<compile_context>
chip_gen: v5e
topology: v5e:2x2
jax: 0.10.0
libtpu: 0.0.40
codegen_flags: <defaults>
</compile_context>

<pallas_src>
import functools

import jax
import jax.numpy as jnp
from jax.experimental import pallas as pl
from jax.experimental.pallas import tpu as pltpu

# ----------------------------- model config ---------------------------------
IMAGE_CHANNELS = 3
AGENT_INDIM = 2
AGENT_OUTDIM = 2
NPAST = 8
NFUTURE = 12
EMBED_IMAGE = 32
EMBED_AGENT = 32
GRID_H = 16          # embed_image_h (reduced from 30 for the small demo)
GRID_W = 16          # embed_image_w
NOISE_DIM = 16
DEC_DIM = EMBED_AGENT + NOISE_DIM  # 48


# --------------------------- fused LSTM kernels ------------------------------
def _lstm_step(x, h, c, emb_w, emb_b, wih, whh, bias, hdim):
    """Linear embed + one LSTM cell (PyTorch gate order i, f, g, o)."""
    emb = jnp.dot(x, emb_w, preferred_element_type=jnp.float32) + emb_b
    gates = (jnp.dot(emb, wih, preferred_element_type=jnp.float32)
             + jnp.dot(h, whh, preferred_element_type=jnp.float32) + bias)
    i_g = jax.nn.sigmoid(gates[:, 0 * hdim:1 * hdim])
    f_g = jax.nn.sigmoid(gates[:, 1 * hdim:2 * hdim])
    g_g = jnp.tanh(gates[:, 2 * hdim:3 * hdim])
    o_g = jax.nn.sigmoid(gates[:, 3 * hdim:4 * hdim])
    c_new = f_g * c + i_g * g_g
    h_new = o_g * jnp.tanh(c_new)
    return h_new, c_new


def _encoder_lstm_kernel(seq_ref, emb_w_ref, emb_b_ref, wih_ref, whh_ref,
                         b_ref, h_out_ref):
    """All NPAST steps of (Linear embed -> LSTM) in one kernel invocation."""
    hdim = whh_ref.shape[0]
    emb_w = emb_w_ref[...]
    emb_b = emb_b_ref[...]
    wih = wih_ref[...]           # (Din, 4H) fused gates -> one matmul / input
    whh = whh_ref[...]
    bias = b_ref[...]
    n_steps, batch = seq_ref.shape[0], seq_ref.shape[1]
    h = jnp.zeros((batch, hdim), jnp.float32)
    c = jnp.zeros((batch, hdim), jnp.float32)
    for t in range(n_steps):             # unrolled; h/c stay in vregs
        x = seq_ref[t]                   # (B_pad, indim)
        h, c = _lstm_step(x, h, c, emb_w, emb_b, wih, whh, bias, hdim)
    h_out_ref[...] = h


def _decoder_lstm_kernel(x0_ref, h0_ref, emb_w_ref, emb_b_ref, wih_ref,
                         whh_ref, b_ref, h2p_w_ref, h2p_b_ref, out_ref):
    """All NFUTURE steps of (Linear embed -> LSTM -> Linear hidden2pos)."""
    hdim = whh_ref.shape[0]
    outdim = h2p_w_ref.shape[1]
    n_steps = out_ref.shape[1] // outdim
    emb_w = emb_w_ref[...]
    emb_b = emb_b_ref[...]
    wih = wih_ref[...]
    whh = whh_ref[...]
    bias = b_ref[...]
    h2p_w = h2p_w_ref[...]
    h2p_b = h2p_b_ref[...]
    h = h0_ref[...]
    c = jnp.zeros_like(h)
    x = x0_ref[...]
    # TODO(synk): original decoder also threads start_pos/start_vel accumulation;
    #             here the per-step relative output feeds the next embedding.
    for t in range(n_steps):
        h, c = _lstm_step(x, h, c, emb_w, emb_b, wih, whh, bias, hdim)
        rel = jnp.dot(h, h2p_w, preferred_element_type=jnp.float32) + h2p_b
        out_ref[:, t * outdim:(t + 1) * outdim] = rel   # single block, one HBM writeback
        x = rel


# --------------------- fused 3x3 conv kernel (channels-first) ----------------
def _conv3x3_cf_kernel(*refs, n_in, grid_w, hw, relu):
    """3x3 same-conv on (Cin, H*W) VMEM tiles as 9 shifted-tap matmuls.

    refs = x_0..x_{n-1} (1, Cin_i, HW), w_0..w_{n-1} (9, Cout, Cin_i),
           masks (9, 1, HW), bias (Cout, 1), out (1, Cout, HW).
    Multiple (x, w) pairs accumulate into one output (no channel concat).
    """
    x_refs = refs[:n_in]
    w_refs = refs[n_in:2 * n_in]
    mask_ref = refs[2 * n_in]
    b_ref = refs[2 * n_in + 1]
    o_ref = refs[2 * n_in + 2]
    cout = o_ref.shape[1]

    acc = jnp.zeros((cout, hw), jnp.float32)
    for idx in range(n_in):
        x = x_refs[idx][0]                       # (Cin, HW) f32, VMEM resident
        for k in range(9):
            dh, dw = k // 3 - 1, k % 3 - 1
            d = (dh * grid_w + dw) % hw          # lane displacement of this tap
            if d == 0:
                shifted = x
            else:
                # shifted[:, i] = x[:, (i + d) mod HW]; wrapped / out-of-image
                # positions are zeroed by the tap mask (== zero padding).
                shifted = jnp.concatenate([x[:, d:], x[:, :d]], axis=1)
            masked = shifted * mask_ref[k]       # (Cin, HW) * (1, HW)
            acc = acc + jnp.dot(w_refs[idx][k].astype(jnp.bfloat16),
                                masked.astype(jnp.bfloat16),
                                preferred_element_type=jnp.float32)
    acc = acc + b_ref[...]
    if relu:
        acc = jnp.maximum(acc, 0.0)
    o_ref[0] = acc                               # lane-dense (Cout, HW) store


def _conv_tap_masks(grid_h, grid_w):
    """(9, 1, H*W) 0/1 masks marking valid (in-image) taps per output cell."""
    hw = grid_h * grid_w
    idx = jnp.arange(hw, dtype=jnp.int32)
    h = idx // grid_w
    w = idx % grid_w
    masks = []
    for k in range(9):
        dh, dw = k // 3 - 1, k % 3 - 1
        valid = ((h + dh >= 0) & (h + dh < grid_h) &
                 (w + dw >= 0) & (w + dw < grid_w))
        masks.append(valid.astype(jnp.float32))
    return jnp.stack(masks, axis=0).reshape(9, 1, hw)


def conv3x3_cf(xs, ws, b, masks, *, grid_w, relu=True):
    """3x3 same conv over flattened-NCHW inputs xs: list of (S, Cin_i, H*W)."""
    num_scenes, _, hw = xs[0].shape
    cout = ws[0].shape[1]
    in_specs = []
    for x in xs:
        in_specs.append(pl.BlockSpec((1, x.shape[1], hw), lambda s: (s, 0, 0)))
    for w in ws:
        in_specs.append(pl.BlockSpec(w.shape, lambda s: (0, 0, 0)))
    in_specs.append(pl.BlockSpec(masks.shape, lambda s: (0, 0, 0)))
    in_specs.append(pl.BlockSpec(b.shape, lambda s: (0, 0)))
    kernel = functools.partial(_conv3x3_cf_kernel, n_in=len(xs),
                               grid_w=grid_w, hw=hw, relu=relu)
    return pl.pallas_call(
        kernel,
        grid=(num_scenes,),
        in_specs=in_specs,
        out_specs=pl.BlockSpec((1, cout, hw), lambda s: (s, 0, 0)),
        out_shape=jax.ShapeDtypeStruct((num_scenes, cout, hw), jnp.float32),
        compiler_params=pltpu.CompilerParams(
            dimension_semantics=("parallel",)),   # v7x: 2 TCs split the scenes
    )(*xs, *ws, masks, b)


# --------------------------- parameters (synthetic) --------------------------
def init_params(key):
    ks = jax.random.split(key, 17)
    s = 0.08

    def rn(k, shape):
        return (s * jax.random.normal(k, shape)).astype(jnp.float32)

    return {
        # AgentEncoderLSTM: Linear(2->32) embed + LSTM(32->32), gates fused i|f|g|o.
        "enc_emb_w": rn(ks[0], (AGENT_INDIM, EMBED_AGENT)),
        "enc_emb_b": rn(ks[1], (1, EMBED_AGENT)),
        "enc_wih":   rn(ks[2], (EMBED_AGENT, 4 * EMBED_AGENT)),
        "enc_whh":   rn(ks[3], (EMBED_AGENT, 4 * EMBED_AGENT)),
        "enc_b":     rn(ks[4], (1, 4 * EMBED_AGENT)),   # b_ih + b_hh summed
        # SemanticImageEncoder conv3x3, tap-major layout (9, Cout, Cin); tap k = kh*3+kw,
        # i.e. img_w[k, co, ci] == torch_weight[co, ci, k//3, k%3].
        "img_w":     rn(ks[5], (9, EMBED_IMAGE, IMAGE_CHANNELS)),
        "img_b":     rn(ks[6], (EMBED_IMAGE, 1)),
        # AgentsMapFusion conv3x3, split along input channels (agent grid | image map)
        # so the channel concat never has to be materialized.
        "fuse_w_a":  rn(ks[7], (9, EMBED_AGENT, EMBED_AGENT)),
        "fuse_w_m":  rn(ks[8], (9, EMBED_AGENT, EMBED_IMAGE)),
        "fuse_b":    rn(ks[9], (EMBED_AGENT, 1)),
        # AgentDecoderLSTM: Linear(2->48) embed, LSTM(48->48), Linear(48->2).
        "dec_emb_w": rn(ks[10], (AGENT_OUTDIM, DEC_DIM)),
        "dec_emb_b": rn(ks[11], (1, DEC_DIM)),
        "dec_wih":   rn(ks[12], (DEC_DIM, 4 * DEC_DIM)),
        "dec_whh":   rn(ks[13], (DEC_DIM, 4 * DEC_DIM)),
        "dec_b":     rn(ks[14], (1, 4 * DEC_DIM)),
        "h2p_w":     rn(ks[15], (DEC_DIM, AGENT_OUTDIM)),
        "h2p_b":     rn(ks[16], (1, AGENT_OUTDIM)),
    }


# ------------------------------ forward pass ---------------------------------
@jax.jit
def _forward_core(params, past_batch, images, scene_ids, cell_ids):
    num_agents = past_batch.shape[0]
    b_pad = ((num_agents + 7) // 8) * 8          # pad agent rows to sublane multiple
    num_scenes, img_c, grid_h, grid_w = images.shape
    hw = grid_h * grid_w

    # ---- AgentEncoderLSTM: one fused kernel over all NPAST steps ----
    seq = jnp.transpose(past_batch, (2, 0, 1))                       # (npast, A, 2)
    seq = jnp.pad(seq, ((0, 0), (0, b_pad - num_agents), (0, 0)))
    h_enc = pl.pallas_call(
        _encoder_lstm_kernel,
        out_shape=jax.ShapeDtypeStruct((b_pad, EMBED_AGENT), jnp.float32),
    )(seq, params["enc_emb_w"], params["enc_emb_b"],
      params["enc_wih"], params["enc_whh"], params["enc_b"])
    agents_indiv = h_enc[:num_agents]                                # (A, 32)

    # ---- SemanticImageEncoder: in-kernel shifted-tap conv3x3 + ReLU ----
    masks = _conv_tap_masks(grid_h, grid_w)
    img_flat = images.reshape(num_scenes, img_c, hw)                 # NCHW -> NC(HW)
    embed_image = conv3x3_cf([img_flat], [params["img_w"]],
                             params["img_b"], masks, grid_w=grid_w, relu=True)

    # ---- SpatialPoolAgent: single vectorized scatter-max onto the grid ----
    # TODO(synk): grid cells are zero-initialized before the max (as in the
    #             previous version); a strict max-pool over agents only would
    #             need -inf init for occupied cells -- reference body not given.
    pooled = jnp.zeros((num_scenes, EMBED_AGENT, hw), jnp.float32)
    pooled = pooled.at[scene_ids, :, cell_ids].max(agents_indiv)

    # ---- AgentsMapFusion: conv over (agent grid | image) without concat ----
    fused = conv3x3_cf([pooled, embed_image],
                       [params["fuse_w_a"], params["fuse_w_m"]],
                       params["fuse_b"], masks, grid_w=grid_w, relu=True)

    # ---- SpatialFetchAgent: single vectorized gather + residual add ----
    fused_agents = fused[scene_ids, :, cell_ids] + agents_indiv      # (A, 32)

    # ---- noise (0.0 * gaussian for non-GAN config) + decoder initial state ----
    dec_h0 = jnp.pad(fused_agents,
                     ((0, b_pad - num_agents), (0, NOISE_DIM)))      # (b_pad, 48)
    last_rel = past_batch[:, :, -1] - past_batch[:, :, -2]           # (A, 2)
    last_rel = jnp.pad(last_rel, ((0, b_pad - num_agents), (0, 0)))

    # ---- AgentDecoderLSTM: one fused kernel over all NFUTURE steps ----
    out_flat = pl.pallas_call(
        _decoder_lstm_kernel,
        out_shape=jax.ShapeDtypeStruct((b_pad, NFUTURE * AGENT_OUTDIM), jnp.float32),
    )(last_rel, dec_h0, params["dec_emb_w"], params["dec_emb_b"],
      params["dec_wih"], params["dec_whh"], params["dec_b"],
      params["h2p_w"], params["h2p_b"])

    decoded = out_flat[:num_agents].reshape(num_agents, NFUTURE, AGENT_OUTDIM)
    decoded = jnp.transpose(decoded, (0, 2, 1))                      # (A, 2, nfuture)
    return decoded


def multi_agent_scene_forward(params, past_batch, future_batch, images,
                              coords, num_agents_list):
    """config='multi_agent_scene', resample=0, use_resnet=0."""
    grid_w = images.shape[3]
    scene_ids, cell_ids = [], []
    for s_idx, na in enumerate(num_agents_list):        # host-side glue, like the
        for j in range(na):                             # reference's list walking
            hy, wx = coords[s_idx][j]
            scene_ids.append(s_idx)
            cell_ids.append(hy * grid_w + wx)
    scene_ids = jnp.asarray(scene_ids, jnp.int32)
    cell_ids = jnp.asarray(cell_ids, jnp.int32)

    decoded = _forward_core(params, past_batch, images, scene_ids, cell_ids)
    return decoded, future_batch, sum(num_agents_list)


# --------------------------------- demo --------------------------------------
if __name__ == "__main__":
    key = jax.random.PRNGKey(0)
    k_par, k_past, k_fut, k_img = jax.random.split(key, 4)

    params = init_params(k_par)

    # 2 scenes; 2 agents in scene 0, 3 agents in scene 1 -> 5 agents total.
    num_agents_list = [2, 3]
    num_agents = sum(num_agents_list)

    past_batch = jax.random.normal(k_past, (num_agents, AGENT_INDIM, NPAST), jnp.float32)
    future_batch = jax.random.normal(k_fut, (num_agents, AGENT_OUTDIM, NFUTURE), jnp.float32)
    images = jax.random.normal(k_img, (len(num_agents_list), IMAGE_CHANNELS, GRID_H, GRID_W),
                               jnp.float32)
    # per-scene agent grid coordinates (row, col) in the HxW embedding grid
    coords = [[(3, 4), (10, 2)],
              [(7, 7), (1, 14), (12, 5)]]

    decoded, fut, n_agents = multi_agent_scene_forward(
        params, past_batch, future_batch, images, coords, num_agents_list)

    decoded = jax.block_until_ready(decoded)
    assert decoded.shape == (num_agents, AGENT_OUTDIM, NFUTURE)
    assert fut.shape == (num_agents, AGENT_OUTDIM, NFUTURE)
    assert n_agents == num_agents
    assert bool(jnp.all(jnp.isfinite(decoded)))
    print("KERNEL_OK")
</pallas_src>

<mosaic_0001>
module attributes {stable_mosaic.version = 11 : i64} {
  func.func @_encoder_lstm_kernel(%arg0: memref<8x8x2xf32, #tpu.memory_space<vmem>>, %arg1: memref<2x32xf32, #tpu.memory_space<vmem>>, %arg2: memref<1x32xf32, #tpu.memory_space<vmem>>, %arg3: memref<32x128xf32, #tpu.memory_space<vmem>>, %arg4: memref<32x128xf32, #tpu.memory_space<vmem>>, %arg5: memref<1x128xf32, #tpu.memory_space<vmem>>, %arg6: memref<8x32xf32, #tpu.memory_space<vmem>>) attributes {dimension_semantics = [], scalar_prefetch = 0 : i64, scratch_operands = 0 : i64, tpu.core_type = #tpu.core_type<tc>} {
    %c0 = arith.constant 0 : index
    %c0_0 = arith.constant 0 : index
    %0 = vector.load %arg1[%c0, %c0_0] : memref<2x32xf32, #tpu.memory_space<vmem>>, vector<2x32xf32>
    %c0_1 = arith.constant 0 : index
    %c0_2 = arith.constant 0 : index
    %1 = vector.load %arg2[%c0_1, %c0_2] : memref<1x32xf32, #tpu.memory_space<vmem>>, vector<1x32xf32>
    %c0_3 = arith.constant 0 : index
    %c0_4 = arith.constant 0 : index
    %2 = vector.load %arg3[%c0_3, %c0_4] : memref<32x128xf32, #tpu.memory_space<vmem>>, vector<32x128xf32>
    %c0_5 = arith.constant 0 : index
    %c0_6 = arith.constant 0 : index
    %3 = vector.load %arg4[%c0_5, %c0_6] : memref<32x128xf32, #tpu.memory_space<vmem>>, vector<32x128xf32>
    %c0_7 = arith.constant 0 : index
    %c0_8 = arith.constant 0 : index
    %4 = vector.load %arg5[%c0_7, %c0_8] : memref<1x128xf32, #tpu.memory_space<vmem>>, vector<1x128xf32>
    %cst = arith.constant 0.000000e+00 : f32
    %5 = vector.broadcast %cst : f32 to vector<8x32xf32>
    %cst_9 = arith.constant 0.000000e+00 : f32
    %6 = vector.broadcast %cst_9 : f32 to vector<8x32xf32>
    %c0_10 = arith.constant 0 : index
    %c0_11 = arith.constant 0 : index
    %c0_12 = arith.constant 0 : index
    %7 = vector.load %arg0[%c0_10, %c0_11, %c0_12] : memref<8x8x2xf32, #tpu.memory_space<vmem>>, vector<1x8x2xf32>
    %8 = vector.shape_cast %7 : vector<1x8x2xf32> to vector<8x2xf32>
    %cst_13 = arith.constant dense<0.000000e+00> : vector<8x32xf32>
    %9 = tpu.matmul %8, %0, %cst_13 {dimension_numbers = #tpu.dot_dimension_numbers<[1], [0], [0], [1], [0, 0, 1, 1], [], []>} : vector<8x2xf32>, vector<2x32xf32>, vector<8x32xf32> -> vector<8x32xf32>
    %10 = vector.broadcast %1 : vector<1x32xf32> to vector<8x32xf32>
    %11 = arith.addf %9, %10 : vector<8x32xf32>
    %cst_14 = arith.constant dense<0.000000e+00> : vector<8x128xf32>
    %12 = tpu.matmul %11, %2, %cst_14 {dimension_numbers = #tpu.dot_dimension_numbers<[1], [0], [0], [1], [0, 0, 1, 1], [], []>} : vector<8x32xf32>, vector<32x128xf32>, vector<8x128xf32> -> vector<8x128xf32>
    %cst_15 = arith.constant dense<0.000000e+00> : vector<8x128xf32>
    %13 = tpu.matmul %5, %3, %cst_15 {dimension_numbers = #tpu.dot_dimension_numbers<[1], [0], [0], [1], [0, 0, 1, 1], [], []>} : vector<8x32xf32>, vector<32x128xf32>, vector<8x128xf32> -> vector<8x128xf32>
    %14 = arith.addf %12, %13 : vector<8x128xf32>
    %15 = vector.broadcast %4 : vector<1x128xf32> to vector<8x128xf32>
    %16 = arith.addf %14, %15 : vector<8x128xf32>
    %17 = vector.extract_strided_slice %16 {offsets = [0, 0], sizes = [8, 32], strides = [1, 1]} : vector<8x128xf32> to vector<8x32xf32>
    %18 = arith.negf %17 : vector<8x32xf32>
    %19 = math.exp %18 : vector<8x32xf32>
    %cst_16 = arith.constant 1.000000e+00 : f32
    %20 = vector.broadcast %cst_16 : f32 to vector<8x32xf32>
    %21 = arith.addf %20, %19 : vector<8x32xf32>
    %22 = arith.divf %20, %21 : vector<8x32xf32>
    %23 = vector.extract_strided_slice %16 {offsets = [0, 32], sizes = [8, 32], strides = [1, 1]} : vector<8x128xf32> to vector<8x32xf32>
    %24 = arith.negf %23 : vector<8x32xf32>
    %25 = math.exp %24 : vector<8x32xf32>
    %cst_17 = arith.constant 1.000000e+00 : f32
    %26 = vector.broadcast %cst_17 : f32 to vector<8x32xf32>
    %27 = arith.addf %26, %25 : vector<8x32xf32>
    %28 = arith.divf %26, %27 : vector<8x32xf32>
    %29 = vector.extract_strided_slice %16 {offsets = [0, 64], sizes = [8, 32], strides = [1, 1]} : vector<8x128xf32> to vector<8x32xf32>
    %30 = math.tanh %29 : vector<8x32xf32>
    %31 = vector.extract_strided_slice %16 {offsets = [0, 96], sizes = [8, 32], strides = [1, 1]} : vector<8x128xf32> to vector<8x32xf32>
    %32 = arith.negf %31 : vector<8x32xf32>
    %33 = math.exp %32 : vector<8x32xf32>
    %cst_18 = arith.constant 1.000000e+00 : f32
    %34 = vector.broadcast %cst_18 : f32 to vector<8x32xf32>
    %35 = arith.addf %34, %33 : vector<8x32xf32>
    %36 = arith.divf %34, %35 : vector<8x32xf32>
    %37 = arith.mulf %28, %6 : vector<8x32xf32>
    %38 = arith.mulf %22, %30 : vector<8x32xf32>
    %39 = arith.addf %37, %38 : vector<8x32xf32>
    %40 = math.tanh %39 : vector<8x32xf32>
    %41 = arith.mulf %36, %40 : vector<8x32xf32>
    %c1 = arith.constant 1 : index
    %c0_19 = arith.constant 0 : index
    %c0_20 = arith.constant 0 : index
    %42 = vector.load %arg0[%c1, %c0_19, %c0_20] : memref<8x8x2xf32, #tpu.memory_space<vmem>>, vector<1x8x2xf32>
    %43 = vector.shape_cast %42 : vector<1x8x2xf32> to vector<8x2xf32>
    %cst_21 = arith.constant dense<0.000000e+00> : vector<8x32xf32>
    %44 = tpu.matmul %43, %0, %cst_21 {dimension_numbers = #tpu.dot_dimension_numbers<[1], [0], [0], [1], [0, 0, 1, 1], [], []>} : vector<8x2xf32>, vector<2x32xf32>, vector<8x32xf32> -> vector<8x32xf32>
    %45 = vector.broadcast %1 : vector<1x32xf32> to vector<8x32xf32>
    %46 = arith.addf %44, %45 : vector<8x32xf32>
    %cst_22 = arith.constant dense<0.000000e+00> : vector<8x128xf32>
    %47 = tpu.matmul %46, %2, %cst_22 {dimension_numbers = #tpu.dot_dimension_numbers<[1], [0], [0], [1], [0, 0, 1, 1], [], []>} : vector<8x32xf32>, vector<32x128xf32>, vector<8x128xf32> -> vector<8x128xf32>
    %cst_23 = arith.constant dense<0.000000e+00> : vector<8x128xf32>
    %48 = tpu.matmul %41, %3, %cst_23 {dimension_numbers = #tpu.dot_dimension_numbers<[1], [0], [0], [1], [0, 0, 1, 1], [], []>} : vector<8x32xf32>, vector<32x128xf32>, vector<8x128xf32> -> vector<8x128xf32>
    %49 = arith.addf %47, %48 : vector<8x128xf32>
    %50 = vector.broadcast %4 : vector<1x128xf32> to vector<8x128xf32>
    %51 = arith.addf %49, %50 : vector<8x128xf32>
    %52 = vector.extract_strided_slice %51 {offsets = [0, 0], sizes = [8, 32], strides = [1, 1]} : vector<8x128xf32> to vector<8x32xf32>
    %53 = arith.negf %52 : vector<8x32xf32>
    %54 = math.exp %53 : vector<8x32xf32>
    %cst_24 = arith.constant 1.000000e+00 : f32
    %55 = vector.broadcast %cst_24 : f32 to vector<8x32xf32>
    %56 = arith.addf %55, %54 : vector<8x32xf32>
    %57 = arith.divf %55, %56 : vector<8x32xf32>
    %58 = vector.extract_strided_slice %51 {offsets = [0, 32], sizes = [8, 32], strides = [1, 1]} : vector<8x128xf32> to vector<8x32xf32>
    %59 = arith.negf %58 : vector<8x32xf32>
    %60 = math.exp %59 : vector<8x32xf32>
    %cst_25 = arith.constant 1.000000e+00 : f32
    %61 = vector.broadcast %cst_25 : f32 to vector<8x32xf32>
    %62 = arith.addf %61, %60 : vector<8x32xf32>
    %63 = arith.divf %61, %62 : vector<8x32xf32>
    %64 = vector.extract_strided_slice %51 {offsets = [0, 64], sizes = [8, 32], strides = [1, 1]} : vector<8x128xf32> to vector<8x32xf32>
    %65 = math.tanh %64 : vector<8x32xf32>
    %66 = vector.extract_strided_slice %51 {offsets = [0, 96], sizes = [8, 32], strides = [1, 1]} : vector<8x128xf32> to vector<8x32xf32>
    %67 = arith.negf %66 : vector<8x32xf32>
    %68 = math.exp %67 : vector<8x32xf32>
    %cst_26 = arith.constant 1.000000e+00 : f32
    %69 = vector.broadcast %cst_26 : f32 to vector<8x32xf32>
    %70 = arith.addf %69, %68 : vector<8x32xf32>
    %71 = arith.divf %69, %70 : vector<8x32xf32>
    %72 = arith.mulf %63, %39 : vector<8x32xf32>
    %73 = arith.mulf %57, %65 : vector<8x32xf32>
    %74 = arith.addf %72, %73 : vector<8x32xf32>
    %75 = math.tanh %74 : vector<8x32xf32>
    %76 = arith.mulf %71, %75 : vector<8x32xf32>
    %c2 = arith.constant 2 : index
    %c0_27 = arith.constant 0 : index
    %c0_28 = arith.constant 0 : index
    %77 = vector.load %arg0[%c2, %c0_27, %c0_28] : memref<8x8x2xf32, #tpu.memory_space<vmem>>, vector<1x8x2xf32>
    %78 = vector.shape_cast %77 : vector<1x8x2xf32> to vector<8x2xf32>
    %cst_29 = arith.constant dense<0.000000e+00> : vector<8x32xf32>
    %79 = tpu.matmul %78, %0, %cst_29 {dimension_numbers = #tpu.dot_dimension_numbers<[1], [0], [0], [1], [0, 0, 1, 1], [], []>} : vector<8x2xf32>, vector<2x32xf32>, vector<8x32xf32> -> vector<8x32xf32>
    %80 = vector.broadcast %1 : vector<1x32xf32> to vector<8x32xf32>
    %81 = arith.addf %79, %80 : vector<8x32xf32>
    %cst_30 = arith.constant dense<0.000000e+00> : vector<8x128xf32>
    %82 = tpu.matmul %81, %2, %cst_30 {dimension_numbers = #tpu.dot_dimension_numbers<[1], [0], [0], [1], [0, 0, 1, 1], [], []>} : vector<8x32xf32>, vector<32x128xf32>, vector<8x128xf32> -> vector<8x128xf32>
    %cst_31 = arith.constant dense<0.000000e+00> : vector<8x128xf32>
    %83 = tpu.matmul %76, %3, %cst_31 {dimension_numbers = #tpu.dot_dimension_numbers<[1], [0], [0], [1], [0, 0, 1, 1], [], []>} : vector<8x32xf32>, vector<32x128xf32>, vector<8x128xf32> -> vector<8x128xf32>
    %84 = arith.addf %82, %83 : vector<8x128xf32>
    %85 = vector.broadcast %4 : vector<1x128xf32> to vector<8x128xf32>
    %86 = arith.addf %84, %85 : vector<8x128xf32>
    %87 = vector.extract_strided_slice %86 {offsets = [0, 0], sizes = [8, 32], strides = [1, 1]} : vector<8x128xf32> to vector<8x32xf32>
    %88 = arith.negf %87 : vector<8x32xf32>
    %89 = math.exp %88 : vector<8x32xf32>
    %cst_32 = arith.constant 1.000000e+00 : f32
    %90 = vector.broadcast %cst_32 : f32 to vector<8x32xf32>
    %91 = arith.addf %90, %89 : vector<8x32xf32>
    %92 = arith.divf %90, %91 : vector<8x32xf32>
    %93 = vector.extract_strided_slice %86 {offsets = [0, 32], sizes = [8, 32], strides = [1, 1]} : vector<8x128xf32> to vector<8x32xf32>
    %94 = arith.negf %93 : vector<8x32xf32>
    %95 = math.exp %94 : vector<8x32xf32>
    %cst_33 = arith.constant 1.000000e+00 : f32
    %96 = vector.broadcast %cst_33 : f32 to vector<8x32xf32>
    %97 = arith.addf %96, %95 : vector<8x32xf32>
    %98 = arith.divf %96, %97 : vector<8x32xf32>
    %99 = vector.extract_strided_slice %86 {offsets = [0, 64], sizes = [8, 32], strides = [1, 1]} : vector<8x128xf32> to vector<8x32xf32>
    %100 = math.tanh %99 : vector<8x32xf32>
    %101 = vector.extract_strided_slice %86 {offsets = [0, 96], sizes = [8, 32], strides = [1, 1]} : vector<8x128xf32> to vector<8x32xf32>
    %102 = arith.negf %101 : vector<8x32xf32>
    %103 = math.exp %102 : vector<8x32xf32>
    %cst_34 = arith.constant 1.000000e+00 : f32
    %104 = vector.broadcast %cst_34 : f32 to vector<8x32xf32>
    %105 = arith.addf %104, %103 : vector<8x32xf32>
    %106 = arith.divf %104, %105 : vector<8x32xf32>
    %107 = arith.mulf %98, %74 : vector<8x32xf32>
    %108 = arith.mulf %92, %100 : vector<8x32xf32>
    %109 = arith.addf %107, %108 : vector<8x32xf32>
    %110 = math.tanh %109 : vector<8x32xf32>
    %111 = arith.mulf %106, %110 : vector<8x32xf32>
    %c3 = arith.constant 3 : index
    %c0_35 = arith.constant 0 : index
    %c0_36 = arith.constant 0 : index
    %112 = vector.load %arg0[%c3, %c0_35, %c0_36] : memref<8x8x2xf32, #tpu.memory_space<vmem>>, vector<1x8x2xf32>
    %113 = vector.shape_cast %112 : vector<1x8x2xf32> to vector<8x2xf32>
    %cst_37 = arith.constant dense<0.000000e+00> : vector<8x32xf32>
    %114 = tpu.matmul %113, %0, %cst_37 {dimension_numbers = #tpu.dot_dimension_numbers<[1], [0], [0], [1], [0, 0, 1, 1], [], []>} : vector<8x2xf32>, vector<2x32xf32>, vector<8x32xf32> -> vector<8x32xf32>
    %115 = vector.broadcast %1 : vector<1x32xf32> to vector<8x32xf32>
    %116 = arith.addf %114, %115 : vector<8x32xf32>
    %cst_38 = arith.constant dense<0.000000e+00> : vector<8x128xf32>
    %117 = tpu.matmul %116, %2, %cst_38 {dimension_numbers = #tpu.dot_dimension_numbers<[1], [0], [0], [1], [0, 0, 1, 1], [], []>} : vector<8x32xf32>, vector<32x128xf32>, vector<8x128xf32> -> vector<8x128xf32>
    %cst_39 = arith.constant dense<0.000000e+00> : vector<8x128xf32>
    %118 = tpu.matmul %111, %3, %cst_39 {dimension_numbers = #tpu.dot_dimension_numbers<[1], [0], [0], [1], [0, 0, 1, 1], [], []>} : vector<8x32xf32>, vector<32x128xf32>, vector<8x128xf32> -> vector<8x128xf32>
    %119 = arith.addf %117, %118 : vector<8x128xf32>
    %120 = vector.broadcast %4 : vector<1x128xf32> to vector<8x128xf32>
    %121 = arith.addf %119, %120 : vector<8x128xf32>
    %122 = vector.extract_strided_slice %121 {offsets = [0, 0], sizes = [8, 32], strides = [1, 1]} : vector<8x128xf32> to vector<8x32xf32>
    %123 = arith.negf %122 : vector<8x32xf32>
    %124 = math.exp %123 : vector<8x32xf32>
    %cst_40 = arith.constant 1.000000e+00 : f32
    %125 = vector.broadcast %cst_40 : f32 to vector<8x32xf32>
    %126 = arith.addf %125, %124 : vector<8x32xf32>
    %127 = arith.divf %125, %126 : vector<8x32xf32>
    %128 = vector.extract_strided_slice %121 {offsets = [0, 32], sizes = [8, 32], strides = [1, 1]} : vector<8x128xf32> to vector<8x32xf32>
    %129 = arith.negf %128 : vector<8x32xf32>
    %130 = math.exp %129 : vector<8x32xf32>
    %cst_41 = arith.constant 1.000000e+00 : f32
    %131 = vector.broadcast %cst_41 : f32 to vector<8x32xf32>
    %132 = arith.addf %131, %130 : vector<8x32xf32>
    %133 = arith.divf %131, %132 : vector<8x32xf32>
    %134 = vector.extract_strided_slice %121 {offsets = [0, 64], sizes = [8, 32], strides = [1, 1]} : vector<8x128xf32> to vector<8x32xf32>
    %135 = math.tanh %134 : vector<8x32xf32>
    %136 = vector.extract_strided_slice %121 {offsets = [0, 96], sizes = [8, 32], strides = [1, 1]} : vector<8x128xf32> to vector<8x32xf32>
    %137 = arith.negf %136 : vector<8x32xf32>
    %138 = math.exp %137 : vector<8x32xf32>
    %cst_42 = arith.constant 1.000000e+00 : f32
    %139 = vector.broadcast %cst_42 : f32 to vector<8x32xf32>
    %140 = arith.addf %139, %138 : vector<8x32xf32>
    %141 = arith.divf %139, %140 : vector<8x32xf32>
    %142 = arith.mulf %133, %109 : vector<8x32xf32>
    %143 = arith.mulf %127, %135 : vector<8x32xf32>
    %144 = arith.addf %142, %143 : vector<8x32xf32>
    %145 = math.tanh %144 : vector<8x32xf32>
    %146 = arith.mulf %141, %145 : vector<8x32xf32>
    %c4 = arith.constant 4 : index
    %c0_43 = arith.constant 0 : index
    %c0_44 = arith.constant 0 : index
    %147 = vector.load %arg0[%c4, %c0_43, %c0_44] : memref<8x8x2xf32, #tpu.memory_space<vmem>>, vector<1x8x2xf32>
    %148 = vector.shape_cast %147 : vector<1x8x2xf32> to vector<8x2xf32>
    %cst_45 = arith.constant dense<0.000000e+00> : vector<8x32xf32>
    %149 = tpu.matmul %148, %0, %cst_45 {dimension_numbers = #tpu.dot_dimension_numbers<[1], [0], [0], [1], [0, 0, 1, 1], [], []>} : vector<8x2xf32>, vector<2x32xf32>, vector<8x32xf32> -> vector<8x32xf32>
    %150 = vector.broadcast %1 : vector<1x32xf32> to vector<8x32xf32>
    %151 = arith.addf %149, %150 : vector<8x32xf32>
    %cst_46 = arith.constant dense<0.000000e+00> : vector<8x128xf32>
    %152 = tpu.matmul %151, %2, %cst_46 {dimension_numbers = #tpu.dot_dimension_numbers<[1], [0], [0], [1], [0, 0, 1, 1], [], []>} : vector<8x32xf32>, vector<32x128xf32>, vector<8x128xf32> -> vector<8x128xf32>
    %cst_47 = arith.constant dense<0.000000e+00> : vector<8x128xf32>
    %153 = tpu.matmul %146, %3, %cst_47 {dimension_numbers = #tpu.dot_dimension_numbers<[1], [0], [0], [1], [0, 0, 1, 1], [], []>} : vector<8x32xf32>, vector<32x128xf32>, vector<8x128xf32> -> vector<8x128xf32>
    %154 = arith.addf %152, %153 : vector<8x128xf32>
    %155 = vector.broadcast %4 : vector<1x128xf32> to vector<8x128xf32>
    %156 = arith.addf %154, %155 : vector<8x128xf32>
    %157 = vector.extract_strided_slice %156 {offsets = [0, 0], sizes = [8, 32], strides = [1, 1]} : vector<8x128xf32> to vector<8x32xf32>
    %158 = arith.negf %157 : vector<8x32xf32>
    %159 = math.exp %158 : vector<8x32xf32>
    %cst_48 = arith.constant 1.000000e+00 : f32
    %160 = vector.broadcast %cst_48 : f32 to vector<8x32xf32>
    %161 = arith.addf %160, %159 : vector<8x32xf32>
    %162 = arith.divf %160, %161 : vector<8x32xf32>
    %163 = vector.extract_strided_slice %156 {offsets = [0, 32], sizes = [8, 32], strides = [1, 1]} : vector<8x128xf32> to vector<8x32xf32>
    %164 = arith.negf %163 : vector<8x32xf32>
    %165 = math.exp %164 : vector<8x32xf32>
    %cst_49 = arith.constant 1.000000e+00 : f32
    %166 = vector.broadcast %cst_49 : f32 to vector<8x32xf32>
    %167 = arith.addf %166, %165 : vector<8x32xf32>
    %168 = arith.divf %166, %167 : vector<8x32xf32>
    %169 = vector.extract_strided_slice %156 {offsets = [0, 64], sizes = [8, 32], strides = [1, 1]} : vector<8x128xf32> to vector<8x32xf32>
    %170 = math.tanh %169 : vector<8x32xf32>
    %171 = vector.extract_strided_slice %156 {offsets = [0, 96], sizes = [8, 32], strides = [1, 1]} : vector<8x128xf32> to vector<8x32xf32>
    %172 = arith.negf %171 : vector<8x32xf32>
    %173 = math.exp %172 : vector<8x32xf32>
    %cst_50 = arith.constant 1.000000e+00 : f32
    %174 = vector.broadcast %cst_50 : f32 to vector<8x32xf32>
    %175 = arith.addf %174, %173 : vector<8x32xf32>
    %176 = arith.divf %174, %175 : vector<8x32xf32>
    %177 = arith.mulf %168, %144 : vector<8x32xf32>
    %178 = arith.mulf %162, %170 : vector<8x32xf32>
    %179 = arith.addf %177, %178 : vector<8x32xf32>
    %180 = math.tanh %179 : vector<8x32xf32>
    %181 = arith.mulf %176, %180 : vector<8x32xf32>
    %c5 = arith.constant 5 : index
    %c0_51 = arith.constant 0 : index
    %c0_52 = arith.constant 0 : index
    %182 = vector.load %arg0[%c5, %c0_51, %c0_52] : memref<8x8x2xf32, #tpu.memory_space<vmem>>, vector<1x8x2xf32>
    %183 = vector.shape_cast %182 : vector<1x8x2xf32> to vector<8x2xf32>
    %cst_53 = arith.constant dense<0.000000e+00> : vector<8x32xf32>
    %184 = tpu.matmul %183, %0, %cst_53 {dimension_numbers = #tpu.dot_dimension_numbers<[1], [0], [0], [1], [0, 0, 1, 1], [], []>} : vector<8x2xf32>, vector<2x32xf32>, vector<8x32xf32> -> vector<8x32xf32>
    %185 = vector.broadcast %1 : vector<1x32xf32> to vector<8x32xf32>
    %186 = arith.addf %184, %185 : vector<8x32xf32>
    %cst_54 = arith.constant dense<0.000000e+00> : vector<8x128xf32>
    %187 = tpu.matmul %186, %2, %cst_54 {dimension_numbers = #tpu.dot_dimension_numbers<[1], [0], [0], [1], [0, 0, 1, 1], [], []>} : vector<8x32xf32>, vector<32x128xf32>, vector<8x128xf32> -> vector<8x128xf32>
    %cst_55 = arith.constant dense<0.000000e+00> : vector<8x128xf32>
    %188 = tpu.matmul %181, %3, %cst_55 {dimension_numbers = #tpu.dot_dimension_numbers<[1], [0], [0], [1], [0, 0, 1, 1], [], []>} : vector<8x32xf32>, vector<32x128xf32>, vector<8x128xf32> -> vector<8x128xf32>
    %189 = arith.addf %187, %188 : vector<8x128xf32>
    %190 = vector.broadcast %4 : vector<1x128xf32> to vector<8x128xf32>
    %191 = arith.addf %189, %190 : vector<8x128xf32>
    %192 = vector.extract_strided_slice %191 {offsets = [0, 0], sizes = [8, 32], strides = [1, 1]} : vector<8x128xf32> to vector<8x32xf32>
    %193 = arith.negf %192 : vector<8x32xf32>
    %194 = math.exp %193 : vector<8x32xf32>
    %cst_56 = arith.constant 1.000000e+00 : f32
    %195 = vector.broadcast %cst_56 : f32 to vector<8x32xf32>
    %196 = arith.addf %195, %194 : vector<8x32xf32>
    %197 = arith.divf %195, %196 : vector<8x32xf32>
    %198 = vector.extract_strided_slice %191 {offsets = [0, 32], sizes = [8, 32], strides = [1, 1]} : vector<8x128xf32> to vector<8x32xf32>
    %199 = arith.negf %198 : vector<8x32xf32>
    %200 = math.exp %199 : vector<8x32xf32>
    %cst_57 = arith.constant 1.000000e+00 : f32
    %201 = vector.broadcast %cst_57 : f32 to vector<8x32xf32>
    %202 = arith.addf %201, %200 : vector<8x32xf32>
    %203 = arith.divf %201, %202 : vector<8x32xf32>
    %204 = vector.extract_strided_slice %191 {offsets = [0, 64], sizes = [8, 32], strides = [1, 1]} : vector<8x128xf32> to vector<8x32xf32>
    %205 = math.tanh %204 : vector<8x32xf32>
    %206 = vector.extract_strided_slice %191 {offsets = [0, 96], sizes = [8, 32], strides = [1, 1]} : vector<8x128xf32> to vector<8x32xf32>
    %207 = arith.negf %206 : vector<8x32xf32>
    %208 = math.exp %207 : vector<8x32xf32>
    %cst_58 = arith.constant 1.000000e+00 : f32
    %209 = vector.broadcast %cst_58 : f32 to vector<8x32xf32>
    %210 = arith.addf %209, %208 : vector<8x32xf32>
    %211 = arith.divf %209, %210 : vector<8x32xf32>
    %212 = arith.mulf %203, %179 : vector<8x32xf32>
    %213 = arith.mulf %197, %205 : vector<8x32xf32>
    %214 = arith.addf %212, %213 : vector<8x32xf32>
    %215 = math.tanh %214 : vector<8x32xf32>
    %216 = arith.mulf %211, %215 : vector<8x32xf32>
    %c6 = arith.constant 6 : index
    %c0_59 = arith.constant 0 : index
    %c0_60 = arith.constant 0 : index
    %217 = vector.load %arg0[%c6, %c0_59, %c0_60] : memref<8x8x2xf32, #tpu.memory_space<vmem>>, vector<1x8x2xf32>
    %218 = vector.shape_cast %217 : vector<1x8x2xf32> to vector<8x2xf32>
    %cst_61 = arith.constant dense<0.000000e+00> : vector<8x32xf32>
    %219 = tpu.matmul %218, %0, %cst_61 {dimension_numbers = #tpu.dot_dimension_numbers<[1], [0], [0], [1], [0, 0, 1, 1], [], []>} : vector<8x2xf32>, vector<2x32xf32>, vector<8x32xf32> -> vector<8x32xf32>
    %220 = vector.broadcast %1 : vector<1x32xf32> to vector<8x32xf32>
    %221 = arith.addf %219, %220 : vector<8x32xf32>
    %cst_62 = arith.constant dense<0.000000e+00> : vector<8x128xf32>
    %222 = tpu.matmul %221, %2, %cst_62 {dimension_numbers = #tpu.dot_dimension_numbers<[1], [0], [0], [1], [0, 0, 1, 1], [], []>} : vector<8x32xf32>, vector<32x128xf32>, vector<8x128xf32> -> vector<8x128xf32>
    %cst_63 = arith.constant dense<0.000000e+00> : vector<8x128xf32>
    %223 = tpu.matmul %216, %3, %cst_63 {dimension_numbers = #tpu.dot_dimension_numbers<[1], [0], [0], [1], [0, 0, 1, 1], [], []>} : vector<8x32xf32>, vector<32x128xf32>, vector<8x128xf32> -> vector<8x128xf32>
    %224 = arith.addf %222, %223 : vector<8x128xf32>
    %225 = vector.broadcast %4 : vector<1x128xf32> to vector<8x128xf32>
    %226 = arith.addf %224, %225 : vector<8x128xf32>
    %227 = vector.extract_strided_slice %226 {offsets = [0, 0], sizes = [8, 32], strides = [1, 1]} : vector<8x128xf32> to vector<8x32xf32>
    %228 = arith.negf %227 : vector<8x32xf32>
    %229 = math.exp %228 : vector<8x32xf32>
    %cst_64 = arith.constant 1.000000e+00 : f32
    %230 = vector.broadcast %cst_64 : f32 to vector<8x32xf32>
    %231 = arith.addf %230, %229 : vector<8x32xf32>
    %232 = arith.divf %230, %231 : vector<8x32xf32>
    %233 = vector.extract_strided_slice %226 {offsets = [0, 32], sizes = [8, 32], strides = [1, 1]} : vector<8x128xf32> to vector<8x32xf32>
    %234 = arith.negf %233 : vector<8x32xf32>
    %235 = math.exp %234 : vector<8x32xf32>
    %cst_65 = arith.constant 1.000000e+00 : f32
    %236 = vector.broadcast %cst_65 : f32 to vector<8x32xf32>
    %237 = arith.addf %236, %235 : vector<8x32xf32>
    %238 = arith.divf %236, %237 : vector<8x32xf32>
    %239 = vector.extract_strided_slice %226 {offsets = [0, 64], sizes = [8, 32], strides = [1, 1]} : vector<8x128xf32> to vector<8x32xf32>
    %240 = math.tanh %239 : vector<8x32xf32>
    %241 = vector.extract_strided_slice %226 {offsets = [0, 96], sizes = [8, 32], strides = [1, 1]} : vector<8x128xf32> to vector<8x32xf32>
    %242 = arith.negf %241 : vector<8x32xf32>
    %243 = math.exp %242 : vector<8x32xf32>
    %cst_66 = arith.constant 1.000000e+00 : f32
    %244 = vector.broadcast %cst_66 : f32 to vector<8x32xf32>
    %245 = arith.addf %244, %243 : vector<8x32xf32>
    %246 = arith.divf %244, %245 : vector<8x32xf32>
    %247 = arith.mulf %238, %214 : vector<8x32xf32>
    %248 = arith.mulf %232, %240 : vector<8x32xf32>
    %249 = arith.addf %247, %248 : vector<8x32xf32>
    %250 = math.tanh %249 : vector<8x32xf32>
    %251 = arith.mulf %246, %250 : vector<8x32xf32>
    %c7 = arith.constant 7 : index
    %c0_67 = arith.constant 0 : index
    %c0_68 = arith.constant 0 : index
    %252 = vector.load %arg0[%c7, %c0_67, %c0_68] : memref<8x8x2xf32, #tpu.memory_space<vmem>>, vector<1x8x2xf32>
    %253 = vector.shape_cast %252 : vector<1x8x2xf32> to vector<8x2xf32>
    %cst_69 = arith.constant dense<0.000000e+00> : vector<8x32xf32>
    %254 = tpu.matmul %253, %0, %cst_69 {dimension_numbers = #tpu.dot_dimension_numbers<[1], [0], [0], [1], [0, 0, 1, 1], [], []>} : vector<8x2xf32>, vector<2x32xf32>, vector<8x32xf32> -> vector<8x32xf32>
    %255 = vector.broadcast %1 : vector<1x32xf32> to vector<8x32xf32>
    %256 = arith.addf %254, %255 : vector<8x32xf32>
    %cst_70 = arith.constant dense<0.000000e+00> : vector<8x128xf32>
    %257 = tpu.matmul %256, %2, %cst_70 {dimension_numbers = #tpu.dot_dimension_numbers<[1], [0], [0], [1], [0, 0, 1, 1], [], []>} : vector<8x32xf32>, vector<32x128xf32>, vector<8x128xf32> -> vector<8x128xf32>
    %cst_71 = arith.constant dense<0.000000e+00> : vector<8x128xf32>
    %258 = tpu.matmul %251, %3, %cst_71 {dimension_numbers = #tpu.dot_dimension_numbers<[1], [0], [0], [1], [0, 0, 1, 1], [], []>} : vector<8x32xf32>, vector<32x128xf32>, vector<8x128xf32> -> vector<8x128xf32>
    %259 = arith.addf %257, %258 : vector<8x128xf32>
    %260 = vector.broadcast %4 : vector<1x128xf32> to vector<8x128xf32>
    %261 = arith.addf %259, %260 : vector<8x128xf32>
    %262 = vector.extract_strided_slice %261 {offsets = [0, 0], sizes = [8, 32], strides = [1, 1]} : vector<8x128xf32> to vector<8x32xf32>
    %263 = arith.negf %262 : vector<8x32xf32>
    %264 = math.exp %263 : vector<8x32xf32>
    %cst_72 = arith.constant 1.000000e+00 : f32
    %265 = vector.broadcast %cst_72 : f32 to vector<8x32xf32>
    %266 = arith.addf %265, %264 : vector<8x32xf32>
    %267 = arith.divf %265, %266 : vector<8x32xf32>
    %268 = vector.extract_strided_slice %261 {offsets = [0, 32], sizes = [8, 32], strides = [1, 1]} : vector<8x128xf32> to vector<8x32xf32>
    %269 = arith.negf %268 : vector<8x32xf32>
    %270 = math.exp %269 : vector<8x32xf32>
    %cst_73 = arith.constant 1.000000e+00 : f32
    %271 = vector.broadcast %cst_73 : f32 to vector<8x32xf32>
    %272 = arith.addf %271, %270 : vector<8x32xf32>
    %273 = arith.divf %271, %272 : vector<8x32xf32>
    %274 = vector.extract_strided_slice %261 {offsets = [0, 64], sizes = [8, 32], strides = [1, 1]} : vector<8x128xf32> to vector<8x32xf32>
    %275 = math.tanh %274 : vector<8x32xf32>
    %276 = vector.extract_strided_slice %261 {offsets = [0, 96], sizes = [8, 32], strides = [1, 1]} : vector<8x128xf32> to vector<8x32xf32>
    %277 = arith.negf %276 : vector<8x32xf32>
    %278 = math.exp %277 : vector<8x32xf32>
    %cst_74 = arith.constant 1.000000e+00 : f32
    %279 = vector.broadcast %cst_74 : f32 to vector<8x32xf32>
    %280 = arith.addf %279, %278 : vector<8x32xf32>
    %281 = arith.divf %279, %280 : vector<8x32xf32>
    %282 = arith.mulf %273, %249 : vector<8x32xf32>
    %283 = arith.mulf %267, %275 : vector<8x32xf32>
    %284 = arith.addf %282, %283 : vector<8x32xf32>
    %285 = math.tanh %284 : vector<8x32xf32>
    %286 = arith.mulf %281, %285 : vector<8x32xf32>
    %c0_75 = arith.constant 0 : index
    %c0_76 = arith.constant 0 : index
    %287 = vector.load %arg6[%c0_75, %c0_76] : memref<8x32xf32, #tpu.memory_space<vmem>>, vector<8x32xf32>
    tpu.vector_store %arg6[%c0_75, %c0_76], %286 {strides = array<i32>} : memref<8x32xf32, #tpu.memory_space<vmem>>, vector<8x32xf32>,
    return
  }
}

module attributes {stable_mosaic.version = 11 : i64} {
  func.func @_conv3x3_cf_kernel(%arg0: i32, %arg1: memref<1x3x256xf32, #tpu.memory_space<vmem>>, %arg2: memref<9x32x3xf32, #tpu.memory_space<vmem>>, %arg3: memref<9x1x256xf32, #tpu.memory_space<vmem>>, %arg4: memref<32x1xf32, #tpu.memory_space<vmem>>, %arg5: memref<1x32x256xf32, #tpu.memory_space<vmem>>) attributes {dimension_semantics = [#tpu.dimension_semantics<parallel>], iteration_bounds = array<i64: 2>, scalar_prefetch = 0 : i64, scratch_operands = 0 : i64, tpu.core_type = #tpu.core_type<tc>, window_params = [{transform_indices = @transform_0, window_bounds = array<i64: 1, 3, 256>}, {pipeline_mode = #tpu.pipeline_mode<synchronous>, transform_indices = @transform_1, window_bounds = array<i64: 9, 32, 3>}, {pipeline_mode = #tpu.pipeline_mode<synchronous>, transform_indices = @transform_2, window_bounds = array<i64: 9, 1, 256>}, {pipeline_mode = #tpu.pipeline_mode<synchronous>, transform_indices = @transform_3, window_bounds = array<i64: 32, 1>}, {transform_indices = @transform_4, window_bounds = array<i64: 1, 32, 256>}]} {
    %cst = arith.constant 0.000000e+00 : f32
    %0 = vector.broadcast %cst : f32 to vector<32x256xf32>
    %c0 = arith.constant 0 : index
    %c0_0 = arith.constant 0 : index
    %c0_1 = arith.constant 0 : index
    %1 = vector.load %arg1[%c0, %c0_0, %c0_1] : memref<1x3x256xf32, #tpu.memory_space<vmem>>, vector<1x3x256xf32>
    %2 = vector.shape_cast %1 : vector<1x3x256xf32> to vector<3x256xf32>
    %3 = vector.extract_strided_slice %2 {offsets = [0, 239], sizes = [3, 17], strides = [1, 1]} : vector<3x256xf32> to vector<3x17xf32>
    %4 = vector.extract_strided_slice %2 {offsets = [0, 0], sizes = [3, 239], strides = [1, 1]} : vector<3x256xf32> to vector<3x239xf32>
    %5 = tpu.concatenate %3, %4 in 1 : vector<3x17xf32>, vector<3x239xf32> -> vector<3x256xf32>
    %c0_2 = arith.constant 0 : index
    %c0_3 = arith.constant 0 : index
    %c0_4 = arith.constant 0 : index
    %6 = vector.load %arg3[%c0_2, %c0_3, %c0_4] : memref<9x1x256xf32, #tpu.memory_space<vmem>>, vector<1x1x256xf32>
    %7 = vector.shape_cast %6 : vector<1x1x256xf32> to vector<1x256xf32>
    %8 = vector.broadcast %7 : vector<1x256xf32> to vector<3x256xf32>
    %9 = arith.mulf %5, %8 : vector<3x256xf32>
    %c0_5 = arith.constant 0 : index
    %c0_6 = arith.constant 0 : index
    %c0_7 = arith.constant 0 : index
    %10 = vector.load %arg2[%c0_5, %c0_6, %c0_7] : memref<9x32x3xf32, #tpu.memory_space<vmem>>, vector<1x32x3xf32>
    %11 = vector.shape_cast %10 : vector<1x32x3xf32> to vector<32x3xf32>
    %12 = arith.truncf %11 : vector<32x3xf32> to vector<32x3xbf16>
    %13 = arith.truncf %9 : vector<3x256xf32> to vector<3x256xbf16>
    %cst_8 = arith.constant dense<0.000000e+00> : vector<32x256xf32>
    %14 = tpu.matmul %12, %13, %cst_8 {dimension_numbers = #tpu.dot_dimension_numbers<[1], [0], [0], [1], [0, 0, 1, 1], [], []>} : vector<32x3xbf16>, vector<3x256xbf16>, vector<32x256xf32> -> vector<32x256xf32>
    %15 = arith.addf %0, %14 : vector<32x256xf32>
    %16 = vector.extract_strided_slice %2 {offsets = [0, 240], sizes = [3, 16], strides = [1, 1]} : vector<3x256xf32> to vector<3x16xf32>
    %17 = vector.extract_strided_slice %2 {offsets = [0, 0], sizes = [3, 240], strides = [1, 1]} : vector<3x256xf32> to vector<3x240xf32>
    %18 = tpu.concatenate %16, %17 in 1 : vector<3x16xf32>, vector<3x240xf32> -> vector<3x256xf32>
    %c1 = arith.constant 1 : index
    %c0_9 = arith.constant 0 : index
    %c0_10 = arith.constant 0 : index
    %19 = vector.load %arg3[%c1, %c0_9, %c0_10] : memref<9x1x256xf32, #tpu.memory_space<vmem>>, vector<1x1x256xf32>
    %20 = vector.shape_cast %19 : vector<1x1x256xf32> to vector<1x256xf32>
    %21 = vector.broadcast %20 : vector<1x256xf32> to vector<3x256xf32>
    %22 = arith.mulf %18, %21 : vector<3x256xf32>
    %c1_11 = arith.constant 1 : index
    %c0_12 = arith.constant 0 : index
    %c0_13 = arith.constant 0 : index
    %23 = vector.load %arg2[%c1_11, %c0_12, %c0_13] : memref<9x32x3xf32, #tpu.memory_space<vmem>>, vector<1x32x3xf32>
    %24 = vector.shape_cast %23 : vector<1x32x3xf32> to vector<32x3xf32>
    %25 = arith.truncf %24 : vector<32x3xf32> to vector<32x3xbf16>
    %26 = arith.truncf %22 : vector<3x256xf32> to vector<3x256xbf16>
    %cst_14 = arith.constant dense<0.000000e+00> : vector<32x256xf32>
    %27 = tpu.matmul %25, %26, %cst_14 {dimension_numbers = #tpu.dot_dimension_numbers<[1], [0], [0], [1], [0, 0, 1, 1], [], []>} : vector<32x3xbf16>, vector<3x256xbf16>, vector<32x256xf32> -> vector<32x256xf32>
    %28 = arith.addf %15, %27 : vector<32x256xf32>
    %29 = vector.extract_strided_slice %2 {offsets = [0, 241], sizes = [3, 15], strides = [1, 1]} : vector<3x256xf32> to vector<3x15xf32>
    %30 = vector.extract_strided_slice %2 {offsets = [0, 0], sizes = [3, 241], strides = [1, 1]} : vector<3x256xf32> to vector<3x241xf32>
    %31 = tpu.concatenate %29, %30 in 1 : vector<3x15xf32>, vector<3x241xf32> -> vector<3x256xf32>
    %c2 = arith.constant 2 : index
    %c0_15 = arith.constant 0 : index
    %c0_16 = arith.constant 0 : index
    %32 = vector.load %arg3[%c2, %c0_15, %c0_16] : memref<9x1x256xf32, #tpu.memory_space<vmem>>, vector<1x1x256xf32>
    %33 = vector.shape_cast %32 : vector<1x1x256xf32> to vector<1x256xf32>
    %34 = vector.broadcast %33 : vector<1x256xf32> to vector<3x256xf32>
    %35 = arith.mulf %31, %34 : vector<3x256xf32>
    %c2_17 = arith.constant 2 : index
    %c0_18 = arith.constant 0 : index
    %c0_19 = arith.constant 0 : index
    %36 = vector.load %arg2[%c2_17, %c0_18, %c0_19] : memref<9x32x3xf32, #tpu.memory_space<vmem>>, vector<1x32x3xf32>
    %37 = vector.shape_cast %36 : vector<1x32x3xf32> to vector<32x3xf32>
    %38 = arith.truncf %37 : vector<32x3xf32> to vector<32x3xbf16>
    %39 = arith.truncf %35 : vector<3x256xf32> to vector<3x256xbf16>
    %cst_20 = arith.constant dense<0.000000e+00> : vector<32x256xf32>
    %40 = tpu.matmul %38, %39, %cst_20 {dimension_numbers = #tpu.dot_dimension_numbers<[1], [0], [0], [1], [0, 0, 1, 1], [], []>} : vector<32x3xbf16>, vector<3x256xbf16>, vector<32x256xf32> -> vector<32x256xf32>
    %41 = arith.addf %28, %40 : vector<32x256xf32>
    %42 = vector.extract_strided_slice %2 {offsets = [0, 255], sizes = [3, 1], strides = [1, 1]} : vector<3x256xf32> to vector<3x1xf32>
    %43 = vector.extract_strided_slice %2 {offsets = [0, 0], sizes = [3, 255], strides = [1, 1]} : vector<3x256xf32> to vector<3x255xf32>
    %44 = tpu.concatenate %42, %43 in 1 : vector<3x1xf32>, vector<3x255xf32> -> vector<3x256xf32>
    %c3 = arith.constant 3 : index
    %c0_21 = arith.constant 0 : index
    %c0_22 = arith.constant 0 : index
    %45 = vector.load %arg3[%c3, %c0_21, %c0_22] : memref<9x1x256xf32, #tpu.memory_space<vmem>>, vector<1x1x256xf32>
    %46 = vector.shape_cast %45 : vector<1x1x256xf32> to vector<1x256xf32>
    %47 = vector.broadcast %46 : vector<1x256xf32> to vector<3x256xf32>
    %48 = arith.mulf %44, %47 : vector<3x256xf32>
    %c3_23 = arith.constant 3 : index
    %c0_24 = arith.constant 0 : index
    %c0_25 = arith.constant 0 : index
    %49 = vector.load %arg2[%c3_23, %c0_24, %c0_25] : memref<9x32x3xf32, #tpu.memory_space<vmem>>, vector<1x32x3xf32>
    %50 = vector.shape_cast %49 : vector<1x32x3xf32> to vector<32x3xf32>
    %51 = arith.truncf %50 : vector<32x3xf32> to vector<32x3xbf16>
    %52 = arith.truncf %48 : vector<3x256xf32> to vector<3x256xbf16>
    %cst_26 = arith.constant dense<0.000000e+00> : vector<32x256xf32>
    %53 = tpu.matmul %51, %52, %cst_26 {dimension_numbers = #tpu.dot_dimension_numbers<[1], [0], [0], [1], [0, 0, 1, 1], [], []>} : vector<32x3xbf16>, vector<3x256xbf16>, vector<32x256xf32> -> vector<32x256xf32>
    %54 = arith.addf %41, %53 : vector<32x256xf32>
    %c4 = arith.constant 4 : index
    %c0_27 = arith.constant 0 : index
    %c0_28 = arith.constant 0 : index
    %55 = vector.load %arg3[%c4, %c0_27, %c0_28] : memref<9x1x256xf32, #tpu.memory_space<vmem>>, vector<1x1x256xf32>
    %56 = vector.shape_cast %55 : vector<1x1x256xf32> to vector<1x256xf32>
    %57 = vector.broadcast %56 : vector<1x256xf32> to vector<3x256xf32>
    %58 = arith.mulf %2, %57 : vector<3x256xf32>
    %c4_29 = arith.constant 4 : index
    %c0_30 = arith.constant 0 : index
    %c0_31 = arith.constant 0 : index
    %59 = vector.load %arg2[%c4_29, %c0_30, %c0_31] : memref<9x32x3xf32, #tpu.memory_space<vmem>>, vector<1x32x3xf32>
    %60 = vector.shape_cast %59 : vector<1x32x3xf32> to vector<32x3xf32>
    %61 = arith.truncf %60 : vector<32x3xf32> to vector<32x3xbf16>
    %62 = arith.truncf %58 : vector<3x256xf32> to vector<3x256xbf16>
    %cst_32 = arith.constant dense<0.000000e+00> : vector<32x256xf32>
    %63 = tpu.matmul %61, %62, %cst_32 {dimension_numbers = #tpu.dot_dimension_numbers<[1], [0], [0], [1], [0, 0, 1, 1], [], []>} : vector<32x3xbf16>, vector<3x256xbf16>, vector<32x256xf32> -> vector<32x256xf32>
    %64 = arith.addf %54, %63 : vector<32x256xf32>
    %65 = vector.extract_strided_slice %2 {offsets = [0, 1], sizes = [3, 255], strides = [1, 1]} : vector<3x256xf32> to vector<3x255xf32>
    %66 = vector.extract_strided_slice %2 {offsets = [0, 0], sizes = [3, 1], strides = [1, 1]} : vector<3x256xf32> to vector<3x1xf32>
    %67 = tpu.concatenate %65, %66 in 1 : vector<3x255xf32>, vector<3x1xf32> -> vector<3x256xf32>
    %c5 = arith.constant 5 : index
    %c0_33 = arith.constant 0 : index
    %c0_34 = arith.constant 0 : index
    %68 = vector.load %arg3[%c5, %c0_33, %c0_34] : memref<9x1x256xf32, #tpu.memory_space<vmem>>, vector<1x1x256xf32>
    %69 = vector.shape_cast %68 : vector<1x1x256xf32> to vector<1x256xf32>
    %70 = vector.broadcast %69 : vector<1x256xf32> to vector<3x256xf32>
    %71 = arith.mulf %67, %70 : vector<3x256xf32>
    %c5_35 = arith.constant 5 : index
    %c0_36 = arith.constant 0 : index
    %c0_37 = arith.constant 0 : index
    %72 = vector.load %arg2[%c5_35, %c0_36, %c0_37] : memref<9x32x3xf32, #tpu.memory_space<vmem>>, vector<1x32x3xf32>
    %73 = vector.shape_cast %72 : vector<1x32x3xf32> to vector<32x3xf32>
    %74 = arith.truncf %73 : vector<32x3xf32> to vector<32x3xbf16>
    %75 = arith.truncf %71 : vector<3x256xf32> to vector<3x256xbf16>
    %cst_38 = arith.constant dense<0.000000e+00> : vector<32x256xf32>
    %76 = tpu.matmul %74, %75, %cst_38 {dimension_numbers = #tpu.dot_dimension_numbers<[1], [0], [0], [1], [0, 0, 1, 1], [], []>} : vector<32x3xbf16>, vector<3x256xbf16>, vector<32x256xf32> -> vector<32x256xf32>
    %77 = arith.addf %64, %76 : vector<32x256xf32>
    %78 = vector.extract_strided_slice %2 {offsets = [0, 15], sizes = [3, 241], strides = [1, 1]} : vector<3x256xf32> to vector<3x241xf32>
    %79 = vector.extract_strided_slice %2 {offsets = [0, 0], sizes = [3, 15], strides = [1, 1]} : vector<3x256xf32> to vector<3x15xf32>
    %80 = tpu.concatenate %78, %79 in 1 : vector<3x241xf32>, vector<3x15xf32> -> vector<3x256xf32>
    %c6 = arith.constant 6 : index
    %c0_39 = arith.constant 0 : index
    %c0_40 = arith.constant 0 : index
    %81 = vector.load %arg3[%c6, %c0_39, %c0_40] : memref<9x1x256xf32, #tpu.memory_space<vmem>>, vector<1x1x256xf32>
    %82 = vector.shape_cast %81 : vector<1x1x256xf32> to vector<1x256xf32>
    %83 = vector.broadcast %82 : vector<1x256xf32> to vector<3x256xf32>
    %84 = arith.mulf %80, %83 : vector<3x256xf32>
    %c6_41 = arith.constant 6 : index
    %c0_42 = arith.constant 0 : index
    %c0_43 = arith.constant 0 : index
    %85 = vector.load %arg2[%c6_41, %c0_42, %c0_43] : memref<9x32x3xf32, #tpu.memory_space<vmem>>, vector<1x32x3xf32>
    %86 = vector.shape_cast %85 : vector<1x32x3xf32> to vector<32x3xf32>
    %87 = arith.truncf %86 : vector<32x3xf32> to vector<32x3xbf16>
    %88 = arith.truncf %84 : vector<3x256xf32> to vector<3x256xbf16>
    %cst_44 = arith.constant dense<0.000000e+00> : vector<32x256xf32>
    %89 = tpu.matmul %87, %88, %cst_44 {dimension_numbers = #tpu.dot_dimension_numbers<[1], [0], [0], [1], [0, 0, 1, 1], [], []>} : vector<32x3xbf16>, vector<3x256xbf16>, vector<32x256xf32> -> vector<32x256xf32>
    %90 = arith.addf %77, %89 : vector<32x256xf32>
    %91 = vector.extract_strided_slice %2 {offsets = [0, 16], sizes = [3, 240], strides = [1, 1]} : vector<3x256xf32> to vector<3x240xf32>
    %92 = vector.extract_strided_slice %2 {offsets = [0, 0], sizes = [3, 16], strides = [1, 1]} : vector<3x256xf32> to vector<3x16xf32>
    %93 = tpu.concatenate %91, %92 in 1 : vector<3x240xf32>, vector<3x16xf32> -> vector<3x256xf32>
    %c7 = arith.constant 7 : index
    %c0_45 = arith.constant 0 : index
    %c0_46 = arith.constant 0 : index
    %94 = vector.load %arg3[%c7, %c0_45, %c0_46] : memref<9x1x256xf32, #tpu.memory_space<vmem>>, vector<1x1x256xf32>
    %95 = vector.shape_cast %94 : vector<1x1x256xf32> to vector<1x256xf32>
    %96 = vector.broadcast %95 : vector<1x256xf32> to vector<3x256xf32>
    %97 = arith.mulf %93, %96 : vector<3x256xf32>
    %c7_47 = arith.constant 7 : index
    %c0_48 = arith.constant 0 : index
    %c0_49 = arith.constant 0 : index
    %98 = vector.load %arg2[%c7_47, %c0_48, %c0_49] : memref<9x32x3xf32, #tpu.memory_space<vmem>>, vector<1x32x3xf32>
    %99 = vector.shape_cast %98 : vector<1x32x3xf32> to vector<32x3xf32>
    %100 = arith.truncf %99 : vector<32x3xf32> to vector<32x3xbf16>
    %101 = arith.truncf %97 : vector<3x256xf32> to vector<3x256xbf16>
    %cst_50 = arith.constant dense<0.000000e+00> : vector<32x256xf32>
    %102 = tpu.matmul %100, %101, %cst_50 {dimension_numbers = #tpu.dot_dimension_numbers<[1], [0], [0], [1], [0, 0, 1, 1], [], []>} : vector<32x3xbf16>, vector<3x256xbf16>, vector<32x256xf32> -> vector<32x256xf32>
    %103 = arith.addf %90, %102 : vector<32x256xf32>
    %104 = vector.extract_strided_slice %2 {offsets = [0, 17], sizes = [3, 239], strides = [1, 1]} : vector<3x256xf32> to vector<3x239xf32>
    %105 = vector.extract_strided_slice %2 {offsets = [0, 0], sizes = [3, 17], strides = [1, 1]} : vector<3x256xf32> to vector<3x17xf32>
    %106 = tpu.concatenate %104, %105 in 1 : vector<3x239xf32>, vector<3x17xf32> -> vector<3x256xf32>
    %c8 = arith.constant 8 : index
    %c0_51 = arith.constant 0 : index
    %c0_52 = arith.constant 0 : index
    %107 = vector.load %arg3[%c8, %c0_51, %c0_52] : memref<9x1x256xf32, #tpu.memory_space<vmem>>, vector<1x1x256xf32>
    %108 = vector.shape_cast %107 : vector<1x1x256xf32> to vector<1x256xf32>
    %109 = vector.broadcast %108 : vector<1x256xf32> to vector<3x256xf32>
    %110 = arith.mulf %106, %109 : vector<3x256xf32>
    %c8_53 = arith.constant 8 : index
    %c0_54 = arith.constant 0 : index
    %c0_55 = arith.constant 0 : index
    %111 = vector.load %arg2[%c8_53, %c0_54, %c0_55] : memref<9x32x3xf32, #tpu.memory_space<vmem>>, vector<1x32x3xf32>
    %112 = vector.shape_cast %111 : vector<1x32x3xf32> to vector<32x3xf32>
    %113 = arith.truncf %112 : vector<32x3xf32> to vector<32x3xbf16>
    %114 = arith.truncf %110 : vector<3x256xf32> to vector<3x256xbf16>
    %cst_56 = arith.constant dense<0.000000e+00> : vector<32x256xf32>
    %115 = tpu.matmul %113, %114, %cst_56 {dimension_numbers = #tpu.dot_dimension_numbers<[1], [0], [0], [1], [0, 0, 1, 1], [], []>} : vector<32x3xbf16>, vector<3x256xbf16>, vector<32x256xf32> -> vector<32x256xf32>
    %116 = arith.addf %103, %115 : vector<32x256xf32>
    %c0_57 = arith.constant 0 : index
    %c0_58 = arith.constant 0 : index
    %117 = vector.load %arg4[%c0_57, %c0_58] : memref<32x1xf32, #tpu.memory_space<vmem>>, vector<32x1xf32>
    %118 = vector.broadcast %117 : vector<32x1xf32> to vector<32x256xf32>
    %119 = arith.addf %116, %118 : vector<32x256xf32>
    %cst_59 = arith.constant 0.000000e+00 : f32
    %120 = vector.broadcast %cst_59 : f32 to vector<32x256xf32>
    %121 = arith.maximumf %119, %120 : vector<32x256xf32>
    %c0_60 = arith.constant 0 : index
    %c0_61 = arith.constant 0 : index
    %c0_62 = arith.constant 0 : index
    %122 = vector.load %arg5[%c0_60, %c0_61, %c0_62] : memref<1x32x256xf32, #tpu.memory_space<vmem>>, vector<1x32x256xf32>
    %123 = vector.shape_cast %122 : vector<1x32x256xf32> to vector<32x256xf32>
    %124 = vector.shape_cast %121 : vector<32x256xf32> to vector<1x32x256xf32>
    tpu.vector_store %arg5[%c0_60, %c0_61, %c0_62], %124 {strides = array<i32>} : memref<1x32x256xf32, #tpu.memory_space<vmem>>, vector<1x32x256xf32>,
    return
  }
  func.func @transform_0(%arg0: i32) -> (i32, i32, i32) {
    %c0_i32 = arith.constant 0 : i32
    %c0_i32_0 = arith.constant 0 : i32
    %c0_i32_1 = arith.constant 0 : i32
    return %arg0, %c0_i32, %c0_i32_0 : i32, i32, i32
  }
  func.func @transform_1(%arg0: i32) -> (i32, i32, i32) {
    %c0_i32 = arith.constant 0 : i32
    %c0_i32_0 = arith.constant 0 : i32
    %c0_i32_1 = arith.constant 0 : i32
    %c0_i32_2 = arith.constant 0 : i32
    return %c0_i32, %c0_i32_0, %c0_i32_1 : i32, i32, i32
  }
  func.func @transform_2(%arg0: i32) -> (i32, i32, i32) {
    %c0_i32 = arith.constant 0 : i32
    %c0_i32_0 = arith.constant 0 : i32
    %c0_i32_1 = arith.constant 0 : i32
    %c0_i32_2 = arith.constant 0 : i32
    return %c0_i32, %c0_i32_0, %c0_i32_1 : i32, i32, i32
  }
  func.func @transform_3(%arg0: i32) -> (i32, i32) {
    %c0_i32 = arith.constant 0 : i32
    %c0_i32_0 = arith.constant 0 : i32
    %c0_i32_1 = arith.constant 0 : i32
    return %c0_i32, %c0_i32_0 : i32, i32
  }
  func.func @transform_4(%arg0: i32) -> (i32, i32, i32) {
    %c0_i32 = arith.constant 0 : i32
    %c0_i32_0 = arith.constant 0 : i32
    %c0_i32_1 = arith.constant 0 : i32
    return %arg0, %c0_i32, %c0_i32_0 : i32, i32, i32
  }
}

module attributes {stable_mosaic.version = 11 : i64} {
  func.func @_conv3x3_cf_kernel(%arg0: i32, %arg1: memref<1x32x256xf32, #tpu.memory_space<vmem>>, %arg2: memref<1x32x256xf32, #tpu.memory_space<vmem>>, %arg3: memref<9x32x32xf32, #tpu.memory_space<vmem>>, %arg4: memref<9x32x32xf32, #tpu.memory_space<vmem>>, %arg5: memref<9x1x256xf32, #tpu.memory_space<vmem>>, %arg6: memref<32x1xf32, #tpu.memory_space<vmem>>, %arg7: memref<1x32x256xf32, #tpu.memory_space<vmem>>) attributes {dimension_semantics = [#tpu.dimension_semantics<parallel>], iteration_bounds = array<i64: 2>, scalar_prefetch = 0 : i64, scratch_operands = 0 : i64, tpu.core_type = #tpu.core_type<tc>, window_params = [{transform_indices = @transform_0, window_bounds = array<i64: 1, 32, 256>}, {transform_indices = @transform_1, window_bounds = array<i64: 1, 32, 256>}, {pipeline_mode = #tpu.pipeline_mode<synchronous>, transform_indices = @transform_2, window_bounds = array<i64: 9, 32, 32>}, {pipeline_mode = #tpu.pipeline_mode<synchronous>, transform_indices = @transform_3, window_bounds = array<i64: 9, 32, 32>}, {pipeline_mode = #tpu.pipeline_mode<synchronous>, transform_indices = @transform_4, window_bounds = array<i64: 9, 1, 256>}, {pipeline_mode = #tpu.pipeline_mode<synchronous>, transform_indices = @transform_5, window_bounds = array<i64: 32, 1>}, {transform_indices = @transform_6, window_bounds = array<i64: 1, 32, 256>}]} {
    %cst = arith.constant 0.000000e+00 : f32
    %0 = vector.broadcast %cst : f32 to vector<32x256xf32>
    %c0 = arith.constant 0 : index
    %c0_0 = arith.constant 0 : index
    %c0_1 = arith.constant 0 : index
    %1 = vector.load %arg1[%c0, %c0_0, %c0_1] : memref<1x32x256xf32, #tpu.memory_space<vmem>>, vector<1x32x256xf32>
    %2 = vector.shape_cast %1 : vector<1x32x256xf32> to vector<32x256xf32>
    %3 = vector.extract_strided_slice %2 {offsets = [0, 239], sizes = [32, 17], strides = [1, 1]} : vector<32x256xf32> to vector<32x17xf32>
    %4 = vector.extract_strided_slice %2 {offsets = [0, 0], sizes = [32, 239], strides = [1, 1]} : vector<32x256xf32> to vector<32x239xf32>
    %5 = tpu.concatenate %3, %4 in 1 : vector<32x17xf32>, vector<32x239xf32> -> vector<32x256xf32>
    %c0_2 = arith.constant 0 : index
    %c0_3 = arith.constant 0 : index
    %c0_4 = arith.constant 0 : index
    %6 = vector.load %arg5[%c0_2, %c0_3, %c0_4] : memref<9x1x256xf32, #tpu.memory_space<vmem>>, vector<1x1x256xf32>
    %7 = vector.shape_cast %6 : vector<1x1x256xf32> to vector<1x256xf32>
    %8 = vector.broadcast %7 : vector<1x256xf32> to vector<32x256xf32>
    %9 = arith.mulf %5, %8 : vector<32x256xf32>
    %c0_5 = arith.constant 0 : index
    %c0_6 = arith.constant 0 : index
    %c0_7 = arith.constant 0 : index
    %10 = vector.load %arg3[%c0_5, %c0_6, %c0_7] : memref<9x32x32xf32, #tpu.memory_space<vmem>>, vector<1x32x32xf32>
    %11 = vector.shape_cast %10 : vector<1x32x32xf32> to vector<32x32xf32>
    %12 = arith.truncf %11 : vector<32x32xf32> to vector<32x32xbf16>
    %13 = arith.truncf %9 : vector<32x256xf32> to vector<32x256xbf16>
    %cst_8 = arith.constant dense<0.000000e+00> : vector<32x256xf32>
    %14 = tpu.matmul %12, %13, %cst_8 {dimension_numbers = #tpu.dot_dimension_numbers<[1], [0], [0], [1], [0, 0, 1, 1], [], []>} : vector<32x32xbf16>, vector<32x256xbf16>, vector<32x256xf32> -> vector<32x256xf32>
    %15 = arith.addf %0, %14 : vector<32x256xf32>
    %16 = vector.extract_strided_slice %2 {offsets = [0, 240], sizes = [32, 16], strides = [1, 1]} : vector<32x256xf32> to vector<32x16xf32>
    %17 = vector.extract_strided_slice %2 {offsets = [0, 0], sizes = [32, 240], strides = [1, 1]} : vector<32x256xf32> to vector<32x240xf32>
    %18 = tpu.concatenate %16, %17 in 1 : vector<32x16xf32>, vector<32x240xf32> -> vector<32x256xf32>
    %c1 = arith.constant 1 : index
    %c0_9 = arith.constant 0 : index
    %c0_10 = arith.constant 0 : index
    %19 = vector.load %arg5[%c1, %c0_9, %c0_10] : memref<9x1x256xf32, #tpu.memory_space<vmem>>, vector<1x1x256xf32>
    %20 = vector.shape_cast %19 : vector<1x1x256xf32> to vector<1x256xf32>
    %21 = vector.broadcast %20 : vector<1x256xf32> to vector<32x256xf32>
    %22 = arith.mulf %18, %21 : vector<32x256xf32>
    %c1_11 = arith.constant 1 : index
    %c0_12 = arith.constant 0 : index
    %c0_13 = arith.constant 0 : index
    %23 = vector.load %arg3[%c1_11, %c0_12, %c0_13] : memref<9x32x32xf32, #tpu.memory_space<vmem>>, vector<1x32x32xf32>
    %24 = vector.shape_cast %23 : vector<1x32x32xf32> to vector<32x32xf32>
    %25 = arith.truncf %24 : vector<32x32xf32> to vector<32x32xbf16>
    %26 = arith.truncf %22 : vector<32x256xf32> to vector<32x256xbf16>
    %cst_14 = arith.constant dense<0.000000e+00> : vector<32x256xf32>
    %27 = tpu.matmul %25, %26, %cst_14 {dimension_numbers = #tpu.dot_dimension_numbers<[1], [0], [0], [1], [0, 0, 1, 1], [], []>} : vector<32x32xbf16>, vector<32x256xbf16>, vector<32x256xf32> -> vector<32x256xf32>
    %28 = arith.addf %15, %27 : vector<32x256xf32>
    %29 = vector.extract_strided_slice %2 {offsets = [0, 241], sizes = [32, 15], strides = [1, 1]} : vector<32x256xf32> to vector<32x15xf32>
    %30 = vector.extract_strided_slice %2 {offsets = [0, 0], sizes = [32, 241], strides = [1, 1]} : vector<32x256xf32> to vector<32x241xf32>
    %31 = tpu.concatenate %29, %30 in 1 : vector<32x15xf32>, vector<32x241xf32> -> vector<32x256xf32>
    %c2 = arith.constant 2 : index
    %c0_15 = arith.constant 0 : index
    %c0_16 = arith.constant 0 : index
    %32 = vector.load %arg5[%c2, %c0_15, %c0_16] : memref<9x1x256xf32, #tpu.memory_space<vmem>>, vector<1x1x256xf32>
    %33 = vector.shape_cast %32 : vector<1x1x256xf32> to vector<1x256xf32>
    %34 = vector.broadcast %33 : vector<1x256xf32> to vector<32x256xf32>
    %35 = arith.mulf %31, %34 : vector<32x256xf32>
    %c2_17 = arith.constant 2 : index
    %c0_18 = arith.constant 0 : index
    %c0_19 = arith.constant 0 : index
    %36 = vector.load %arg3[%c2_17, %c0_18, %c0_19] : memref<9x32x32xf32, #tpu.memory_space<vmem>>, vector<1x32x32xf32>
    %37 = vector.shape_cast %36 : vector<1x32x32xf32> to vector<32x32xf32>
    %38 = arith.truncf %37 : vector<32x32xf32> to vector<32x32xbf16>
    %39 = arith.truncf %35 : vector<32x256xf32> to vector<32x256xbf16>
    %cst_20 = arith.constant dense<0.000000e+00> : vector<32x256xf32>
    %40 = tpu.matmul %38, %39, %cst_20 {dimension_numbers = #tpu.dot_dimension_numbers<[1], [0], [0], [1], [0, 0, 1, 1], [], []>} : vector<32x32xbf16>, vector<32x256xbf16>, vector<32x256xf32> -> vector<32x256xf32>
    %41 = arith.addf %28, %40 : vector<32x256xf32>
    %42 = vector.extract_strided_slice %2 {offsets = [0, 255], sizes = [32, 1], strides = [1, 1]} : vector<32x256xf32> to vector<32x1xf32>
    %43 = vector.extract_strided_slice %2 {offsets = [0, 0], sizes = [32, 255], strides = [1, 1]} : vector<32x256xf32> to vector<32x255xf32>
    %44 = tpu.concatenate %42, %43 in 1 : vector<32x1xf32>, vector<32x255xf32> -> vector<32x256xf32>
    %c3 = arith.constant 3 : index
    %c0_21 = arith.constant 0 : index
    %c0_22 = arith.constant 0 : index
    %45 = vector.load %arg5[%c3, %c0_21, %c0_22] : memref<9x1x256xf32, #tpu.memory_space<vmem>>, vector<1x1x256xf32>
    %46 = vector.shape_cast %45 : vector<1x1x256xf32> to vector<1x256xf32>
    %47 = vector.broadcast %46 : vector<1x256xf32> to vector<32x256xf32>
    %48 = arith.mulf %44, %47 : vector<32x256xf32>
    %c3_23 = arith.constant 3 : index
    %c0_24 = arith.constant 0 : index
    %c0_25 = arith.constant 0 : index
    %49 = vector.load %arg3[%c3_23, %c0_24, %c0_25] : memref<9x32x32xf32, #tpu.memory_space<vmem>>, vector<1x32x32xf32>
    %50 = vector.shape_cast %49 : vector<1x32x32xf32> to vector<32x32xf32>
    %51 = arith.truncf %50 : vector<32x32xf32> to vector<32x32xbf16>
    %52 = arith.truncf %48 : vector<32x256xf32> to vector<32x256xbf16>
    %cst_26 = arith.constant dense<0.000000e+00> : vector<32x256xf32>
    %53 = tpu.matmul %51, %52, %cst_26 {dimension_numbers = #tpu.dot_dimension_numbers<[1], [0], [0], [1], [0, 0, 1, 1], [], []>} : vector<32x32xbf16>, vector<32x256xbf16>, vector<32x256xf32> -> vector<32x256xf32>
    %54 = arith.addf %41, %53 : vector<32x256xf32>
    %c4 = arith.constant 4 : index
    %c0_27 = arith.constant 0 : index
    %c0_28 = arith.constant 0 : index
    %55 = vector.load %arg5[%c4, %c0_27, %c0_28] : memref<9x1x256xf32, #tpu.memory_space<vmem>>, vector<1x1x256xf32>
    %56 = vector.shape_cast %55 : vector<1x1x256xf32> to vector<1x256xf32>
    %57 = vector.broadcast %56 : vector<1x256xf32> to vector<32x256xf32>
    %58 = arith.mulf %2, %57 : vector<32x256xf32>
    %c4_29 = arith.constant 4 : index
    %c0_30 = arith.constant 0 : index
    %c0_31 = arith.constant 0 : index
    %59 = vector.load %arg3[%c4_29, %c0_30, %c0_31] : memref<9x32x32xf32, #tpu.memory_space<vmem>>, vector<1x32x32xf32>
    %60 = vector.shape_cast %59 : vector<1x32x32xf32> to vector<32x32xf32>
    %61 = arith.truncf %60 : vector<32x32xf32> to vector<32x32xbf16>
    %62 = arith.truncf %58 : vector<32x256xf32> to vector<32x256xbf16>
    %cst_32 = arith.constant dense<0.000000e+00> : vector<32x256xf32>
    %63 = tpu.matmul %61, %62, %cst_32 {dimension_numbers = #tpu.dot_dimension_numbers<[1], [0], [0], [1], [0, 0, 1, 1], [], []>} : vector<32x32xbf16>, vector<32x256xbf16>, vector<32x256xf32> -> vector<32x256xf32>
    %64 = arith.addf %54, %63 : vector<32x256xf32>
    %65 = vector.extract_strided_slice %2 {offsets = [0, 1], sizes = [32, 255], strides = [1, 1]} : vector<32x256xf32> to vector<32x255xf32>
    %66 = vector.extract_strided_slice %2 {offsets = [0, 0], sizes = [32, 1], strides = [1, 1]} : vector<32x256xf32> to vector<32x1xf32>
    %67 = tpu.concatenate %65, %66 in 1 : vector<32x255xf32>, vector<32x1xf32> -> vector<32x256xf32>
    %c5 = arith.constant 5 : index
    %c0_33 = arith.constant 0 : index
    %c0_34 = arith.constant 0 : index
    %68 = vector.load %arg5[%c5, %c0_33, %c0_34] : memref<9x1x256xf32, #tpu.memory_space<vmem>>, vector<1x1x256xf32>
    %69 = vector.shape_cast %68 : vector<1x1x256xf32> to vector<1x256xf32>
    %70 = vector.broadcast %69 : vector<1x256xf32> to vector<32x256xf32>
    %71 = arith.mulf %67, %70 : vector<32x256xf32>
    %c5_35 = arith.constant 5 : index
    %c0_36 = arith.constant 0 : index
    %c0_37 = arith.constant 0 : index
    %72 = vector.load %arg3[%c5_35, %c0_36, %c0_37] : memref<9x32x32xf32, #tpu.memory_space<vmem>>, vector<1x32x32xf32>
    %73 = vector.shape_cast %72 : vector<1x32x32xf32> to vector<32x32xf32>
    %74 = arith.truncf %73 : vector<32x32xf32> to vector<32x32xbf16>
    %75 = arith.truncf %71 : vector<32x256xf32> to vector<32x256xbf16>
    %cst_38 = arith.constant dense<0.000000e+00> : vector<32x256xf32>
    %76 = tpu.matmul %74, %75, %cst_38 {dimension_numbers = #tpu.dot_dimension_numbers<[1], [0], [0], [1], [0, 0, 1, 1], [], []>} : vector<32x32xbf16>, vector<32x256xbf16>, vector<32x256xf32> -> vector<32x256xf32>
    %77 = arith.addf %64, %76 : vector<32x256xf32>
    %78 = vector.extract_strided_slice %2 {offsets = [0, 15], sizes = [32, 241], strides = [1, 1]} : vector<32x256xf32> to vector<32x241xf32>
    %79 = vector.extract_strided_slice %2 {offsets = [0, 0], sizes = [32, 15], strides = [1, 1]} : vector<32x256xf32> to vector<32x15xf32>
    %80 = tpu.concatenate %78, %79 in 1 : vector<32x241xf32>, vector<32x15xf32> -> vector<32x256xf32>
    %c6 = arith.constant 6 : index
    %c0_39 = arith.constant 0 : index
    %c0_40 = arith.constant 0 : index
    %81 = vector.load %arg5[%c6, %c0_39, %c0_40] : memref<9x1x256xf32, #tpu.memory_space<vmem>>, vector<1x1x256xf32>
    %82 = vector.shape_cast %81 : vector<1x1x256xf32> to vector<1x256xf32>
    %83 = vector.broadcast %82 : vector<1x256xf32> to vector<32x256xf32>
    %84 = arith.mulf %80, %83 : vector<32x256xf32>
    %c6_41 = arith.constant 6 : index
    %c0_42 = arith.constant 0 : index
    %c0_43 = arith.constant 0 : index
    %85 = vector.load %arg3[%c6_41, %c0_42, %c0_43] : memref<9x32x32xf32, #tpu.memory_space<vmem>>, vector<1x32x32xf32>
    %86 = vector.shape_cast %85 : vector<1x32x32xf32> to vector<32x32xf32>
    %87 = arith.truncf %86 : vector<32x32xf32> to vector<32x32xbf16>
    %88 = arith.truncf %84 : vector<32x256xf32> to vector<32x256xbf16>
    %cst_44 = arith.constant dense<0.000000e+00> : vector<32x256xf32>
    %89 = tpu.matmul %87, %88, %cst_44 {dimension_numbers = #tpu.dot_dimension_numbers<[1], [0], [0], [1], [0, 0, 1, 1], [], []>} : vector<32x32xbf16>, vector<32x256xbf16>, vector<32x256xf32> -> vector<32x256xf32>
    %90 = arith.addf %77, %89 : vector<32x256xf32>
    %91 = vector.extract_strided_slice %2 {offsets = [0, 16], sizes = [32, 240], strides = [1, 1]} : vector<32x256xf32> to vector<32x240xf32>
    %92 = vector.extract_strided_slice %2 {offsets = [0, 0], sizes = [32, 16], strides = [1, 1]} : vector<32x256xf32> to vector<32x16xf32>
    %93 = tpu.concatenate %91, %92 in 1 : vector<32x240xf32>, vector<32x16xf32> -> vector<32x256xf32>
    %c7 = arith.constant 7 : index
    %c0_45 = arith.constant 0 : index
    %c0_46 = arith.constant 0 : index
    %94 = vector.load %arg5[%c7, %c0_45, %c0_46] : memref<9x1x256xf32, #tpu.memory_space<vmem>>, vector<1x1x256xf32>
    %95 = vector.shape_cast %94 : vector<1x1x256xf32> to vector<1x256xf32>
    %96 = vector.broadcast %95 : vector<1x256xf32> to vector<32x256xf32>
    %97 = arith.mulf %93, %96 : vector<32x256xf32>
    %c7_47 = arith.constant 7 : index
    %c0_48 = arith.constant 0 : index
    %c0_49 = arith.constant 0 : index
    %98 = vector.load %arg3[%c7_47, %c0_48, %c0_49] : memref<9x32x32xf32, #tpu.memory_space<vmem>>, vector<1x32x32xf32>
    %99 = vector.shape_cast %98 : vector<1x32x32xf32> to vector<32x32xf32>
    %100 = arith.truncf %99 : vector<32x32xf32> to vector<32x32xbf16>
    %101 = arith.truncf %97 : vector<32x256xf32> to vector<32x256xbf16>
    %cst_50 = arith.constant dense<0.000000e+00> : vector<32x256xf32>
    %102 = tpu.matmul %100, %101, %cst_50 {dimension_numbers = #tpu.dot_dimension_numbers<[1], [0], [0], [1], [0, 0, 1, 1], [], []>} : vector<32x32xbf16>, vector<32x256xbf16>, vector<32x256xf32> -> vector<32x256xf32>
    %103 = arith.addf %90, %102 : vector<32x256xf32>
    %104 = vector.extract_strided_slice %2 {offsets = [0, 17], sizes = [32, 239], strides = [1, 1]} : vector<32x256xf32> to vector<32x239xf32>
    %105 = vector.extract_strided_slice %2 {offsets = [0, 0], sizes = [32, 17], strides = [1, 1]} : vector<32x256xf32> to vector<32x17xf32>
    %106 = tpu.concatenate %104, %105 in 1 : vector<32x239xf32>, vector<32x17xf32> -> vector<32x256xf32>
    %c8 = arith.constant 8 : index
    %c0_51 = arith.constant 0 : index
    %c0_52 = arith.constant 0 : index
    %107 = vector.load %arg5[%c8, %c0_51, %c0_52] : memref<9x1x256xf32, #tpu.memory_space<vmem>>, vector<1x1x256xf32>
    %108 = vector.shape_cast %107 : vector<1x1x256xf32> to vector<1x256xf32>
    %109 = vector.broadcast %108 : vector<1x256xf32> to vector<32x256xf32>
    %110 = arith.mulf %106, %109 : vector<32x256xf32>
    %c8_53 = arith.constant 8 : index
    %c0_54 = arith.constant 0 : index
    %c0_55 = arith.constant 0 : index
    %111 = vector.load %arg3[%c8_53, %c0_54, %c0_55] : memref<9x32x32xf32, #tpu.memory_space<vmem>>, vector<1x32x32xf32>
    %112 = vector.shape_cast %111 : vector<1x32x32xf32> to vector<32x32xf32>
    %113 = arith.truncf %112 : vector<32x32xf32> to vector<32x32xbf16>
    %114 = arith.truncf %110 : vector<32x256xf32> to vector<32x256xbf16>
    %cst_56 = arith.constant dense<0.000000e+00> : vector<32x256xf32>
    %115 = tpu.matmul %113, %114, %cst_56 {dimension_numbers = #tpu.dot_dimension_numbers<[1], [0], [0], [1], [0, 0, 1, 1], [], []>} : vector<32x32xbf16>, vector<32x256xbf16>, vector<32x256xf32> -> vector<32x256xf32>
    %116 = arith.addf %103, %115 : vector<32x256xf32>
    %c0_57 = arith.constant 0 : index
    %c0_58 = arith.constant 0 : index
    %c0_59 = arith.constant 0 : index
    %117 = vector.load %arg2[%c0_57, %c0_58, %c0_59] : memref<1x32x256xf32, #tpu.memory_space<vmem>>, vector<1x32x256xf32>
    %118 = vector.shape_cast %117 : vector<1x32x256xf32> to vector<32x256xf32>
    %119 = vector.extract_strided_slice %118 {offsets = [0, 239], sizes = [32, 17], strides = [1, 1]} : vector<32x256xf32> to vector<32x17xf32>
    %120 = vector.extract_strided_slice %118 {offsets = [0, 0], sizes = [32, 239], strides = [1, 1]} : vector<32x256xf32> to vector<32x239xf32>
    %121 = tpu.concatenate %119, %120 in 1 : vector<32x17xf32>, vector<32x239xf32> -> vector<32x256xf32>
    %c0_60 = arith.constant 0 : index
    %c0_61 = arith.constant 0 : index
    %c0_62 = arith.constant 0 : index
    %122 = vector.load %arg5[%c0_60, %c0_61, %c0_62] : memref<9x1x256xf32, #tpu.memory_space<vmem>>, vector<1x1x256xf32>
    %123 = vector.shape_cast %122 : vector<1x1x256xf32> to vector<1x256xf32>
    %124 = vector.broadcast %123 : vector<1x256xf32> to vector<32x256xf32>
    %125 = arith.mulf %121, %124 : vector<32x256xf32>
    %c0_63 = arith.constant 0 : index
    %c0_64 = arith.constant 0 : index
    %c0_65 = arith.constant 0 : index
    %126 = vector.load %arg4[%c0_63, %c0_64, %c0_65] : memref<9x32x32xf32, #tpu.memory_space<vmem>>, vector<1x32x32xf32>
    %127 = vector.shape_cast %126 : vector<1x32x32xf32> to vector<32x32xf32>
    %128 = arith.truncf %127 : vector<32x32xf32> to vector<32x32xbf16>
    %129 = arith.truncf %125 : vector<32x256xf32> to vector<32x256xbf16>
    %cst_66 = arith.constant dense<0.000000e+00> : vector<32x256xf32>
    %130 = tpu.matmul %128, %129, %cst_66 {dimension_numbers = #tpu.dot_dimension_numbers<[1], [0], [0], [1], [0, 0, 1, 1], [], []>} : vector<32x32xbf16>, vector<32x256xbf16>, vector<32x256xf32> -> vector<32x256xf32>
    %131 = arith.addf %116, %130 : vector<32x256xf32>
    %132 = vector.extract_strided_slice %118 {offsets = [0, 240], sizes = [32, 16], strides = [1, 1]} : vector<32x256xf32> to vector<32x16xf32>
    %133 = vector.extract_strided_slice %118 {offsets = [0, 0], sizes = [32, 240], strides = [1, 1]} : vector<32x256xf32> to vector<32x240xf32>
    %134 = tpu.concatenate %132, %133 in 1 : vector<32x16xf32>, vector<32x240xf32> -> vector<32x256xf32>
    %c1_67 = arith.constant 1 : index
    %c0_68 = arith.constant 0 : index
    %c0_69 = arith.constant 0 : index
    %135 = vector.load %arg5[%c1_67, %c0_68, %c0_69] : memref<9x1x256xf32, #tpu.memory_space<vmem>>, vector<1x1x256xf32>
    %136 = vector.shape_cast %135 : vector<1x1x256xf32> to vector<1x256xf32>
    %137 = vector.broadcast %136 : vector<1x256xf32> to vector<32x256xf32>
    %138 = arith.mulf %134, %137 : vector<32x256xf32>
    %c1_70 = arith.constant 1 : index
    %c0_71 = arith.constant 0 : index
    %c0_72 = arith.constant 0 : index
    %139 = vector.load %arg4[%c1_70, %c0_71, %c0_72] : memref<9x32x32xf32, #tpu.memory_space<vmem>>, vector<1x32x32xf32>
    %140 = vector.shape_cast %139 : vector<1x32x32xf32> to vector<32x32xf32>
    %141 = arith.truncf %140 : vector<32x32xf32> to vector<32x32xbf16>
    %142 = arith.truncf %138 : vector<32x256xf32> to vector<32x256xbf16>
    %cst_73 = arith.constant dense<0.000000e+00> : vector<32x256xf32>
    %143 = tpu.matmul %141, %142, %cst_73 {dimension_numbers = #tpu.dot_dimension_numbers<[1], [0], [0], [1], [0, 0, 1, 1], [], []>} : vector<32x32xbf16>, vector<32x256xbf16>, vector<32x256xf32> -> vector<32x256xf32>
    %144 = arith.addf %131, %143 : vector<32x256xf32>
    %145 = vector.extract_strided_slice %118 {offsets = [0, 241], sizes = [32, 15], strides = [1, 1]} : vector<32x256xf32> to vector<32x15xf32>
    %146 = vector.extract_strided_slice %118 {offsets = [0, 0], sizes = [32, 241], strides = [1, 1]} : vector<32x256xf32> to vector<32x241xf32>
    %147 = tpu.concatenate %145, %146 in 1 : vector<32x15xf32>, vector<32x241xf32> -> vector<32x256xf32>
    %c2_74 = arith.constant 2 : index
    %c0_75 = arith.constant 0 : index
    %c0_76 = arith.constant 0 : index
    %148 = vector.load %arg5[%c2_74, %c0_75, %c0_76] : memref<9x1x256xf32, #tpu.memory_space<vmem>>, vector<1x1x256xf32>
    %149 = vector.shape_cast %148 : vector<1x1x256xf32> to vector<1x256xf32>
    %150 = vector.broadcast %149 : vector<1x256xf32> to vector<32x256xf32>
    %151 = arith.mulf %147, %150 : vector<32x256xf32>
    %c2_77 = arith.constant 2 : index
    %c0_78 = arith.constant 0 : index
    %c0_79 = arith.constant 0 : index
    %152 = vector.load %arg4[%c2_77, %c0_78, %c0_79] : memref<9x32x32xf32, #tpu.memory_space<vmem>>, vector<1x32x32xf32>
    %153 = vector.shape_cast %152 : vector<1x32x32xf32> to vector<32x32xf32>
    %154 = arith.truncf %153 : vector<32x32xf32> to vector<32x32xbf16>
    %155 = arith.truncf %151 : vector<32x256xf32> to vector<32x256xbf16>
    %cst_80 = arith.constant dense<0.000000e+00> : vector<32x256xf32>
    %156 = tpu.matmul %154, %155, %cst_80 {dimension_numbers = #tpu.dot_dimension_numbers<[1], [0], [0], [1], [0, 0, 1, 1], [], []>} : vector<32x32xbf16>, vector<32x256xbf16>, vector<32x256xf32> -> vector<32x256xf32>
    %157 = arith.addf %144, %156 : vector<32x256xf32>
    %158 = vector.extract_strided_slice %118 {offsets = [0, 255], sizes = [32, 1], strides = [1, 1]} : vector<32x256xf32> to vector<32x1xf32>
    %159 = vector.extract_strided_slice %118 {offsets = [0, 0], sizes = [32, 255], strides = [1, 1]} : vector<32x256xf32> to vector<32x255xf32>
    %160 = tpu.concatenate %158, %159 in 1 : vector<32x1xf32>, vector<32x255xf32> -> vector<32x256xf32>
    %c3_81 = arith.constant 3 : index
    %c0_82 = arith.constant 0 : index
    %c0_83 = arith.constant 0 : index
    %161 = vector.load %arg5[%c3_81, %c0_82, %c0_83] : memref<9x1x256xf32, #tpu.memory_space<vmem>>, vector<1x1x256xf32>
    %162 = vector.shape_cast %161 : vector<1x1x256xf32> to vector<1x256xf32>
    %163 = vector.broadcast %162 : vector<1x256xf32> to vector<32x256xf32>
    %164 = arith.mulf %160, %163 : vector<32x256xf32>
    %c3_84 = arith.constant 3 : index
    %c0_85 = arith.constant 0 : index
    %c0_86 = arith.constant 0 : index
    %165 = vector.load %arg4[%c3_84, %c0_85, %c0_86] : memref<9x32x32xf32, #tpu.memory_space<vmem>>, vector<1x32x32xf32>
    %166 = vector.shape_cast %165 : vector<1x32x32xf32> to vector<32x32xf32>
    %167 = arith.truncf %166 : vector<32x32xf32> to vector<32x32xbf16>
    %168 = arith.truncf %164 : vector<32x256xf32> to vector<32x256xbf16>
    %cst_87 = arith.constant dense<0.000000e+00> : vector<32x256xf32>
    %169 = tpu.matmul %167, %168, %cst_87 {dimension_numbers = #tpu.dot_dimension_numbers<[1], [0], [0], [1], [0, 0, 1, 1], [], []>} : vector<32x32xbf16>, vector<32x256xbf16>, vector<32x256xf32> -> vector<32x256xf32>
    %170 = arith.addf %157, %169 : vector<32x256xf32>
    %c4_88 = arith.constant 4 : index
    %c0_89 = arith.constant 0 : index
    %c0_90 = arith.constant 0 : index
    %171 = vector.load %arg5[%c4_88, %c0_89, %c0_90] : memref<9x1x256xf32, #tpu.memory_space<vmem>>, vector<1x1x256xf32>
    %172 = vector.shape_cast %171 : vector<1x1x256xf32> to vector<1x256xf32>
    %173 = vector.broadcast %172 : vector<1x256xf32> to vector<32x256xf32>
    %174 = arith.mulf %118, %173 : vector<32x256xf32>
    %c4_91 = arith.constant 4 : index
    %c0_92 = arith.constant 0 : index
    %c0_93 = arith.constant 0 : index
    %175 = vector.load %arg4[%c4_91, %c0_92, %c0_93] : memref<9x32x32xf32, #tpu.memory_space<vmem>>, vector<1x32x32xf32>
    %176 = vector.shape_cast %175 : vector<1x32x32xf32> to vector<32x32xf32>
    %177 = arith.truncf %176 : vector<32x32xf32> to vector<32x32xbf16>
    %178 = arith.truncf %174 : vector<32x256xf32> to vector<32x256xbf16>
    %cst_94 = arith.constant dense<0.000000e+00> : vector<32x256xf32>
    %179 = tpu.matmul %177, %178, %cst_94 {dimension_numbers = #tpu.dot_dimension_numbers<[1], [0], [0], [1], [0, 0, 1, 1], [], []>} : vector<32x32xbf16>, vector<32x256xbf16>, vector<32x256xf32> -> vector<32x256xf32>
    %180 = arith.addf %170, %179 : vector<32x256xf32>
    %181 = vector.extract_strided_slice %118 {offsets = [0, 1], sizes = [32, 255], strides = [1, 1]} : vector<32x256xf32> to vector<32x255xf32>
    %182 = vector.extract_strided_slice %118 {offsets = [0, 0], sizes = [32, 1], strides = [1, 1]} : vector<32x256xf32> to vector<32x1xf32>
    %183 = tpu.concatenate %181, %182 in 1 : vector<32x255xf32>, vector<32x1xf32> -> vector<32x256xf32>
    %c5_95 = arith.constant 5 : index
    %c0_96 = arith.constant 0 : index
    %c0_97 = arith.constant 0 : index
    %184 = vector.load %arg5[%c5_95, %c0_96, %c0_97] : memref<9x1x256xf32, #tpu.memory_space<vmem>>, vector<1x1x256xf32>
    %185 = vector.shape_cast %184 : vector<1x1x256xf32> to vector<1x256xf32>
    %186 = vector.broadcast %185 : vector<1x256xf32> to vector<32x256xf32>
    %187 = arith.mulf %183, %186 : vector<32x256xf32>
    %c5_98 = arith.constant 5 : index
    %c0_99 = arith.constant 0 : index
    %c0_100 = arith.constant 0 : index
    %188 = vector.load %arg4[%c5_98, %c0_99, %c0_100] : memref<9x32x32xf32, #tpu.memory_space<vmem>>, vector<1x32x32xf32>
    %189 = vector.shape_cast %188 : vector<1x32x32xf32> to vector<32x32xf32>
    %190 = arith.truncf %189 : vector<32x32xf32> to vector<32x32xbf16>
    %191 = arith.truncf %187 : vector<32x256xf32> to vector<32x256xbf16>
    %cst_101 = arith.constant dense<0.000000e+00> : vector<32x256xf32>
    %192 = tpu.matmul %190, %191, %cst_101 {dimension_numbers = #tpu.dot_dimension_numbers<[1], [0], [0], [1], [0, 0, 1, 1], [], []>} : vector<32x32xbf16>, vector<32x256xbf16>, vector<32x256xf32> -> vector<32x256xf32>
    %193 = arith.addf %180, %192 : vector<32x256xf32>
    %194 = vector.extract_strided_slice %118 {offsets = [0, 15], sizes = [32, 241], strides = [1, 1]} : vector<32x256xf32> to vector<32x241xf32>
    %195 = vector.extract_strided_slice %118 {offsets = [0, 0], sizes = [32, 15], strides = [1, 1]} : vector<32x256xf32> to vector<32x15xf32>
    %196 = tpu.concatenate %194, %195 in 1 : vector<32x241xf32>, vector<32x15xf32> -> vector<32x256xf32>
    %c6_102 = arith.constant 6 : index
    %c0_103 = arith.constant 0 : index
    %c0_104 = arith.constant 0 : index
    %197 = vector.load %arg5[%c6_102, %c0_103, %c0_104] : memref<9x1x256xf32, #tpu.memory_space<vmem>>, vector<1x1x256xf32>
    %198 = vector.shape_cast %197 : vector<1x1x256xf32> to vector<1x256xf32>
    %199 = vector.broadcast %198 : vector<1x256xf32> to vector<32x256xf32>
    %200 = arith.mulf %196, %199 : vector<32x256xf32>
    %c6_105 = arith.constant 6 : index
    %c0_106 = arith.constant 0 : index
    %c0_107 = arith.constant 0 : index
    %201 = vector.load %arg4[%c6_105, %c0_106, %c0_107] : memref<9x32x32xf32, #tpu.memory_space<vmem>>, vector<1x32x32xf32>
    %202 = vector.shape_cast %201 : vector<1x32x32xf32> to vector<32x32xf32>
    %203 = arith.truncf %202 : vector<32x32xf32> to vector<32x32xbf16>
    %204 = arith.truncf %200 : vector<32x256xf32> to vector<32x256xbf16>
    %cst_108 = arith.constant dense<0.000000e+00> : vector<32x256xf32>
    %205 = tpu.matmul %203, %204, %cst_108 {dimension_numbers = #tpu.dot_dimension_numbers<[1], [0], [0], [1], [0, 0, 1, 1], [], []>} : vector<32x32xbf16>, vector<32x256xbf16>, vector<32x256xf32> -> vector<32x256xf32>
    %206 = arith.addf %193, %205 : vector<32x256xf32>
    %207 = vector.extract_strided_slice %118 {offsets = [0, 16], sizes = [32, 240], strides = [1, 1]} : vector<32x256xf32> to vector<32x240xf32>
    %208 = vector.extract_strided_slice %118 {offsets = [0, 0], sizes = [32, 16], strides = [1, 1]} : vector<32x256xf32> to vector<32x16xf32>
    %209 = tpu.concatenate %207, %208 in 1 : vector<32x240xf32>, vector<32x16xf32> -> vector<32x256xf32>
    %c7_109 = arith.constant 7 : index
    %c0_110 = arith.constant 0 : index
    %c0_111 = arith.constant 0 : index
    %210 = vector.load %arg5[%c7_109, %c0_110, %c0_111] : memref<9x1x256xf32, #tpu.memory_space<vmem>>, vector<1x1x256xf32>
    %211 = vector.shape_cast %210 : vector<1x1x256xf32> to vector<1x256xf32>
    %212 = vector.broadcast %211 : vector<1x256xf32> to vector<32x256xf32>
    %213 = arith.mulf %209, %212 : vector<32x256xf32>
    %c7_112 = arith.constant 7 : index
    %c0_113 = arith.constant 0 : index
    %c0_114 = arith.constant 0 : index
    %214 = vector.load %arg4[%c7_112, %c0_113, %c0_114] : memref<9x32x32xf32, #tpu.memory_space<vmem>>, vector<1x32x32xf32>
    %215 = vector.shape_cast %214 : vector<1x32x32xf32> to vector<32x32xf32>
    %216 = arith.truncf %215 : vector<32x32xf32> to vector<32x32xbf16>
    %217 = arith.truncf %213 : vector<32x256xf32> to vector<32x256xbf16>
    %cst_115 = arith.constant dense<0.000000e+00> : vector<32x256xf32>
    %218 = tpu.matmul %216, %217, %cst_115 {dimension_numbers = #tpu.dot_dimension_numbers<[1], [0], [0], [1], [0, 0, 1, 1], [], []>} : vector<32x32xbf16>, vector<32x256xbf16>, vector<32x256xf32> -> vector<32x256xf32>
    %219 = arith.addf %206, %218 : vector<32x256xf32>
    %220 = vector.extract_strided_slice %118 {offsets = [0, 17], sizes = [32, 239], strides = [1, 1]} : vector<32x256xf32> to vector<32x239xf32>
    %221 = vector.extract_strided_slice %118 {offsets = [0, 0], sizes = [32, 17], strides = [1, 1]} : vector<32x256xf32> to vector<32x17xf32>
    %222 = tpu.concatenate %220, %221 in 1 : vector<32x239xf32>, vector<32x17xf32> -> vector<32x256xf32>
    %c8_116 = arith.constant 8 : index
    %c0_117 = arith.constant 0 : index
    %c0_118 = arith.constant 0 : index
    %223 = vector.load %arg5[%c8_116, %c0_117, %c0_118] : memref<9x1x256xf32, #tpu.memory_space<vmem>>, vector<1x1x256xf32>
    %224 = vector.shape_cast %223 : vector<1x1x256xf32> to vector<1x256xf32>
    %225 = vector.broadcast %224 : vector<1x256xf32> to vector<32x256xf32>
    %226 = arith.mulf %222, %225 : vector<32x256xf32>
    %c8_119 = arith.constant 8 : index
    %c0_120 = arith.constant 0 : index
    %c0_121 = arith.constant 0 : index
    %227 = vector.load %arg4[%c8_119, %c0_120, %c0_121] : memref<9x32x32xf32, #tpu.memory_space<vmem>>, vector<1x32x32xf32>
    %228 = vector.shape_cast %227 : vector<1x32x32xf32> to vector<32x32xf32>
    %229 = arith.truncf %228 : vector<32x32xf32> to vector<32x32xbf16>
    %230 = arith.truncf %226 : vector<32x256xf32> to vector<32x256xbf16>
    %cst_122 = arith.constant dense<0.000000e+00> : vector<32x256xf32>
    %231 = tpu.matmul %229, %230, %cst_122 {dimension_numbers = #tpu.dot_dimension_numbers<[1], [0], [0], [1], [0, 0, 1, 1], [], []>} : vector<32x32xbf16>, vector<32x256xbf16>, vector<32x256xf32> -> vector<32x256xf32>
    %232 = arith.addf %219, %231 : vector<32x256xf32>
    %c0_123 = arith.constant 0 : index
    %c0_124 = arith.constant 0 : index
    %233 = vector.load %arg6[%c0_123, %c0_124] : memref<32x1xf32, #tpu.memory_space<vmem>>, vector<32x1xf32>
    %234 = vector.broadcast %233 : vector<32x1xf32> to vector<32x256xf32>
    %235 = arith.addf %232, %234 : vector<32x256xf32>
    %cst_125 = arith.constant 0.000000e+00 : f32
    %236 = vector.broadcast %cst_125 : f32 to vector<32x256xf32>
    %237 = arith.maximumf %235, %236 : vector<32x256xf32>
    %c0_126 = arith.constant 0 : index
    %c0_127 = arith.constant 0 : index
    %c0_128 = arith.constant 0 : index
    %238 = vector.load %arg7[%c0_126, %c0_127, %c0_128] : memref<1x32x256xf32, #tpu.memory_space<vmem>>, vector<1x32x256xf32>
    %239 = vector.shape_cast %238 : vector<1x32x256xf32> to vector<32x256xf32>
    %240 = vector.shape_cast %237 : vector<32x256xf32> to vector<1x32x256xf32>
    tpu.vector_store %arg7[%c0_126, %c0_127, %c0_128], %240 {strides = array<i32>} : memref<1x32x256xf32, #tpu.memory_space<vmem>>, vector<1x32x256xf32>,
    return
  }
  func.func @transform_0(%arg0: i32) -> (i32, i32, i32) {
    %c0_i32 = arith.constant 0 : i32
    %c0_i32_0 = arith.constant 0 : i32
    %c0_i32_1 = arith.constant 0 : i32
    return %arg0, %c0_i32, %c0_i32_0 : i32, i32, i32
  }
  func.func @transform_1(%arg0: i32) -> (i32, i32, i32) {
    %c0_i32 = arith.constant 0 : i32
    %c0_i32_0 = arith.constant 0 : i32
    %c0_i32_1 = arith.constant 0 : i32
    return %arg0, %c0_i32, %c0_i32_0 : i32, i32, i32
  }
  func.func @transform_2(%arg0: i32) -> (i32, i32, i32) {
    %c0_i32 = arith.constant 0 : i32
    %c0_i32_0 = arith.constant 0 : i32
    %c0_i32_1 = arith.constant 0 : i32
    %c0_i32_2 = arith.constant 0 : i32
    return %c0_i32, %c0_i32_0, %c0_i32_1 : i32, i32, i32
  }
  func.func @transform_3(%arg0: i32) -> (i32, i32, i32) {
    %c0_i32 = arith.constant 0 : i32
    %c0_i32_0 = arith.constant 0 : i32
    %c0_i32_1 = arith.constant 0 : i32
    %c0_i32_2 = arith.constant 0 : i32
    return %c0_i32, %c0_i32_0, %c0_i32_1 : i32, i32, i32
  }
  func.func @transform_4(%arg0: i32) -> (i32, i32, i32) {
    %c0_i32 = arith.constant 0 : i32
    %c0_i32_0 = arith.constant 0 : i32
    %c0_i32_1 = arith.constant 0 : i32
    %c0_i32_2 = arith.constant 0 : i32
    return %c0_i32, %c0_i32_0, %c0_i32_1 : i32, i32, i32
  }
  func.func @transform_5(%arg0: i32) -> (i32, i32) {
    %c0_i32 = arith.constant 0 : i32
    %c0_i32_0 = arith.constant 0 : i32
    %c0_i32_1 = arith.constant 0 : i32
    return %c0_i32, %c0_i32_0 : i32, i32
  }
  func.func @transform_6(%arg0: i32) -> (i32, i32, i32) {
    %c0_i32 = arith.constant 0 : i32
    %c0_i32_0 = arith.constant 0 : i32
    %c0_i32_1 = arith.constant 0 : i32
    return %arg0, %c0_i32, %c0_i32_0 : i32, i32, i32
  }
}

module attributes {stable_mosaic.version = 11 : i64} {
  func.func @_decoder_lstm_kernel(%arg0: memref<8x2xf32, #tpu.memory_space<vmem>>, %arg1: memref<8x48xf32, #tpu.memory_space<vmem>>, %arg2: memref<2x48xf32, #tpu.memory_space<vmem>>, %arg3: memref<1x48xf32, #tpu.memory_space<vmem>>, %arg4: memref<48x192xf32, #tpu.memory_space<vmem>>, %arg5: memref<48x192xf32, #tpu.memory_space<vmem>>, %arg6: memref<1x192xf32, #tpu.memory_space<vmem>>, %arg7: memref<48x2xf32, #tpu.memory_space<vmem>>, %arg8: memref<1x2xf32, #tpu.memory_space<vmem>>, %arg9: memref<8x24xf32, #tpu.memory_space<vmem>>) attributes {dimension_semantics = [], scalar_prefetch = 0 : i64, scratch_operands = 0 : i64, tpu.core_type = #tpu.core_type<tc>} {
    %c0 = arith.constant 0 : index
    %c0_0 = arith.constant 0 : index
    %0 = vector.load %arg2[%c0, %c0_0] : memref<2x48xf32, #tpu.memory_space<vmem>>, vector<2x48xf32>
    %c0_1 = arith.constant 0 : index
    %c0_2 = arith.constant 0 : index
    %1 = vector.load %arg3[%c0_1, %c0_2] : memref<1x48xf32, #tpu.memory_space<vmem>>, vector<1x48xf32>
    %c0_3 = arith.constant 0 : index
    %c0_4 = arith.constant 0 : index
    %2 = vector.load %arg4[%c0_3, %c0_4] : memref<48x192xf32, #tpu.memory_space<vmem>>, vector<48x192xf32>
    %c0_5 = arith.constant 0 : index
    %c0_6 = arith.constant 0 : index
    %3 = vector.load %arg5[%c0_5, %c0_6] : memref<48x192xf32, #tpu.memory_space<vmem>>, vector<48x192xf32>
    %c0_7 = arith.constant 0 : index
    %c0_8 = arith.constant 0 : index
    %4 = vector.load %arg6[%c0_7, %c0_8] : memref<1x192xf32, #tpu.memory_space<vmem>>, vector<1x192xf32>
    %c0_9 = arith.constant 0 : index
    %c0_10 = arith.constant 0 : index
    %5 = vector.load %arg7[%c0_9, %c0_10] : memref<48x2xf32, #tpu.memory_space<vmem>>, vector<48x2xf32>
    %c0_11 = arith.constant 0 : index
    %c0_12 = arith.constant 0 : index
    %6 = vector.load %arg8[%c0_11, %c0_12] : memref<1x2xf32, #tpu.memory_space<vmem>>, vector<1x2xf32>
    %c0_13 = arith.constant 0 : index
    %c0_14 = arith.constant 0 : index
    %7 = vector.load %arg1[%c0_13, %c0_14] : memref<8x48xf32, #tpu.memory_space<vmem>>, vector<8x48xf32>
    %cst = arith.constant 0.000000e+00 : f32
    %8 = vector.broadcast %cst : f32 to vector<8x48xf32>
    %c0_15 = arith.constant 0 : index
    %c0_16 = arith.constant 0 : index
    %9 = vector.load %arg0[%c0_15, %c0_16] : memref<8x2xf32, #tpu.memory_space<vmem>>, vector<8x2xf32>
    %cst_17 = arith.constant dense<0.000000e+00> : vector<8x48xf32>
    %10 = tpu.matmul %9, %0, %cst_17 {dimension_numbers = #tpu.dot_dimension_numbers<[1], [0], [0], [1], [0, 0, 1, 1], [], []>} : vector<8x2xf32>, vector<2x48xf32>, vector<8x48xf32> -> vector<8x48xf32>
    %11 = vector.broadcast %1 : vector<1x48xf32> to vector<8x48xf32>
    %12 = arith.addf %10, %11 : vector<8x48xf32>
    %cst_18 = arith.constant dense<0.000000e+00> : vector<8x192xf32>
    %13 = tpu.matmul %12, %2, %cst_18 {dimension_numbers = #tpu.dot_dimension_numbers<[1], [0], [0], [1], [0, 0, 1, 1], [], []>} : vector<8x48xf32>, vector<48x192xf32>, vector<8x192xf32> -> vector<8x192xf32>
    %cst_19 = arith.constant dense<0.000000e+00> : vector<8x192xf32>
    %14 = tpu.matmul %7, %3, %cst_19 {dimension_numbers = #tpu.dot_dimension_numbers<[1], [0], [0], [1], [0, 0, 1, 1], [], []>} : vector<8x48xf32>, vector<48x192xf32>, vector<8x192xf32> -> vector<8x192xf32>
    %15 = arith.addf %13, %14 : vector<8x192xf32>
    %16 = vector.broadcast %4 : vector<1x192xf32> to vector<8x192xf32>
    %17 = arith.addf %15, %16 : vector<8x192xf32>
    %18 = vector.extract_strided_slice %17 {offsets = [0, 0], sizes = [8, 48], strides = [1, 1]} : vector<8x192xf32> to vector<8x48xf32>
    %19 = arith.negf %18 : vector<8x48xf32>
    %20 = math.exp %19 : vector<8x48xf32>
    %cst_20 = arith.constant 1.000000e+00 : f32
    %21 = vector.broadcast %cst_20 : f32 to vector<8x48xf32>
    %22 = arith.addf %21, %20 : vector<8x48xf32>
    %23 = arith.divf %21, %22 : vector<8x48xf32>
    %24 = vector.extract_strided_slice %17 {offsets = [0, 48], sizes = [8, 48], strides = [1, 1]} : vector<8x192xf32> to vector<8x48xf32>
    %25 = arith.negf %24 : vector<8x48xf32>
    %26 = math.exp %25 : vector<8x48xf32>
    %cst_21 = arith.constant 1.000000e+00 : f32
    %27 = vector.broadcast %cst_21 : f32 to vector<8x48xf32>
    %28 = arith.addf %27, %26 : vector<8x48xf32>
    %29 = arith.divf %27, %28 : vector<8x48xf32>
    %30 = vector.extract_strided_slice %17 {offsets = [0, 96], sizes = [8, 48], strides = [1, 1]} : vector<8x192xf32> to vector<8x48xf32>
    %31 = math.tanh %30 : vector<8x48xf32>
    %32 = vector.extract_strided_slice %17 {offsets = [0, 144], sizes = [8, 48], strides = [1, 1]} : vector<8x192xf32> to vector<8x48xf32>
    %33 = arith.negf %32 : vector<8x48xf32>
    %34 = math.exp %33 : vector<8x48xf32>
    %cst_22 = arith.constant 1.000000e+00 : f32
    %35 = vector.broadcast %cst_22 : f32 to vector<8x48xf32>
    %36 = arith.addf %35, %34 : vector<8x48xf32>
    %37 = arith.divf %35, %36 : vector<8x48xf32>
    %38 = arith.mulf %29, %8 : vector<8x48xf32>
    %39 = arith.mulf %23, %31 : vector<8x48xf32>
    %40 = arith.addf %38, %39 : vector<8x48xf32>
    %41 = math.tanh %40 : vector<8x48xf32>
    %42 = arith.mulf %37, %41 : vector<8x48xf32>
    %cst_23 = arith.constant dense<0.000000e+00> : vector<8x2xf32>
    %43 = tpu.matmul %42, %5, %cst_23 {dimension_numbers = #tpu.dot_dimension_numbers<[1], [0], [0], [1], [0, 0, 1, 1], [], []>} : vector<8x48xf32>, vector<48x2xf32>, vector<8x2xf32> -> vector<8x2xf32>
    %44 = vector.broadcast %6 : vector<1x2xf32> to vector<8x2xf32>
    %45 = arith.addf %43, %44 : vector<8x2xf32>
    %c0_24 = arith.constant 0 : index
    %c0_25 = arith.constant 0 : index
    %46 = vector.load %arg9[%c0_24, %c0_25] : memref<8x24xf32, #tpu.memory_space<vmem>>, vector<8x2xf32>
    tpu.vector_store %arg9[%c0_24, %c0_25], %45 {strides = array<i32>} : memref<8x24xf32, #tpu.memory_space<vmem>>, vector<8x2xf32>,
    %cst_26 = arith.constant dense<0.000000e+00> : vector<8x48xf32>
    %47 = tpu.matmul %45, %0, %cst_26 {dimension_numbers = #tpu.dot_dimension_numbers<[1], [0], [0], [1], [0, 0, 1, 1], [], []>} : vector<8x2xf32>, vector<2x48xf32>, vector<8x48xf32> -> vector<8x48xf32>
    %48 = vector.broadcast %1 : vector<1x48xf32> to vector<8x48xf32>
    %49 = arith.addf %47, %48 : vector<8x48xf32>
    %cst_27 = arith.constant dense<0.000000e+00> : vector<8x192xf32>
    %50 = tpu.matmul %49, %2, %cst_27 {dimension_numbers = #tpu.dot_dimension_numbers<[1], [0], [0], [1], [0, 0, 1, 1], [], []>} : vector<8x48xf32>, vector<48x192xf32>, vector<8x192xf32> -> vector<8x192xf32>
    %cst_28 = arith.constant dense<0.000000e+00> : vector<8x192xf32>
    %51 = tpu.matmul %42, %3, %cst_28 {dimension_numbers = #tpu.dot_dimension_numbers<[1], [0], [0], [1], [0, 0, 1, 1], [], []>} : vector<8x48xf32>, vector<48x192xf32>, vector<8x192xf32> -> vector<8x192xf32>
    %52 = arith.addf %50, %51 : vector<8x192xf32>
    %53 = vector.broadcast %4 : vector<1x192xf32> to vector<8x192xf32>
    %54 = arith.addf %52, %53 : vector<8x192xf32>
    %55 = vector.extract_strided_slice %54 {offsets = [0, 0], sizes = [8, 48], strides = [1, 1]} : vector<8x192xf32> to vector<8x48xf32>
    %56 = arith.negf %55 : vector<8x48xf32>
    %57 = math.exp %56 : vector<8x48xf32>
    %cst_29 = arith.constant 1.000000e+00 : f32
    %58 = vector.broadcast %cst_29 : f32 to vector<8x48xf32>
    %59 = arith.addf %58, %57 : vector<8x48xf32>
    %60 = arith.divf %58, %59 : vector<8x48xf32>
    %61 = vector.extract_strided_slice %54 {offsets = [0, 48], sizes = [8, 48], strides = [1, 1]} : vector<8x192xf32> to vector<8x48xf32>
    %62 = arith.negf %61 : vector<8x48xf32>
    %63 = math.exp %62 : vector<8x48xf32>
    %cst_30 = arith.constant 1.000000e+00 : f32
    %64 = vector.broadcast %cst_30 : f32 to vector<8x48xf32>
    %65 = arith.addf %64, %63 : vector<8x48xf32>
    %66 = arith.divf %64, %65 : vector<8x48xf32>
    %67 = vector.extract_strided_slice %54 {offsets = [0, 96], sizes = [8, 48], strides = [1, 1]} : vector<8x192xf32> to vector<8x48xf32>
    %68 = math.tanh %67 : vector<8x48xf32>
    %69 = vector.extract_strided_slice %54 {offsets = [0, 144], sizes = [8, 48], strides = [1, 1]} : vector<8x192xf32> to vector<8x48xf32>
    %70 = arith.negf %69 : vector<8x48xf32>
    %71 = math.exp %70 : vector<8x48xf32>
    %cst_31 = arith.constant 1.000000e+00 : f32
    %72 = vector.broadcast %cst_31 : f32 to vector<8x48xf32>
    %73 = arith.addf %72, %71 : vector<8x48xf32>
    %74 = arith.divf %72, %73 : vector<8x48xf32>
    %75 = arith.mulf %66, %40 : vector<8x48xf32>
    %76 = arith.mulf %60, %68 : vector<8x48xf32>
    %77 = arith.addf %75, %76 : vector<8x48xf32>
    %78 = math.tanh %77 : vector<8x48xf32>
    %79 = arith.mulf %74, %78 : vector<8x48xf32>
    %cst_32 = arith.constant dense<0.000000e+00> : vector<8x2xf32>
    %80 = tpu.matmul %79, %5, %cst_32 {dimension_numbers = #tpu.dot_dimension_numbers<[1], [0], [0], [1], [0, 0, 1, 1], [], []>} : vector<8x48xf32>, vector<48x2xf32>, vector<8x2xf32> -> vector<8x2xf32>
    %81 = vector.broadcast %6 : vector<1x2xf32> to vector<8x2xf32>
    %82 = arith.addf %80, %81 : vector<8x2xf32>
    %c0_33 = arith.constant 0 : index
    %c2 = arith.constant 2 : index
    %83 = vector.load %arg9[%c0_33, %c2] : memref<8x24xf32, #tpu.memory_space<vmem>>, vector<8x2xf32>
    tpu.vector_store %arg9[%c0_33, %c2], %82 {strides = array<i32>} : memref<8x24xf32, #tpu.memory_space<vmem>>, vector<8x2xf32>,
    %cst_34 = arith.constant dense<0.000000e+00> : vector<8x48xf32>
    %84 = tpu.matmul %82, %0, %cst_34 {dimension_numbers = #tpu.dot_dimension_numbers<[1], [0], [0], [1], [0, 0, 1, 1], [], []>} : vector<8x2xf32>, vector<2x48xf32>, vector<8x48xf32> -> vector<8x48xf32>
    %85 = vector.broadcast %1 : vector<1x48xf32> to vector<8x48xf32>
    %86 = arith.addf %84, %85 : vector<8x48xf32>
    %cst_35 = arith.constant dense<0.000000e+00> : vector<8x192xf32>
    %87 = tpu.matmul %86, %2, %cst_35 {dimension_numbers = #tpu.dot_dimension_numbers<[1], [0], [0], [1], [0, 0, 1, 1], [], []>} : vector<8x48xf32>, vector<48x192xf32>, vector<8x192xf32> -> vector<8x192xf32>
    %cst_36 = arith.constant dense<0.000000e+00> : vector<8x192xf32>
    %88 = tpu.matmul %79, %3, %cst_36 {dimension_numbers = #tpu.dot_dimension_numbers<[1], [0], [0], [1], [0, 0, 1, 1], [], []>} : vector<8x48xf32>, vector<48x192xf32>, vector<8x192xf32> -> vector<8x192xf32>
    %89 = arith.addf %87, %88 : vector<8x192xf32>
    %90 = vector.broadcast %4 : vector<1x192xf32> to vector<8x192xf32>
    %91 = arith.addf %89, %90 : vector<8x192xf32>
    %92 = vector.extract_strided_slice %91 {offsets = [0, 0], sizes = [8, 48], strides = [1, 1]} : vector<8x192xf32> to vector<8x48xf32>
    %93 = arith.negf %92 : vector<8x48xf32>
    %94 = math.exp %93 : vector<8x48xf32>
    %cst_37 = arith.constant 1.000000e+00 : f32
    %95 = vector.broadcast %cst_37 : f32 to vector<8x48xf32>
    %96 = arith.addf %95, %94 : vector<8x48xf32>
    %97 = arith.divf %95, %96 : vector<8x48xf32>
    %98 = vector.extract_strided_slice %91 {offsets = [0, 48], sizes = [8, 48], strides = [1, 1]} : vector<8x192xf32> to vector<8x48xf32>
    %99 = arith.negf %98 : vector<8x48xf32>
    %100 = math.exp %99 : vector<8x48xf32>
    %cst_38 = arith.constant 1.000000e+00 : f32
    %101 = vector.broadcast %cst_38 : f32 to vector<8x48xf32>
    %102 = arith.addf %101, %100 : vector<8x48xf32>
    %103 = arith.divf %101, %102 : vector<8x48xf32>
    %104 = vector.extract_strided_slice %91 {offsets = [0, 96], sizes = [8, 48], strides = [1, 1]} : vector<8x192xf32> to vector<8x48xf32>
    %105 = math.tanh %104 : vector<8x48xf32>
    %106 = vector.extract_strided_slice %91 {offsets = [0, 144], sizes = [8, 48], strides = [1, 1]} : vector<8x192xf32> to vector<8x48xf32>
    %107 = arith.negf %106 : vector<8x48xf32>
    %108 = math.exp %107 : vector<8x48xf32>
    %cst_39 = arith.constant 1.000000e+00 : f32
    %109 = vector.broadcast %cst_39 : f32 to vector<8x48xf32>
    %110 = arith.addf %109, %108 : vector<8x48xf32>
    %111 = arith.divf %109, %110 : vector<8x48xf32>
    %112 = arith.mulf %103, %77 : vector<8x48xf32>
    %113 = arith.mulf %97, %105 : vector<8x48xf32>
    %114 = arith.addf %112, %113 : vector<8x48xf32>
    %115 = math.tanh %114 : vector<8x48xf32>
    %116 = arith.mulf %111, %115 : vector<8x48xf32>
    %cst_40 = arith.constant dense<0.000000e+00> : vector<8x2xf32>
    %117 = tpu.matmul %116, %5, %cst_40 {dimension_numbers = #tpu.dot_dimension_numbers<[1], [0], [0], [1], [0, 0, 1, 1], [], []>} : vector<8x48xf32>, vector<48x2xf32>, vector<8x2xf32> -> vector<8x2xf32>
    %118 = vector.broadcast %6 : vector<1x2xf32> to vector<8x2xf32>
    %119 = arith.addf %117, %118 : vector<8x2xf32>
    %c0_41 = arith.constant 0 : index
    %c4 = arith.constant 4 : index
    %120 = vector.load %arg9[%c0_41, %c4] : memref<8x24xf32, #tpu.memory_space<vmem>>, vector<8x2xf32>
    tpu.vector_store %arg9[%c0_41, %c4], %119 {strides = array<i32>} : memref<8x24xf32, #tpu.memory_space<vmem>>, vector<8x2xf32>,
    %cst_42 = arith.constant dense<0.000000e+00> : vector<8x48xf32>
    %121 = tpu.matmul %119, %0, %cst_42 {dimension_numbers = #tpu.dot_dimension_numbers<[1], [0], [0], [1], [0, 0, 1, 1], [], []>} : vector<8x2xf32>, vector<2x48xf32>, vector<8x48xf32> -> vector<8x48xf32>
    %122 = vector.broadcast %1 : vector<1x48xf32> to vector<8x48xf32>
    %123 = arith.addf %121, %122 : vector<8x48xf32>
    %cst_43 = arith.constant dense<0.000000e+00> : vector<8x192xf32>
    %124 = tpu.matmul %123, %2, %cst_43 {dimension_numbers = #tpu.dot_dimension_numbers<[1], [0], [0], [1], [0, 0, 1, 1], [], []>} : vector<8x48xf32>, vector<48x192xf32>, vector<8x192xf32> -> vector<8x192xf32>
    %cst_44 = arith.constant dense<0.000000e+00> : vector<8x192xf32>
    %125 = tpu.matmul %116, %3, %cst_44 {dimension_numbers = #tpu.dot_dimension_numbers<[1], [0], [0], [1], [0, 0, 1, 1], [], []>} : vector<8x48xf32>, vector<48x192xf32>, vector<8x192xf32> -> vector<8x192xf32>
    %126 = arith.addf %124, %125 : vector<8x192xf32>
    %127 = vector.broadcast %4 : vector<1x192xf32> to vector<8x192xf32>
    %128 = arith.addf %126, %127 : vector<8x192xf32>
    %129 = vector.extract_strided_slice %128 {offsets = [0, 0], sizes = [8, 48], strides = [1, 1]} : vector<8x192xf32> to vector<8x48xf32>
    %130 = arith.negf %129 : vector<8x48xf32>
    %131 = math.exp %130 : vector<8x48xf32>
    %cst_45 = arith.constant 1.000000e+00 : f32
    %132 = vector.broadcast %cst_45 : f32 to vector<8x48xf32>
    %133 = arith.addf %132, %131 : vector<8x48xf32>
    %134 = arith.divf %132, %133 : vector<8x48xf32>
    %135 = vector.extract_strided_slice %128 {offsets = [0, 48], sizes = [8, 48], strides = [1, 1]} : vector<8x192xf32> to vector<8x48xf32>
    %136 = arith.negf %135 : vector<8x48xf32>
    %137 = math.exp %136 : vector<8x48xf32>
    %cst_46 = arith.constant 1.000000e+00 : f32
    %138 = vector.broadcast %cst_46 : f32 to vector<8x48xf32>
    %139 = arith.addf %138, %137 : vector<8x48xf32>
    %140 = arith.divf %138, %139 : vector<8x48xf32>
    %141 = vector.extract_strided_slice %128 {offsets = [0, 96], sizes = [8, 48], strides = [1, 1]} : vector<8x192xf32> to vector<8x48xf32>
    %142 = math.tanh %141 : vector<8x48xf32>
    %143 = vector.extract_strided_slice %128 {offsets = [0, 144], sizes = [8, 48], strides = [1, 1]} : vector<8x192xf32> to vector<8x48xf32>
    %144 = arith.negf %143 : vector<8x48xf32>
    %145 = math.exp %144 : vector<8x48xf32>
    %cst_47 = arith.constant 1.000000e+00 : f32
    %146 = vector.broadcast %cst_47 : f32 to vector<8x48xf32>
    %147 = arith.addf %146, %145 : vector<8x48xf32>
    %148 = arith.divf %146, %147 : vector<8x48xf32>
    %149 = arith.mulf %140, %114 : vector<8x48xf32>
    %150 = arith.mulf %134, %142 : vector<8x48xf32>
    %151 = arith.addf %149, %150 : vector<8x48xf32>
    %152 = math.tanh %151 : vector<8x48xf32>
    %153 = arith.mulf %148, %152 : vector<8x48xf32>
    %cst_48 = arith.constant dense<0.000000e+00> : vector<8x2xf32>
    %154 = tpu.matmul %153, %5, %cst_48 {dimension_numbers = #tpu.dot_dimension_numbers<[1], [0], [0], [1], [0, 0, 1, 1], [], []>} : vector<8x48xf32>, vector<48x2xf32>, vector<8x2xf32> -> vector<8x2xf32>
    %155 = vector.broadcast %6 : vector<1x2xf32> to vector<8x2xf32>
    %156 = arith.addf %154, %155 : vector<8x2xf32>
    %c0_49 = arith.constant 0 : index
    %c6 = arith.constant 6 : index
    %157 = vector.load %arg9[%c0_49, %c6] : memref<8x24xf32, #tpu.memory_space<vmem>>, vector<8x2xf32>
    tpu.vector_store %arg9[%c0_49, %c6], %156 {strides = array<i32>} : memref<8x24xf32, #tpu.memory_space<vmem>>, vector<8x2xf32>,
    %cst_50 = arith.constant dense<0.000000e+00> : vector<8x48xf32>
    %158 = tpu.matmul %156, %0, %cst_50 {dimension_numbers = #tpu.dot_dimension_numbers<[1], [0], [0], [1], [0, 0, 1, 1], [], []>} : vector<8x2xf32>, vector<2x48xf32>, vector<8x48xf32> -> vector<8x48xf32>
    %159 = vector.broadcast %1 : vector<1x48xf32> to vector<8x48xf32>
    %160 = arith.addf %158, %159 : vector<8x48xf32>
    %cst_51 = arith.constant dense<0.000000e+00> : vector<8x192xf32>
    %161 = tpu.matmul %160, %2, %cst_51 {dimension_numbers = #tpu.dot_dimension_numbers<[1], [0], [0], [1], [0, 0, 1, 1], [], []>} : vector<8x48xf32>, vector<48x192xf32>, vector<8x192xf32> -> vector<8x192xf32>
    %cst_52 = arith.constant dense<0.000000e+00> : vector<8x192xf32>
    %162 = tpu.matmul %153, %3, %cst_52 {dimension_numbers = #tpu.dot_dimension_numbers<[1], [0], [0], [1], [0, 0, 1, 1], [], []>} : vector<8x48xf32>, vector<48x192xf32>, vector<8x192xf32> -> vector<8x192xf32>
    %163 = arith.addf %161, %162 : vector<8x192xf32>
    %164 = vector.broadcast %4 : vector<1x192xf32> to vector<8x192xf32>
    %165 = arith.addf %163, %164 : vector<8x192xf32>
    %166 = vector.extract_strided_slice %165 {offsets = [0, 0], sizes = [8, 48], strides = [1, 1]} : vector<8x192xf32> to vector<8x48xf32>
    %167 = arith.negf %166 : vector<8x48xf32>
    %168 = math.exp %167 : vector<8x48xf32>
    %cst_53 = arith.constant 1.000000e+00 : f32
    %169 = vector.broadcast %cst_53 : f32 to vector<8x48xf32>
    %170 = arith.addf %169, %168 : vector<8x48xf32>
    %171 = arith.divf %169, %170 : vector<8x48xf32>
    %172 = vector.extract_strided_slice %165 {offsets = [0, 48], sizes = [8, 48], strides = [1, 1]} : vector<8x192xf32> to vector<8x48xf32>
    %173 = arith.negf %172 : vector<8x48xf32>
    %174 = math.exp %173 : vector<8x48xf32>
    %cst_54 = arith.constant 1.000000e+00 : f32
    %175 = vector.broadcast %cst_54 : f32 to vector<8x48xf32>
    %176 = arith.addf %175, %174 : vector<8x48xf32>
    %177 = arith.divf %175, %176 : vector<8x48xf32>
    %178 = vector.extract_strided_slice %165 {offsets = [0, 96], sizes = [8, 48], strides = [1, 1]} : vector<8x192xf32> to vector<8x48xf32>
    %179 = math.tanh %178 : vector<8x48xf32>
    %180 = vector.extract_strided_slice %165 {offsets = [0, 144], sizes = [8, 48], strides = [1, 1]} : vector<8x192xf32> to vector<8x48xf32>
    %181 = arith.negf %180 : vector<8x48xf32>
    %182 = math.exp %181 : vector<8x48xf32>
    %cst_55 = arith.constant 1.000000e+00 : f32
    %183 = vector.broadcast %cst_55 : f32 to vector<8x48xf32>
    %184 = arith.addf %183, %182 : vector<8x48xf32>
    %185 = arith.divf %183, %184 : vector<8x48xf32>
    %186 = arith.mulf %177, %151 : vector<8x48xf32>
    %187 = arith.mulf %171, %179 : vector<8x48xf32>
    %188 = arith.addf %186, %187 : vector<8x48xf32>
    %189 = math.tanh %188 : vector<8x48xf32>
    %190 = arith.mulf %185, %189 : vector<8x48xf32>
    %cst_56 = arith.constant dense<0.000000e+00> : vector<8x2xf32>
    %191 = tpu.matmul %190, %5, %cst_56 {dimension_numbers = #tpu.dot_dimension_numbers<[1], [0], [0], [1], [0, 0, 1, 1], [], []>} : vector<8x48xf32>, vector<48x2xf32>, vector<8x2xf32> -> vector<8x2xf32>
    %192 = vector.broadcast %6 : vector<1x2xf32> to vector<8x2xf32>
    %193 = arith.addf %191, %192 : vector<8x2xf32>
    %c0_57 = arith.constant 0 : index
    %c8 = arith.constant 8 : index
    %194 = vector.load %arg9[%c0_57, %c8] : memref<8x24xf32, #tpu.memory_space<vmem>>, vector<8x2xf32>
    tpu.vector_store %arg9[%c0_57, %c8], %193 {strides = array<i32>} : memref<8x24xf32, #tpu.memory_space<vmem>>, vector<8x2xf32>,
    %cst_58 = arith.constant dense<0.000000e+00> : vector<8x48xf32>
    %195 = tpu.matmul %193, %0, %cst_58 {dimension_numbers = #tpu.dot_dimension_numbers<[1], [0], [0], [1], [0, 0, 1, 1], [], []>} : vector<8x2xf32>, vector<2x48xf32>, vector<8x48xf32> -> vector<8x48xf32>
    %196 = vector.broadcast %1 : vector<1x48xf32> to vector<8x48xf32>
    %197 = arith.addf %195, %196 : vector<8x48xf32>
    %cst_59 = arith.constant dense<0.000000e+00> : vector<8x192xf32>
    %198 = tpu.matmul %197, %2, %cst_59 {dimension_numbers = #tpu.dot_dimension_numbers<[1], [0], [0], [1], [0, 0, 1, 1], [], []>} : vector<8x48xf32>, vector<48x192xf32>, vector<8x192xf32> -> vector<8x192xf32>
    %cst_60 = arith.constant dense<0.000000e+00> : vector<8x192xf32>
    %199 = tpu.matmul %190, %3, %cst_60 {dimension_numbers = #tpu.dot_dimension_numbers<[1], [0], [0], [1], [0, 0, 1, 1], [], []>} : vector<8x48xf32>, vector<48x192xf32>, vector<8x192xf32> -> vector<8x192xf32>
    %200 = arith.addf %198, %199 : vector<8x192xf32>
    %201 = vector.broadcast %4 : vector<1x192xf32> to vector<8x192xf32>
    %202 = arith.addf %200, %201 : vector<8x192xf32>
    %203 = vector.extract_strided_slice %202 {offsets = [0, 0], sizes = [8, 48], strides = [1, 1]} : vector<8x192xf32> to vector<8x48xf32>
    %204 = arith.negf %203 : vector<8x48xf32>
    %205 = math.exp %204 : vector<8x48xf32>
    %cst_61 = arith.constant 1.000000e+00 : f32
    %206 = vector.broadcast %cst_61 : f32 to vector<8x48xf32>
    %207 = arith.addf %206, %205 : vector<8x48xf32>
    %208 = arith.divf %206, %207 : vector<8x48xf32>
    %209 = vector.extract_strided_slice %202 {offsets = [0, 48], sizes = [8, 48], strides = [1, 1]} : vector<8x192xf32> to vector<8x48xf32>
    %210 = arith.negf %209 : vector<8x48xf32>
    %211 = math.exp %210 : vector<8x48xf32>
    %cst_62 = arith.constant 1.000000e+00 : f32
    %212 = vector.broadcast %cst_62 : f32 to vector<8x48xf32>
    %213 = arith.addf %212, %211 : vector<8x48xf32>
    %214 = arith.divf %212, %213 : vector<8x48xf32>
    %215 = vector.extract_strided_slice %202 {offsets = [0, 96], sizes = [8, 48], strides = [1, 1]} : vector<8x192xf32> to vector<8x48xf32>
    %216 = math.tanh %215 : vector<8x48xf32>
    %217 = vector.extract_strided_slice %202 {offsets = [0, 144], sizes = [8, 48], strides = [1, 1]} : vector<8x192xf32> to vector<8x48xf32>
    %218 = arith.negf %217 : vector<8x48xf32>
    %219 = math.exp %218 : vector<8x48xf32>
    %cst_63 = arith.constant 1.000000e+00 : f32
    %220 = vector.broadcast %cst_63 : f32 to vector<8x48xf32>
    %221 = arith.addf %220, %219 : vector<8x48xf32>
    %222 = arith.divf %220, %221 : vector<8x48xf32>
    %223 = arith.mulf %214, %188 : vector<8x48xf32>
    %224 = arith.mulf %208, %216 : vector<8x48xf32>
    %225 = arith.addf %223, %224 : vector<8x48xf32>
    %226 = math.tanh %225 : vector<8x48xf32>
    %227 = arith.mulf %222, %226 : vector<8x48xf32>
    %cst_64 = arith.constant dense<0.000000e+00> : vector<8x2xf32>
    %228 = tpu.matmul %227, %5, %cst_64 {dimension_numbers = #tpu.dot_dimension_numbers<[1], [0], [0], [1], [0, 0, 1, 1], [], []>} : vector<8x48xf32>, vector<48x2xf32>, vector<8x2xf32> -> vector<8x2xf32>
    %229 = vector.broadcast %6 : vector<1x2xf32> to vector<8x2xf32>
    %230 = arith.addf %228, %229 : vector<8x2xf32>
    %c0_65 = arith.constant 0 : index
    %c10 = arith.constant 10 : index
    %231 = vector.load %arg9[%c0_65, %c10] : memref<8x24xf32, #tpu.memory_space<vmem>>, vector<8x2xf32>
    tpu.vector_store %arg9[%c0_65, %c10], %230 {strides = array<i32>} : memref<8x24xf32, #tpu.memory_space<vmem>>, vector<8x2xf32>,
    %cst_66 = arith.constant dense<0.000000e+00> : vector<8x48xf32>
    %232 = tpu.matmul %230, %0, %cst_66 {dimension_numbers = #tpu.dot_dimension_numbers<[1], [0], [0], [1], [0, 0, 1, 1], [], []>} : vector<8x2xf32>, vector<2x48xf32>, vector<8x48xf32> -> vector<8x48xf32>
    %233 = vector.broadcast %1 : vector<1x48xf32> to vector<8x48xf32>
    %234 = arith.addf %232, %233 : vector<8x48xf32>
    %cst_67 = arith.constant dense<0.000000e+00> : vector<8x192xf32>
    %235 = tpu.matmul %234, %2, %cst_67 {dimension_numbers = #tpu.dot_dimension_numbers<[1], [0], [0], [1], [0, 0, 1, 1], [], []>} : vector<8x48xf32>, vector<48x192xf32>, vector<8x192xf32> -> vector<8x192xf32>
    %cst_68 = arith.constant dense<0.000000e+00> : vector<8x192xf32>
    %236 = tpu.matmul %227, %3, %cst_68 {dimension_numbers = #tpu.dot_dimension_numbers<[1], [0], [0], [1], [0, 0, 1, 1], [], []>} : vector<8x48xf32>, vector<48x192xf32>, vector<8x192xf32> -> vector<8x192xf32>
    %237 = arith.addf %235, %236 : vector<8x192xf32>
    %238 = vector.broadcast %4 : vector<1x192xf32> to vector<8x192xf32>
    %239 = arith.addf %237, %238 : vector<8x192xf32>
    %240 = vector.extract_strided_slice %239 {offsets = [0, 0], sizes = [8, 48], strides = [1, 1]} : vector<8x192xf32> to vector<8x48xf32>
    %241 = arith.negf %240 : vector<8x48xf32>
    %242 = math.exp %241 : vector<8x48xf32>
    %cst_69 = arith.constant 1.000000e+00 : f32
    %243 = vector.broadcast %cst_69 : f32 to vector<8x48xf32>
    %244 = arith.addf %243, %242 : vector<8x48xf32>
    %245 = arith.divf %243, %244 : vector<8x48xf32>
    %246 = vector.extract_strided_slice %239 {offsets = [0, 48], sizes = [8, 48], strides = [1, 1]} : vector<8x192xf32> to vector<8x48xf32>
    %247 = arith.negf %246 : vector<8x48xf32>
    %248 = math.exp %247 : vector<8x48xf32>
    %cst_70 = arith.constant 1.000000e+00 : f32
    %249 = vector.broadcast %cst_70 : f32 to vector<8x48xf32>
    %250 = arith.addf %249, %248 : vector<8x48xf32>
    %251 = arith.divf %249, %250 : vector<8x48xf32>
    %252 = vector.extract_strided_slice %239 {offsets = [0, 96], sizes = [8, 48], strides = [1, 1]} : vector<8x192xf32> to vector<8x48xf32>
    %253 = math.tanh %252 : vector<8x48xf32>
    %254 = vector.extract_strided_slice %239 {offsets = [0, 144], sizes = [8, 48], strides = [1, 1]} : vector<8x192xf32> to vector<8x48xf32>
    %255 = arith.negf %254 : vector<8x48xf32>
    %256 = math.exp %255 : vector<8x48xf32>
    %cst_71 = arith.constant 1.000000e+00 : f32
    %257 = vector.broadcast %cst_71 : f32 to vector<8x48xf32>
    %258 = arith.addf %257, %256 : vector<8x48xf32>
    %259 = arith.divf %257, %258 : vector<8x48xf32>
    %260 = arith.mulf %251, %225 : vector<8x48xf32>
    %261 = arith.mulf %245, %253 : vector<8x48xf32>
    %262 = arith.addf %260, %261 : vector<8x48xf32>
    %263 = math.tanh %262 : vector<8x48xf32>
    %264 = arith.mulf %259, %263 : vector<8x48xf32>
    %cst_72 = arith.constant dense<0.000000e+00> : vector<8x2xf32>
    %265 = tpu.matmul %264, %5, %cst_72 {dimension_numbers = #tpu.dot_dimension_numbers<[1], [0], [0], [1], [0, 0, 1, 1], [], []>} : vector<8x48xf32>, vector<48x2xf32>, vector<8x2xf32> -> vector<8x2xf32>
    %266 = vector.broadcast %6 : vector<1x2xf32> to vector<8x2xf32>
    %267 = arith.addf %265, %266 : vector<8x2xf32>
    %c0_73 = arith.constant 0 : index
    %c12 = arith.constant 12 : index
    %268 = vector.load %arg9[%c0_73, %c12] : memref<8x24xf32, #tpu.memory_space<vmem>>, vector<8x2xf32>
    tpu.vector_store %arg9[%c0_73, %c12], %267 {strides = array<i32>} : memref<8x24xf32, #tpu.memory_space<vmem>>, vector<8x2xf32>,
    %cst_74 = arith.constant dense<0.000000e+00> : vector<8x48xf32>
    %269 = tpu.matmul %267, %0, %cst_74 {dimension_numbers = #tpu.dot_dimension_numbers<[1], [0], [0], [1], [0, 0, 1, 1], [], []>} : vector<8x2xf32>, vector<2x48xf32>, vector<8x48xf32> -> vector<8x48xf32>
    %270 = vector.broadcast %1 : vector<1x48xf32> to vector<8x48xf32>
    %271 = arith.addf %269, %270 : vector<8x48xf32>
    %cst_75 = arith.constant dense<0.000000e+00> : vector<8x192xf32>
    %272 = tpu.matmul %271, %2, %cst_75 {dimension_numbers = #tpu.dot_dimension_numbers<[1], [0], [0], [1], [0, 0, 1, 1], [], []>} : vector<8x48xf32>, vector<48x192xf32>, vector<8x192xf32> -> vector<8x192xf32>
    %cst_76 = arith.constant dense<0.000000e+00> : vector<8x192xf32>
    %273 = tpu.matmul %264, %3, %cst_76 {dimension_numbers = #tpu.dot_dimension_numbers<[1], [0], [0], [1], [0, 0, 1, 1], [], []>} : vector<8x48xf32>, vector<48x192xf32>, vector<8x192xf32> -> vector<8x192xf32>
    %274 = arith.addf %272, %273 : vector<8x192xf32>
    %275 = vector.broadcast %4 : vector<1x192xf32> to vector<8x192xf32>
    %276 = arith.addf %274, %275 : vector<8x192xf32>
    %277 = vector.extract_strided_slice %276 {offsets = [0, 0], sizes = [8, 48], strides = [1, 1]} : vector<8x192xf32> to vector<8x48xf32>
    %278 = arith.negf %277 : vector<8x48xf32>
    %279 = math.exp %278 : vector<8x48xf32>
    %cst_77 = arith.constant 1.000000e+00 : f32
    %280 = vector.broadcast %cst_77 : f32 to vector<8x48xf32>
    %281 = arith.addf %280, %279 : vector<8x48xf32>
    %282 = arith.divf %280, %281 : vector<8x48xf32>
    %283 = vector.extract_strided_slice %276 {offsets = [0, 48], sizes = [8, 48], strides = [1, 1]} : vector<8x192xf32> to vector<8x48xf32>
    %284 = arith.negf %283 : vector<8x48xf32>
    %285 = math.exp %284 : vector<8x48xf32>
    %cst_78 = arith.constant 1.000000e+00 : f32
    %286 = vector.broadcast %cst_78 : f32 to vector<8x48xf32>
    %287 = arith.addf %286, %285 : vector<8x48xf32>
    %288 = arith.divf %286, %287 : vector<8x48xf32>
    %289 = vector.extract_strided_slice %276 {offsets = [0, 96], sizes = [8, 48], strides = [1, 1]} : vector<8x192xf32> to vector<8x48xf32>
    %290 = math.tanh %289 : vector<8x48xf32>
    %291 = vector.extract_strided_slice %276 {offsets = [0, 144], sizes = [8, 48], strides = [1, 1]} : vector<8x192xf32> to vector<8x48xf32>
    %292 = arith.negf %291 : vector<8x48xf32>
    %293 = math.exp %292 : vector<8x48xf32>
    %cst_79 = arith.constant 1.000000e+00 : f32
    %294 = vector.broadcast %cst_79 : f32 to vector<8x48xf32>
    %295 = arith.addf %294, %293 : vector<8x48xf32>
    %296 = arith.divf %294, %295 : vector<8x48xf32>
    %297 = arith.mulf %288, %262 : vector<8x48xf32>
    %298 = arith.mulf %282, %290 : vector<8x48xf32>
    %299 = arith.addf %297, %298 : vector<8x48xf32>
    %300 = math.tanh %299 : vector<8x48xf32>
    %301 = arith.mulf %296, %300 : vector<8x48xf32>
    %cst_80 = arith.constant dense<0.000000e+00> : vector<8x2xf32>
    %302 = tpu.matmul %301, %5, %cst_80 {dimension_numbers = #tpu.dot_dimension_numbers<[1], [0], [0], [1], [0, 0, 1, 1], [], []>} : vector<8x48xf32>, vector<48x2xf32>, vector<8x2xf32> -> vector<8x2xf32>
    %303 = vector.broadcast %6 : vector<1x2xf32> to vector<8x2xf32>
    %304 = arith.addf %302, %303 : vector<8x2xf32>
    %c0_81 = arith.constant 0 : index
    %c14 = arith.constant 14 : index
    %305 = vector.load %arg9[%c0_81, %c14] : memref<8x24xf32, #tpu.memory_space<vmem>>, vector<8x2xf32>
    tpu.vector_store %arg9[%c0_81, %c14], %304 {strides = array<i32>} : memref<8x24xf32, #tpu.memory_space<vmem>>, vector<8x2xf32>,
    %cst_82 = arith.constant dense<0.000000e+00> : vector<8x48xf32>
    %306 = tpu.matmul %304, %0, %cst_82 {dimension_numbers = #tpu.dot_dimension_numbers<[1], [0], [0], [1], [0, 0, 1, 1], [], []>} : vector<8x2xf32>, vector<2x48xf32>, vector<8x48xf32> -> vector<8x48xf32>
    %307 = vector.broadcast %1 : vector<1x48xf32> to vector<8x48xf32>
    %308 = arith.addf %306, %307 : vector<8x48xf32>
    %cst_83 = arith.constant dense<0.000000e+00> : vector<8x192xf32>
    %309 = tpu.matmul %308, %2, %cst_83 {dimension_numbers = #tpu.dot_dimension_numbers<[1], [0], [0], [1], [0, 0, 1, 1], [], []>} : vector<8x48xf32>, vector<48x192xf32>, vector<8x192xf32> -> vector<8x192xf32>
    %cst_84 = arith.constant dense<0.000000e+00> : vector<8x192xf32>
    %310 = tpu.matmul %301, %3, %cst_84 {dimension_numbers = #tpu.dot_dimension_numbers<[1], [0], [0], [1], [0, 0, 1, 1], [], []>} : vector<8x48xf32>, vector<48x192xf32>, vector<8x192xf32> -> vector<8x192xf32>
    %311 = arith.addf %309, %310 : vector<8x192xf32>
    %312 = vector.broadcast %4 : vector<1x192xf32> to vector<8x192xf32>
    %313 = arith.addf %311, %312 : vector<8x192xf32>
    %314 = vector.extract_strided_slice %313 {offsets = [0, 0], sizes = [8, 48], strides = [1, 1]} : vector<8x192xf32> to vector<8x48xf32>
    %315 = arith.negf %314 : vector<8x48xf32>
    %316 = math.exp %315 : vector<8x48xf32>
    %cst_85 = arith.constant 1.000000e+00 : f32
    %317 = vector.broadcast %cst_85 : f32 to vector<8x48xf32>
    %318 = arith.addf %317, %316 : vector<8x48xf32>
    %319 = arith.divf %317, %318 : vector<8x48xf32>
    %320 = vector.extract_strided_slice %313 {offsets = [0, 48], sizes = [8, 48], strides = [1, 1]} : vector<8x192xf32> to vector<8x48xf32>
    %321 = arith.negf %320 : vector<8x48xf32>
    %322 = math.exp %321 : vector<8x48xf32>
    %cst_86 = arith.constant 1.000000e+00 : f32
    %323 = vector.broadcast %cst_86 : f32 to vector<8x48xf32>
    %324 = arith.addf %323, %322 : vector<8x48xf32>
    %325 = arith.divf %323, %324 : vector<8x48xf32>
    %326 = vector.extract_strided_slice %313 {offsets = [0, 96], sizes = [8, 48], strides = [1, 1]} : vector<8x192xf32> to vector<8x48xf32>
    %327 = math.tanh %326 : vector<8x48xf32>
    %328 = vector.extract_strided_slice %313 {offsets = [0, 144], sizes = [8, 48], strides = [1, 1]} : vector<8x192xf32> to vector<8x48xf32>
    %329 = arith.negf %328 : vector<8x48xf32>
    %330 = math.exp %329 : vector<8x48xf32>
    %cst_87 = arith.constant 1.000000e+00 : f32
    %331 = vector.broadcast %cst_87 : f32 to vector<8x48xf32>
    %332 = arith.addf %331, %330 : vector<8x48xf32>
    %333 = arith.divf %331, %332 : vector<8x48xf32>
    %334 = arith.mulf %325, %299 : vector<8x48xf32>
    %335 = arith.mulf %319, %327 : vector<8x48xf32>
    %336 = arith.addf %334, %335 : vector<8x48xf32>
    %337 = math.tanh %336 : vector<8x48xf32>
    %338 = arith.mulf %333, %337 : vector<8x48xf32>
    %cst_88 = arith.constant dense<0.000000e+00> : vector<8x2xf32>
    %339 = tpu.matmul %338, %5, %cst_88 {dimension_numbers = #tpu.dot_dimension_numbers<[1], [0], [0], [1], [0, 0, 1, 1], [], []>} : vector<8x48xf32>, vector<48x2xf32>, vector<8x2xf32> -> vector<8x2xf32>
    %340 = vector.broadcast %6 : vector<1x2xf32> to vector<8x2xf32>
    %341 = arith.addf %339, %340 : vector<8x2xf32>
    %c0_89 = arith.constant 0 : index
    %c16 = arith.constant 16 : index
    %342 = vector.load %arg9[%c0_89, %c16] : memref<8x24xf32, #tpu.memory_space<vmem>>, vector<8x2xf32>
    tpu.vector_store %arg9[%c0_89, %c16], %341 {strides = array<i32>} : memref<8x24xf32, #tpu.memory_space<vmem>>, vector<8x2xf32>,
    %cst_90 = arith.constant dense<0.000000e+00> : vector<8x48xf32>
    %343 = tpu.matmul %341, %0, %cst_90 {dimension_numbers = #tpu.dot_dimension_numbers<[1], [0], [0], [1], [0, 0, 1, 1], [], []>} : vector<8x2xf32>, vector<2x48xf32>, vector<8x48xf32> -> vector<8x48xf32>
    %344 = vector.broadcast %1 : vector<1x48xf32> to vector<8x48xf32>
    %345 = arith.addf %343, %344 : vector<8x48xf32>
    %cst_91 = arith.constant dense<0.000000e+00> : vector<8x192xf32>
    %346 = tpu.matmul %345, %2, %cst_91 {dimension_numbers = #tpu.dot_dimension_numbers<[1], [0], [0], [1], [0, 0, 1, 1], [], []>} : vector<8x48xf32>, vector<48x192xf32>, vector<8x192xf32> -> vector<8x192xf32>
    %cst_92 = arith.constant dense<0.000000e+00> : vector<8x192xf32>
    %347 = tpu.matmul %338, %3, %cst_92 {dimension_numbers = #tpu.dot_dimension_numbers<[1], [0], [0], [1], [0, 0, 1, 1], [], []>} : vector<8x48xf32>, vector<48x192xf32>, vector<8x192xf32> -> vector<8x192xf32>
    %348 = arith.addf %346, %347 : vector<8x192xf32>
    %349 = vector.broadcast %4 : vector<1x192xf32> to vector<8x192xf32>
    %350 = arith.addf %348, %349 : vector<8x192xf32>
    %351 = vector.extract_strided_slice %350 {offsets = [0, 0], sizes = [8, 48], strides = [1, 1]} : vector<8x192xf32> to vector<8x48xf32>
    %352 = arith.negf %351 : vector<8x48xf32>
    %353 = math.exp %352 : vector<8x48xf32>
    %cst_93 = arith.constant 1.000000e+00 : f32
    %354 = vector.broadcast %cst_93 : f32 to vector<8x48xf32>
    %355 = arith.addf %354, %353 : vector<8x48xf32>
    %356 = arith.divf %354, %355 : vector<8x48xf32>
    %357 = vector.extract_strided_slice %350 {offsets = [0, 48], sizes = [8, 48], strides = [1, 1]} : vector<8x192xf32> to vector<8x48xf32>
    %358 = arith.negf %357 : vector<8x48xf32>
    %359 = math.exp %358 : vector<8x48xf32>
    %cst_94 = arith.constant 1.000000e+00 : f32
    %360 = vector.broadcast %cst_94 : f32 to vector<8x48xf32>
    %361 = arith.addf %360, %359 : vector<8x48xf32>
    %362 = arith.divf %360, %361 : vector<8x48xf32>
    %363 = vector.extract_strided_slice %350 {offsets = [0, 96], sizes = [8, 48], strides = [1, 1]} : vector<8x192xf32> to vector<8x48xf32>
    %364 = math.tanh %363 : vector<8x48xf32>
    %365 = vector.extract_strided_slice %350 {offsets = [0, 144], sizes = [8, 48], strides = [1, 1]} : vector<8x192xf32> to vector<8x48xf32>
    %366 = arith.negf %365 : vector<8x48xf32>
    %367 = math.exp %366 : vector<8x48xf32>
    %cst_95 = arith.constant 1.000000e+00 : f32
    %368 = vector.broadcast %cst_95 : f32 to vector<8x48xf32>
    %369 = arith.addf %368, %367 : vector<8x48xf32>
    %370 = arith.divf %368, %369 : vector<8x48xf32>
    %371 = arith.mulf %362, %336 : vector<8x48xf32>
    %372 = arith.mulf %356, %364 : vector<8x48xf32>
    %373 = arith.addf %371, %372 : vector<8x48xf32>
    %374 = math.tanh %373 : vector<8x48xf32>
    %375 = arith.mulf %370, %374 : vector<8x48xf32>
    %cst_96 = arith.constant dense<0.000000e+00> : vector<8x2xf32>
    %376 = tpu.matmul %375, %5, %cst_96 {dimension_numbers = #tpu.dot_dimension_numbers<[1], [0], [0], [1], [0, 0, 1, 1], [], []>} : vector<8x48xf32>, vector<48x2xf32>, vector<8x2xf32> -> vector<8x2xf32>
    %377 = vector.broadcast %6 : vector<1x2xf32> to vector<8x2xf32>
    %378 = arith.addf %376, %377 : vector<8x2xf32>
    %c0_97 = arith.constant 0 : index
    %c18 = arith.constant 18 : index
    %379 = vector.load %arg9[%c0_97, %c18] : memref<8x24xf32, #tpu.memory_space<vmem>>, vector<8x2xf32>
    tpu.vector_store %arg9[%c0_97, %c18], %378 {strides = array<i32>} : memref<8x24xf32, #tpu.memory_space<vmem>>, vector<8x2xf32>,
    %cst_98 = arith.constant dense<0.000000e+00> : vector<8x48xf32>
    %380 = tpu.matmul %378, %0, %cst_98 {dimension_numbers = #tpu.dot_dimension_numbers<[1], [0], [0], [1], [0, 0, 1, 1], [], []>} : vector<8x2xf32>, vector<2x48xf32>, vector<8x48xf32> -> vector<8x48xf32>
    %381 = vector.broadcast %1 : vector<1x48xf32> to vector<8x48xf32>
    %382 = arith.addf %380, %381 : vector<8x48xf32>
    %cst_99 = arith.constant dense<0.000000e+00> : vector<8x192xf32>
    %383 = tpu.matmul %382, %2, %cst_99 {dimension_numbers = #tpu.dot_dimension_numbers<[1], [0], [0], [1], [0, 0, 1, 1], [], []>} : vector<8x48xf32>, vector<48x192xf32>, vector<8x192xf32> -> vector<8x192xf32>
    %cst_100 = arith.constant dense<0.000000e+00> : vector<8x192xf32>
    %384 = tpu.matmul %375, %3, %cst_100 {dimension_numbers = #tpu.dot_dimension_numbers<[1], [0], [0], [1], [0, 0, 1, 1], [], []>} : vector<8x48xf32>, vector<48x192xf32>, vector<8x192xf32> -> vector<8x192xf32>
    %385 = arith.addf %383, %384 : vector<8x192xf32>
    %386 = vector.broadcast %4 : vector<1x192xf32> to vector<8x192xf32>
    %387 = arith.addf %385, %386 : vector<8x192xf32>
    %388 = vector.extract_strided_slice %387 {offsets = [0, 0], sizes = [8, 48], strides = [1, 1]} : vector<8x192xf32> to vector<8x48xf32>
    %389 = arith.negf %388 : vector<8x48xf32>
    %390 = math.exp %389 : vector<8x48xf32>
    %cst_101 = arith.constant 1.000000e+00 : f32
    %391 = vector.broadcast %cst_101 : f32 to vector<8x48xf32>
    %392 = arith.addf %391, %390 : vector<8x48xf32>
    %393 = arith.divf %391, %392 : vector<8x48xf32>
    %394 = vector.extract_strided_slice %387 {offsets = [0, 48], sizes = [8, 48], strides = [1, 1]} : vector<8x192xf32> to vector<8x48xf32>
    %395 = arith.negf %394 : vector<8x48xf32>
    %396 = math.exp %395 : vector<8x48xf32>
    %cst_102 = arith.constant 1.000000e+00 : f32
    %397 = vector.broadcast %cst_102 : f32 to vector<8x48xf32>
    %398 = arith.addf %397, %396 : vector<8x48xf32>
    %399 = arith.divf %397, %398 : vector<8x48xf32>
    %400 = vector.extract_strided_slice %387 {offsets = [0, 96], sizes = [8, 48], strides = [1, 1]} : vector<8x192xf32> to vector<8x48xf32>
    %401 = math.tanh %400 : vector<8x48xf32>
    %402 = vector.extract_strided_slice %387 {offsets = [0, 144], sizes = [8, 48], strides = [1, 1]} : vector<8x192xf32> to vector<8x48xf32>
    %403 = arith.negf %402 : vector<8x48xf32>
    %404 = math.exp %403 : vector<8x48xf32>
    %cst_103 = arith.constant 1.000000e+00 : f32
    %405 = vector.broadcast %cst_103 : f32 to vector<8x48xf32>
    %406 = arith.addf %405, %404 : vector<8x48xf32>
    %407 = arith.divf %405, %406 : vector<8x48xf32>
    %408 = arith.mulf %399, %373 : vector<8x48xf32>
    %409 = arith.mulf %393, %401 : vector<8x48xf32>
    %410 = arith.addf %408, %409 : vector<8x48xf32>
    %411 = math.tanh %410 : vector<8x48xf32>
    %412 = arith.mulf %407, %411 : vector<8x48xf32>
    %cst_104 = arith.constant dense<0.000000e+00> : vector<8x2xf32>
    %413 = tpu.matmul %412, %5, %cst_104 {dimension_numbers = #tpu.dot_dimension_numbers<[1], [0], [0], [1], [0, 0, 1, 1], [], []>} : vector<8x48xf32>, vector<48x2xf32>, vector<8x2xf32> -> vector<8x2xf32>
    %414 = vector.broadcast %6 : vector<1x2xf32> to vector<8x2xf32>
    %415 = arith.addf %413, %414 : vector<8x2xf32>
    %c0_105 = arith.constant 0 : index
    %c20 = arith.constant 20 : index
    %416 = vector.load %arg9[%c0_105, %c20] : memref<8x24xf32, #tpu.memory_space<vmem>>, vector<8x2xf32>
    tpu.vector_store %arg9[%c0_105, %c20], %415 {strides = array<i32>} : memref<8x24xf32, #tpu.memory_space<vmem>>, vector<8x2xf32>,
    %cst_106 = arith.constant dense<0.000000e+00> : vector<8x48xf32>
    %417 = tpu.matmul %415, %0, %cst_106 {dimension_numbers = #tpu.dot_dimension_numbers<[1], [0], [0], [1], [0, 0, 1, 1], [], []>} : vector<8x2xf32>, vector<2x48xf32>, vector<8x48xf32> -> vector<8x48xf32>
    %418 = vector.broadcast %1 : vector<1x48xf32> to vector<8x48xf32>
    %419 = arith.addf %417, %418 : vector<8x48xf32>
    %cst_107 = arith.constant dense<0.000000e+00> : vector<8x192xf32>
    %420 = tpu.matmul %419, %2, %cst_107 {dimension_numbers = #tpu.dot_dimension_numbers<[1], [0], [0], [1], [0, 0, 1, 1], [], []>} : vector<8x48xf32>, vector<48x192xf32>, vector<8x192xf32> -> vector<8x192xf32>
    %cst_108 = arith.constant dense<0.000000e+00> : vector<8x192xf32>
    %421 = tpu.matmul %412, %3, %cst_108 {dimension_numbers = #tpu.dot_dimension_numbers<[1], [0], [0], [1], [0, 0, 1, 1], [], []>} : vector<8x48xf32>, vector<48x192xf32>, vector<8x192xf32> -> vector<8x192xf32>
    %422 = arith.addf %420, %421 : vector<8x192xf32>
    %423 = vector.broadcast %4 : vector<1x192xf32> to vector<8x192xf32>
    %424 = arith.addf %422, %423 : vector<8x192xf32>
    %425 = vector.extract_strided_slice %424 {offsets = [0, 0], sizes = [8, 48], strides = [1, 1]} : vector<8x192xf32> to vector<8x48xf32>
    %426 = arith.negf %425 : vector<8x48xf32>
    %427 = math.exp %426 : vector<8x48xf32>
    %cst_109 = arith.constant 1.000000e+00 : f32
    %428 = vector.broadcast %cst_109 : f32 to vector<8x48xf32>
    %429 = arith.addf %428, %427 : vector<8x48xf32>
    %430 = arith.divf %428, %429 : vector<8x48xf32>
    %431 = vector.extract_strided_slice %424 {offsets = [0, 48], sizes = [8, 48], strides = [1, 1]} : vector<8x192xf32> to vector<8x48xf32>
    %432 = arith.negf %431 : vector<8x48xf32>
    %433 = math.exp %432 : vector<8x48xf32>
    %cst_110 = arith.constant 1.000000e+00 : f32
    %434 = vector.broadcast %cst_110 : f32 to vector<8x48xf32>
    %435 = arith.addf %434, %433 : vector<8x48xf32>
    %436 = arith.divf %434, %435 : vector<8x48xf32>
    %437 = vector.extract_strided_slice %424 {offsets = [0, 96], sizes = [8, 48], strides = [1, 1]} : vector<8x192xf32> to vector<8x48xf32>
    %438 = math.tanh %437 : vector<8x48xf32>
    %439 = vector.extract_strided_slice %424 {offsets = [0, 144], sizes = [8, 48], strides = [1, 1]} : vector<8x192xf32> to vector<8x48xf32>
    %440 = arith.negf %439 : vector<8x48xf32>
    %441 = math.exp %440 : vector<8x48xf32>
    %cst_111 = arith.constant 1.000000e+00 : f32
    %442 = vector.broadcast %cst_111 : f32 to vector<8x48xf32>
    %443 = arith.addf %442, %441 : vector<8x48xf32>
    %444 = arith.divf %442, %443 : vector<8x48xf32>
    %445 = arith.mulf %436, %410 : vector<8x48xf32>
    %446 = arith.mulf %430, %438 : vector<8x48xf32>
    %447 = arith.addf %445, %446 : vector<8x48xf32>
    %448 = math.tanh %447 : vector<8x48xf32>
    %449 = arith.mulf %444, %448 : vector<8x48xf32>
    %cst_112 = arith.constant dense<0.000000e+00> : vector<8x2xf32>
    %450 = tpu.matmul %449, %5, %cst_112 {dimension_numbers = #tpu.dot_dimension_numbers<[1], [0], [0], [1], [0, 0, 1, 1], [], []>} : vector<8x48xf32>, vector<48x2xf32>, vector<8x2xf32> -> vector<8x2xf32>
    %451 = vector.broadcast %6 : vector<1x2xf32> to vector<8x2xf32>
    %452 = arith.addf %450, %451 : vector<8x2xf32>
    %c0_113 = arith.constant 0 : index
    %c22 = arith.constant 22 : index
    %453 = vector.load %arg9[%c0_113, %c22] : memref<8x24xf32, #tpu.memory_space<vmem>>, vector<8x2xf32>
    tpu.vector_store %arg9[%c0_113, %c22], %452 {strides = array<i32>} : memref<8x24xf32, #tpu.memory_space<vmem>>, vector<8x2xf32>,
    return
  }
}

</mosaic_0001>

<bundles_post_ra>
// kernel: _forward_core.4
= control target key start
LH: loop header
LB: loop body
LE: loop exit
PB: predicated region body
PF: predicated region fallthrough
CT: control target
= control target key end

     0   :  { %vm42_vm0 = vcmask 1041408   ;;  %vm38_vm1 = vcmask 15360   ;;  %v1055_v10 = vmov 0.0   ;;  %vm66_vm2 = vcmask 261120   ;;  %s1327_s1 = inlined_call_operand.vmem [shape: f32[2,32], index: 1, kind: input, shape index: {}]   ;;  %s1328_s0 = inlined_call_operand.vmem [shape: f32[8,8,2], index: 0, kind: input, shape index: {}]   ;;  %s1329_s3 = inlined_call_operand.vmem [shape: f32[32,128], index: 3, kind: input, shape index: {}]   ;;  %s1330_s2 = inlined_call_operand.vmem [shape: f32[1,32], index: 2, kind: input, shape index: {}]   ;;  %s1331_s4 = inlined_call_operand.vmem [shape: f32[32,128], index: 4, kind: input, shape index: {}]   ;;  %s1332_s5 = inlined_call_operand.vmem [shape: f32[1,128], index: 5, kind: input, shape index: {}]   ;;  %s1333_s6 = inlined_call_operand.vmem [shape: f32[8,32], index: 6, kind: output, shape index: {}]  }
   0x1   :  { %v1096_v0 = vld [vmem:[%s1327_s1] sm:$0x3]  ;;  %v1104_v2 = vld [vmem:[%s1329_s3 + $0x18] sm:$0xff]  ;;  %v1112_v3 = vld [vmem:[%s1329_s3 + $0x10] sm:$0xff] }
   0x2   :  { %v34_v1 = vld [vmem:[%s1328_s0] sm:$0xff]  ;;  %940 = vmatpush.msk.msra.mxu0 %vm42_vm0, %v1096_v0  ;;  %105 = vmatpush.msra.mxu2 %v1104_v2  ;;  %v1123_v4 = vld [vmem:[%s1329_s3 + $0x8] sm:$0xff]  ;;  %v1130_v5 = vld [vmem:[%s1331_s4 + $0x18] sm:$0xff] }
   0x3   :  { %941 = vmatmul.msk.f32.vlgmr.msra.gmra.mxu0 %vm38_vm1, %v34_v1  ;;  %945 = vmatpush.msk.msra.mxu3 %vm42_vm0, %v1096_v0  ;;  %v1135_v6 = vld [vmem:[%s1329_s3] sm:$0xff]  ;;  %v1142_v7 = vld [vmem:[%s1331_s4 + $0x10] sm:$0xff]  ;;  %v1147_v8 = vld [vmem:[%s1331_s4 + $0x8] sm:$0xff] }
   0x4   :  { %106 = vmatpush.msra.mxu2 %v1112_v3  ;;  %82 = vmatpush.msra.mxu1 %v1130_v5  ;;  %v1156_v9 = vld [vmem:[%s1331_s4] sm:$0xff]  ;;  %v944_v35 = vld [vmem:[%s1328_s0 + $0x8] sm:$0xff] }
   0x5   :  { %219 = vmatpush.msrb.mxu3 %v1104_v2  ;;  %196 = vmatpush.msrb.mxu0 %v1130_v5  ;;  %v1179_v11 = vld [vmem:[%s1330_s2] ss:$0 sm:$0xff]  ;;  %s1056_s2 = smov 64  }
   0x6   :  { %107 = vmatpush.msra.mxu2 %v1123_v4  ;;  %83 = vmatpush.msra.mxu1 %v1142_v7  ;;  %v1190_v15 = vld [vmem:[%s1332_s5] ss:$0 sm:$0xff]  ;;  %s1057_s5 = smov 32  }
   0x7   :  { %220 = vmatpush.msrb.mxu3 %v1112_v3  ;;  %197 = vmatpush.msrb.mxu0 %v1142_v7 }
   0x8   :  { %108 = vmatpush.msra.mxu2 %v1135_v6  ;;  %84 = vmatpush.msra.mxu1 %v1147_v8 }
   0x9   :  { %221 = vmatpush.msrb.mxu3 %v1123_v4  ;;  %198 = vmatpush.msrb.mxu0 %v1147_v8 }
   0xa   :  { %307 = vmatpush.msrb.mxu2 %v1130_v5  ;;  %85 = vmatpush.msra.mxu1 %v1156_v9 }
   0xb   :  { %222 = vmatpush.msrb.mxu3 %v1135_v6  ;;  %86 = vmatmul.f32.vlgmr.msra.gmra.mxu1 %v1055_v10  ;;  %v950_v10 = vld [vmem:[%s1328_s0 + $0x10] sm:$0xff] }
   0xc   :  { %308 = vmatpush.msrb.mxu2 %v1142_v7  ;;  %199 = vmatpush.msrb.mxu0 %v1156_v9 }
   0xd   :  { %951 = vmatpush.msk.msrb.mxu1 %vm42_vm0, %v1096_v0  ;;  %946 = vmatmul.msk.f32.vlgmr.msra.gmra.mxu3 %vm38_vm1, %v944_v35 }
   0xe   :  { %309 = vmatpush.msrb.mxu2 %v1147_v8  ;;  %330 = vmatpush.msra.mxu0 %v1104_v2 }
   0xf   :  { %418 = vmatpush.msra.mxu1 %v1130_v5  ;;  %957 = vmatpush.msk.msra.mxu3 %vm42_vm0, %v1096_v0 }
  0x10   :  { %310 = vmatpush.msrb.mxu2 %v1156_v9  ;;  %331 = vmatpush.msra.mxu0 %v1112_v3 }
  0x11   :  { %419 = vmatpush.msra.mxu1 %v1142_v7 }
  0x12   :  { %332 = vmatpush.msra.mxu0 %v1123_v4 }
  0x13   :  { %420 = vmatpush.msra.mxu1 %v1147_v8 }
  0x14   :  { %333 = vmatpush.msra.mxu0 %v1135_v6  ;;  %952 = vmatmul.msk.f32.vlgmr.msrb.gmra.mxu1 %vm38_vm1, %v950_v10 }
  0x15   :  { %421 = vmatpush.msra.mxu1 %v1156_v9 }
  0x17   :  { %552 = vmatpush.msrb.mxu1 %v1104_v2 }
  0x19   :  { %553 = vmatpush.msrb.mxu1 %v1112_v3 }
  0x1b   :  { %554 = vmatpush.msrb.mxu1 %v1123_v4 }
  0x1d   :  { %555 = vmatpush.msrb.mxu1 %v1135_v6 }
  0x80   :  { %v63_v12 = vpop.f32.mrf.mxu0 }
  0x81   :  { %v64_v13 = vadd.f32 %v1179_v11, %v63_v12 }
  0x83   :  { %942 = vmatmul.msk.f32.vlgmr.msra.gmra.mxu2 %vm66_vm2, %v64_v13 }
  0x84   :  { %441 = vmatpush.msra.mxu2 %v1104_v2 }
  0x86   :  { %442 = vmatpush.msra.mxu2 %v1112_v3 }
  0x88   :  { %443 = vmatpush.msra.mxu2 %v1123_v4  ;;  %v87_v14 = vpop.f32.mrf.mxu1 }
  0x8a   :  { %444 = vmatpush.msra.mxu2 %v1135_v6 }
  0x90   :  { %v176_v40 = vpop.f32.mrf.mxu3 }
  0x91   :  { %v177_v41 = vadd.f32 %v1179_v11, %v176_v40 }
  0x93   :  { %948 = vmatmul.msk.f32.vlgmr.msrb.gmra.mxu3 %vm66_vm2, %v177_v41 }
  0x94   :  { %529 = vmatpush.msrb.mxu3 %v1130_v5 }
  0x96   :  { %530 = vmatpush.msrb.mxu3 %v1142_v7 }
  0x98   :  { %531 = vmatpush.msrb.mxu3 %v1147_v8 }
  0x9a   :  { %532 = vmatpush.msrb.mxu3 %v1156_v9 }
 0x106   :  { %v110_v16 = vpop.f32.mrf.mxu2 }
 0x107   :  { %v111_v17 = vadd.f32 %v110_v16, %v87_v14 }
 0x109   :  { %v116_v18 = vadd.f32 %v1190_v15, %v111_v17 }
 0x10b   :  { %991 = vtanh.f32 %v116_v18  ;;  %v943_v20 = vmul.f32 -1.442695, %v116_v18 }
 0x10d   :  { %993 = vpow2.f32 %v943_v20 }
 0x111   :  { %v992_v19 = vpop.eup %991 }
 0x112   :  { %139 = vrot.lane.b32.xlu0 %v992_v19, %s1056_s2  ;;  %v287_v19 = vpop.f32.mrf.mxu1 }
 0x113   :  { %v994_v21 = vpop.eup %993  ;;  %v288_v20 = vadd.f32 %v1179_v11, %v287_v19  ;;  %v962_v19 = vld [vmem:[%s1328_s0 + $0x20] sm:$0xff] }
 0x114   :  { %v120_v22 = vadd.f32 1.0, %v994_v21 }
 0x116   :  { %995 = vrcp.f32 %v120_v22  ;;  %v132_v28 = vand.u32 2147483648, %v120_v22  ;;  %vm126_vm4 = vweird.f32 %v120_v22  ;;  %v130_v29 = vand.u32 2147483647, %v120_v22  ;;  %v224_v45 = vpop.f32.mrf.mxu3 }
 0x118   :  { %v133_v31 = vor.u32 1.1754944e-38, %v132_v28  ;;  %vm131_vm6 = vcmp.eq.f32.partialorder %v130_v29, 8.507059e+37 }
 0x11c   :  { %v996_v23 = vpop.eup %995 }
 0x11d   :  { %v122_v24 = vmul.f32 %v996_v23, %v120_v22  ;;  %vm127_vm3 = vweird.f32 %v996_v23 }
 0x11e   :  { %vm128_vm5 = vmor %vm126_vm4, %vm127_vm3 }
 0x11f   :  { %v123_v25 = vsub.f32 1.0, %v122_v24 }
 0x121   :  { %v124_v26 = vmul.f32 %v996_v23, %v123_v25 }
 0x123   :  { %v125_v27 = vadd.f32 %v996_v23, %v124_v26 }
 0x125   :  { %v129_v30 = vsel %vm128_vm5, %v996_v23, %v125_v27 }
 0x126   :  { %v134_v33 = vsel %vm131_vm6, %v133_v31, %v129_v30 }
 0x127   :  { %v137_v36 = vmul.f32 0.0, %v134_v33 }
 0x184   :  { %v140_v32 = vpop.permute.xlu0 %139 }
 0x185   :  { %v142_v34 = vmul.f32 %v140_v32, %v134_v33 }
 0x187   :  { %144 = vrot.lane.b32.xlu0 %v142_v34, %s1057_s5 }
 0x1f9   :  { %v145_v37 = vpop.permute.xlu0 %144 }
 0x1fa   :  { %v147_v38 = vadd.f32 %v145_v37, %v137_v36 }
 0x1fc   :  { %997 = vtanh.f32 %v147_v38 }
 0x202   :  { %v998_v39 = vpop.eup %997 }
 0x203   :  { %150 = vrot.lane.b32.xlu1 %v998_v39, %s1056_s2 }
 0x275   :  { %v151_v42 = vpop.permute.xlu1 %150 }
 0x276   :  { %v153_v43 = vmul.f32 %v151_v42, %v134_v33  ;;  %v956_v42 = vld [vmem:[%s1328_s0 + $0x18] sm:$0xff] }
 0x277   :  { %958 = vmatmul.msk.f32.vlgmr.msra.gmra.mxu3 %vm38_vm1, %v956_v42 }
 0x278   :  { %180 = vrot.lane.b32.xlu1 %v153_v43, %s1057_s5  ;;  %663 = vmatpush.msra.mxu3 %v1104_v2 }
 0x27a   :  { %664 = vmatpush.msra.mxu3 %v1112_v3 }
 0x27c   :  { %665 = vmatpush.msra.mxu3 %v1123_v4 }
 0x27e   :  { %666 = vmatpush.msra.mxu3 %v1135_v6 }
 0x2ea   :  { %v181_v44 = vpop.permute.xlu1 %180 }
 0x2eb   :  { %947 = vmatmul.msk.f32.vlgmr.msrb.gmra.mxu0 %vm66_vm2, %v181_v44 }
 0x2ec   :  { %963 = vmatpush.msk.msrb.mxu0 %vm42_vm0, %v1096_v0 }
 0x2f3   :  { %954 = vmatmul.msk.f32.vlgmr.msra.gmra.mxu0 %vm66_vm2, %v288_v20 }
 0x2f4   :  { %640 = vmatpush.msra.mxu0 %v1130_v5 }
 0x2f6   :  { %641 = vmatpush.msra.mxu0 %v1142_v7 }
 0x2f8   :  { %642 = vmatpush.msra.mxu0 %v1147_v8 }
 0x2fa   :  { %643 = vmatpush.msra.mxu0 %v1156_v9 }
 0x2fb   :  { %964 = vmatmul.msk.f32.vlgmr.msrb.gmra.mxu0 %vm38_vm1, %v962_v19 }
 0x2fc   :  { %774 = vmatpush.msrb.mxu0 %v1104_v2 }
 0x2fe   :  { %775 = vmatpush.msrb.mxu0 %v1112_v3 }
 0x300   :  { %776 = vmatpush.msrb.mxu0 %v1123_v4 }
 0x302   :  { %777 = vmatpush.msrb.mxu0 %v1135_v6 }
 0x368   :  { %v201_v46 = vpop.f32.mrf.mxu0 }
 0x369   :  { %v225_v47 = vadd.f32 %v224_v45, %v201_v46 }
 0x36b   :  { %v227_v48 = vadd.f32 %v1190_v15, %v225_v47  ;;  %v398_v47 = vpop.f32.mrf.mxu3 }
 0x36d   :  { %999 = vtanh.f32 %v227_v48  ;;  %v949_v50 = vmul.f32 -1.442695, %v227_v48  ;;  %v399_v48 = vadd.f32 %v1179_v11, %v398_v47 }
 0x36f   :  { %1001 = vpow2.f32 %v949_v50 }
 0x370   :  { %v335_v22 = vpop.f32.mrf.mxu0 }
 0x373   :  { %v1000_v49 = vpop.eup %999 }
 0x374   :  { %250 = vrot.lane.b32.xlu2 %v1000_v49, %s1056_s2 }
 0x375   :  { %v1002_v51 = vpop.eup %1001 }
 0x376   :  { %v231_v52 = vadd.f32 1.0, %v1002_v51 }
 0x378   :  { %1003 = vrcp.f32 %v231_v52  ;;  %v243_v58 = vand.u32 2147483648, %v231_v52  ;;  %vm237_vm8 = vweird.f32 %v231_v52  ;;  %v241_v59 = vand.u32 2147483647, %v231_v52 }
 0x37a   :  { %v244_v61 = vor.u32 1.1754944e-38, %v243_v58  ;;  %vm242_vm10 = vcmp.eq.f32.partialorder %v241_v59, 8.507059e+37 }
 0x37e   :  { %v1004_v53 = vpop.eup %1003 }
 0x37f   :  { %v233_v54 = vmul.f32 %v1004_v53, %v231_v52  ;;  %vm238_vm7 = vweird.f32 %v1004_v53 }
 0x380   :  { %vm239_vm9 = vmor %vm237_vm8, %vm238_vm7 }
 0x381   :  { %v234_v55 = vsub.f32 1.0, %v233_v54 }
 0x383   :  { %v235_v56 = vmul.f32 %v1004_v53, %v234_v55 }
 0x385   :  { %v236_v57 = vadd.f32 %v1004_v53, %v235_v56 }
 0x387   :  { %v240_v60 = vsel %vm239_vm9, %v1004_v53, %v236_v57 }
 0x388   :  { %v245_v63 = vsel %vm242_vm10, %v244_v61, %v240_v60 }
 0x389   :  { %v248_v12 = vmul.f32 %v245_v63, %v147_v38 }
 0x3ce   :  { %v251_v62 = vpop.permute.xlu2 %250 }
 0x3cf   :  { %v253_v1 = vmul.f32 %v251_v62, %v245_v63 }
 0x3d1   :  { %255 = vrot.lane.b32.xlu2 %v253_v1, %s1057_s5 }
 0x42b   :  { %v256_v13 = vpop.permute.xlu2 %255 }
 0x42c   :  { %v258_v14 = vadd.f32 %v256_v13, %v248_v12 }
 0x42e   :  { %1005 = vtanh.f32 %v258_v14 }
 0x434   :  { %v1006_v16 = vpop.eup %1005 }
 0x435   :  { %261 = vrot.lane.b32.xlu0 %v1006_v16, %s1056_s2 }
 0x4a7   :  { %v262_v17 = vpop.permute.xlu0 %261 }
 0x4a8   :  { %v264_v18 = vmul.f32 %v262_v17, %v245_v63 }
 0x4aa   :  { %291 = vrot.lane.b32.xlu1 %v264_v18, %s1057_s5 }
 0x51c   :  { %v292_v21 = vpop.permute.xlu1 %291 }
 0x51d   :  { %953 = vmatmul.msk.f32.vlgmr.msrb.gmra.mxu2 %vm66_vm2, %v292_v21 }
 0x51e   :  { %969 = vmatpush.msk.msrb.mxu2 %vm42_vm0, %v1096_v0 }
 0x525   :  { %960 = vmatmul.msk.f32.vlgmr.msra.gmra.mxu2 %vm66_vm2, %v399_v48 }
 0x526   :  { %751 = vmatpush.msra.mxu2 %v1130_v5 }
 0x528   :  { %752 = vmatpush.msra.mxu2 %v1142_v7 }
 0x52a   :  { %753 = vmatpush.msra.mxu2 %v1147_v8 }
 0x52c   :  { %754 = vmatpush.msra.mxu2 %v1156_v9 }
 0x5a0   :  { %v312_v23 = vpop.f32.mrf.mxu2 }
 0x5a1   :  { %v336_v24 = vadd.f32 %v335_v22, %v312_v23 }
 0x5a3   :  { %v338_v25 = vadd.f32 %v1190_v15, %v336_v24 }
 0x5a5   :  { %1007 = vtanh.f32 %v338_v25  ;;  %v955_v27 = vmul.f32 -1.442695, %v338_v25 }
 0x5a7   :  { %1009 = vpow2.f32 %v955_v27 }
 0x5a8   :  { %v446_v52 = vpop.f32.mrf.mxu2 }
 0x5ab   :  { %v1008_v26 = vpop.eup %1007 }
 0x5ac   :  { %361 = vrot.lane.b32.xlu2 %v1008_v26, %s1056_s2  ;;  %v509_v26 = vpop.f32.mrf.mxu0 }
 0x5ad   :  { %v1010_v28 = vpop.eup %1009  ;;  %v510_v27 = vadd.f32 %v1179_v11, %v509_v26 }
 0x5ae   :  { %v342_v29 = vadd.f32 1.0, %v1010_v28 }
 0x5b0   :  { %1011 = vrcp.f32 %v342_v29  ;;  %v354_v35 = vand.u32 2147483648, %v342_v29  ;;  %vm348_vm12 = vweird.f32 %v342_v29  ;;  %v352_v36 = vand.u32 2147483647, %v342_v29 }
 0x5b2   :  { %v355_v38 = vor.u32 1.1754944e-38, %v354_v35  ;;  %vm353_vm14 = vcmp.eq.f32.partialorder %v352_v36, 8.507059e+37 }
 0x5b6   :  { %v1012_v30 = vpop.eup %1011 }
 0x5b7   :  { %v344_v31 = vmul.f32 %v1012_v30, %v342_v29  ;;  %vm349_vm11 = vweird.f32 %v1012_v30 }
 0x5b8   :  { %vm350_vm13 = vmor %vm348_vm12, %vm349_vm11 }
 0x5b9   :  { %v345_v32 = vsub.f32 1.0, %v344_v31 }
 0x5bb   :  { %v346_v33 = vmul.f32 %v1012_v30, %v345_v32 }
 0x5bd   :  { %v347_v34 = vadd.f32 %v1012_v30, %v346_v33 }
 0x5bf   :  { %v351_v37 = vsel %vm350_vm13, %v1012_v30, %v347_v34 }
 0x5c0   :  { %v356_v40 = vsel %vm353_vm14, %v355_v38, %v351_v37 }
 0x5c1   :  { %v359_v43 = vmul.f32 %v356_v40, %v258_v14 }
 0x606   :  { %v362_v39 = vpop.permute.xlu2 %361 }
 0x607   :  { %v364_v41 = vmul.f32 %v362_v39, %v356_v40 }
 0x609   :  { %366 = vrot.lane.b32.xlu0 %v364_v41, %s1057_s5 }
 0x67b   :  { %v367_v44 = vpop.permute.xlu0 %366 }
 0x67c   :  { %v369_v45 = vadd.f32 %v367_v44, %v359_v43  ;;  %v968_v44 = vld [vmem:[%s1328_s0 + $0x28] sm:$0xff] }
 0x67d   :  { %970 = vmatmul.msk.f32.vlgmr.msrb.gmra.mxu2 %vm38_vm1, %v968_v44 }
 0x67e   :  { %1013 = vtanh.f32 %v369_v45  ;;  %885 = vmatpush.msrb.mxu2 %v1104_v2 }
 0x680   :  { %886 = vmatpush.msrb.mxu2 %v1112_v3 }
 0x682   :  { %887 = vmatpush.msrb.mxu2 %v1123_v4 }
 0x684   :  { %v1014_v46 = vpop.eup %1013  ;;  %888 = vmatpush.msrb.mxu2 %v1135_v6 }
 0x685   :  { %372 = vrot.lane.b32.xlu1 %v1014_v46, %s1056_s2 }
 0x6f7   :  { %v373_v49 = vpop.permute.xlu1 %372 }
 0x6f8   :  { %v375_v50 = vmul.f32 %v373_v49, %v356_v40 }
 0x6fa   :  { %402 = vrot.lane.b32.xlu2 %v375_v50, %s1057_s5 }
 0x700   :  { %v620_v49 = vpop.f32.mrf.mxu2 }
 0x701   :  { %v621_v50 = vadd.f32 %v1179_v11, %v620_v49 }
 0x754   :  { %v403_v51 = vpop.permute.xlu2 %402 }
 0x755   :  { %959 = vmatmul.msk.f32.vlgmr.msra.gmra.mxu1 %vm66_vm2, %v403_v51 }
 0x756   :  { %975 = vmatpush.msk.msra.mxu1 %vm42_vm0, %v1096_v0 }
 0x75d   :  { %966 = vmatmul.msk.f32.vlgmr.msrb.gmra.mxu1 %vm66_vm2, %v510_v27 }
 0x75e   :  { %862 = vmatpush.msrb.mxu1 %v1130_v5 }
 0x760   :  { %863 = vmatpush.msrb.mxu1 %v1142_v7 }
 0x762   :  { %864 = vmatpush.msrb.mxu1 %v1147_v8 }
 0x764   :  { %865 = vmatpush.msrb.mxu1 %v1156_v9 }
 0x7d2   :  { %v423_v53 = vpop.f32.mrf.mxu1 }
 0x7d3   :  { %v447_v54 = vadd.f32 %v446_v52, %v423_v53 }
 0x7d5   :  { %v449_v55 = vadd.f32 %v1190_v15, %v447_v54 }
 0x7d7   :  { %1015 = vtanh.f32 %v449_v55  ;;  %v961_v57 = vmul.f32 -1.442695, %v449_v55 }
 0x7d9   :  { %1017 = vpow2.f32 %v961_v57 }
 0x7da   :  { %v557_v29 = vpop.f32.mrf.mxu1 }
 0x7dd   :  { %v1016_v56 = vpop.eup %1015 }
 0x7de   :  { %472 = vrot.lane.b32.xlu0 %v1016_v56, %s1056_s2 }
 0x7df   :  { %v1018_v58 = vpop.eup %1017 }
 0x7e0   :  { %v453_v59 = vadd.f32 1.0, %v1018_v58 }
 0x7e2   :  { %1019 = vrcp.f32 %v453_v59  ;;  %v465_v10 = vand.u32 2147483648, %v453_v59  ;;  %vm459_vm3 = vweird.f32 %v453_v59  ;;  %v463_v12 = vand.u32 2147483647, %v453_v59 }
 0x7e4   :  { %v466_v14 = vor.u32 1.1754944e-38, %v465_v10  ;;  %vm464_vm5 = vcmp.eq.f32.partialorder %v463_v12, 8.507059e+37 }
 0x7e8   :  { %v1020_v60 = vpop.eup %1019 }
 0x7e9   :  { %v455_v61 = vmul.f32 %v1020_v60, %v453_v59  ;;  %vm460_vm15 = vweird.f32 %v1020_v60 }
 0x7ea   :  { %vm461_vm4 = vmor %vm459_vm3, %vm460_vm15 }
 0x7eb   :  { %v456_v62 = vsub.f32 1.0, %v455_v61 }
 0x7ed   :  { %v457_v63 = vmul.f32 %v1020_v60, %v456_v62 }
 0x7ef   :  { %v458_v1 = vadd.f32 %v1020_v60, %v457_v63 }
 0x7f1   :  { %v462_v13 = vsel %vm461_vm4, %v1020_v60, %v458_v1 }
 0x7f2   :  { %v467_v17 = vsel %vm464_vm5, %v466_v14, %v462_v13 }
 0x7f3   :  { %v470_v20 = vmul.f32 %v467_v17, %v369_v45 }
 0x850   :  { %v473_v16 = vpop.permute.xlu0 %472 }
 0x851   :  { %v475_v18 = vmul.f32 %v473_v16, %v467_v17 }
 0x853   :  { %477 = vrot.lane.b32.xlu1 %v475_v18, %s1057_s5 }
 0x8c5   :  { %v478_v21 = vpop.permute.xlu1 %477 }
 0x8c6   :  { %v480_v22 = vadd.f32 %v478_v21, %v470_v20 }
 0x8c8   :  { %1021 = vtanh.f32 %v480_v22 }
 0x8ce   :  { %v1022_v23 = vpop.eup %1021 }
 0x8cf   :  { %483 = vrot.lane.b32.xlu2 %v1022_v23, %s1056_s2 }
 0x929   :  { %v484_v24 = vpop.permute.xlu2 %483 }
 0x92a   :  { %v486_v25 = vmul.f32 %v484_v24, %v467_v17  ;;  %v974_v17 = vld [vmem:[%s1328_s0 + $0x30] sm:$0xff] }
 0x92b   :  { %976 = vmatmul.msk.f32.vlgmr.msra.gmra.mxu1 %vm38_vm1, %v974_v17 }
 0x92c   :  { %513 = vrot.lane.b32.xlu0 %v486_v25, %s1057_s5 }
 0x99e   :  { %v514_v28 = vpop.permute.xlu0 %513 }
 0x99f   :  { %965 = vmatmul.msk.f32.vlgmr.msrb.gmra.mxu3 %vm66_vm2, %v514_v28 }
 0x9a0   :  { %981 = vmatpush.msk.msrb.mxu3 %vm42_vm0, %v1096_v0 }
 0x9a7   :  { %972 = vmatmul.msk.f32.vlgmr.msra.gmra.mxu3 %vm66_vm2, %v621_v50 }
 0x9a8   :  { %v731_v24 = vpop.f32.mrf.mxu1 }
 0x9a9   :  { %v732_v25 = vadd.f32 %v1179_v11, %v731_v24 }
 0xa22   :  { %v534_v30 = vpop.f32.mrf.mxu3 }
 0xa23   :  { %v558_v31 = vadd.f32 %v557_v29, %v534_v30 }
 0xa25   :  { %v560_v32 = vadd.f32 %v1190_v15, %v558_v31 }
 0xa27   :  { %1023 = vtanh.f32 %v560_v32  ;;  %v967_v5 = vmul.f32 -1.442695, %v560_v32 }
 0xa29   :  { %1025 = vpow2.f32 %v967_v5 }
 0xa2a   :  { %v668_v4 = vpop.f32.mrf.mxu3 }
 0xa2d   :  { %v1024_v33 = vpop.eup %1023 }
 0xa2e   :  { %583 = vrot.lane.b32.xlu1 %v1024_v33, %s1056_s2 }
 0xa2f   :  { %v1026_v7 = vpop.eup %1025 }
 0xa30   :  { %v564_v8 = vadd.f32 1.0, %v1026_v7 }
 0xa32   :  { %1027 = vrcp.f32 %v564_v8  ;;  %v576_v0 = vand.u32 2147483648, %v564_v8  ;;  %vm570_vm6 = vweird.f32 %v564_v8  ;;  %v574_v38 = vand.u32 2147483647, %v564_v8 }
 0xa34   :  { %v577_v40 = vor.u32 1.1754944e-38, %v576_v0  ;;  %vm575_vm8 = vcmp.eq.f32.partialorder %v574_v38, 8.507059e+37 }
 0xa38   :  { %v1028_v9 = vpop.eup %1027 }
 0xa39   :  { %v566_v34 = vmul.f32 %v1028_v9, %v564_v8  ;;  %vm571_vm0 = vweird.f32 %v1028_v9 }
 0xa3a   :  { %vm572_vm7 = vmor %vm570_vm6, %vm571_vm0 }
 0xa3b   :  { %v567_v35 = vsub.f32 1.0, %v566_v34 }
 0xa3d   :  { %v568_v36 = vmul.f32 %v1028_v9, %v567_v35 }
 0xa3f   :  { %v569_v37 = vadd.f32 %v1028_v9, %v568_v36 }
 0xa41   :  { %v573_v39 = vsel %vm572_vm7, %v1028_v9, %v569_v37 }
 0xa42   :  { %v578_v42 = vsel %vm575_vm8, %v577_v40, %v573_v39 }
 0xa43   :  { %v581_v45 = vmul.f32 %v578_v42, %v480_v22 }
 0xaa0   :  { %v584_v41 = vpop.permute.xlu1 %583 }
 0xaa1   :  { %v586_v43 = vmul.f32 %v584_v41, %v578_v42 }
 0xaa3   :  { %588 = vrot.lane.b32.xlu2 %v586_v43, %s1057_s5 }
 0xafd   :  { %v589_v46 = vpop.permute.xlu2 %588 }
 0xafe   :  { %v591_v47 = vadd.f32 %v589_v46, %v581_v45 }
 0xb00   :  { %1029 = vtanh.f32 %v591_v47 }
 0xb06   :  { %v1030_v48 = vpop.eup %1029 }
 0xb07   :  { %594 = vrot.lane.b32.xlu0 %v1030_v48, %s1056_s2 }
 0xb79   :  { %v595_v51 = vpop.permute.xlu0 %594 }
 0xb7a   :  { %v597_v2 = vmul.f32 %v595_v51, %v578_v42  ;;  %v980_v42 = vld [vmem:[%s1328_s0 + $0x38] sm:$0xff] }
 0xb7b   :  { %982 = vmatmul.msk.f32.vlgmr.msrb.gmra.mxu3 %vm38_vm1, %v980_v42 }
 0xb7c   :  { %624 = vrot.lane.b32.xlu1 %v597_v2, %s1057_s5 }
 0xbee   :  { %v625_v3 = vpop.permute.xlu1 %624 }
 0xbef   :  { %971 = vmatmul.msk.f32.vlgmr.msra.gmra.mxu0 %vm66_vm2, %v625_v3 }
 0xbf7   :  { %978 = vmatmul.msk.f32.vlgmr.msrb.gmra.mxu0 %vm66_vm2, %v732_v25 }
 0xbfe   :  { %v842_v49 = vpop.f32.mrf.mxu3 }
 0xbff   :  { %v843_v50 = vadd.f32 %v1179_v11, %v842_v49 }
 0xc6c   :  { %v645_v6 = vpop.f32.mrf.mxu0 }
 0xc6d   :  { %v669_v52 = vadd.f32 %v668_v4, %v645_v6 }
 0xc6f   :  { %v671_v53 = vadd.f32 %v1190_v15, %v669_v52 }
 0xc71   :  { %1031 = vtanh.f32 %v671_v53  ;;  %v973_v55 = vmul.f32 -1.442695, %v671_v53 }
 0xc73   :  { %1033 = vpow2.f32 %v973_v55 }
 0xc74   :  { %v779_v27 = vpop.f32.mrf.mxu0 }
 0xc77   :  { %v1032_v54 = vpop.eup %1031 }
 0xc78   :  { %694 = vrot.lane.b32.xlu2 %v1032_v54, %s1056_s2 }
 0xc79   :  { %v1034_v56 = vpop.eup %1033 }
 0xc7a   :  { %v675_v57 = vadd.f32 1.0, %v1034_v56 }
 0xc7c   :  { %1035 = vrcp.f32 %v675_v57  ;;  %v687_v63 = vand.u32 2147483648, %v675_v57  ;;  %vm681_vm10 = vweird.f32 %v675_v57  ;;  %v685_v1 = vand.u32 2147483647, %v675_v57 }
 0xc7e   :  { %v688_v12 = vor.u32 1.1754944e-38, %v687_v63  ;;  %vm686_vm12 = vcmp.eq.f32.partialorder %v685_v1, 8.507059e+37 }
 0xc82   :  { %v1036_v58 = vpop.eup %1035 }
 0xc83   :  { %v677_v59 = vmul.f32 %v1036_v58, %v675_v57  ;;  %vm682_vm9 = vweird.f32 %v1036_v58 }
 0xc84   :  { %vm683_vm11 = vmor %vm681_vm10, %vm682_vm9 }
 0xc85   :  { %v678_v60 = vsub.f32 1.0, %v677_v59 }
 0xc87   :  { %v679_v61 = vmul.f32 %v1036_v58, %v678_v60 }
 0xc89   :  { %v680_v62 = vadd.f32 %v1036_v58, %v679_v61 }
 0xc8b   :  { %v684_v10 = vsel %vm683_vm11, %v1036_v58, %v680_v62 }
 0xc8c   :  { %v689_v14 = vsel %vm686_vm12, %v688_v12, %v684_v10 }
 0xc8d   :  { %v692_v18 = vmul.f32 %v689_v14, %v591_v47 }
 0xcd2   :  { %v695_v13 = vpop.permute.xlu2 %694 }
 0xcd3   :  { %v697_v16 = vmul.f32 %v695_v13, %v689_v14 }
 0xcd5   :  { %699 = vrot.lane.b32.xlu0 %v697_v16, %s1057_s5 }
 0xd47   :  { %v700_v19 = vpop.permute.xlu0 %699 }
 0xd48   :  { %v702_v20 = vadd.f32 %v700_v19, %v692_v18 }
 0xd4a   :  { %1037 = vtanh.f32 %v702_v20 }
 0xd50   :  { %v1038_v21 = vpop.eup %1037 }
 0xd51   :  { %705 = vrot.lane.b32.xlu1 %v1038_v21, %s1056_s2 }
 0xdc3   :  { %v706_v22 = vpop.permute.xlu1 %705 }
 0xdc4   :  { %v708_v23 = vmul.f32 %v706_v22, %v689_v14 }
 0xdc6   :  { %735 = vrot.lane.b32.xlu2 %v708_v23, %s1057_s5 }
 0xe20   :  { %v736_v26 = vpop.permute.xlu2 %735 }
 0xe21   :  { %977 = vmatmul.msk.f32.vlgmr.msra.gmra.mxu2 %vm66_vm2, %v736_v26 }
 0xe29   :  { %984 = vmatmul.msk.f32.vlgmr.msrb.gmra.mxu2 %vm66_vm2, %v843_v50 }
 0xea4   :  { %v756_v28 = vpop.f32.mrf.mxu2 }
 0xea5   :  { %v780_v29 = vadd.f32 %v779_v27, %v756_v28 }
 0xea7   :  { %v782_v30 = vadd.f32 %v1190_v15, %v780_v29 }
 0xea9   :  { %1039 = vtanh.f32 %v782_v30  ;;  %v979_v32 = vmul.f32 -1.442695, %v782_v30 }
 0xeab   :  { %1041 = vpow2.f32 %v979_v32 }
 0xeac   :  { %v890_v2 = vpop.f32.mrf.mxu2 }
 0xeaf   :  { %v1040_v31 = vpop.eup %1039 }
 0xeb0   :  { %805 = vrot.lane.b32.xlu0 %v1040_v31, %s1056_s2 }
 0xeb1   :  { %v1042_v33 = vpop.eup %1041 }
 0xeb2   :  { %v786_v5 = vadd.f32 1.0, %v1042_v33 }
 0xeb4   :  { %1043 = vrcp.f32 %v786_v5  ;;  %v798_v36 = vand.u32 2147483648, %v786_v5  ;;  %vm792_vm14 = vweird.f32 %v786_v5  ;;  %v796_v37 = vand.u32 2147483647, %v786_v5 }
 0xeb6   :  { %v799_v38 = vor.u32 1.1754944e-38, %v798_v36  ;;  %vm797_vm3 = vcmp.eq.f32.partialorder %v796_v37, 8.507059e+37 }
 0xeba   :  { %v1044_v7 = vpop.eup %1043 }
 0xebb   :  { %v788_v8 = vmul.f32 %v1044_v7, %v786_v5  ;;  %vm793_vm13 = vweird.f32 %v1044_v7 }
 0xebc   :  { %vm794_vm15 = vmor %vm792_vm14, %vm793_vm13 }
 0xebd   :  { %v789_v9 = vsub.f32 1.0, %v788_v8 }
 0xebf   :  { %v790_v34 = vmul.f32 %v1044_v7, %v789_v9 }
 0xec1   :  { %v791_v35 = vadd.f32 %v1044_v7, %v790_v34 }
 0xec3   :  { %v795_v0 = vsel %vm794_vm15, %v1044_v7, %v791_v35 }
 0xec4   :  { %v800_v40 = vsel %vm797_vm3, %v799_v38, %v795_v0 }
 0xec5   :  { %v803_v43 = vmul.f32 %v800_v40, %v702_v20 }
 0xf22   :  { %v806_v39 = vpop.permute.xlu0 %805 }
 0xf23   :  { %v808_v41 = vmul.f32 %v806_v39, %v800_v40 }
 0xf25   :  { %810 = vrot.lane.b32.xlu1 %v808_v41, %s1057_s5 }
 0xf97   :  { %v811_v44 = vpop.permute.xlu1 %810 }
 0xf98   :  { %v813_v45 = vadd.f32 %v811_v44, %v803_v43 }
 0xf9a   :  { %1045 = vtanh.f32 %v813_v45 }
 0xfa0   :  { %v1046_v46 = vpop.eup %1045 }
 0xfa1   :  { %816 = vrot.lane.b32.xlu2 %v1046_v46, %s1056_s2 }
 0xffb   :  { %v817_v47 = vpop.permute.xlu2 %816 }
 0xffc   :  { %v819_v48 = vmul.f32 %v817_v47, %v800_v40 }
 0xffe   :  { %846 = vrot.lane.b32.xlu0 %v819_v48, %s1057_s5 }
0x1070   :  { %v847_v51 = vpop.permute.xlu0 %846 }
0x1071   :  { %983 = vmatmul.msk.f32.vlgmr.msrb.gmra.mxu1 %vm66_vm2, %v847_v51 }
0x10ee   :  { %v867_v3 = vpop.f32.mrf.mxu1 }
0x10ef   :  { %v891_v4 = vadd.f32 %v890_v2, %v867_v3 }
0x10f1   :  { %v893_v6 = vadd.f32 %v1190_v15, %v891_v4 }
0x10f3   :  { %1047 = vtanh.f32 %v893_v6  ;;  %v985_v53 = vmul.f32 -1.442695, %v893_v6 }
0x10f5   :  { %1049 = vpow2.f32 %v985_v53 }
0x10f9   :  { %v1048_v52 = vpop.eup %1047 }
0x10fa   :  { %916 = vrot.lane.b32.xlu1 %v1048_v52, %s1056_s2 }
0x10fb   :  { %v1050_v54 = vpop.eup %1049 }
0x10fc   :  { %v897_v55 = vadd.f32 1.0, %v1050_v54 }
0x10fe   :  { %1051 = vrcp.f32 %v897_v55  ;;  %v909_v60 = vand.u32 2147483648, %v897_v55  ;;  %vm903_vm4 = vweird.f32 %v897_v55  ;;  %v907_v61 = vand.u32 2147483647, %v897_v55 }
0x1100   :  { %v910_v62 = vor.u32 1.1754944e-38, %v909_v60  ;;  %vm908_vm0 = vcmp.eq.f32.partialorder %v907_v61, 8.507059e+37 }
0x1104   :  { %v1052_v11 = vpop.eup %1051 }
0x1105   :  { %v899_v56 = vmul.f32 %v1052_v11, %v897_v55  ;;  %vm904_vm1 = vweird.f32 %v1052_v11 }
0x1106   :  { %vm905_vm5 = vmor %vm903_vm4, %vm904_vm1 }
0x1107   :  { %v900_v57 = vsub.f32 1.0, %v899_v56 }
0x1109   :  { %v901_v58 = vmul.f32 %v1052_v11, %v900_v57 }
0x110b   :  { %v902_v59 = vadd.f32 %v1052_v11, %v901_v58 }
0x110d   :  { %v906_v15 = vsel %vm905_vm5, %v1052_v11, %v902_v59 }
0x110e   :  { %v911_v1 = vsel %vm908_vm0, %v910_v62, %v906_v15 }
0x110f   :  { %v914_v12 = vmul.f32 %v911_v1, %v813_v45 }
0x116c   :  { %v917_v63 = vpop.permute.xlu1 %916 }
0x116d   :  { %v919_v10 = vmul.f32 %v917_v63, %v911_v1 }
0x116f   :  { %921 = vrot.lane.b32.xlu2 %v919_v10, %s1057_s5 }
0x11c9   :  { %v922_v13 = vpop.permute.xlu2 %921 }
0x11ca   :  { %v924_v14 = vadd.f32 %v922_v13, %v914_v12 }
0x11cc   :  { %1053 = vtanh.f32 %v924_v14 }
0x11d2   :  { %v1054_v16 = vpop.eup %1053 }
0x11d3   :  { %927 = vrot.lane.b32.xlu0 %v1054_v16, %s1056_s2 }
0x1245   :  { %v928_v17 = vpop.permute.xlu0 %927 }
0x1246   :  { %v930_v18 = vmul.f32 %v928_v17, %v911_v1 }
0x1248   :  { %932 = vrot.lane.b32.xlu1 %v930_v18, %s1057_s5 }
0x12ba   :  { %v933_v19 = vpop.permute.xlu1 %932 }
0x12bb   :  { %935 = vst.msk [vmem:[%s1333_s6] sm:$0xff] %vm66_vm2, %v933_v19 }

// kernel: _forward_core.5
= control target key start
LH: loop header
LB: loop body
LE: loop exit
PB: predicated region body
PF: predicated region fallthrough
CT: control target
= control target key end

     0   :  { %s1273_s15 = smov 0   ;;  %s1572_s0 = inlined_call_operand.vmem [shape: f32[2,3,256], index: 0, kind: input, shape index: {}]   ;;  %s1573_s1 = inlined_call_operand.vmem [shape: f32[9,32,3], index: 1, kind: input, shape index: {}]   ;;  %s1574_s2 = inlined_call_operand.vmem [shape: f32[9,1,256], index: 2, kind: input, shape index: {}]   ;;  %s1575_s3 = inlined_call_operand.vmem [shape: f32[32,1], index: 3, kind: input, shape index: {}]   ;;  %s1576_s4 = inlined_call_operand.vmem [shape: f32[2,32,256], index: 4, kind: output, shape index: {}]  }
   0x1 LB: > { %s1118_s16 = sadd.s32 4294967295, %s1236_s15   ;;  %p1122_p0 = scmp.ge.s32.totalorder %s1236_s15, 1  ;;  %s1236_s15 = sphi %s1273_s15, %s14_s15  }
   0x2   : > { %p162_p1 = scmp.lt.s32.totalorder %s1236_s15, 3 }
   0x4   : > { %p163_p2 = pnand %p1122_p0, %p162_p1 }
   0x5   : > { %p188_p3 = scmp.lt.s32.totalorder (!%p163_p2), %s1118_s16, 1  ;;  %s1238_s21 = smov (!%p163_p2), 17  }
   0x6   : > { %166 = sbr.rel (%p163_p2) target bundleno = 450 (0x1c2), region = 36  ;;  %s1239_s22 = smov (!%p163_p2), 16  }
   0x7   : > { %s1240_s23 = smov (!%p163_p2), 15   ;;  %s1241_s26 = smov (!%p163_p2), 1  }
   0x8   : > { %s1242_s27 = smov (!%p163_p2), 127   ;;  %s1243_s28 = smov (!%p163_p2), 113  }
   0x9   : > { %s1244_s29 = smov (!%p163_p2), 112   ;;  %s1245_s30 = smov (!%p163_p2), 111  }
   0xb   : > { %s1578_s16 = smov (!%p188_p3, %s1118_s16), 1  ;;  %v1158_v8 = vld [vmem:[%s1574_s2 + $0x8] sm:$0x3]  ;;  %vm566_vm0 = vcmask 1043456   ;;  %v218_v34 = vld [vmem:[%s1574_s2] sm:$0x3] }
   0xc   : > { %s1205_s17 = sshll.u32 %s1578_s16, 3  ;;  %v564_v11 = vperm.slane %v1158_v8, 1  ;;  %v563_v12 = vperm.slane %v1158_v8, 0  ;;  %vm213_vm1 = vcmask 138240   ;;  %v221_v37 = vperm.slane %v218_v34, 1  ;;  %v1130_v55 = vld [vmem:[%s1573_s1 + $0x30] sm:$0xff] }
   0xd   : > { %s192_s20 = scalar_lea.vmem %s1572_s0, %s1205_s17  ;;  %v1127_v38 = vld [vmem:[%s1574_s2 + $0x2] sm:$0x3]  ;;  %vm276_vm2 = vcmask 1040384   ;;  %vm246_vm3 = vcmask 130048   ;;  %vm277_vm4 = vcmask 1041408   ;;  %v1246_v45 = vmov 65535  }
   0xe   : > { %v1287_v0 = vld [vmem:[%s192_s20] sm:$0x77]  ;;  %v565_v13 = vrot.slane %v564_v11, 4  ;;  %v254_v40 = vperm.slane %v1127_v38, 0  ;;  %v255_v41 = vperm.slane %v1127_v38, 1  ;;  %v278_v46 = vsel %vm276_vm2, 4294967295, %v1246_v45 }
   0xf   : > { %201 = vst [vmem:[#allocation1] ss:$2 sm:$0xff] %v1287_v0  ;;  %v1320_v52 = vsel %vm277_vm4, %v278_v46, 0  ;;  %v1131_v56 = vld [vmem:[%s1573_s1 + $0x38] sm:$0xff]  ;;  %v1128_v57 = vld [vmem:[%s1573_s1 + $0x20] sm:$0xff]  ;;  %v1129_v58 = vld [vmem:[%s1573_s1 + $0x28] sm:$0xff] }
  0x10   : > { %v567_v15 = vsel %vm566_vm0, %v563_v12, %v565_v13  ;;  %v220_v59 = vperm.slane %v218_v34, 0  ;;  %v266_v63 = vpack.c.bf16 %v1131_v56, %v1130_v55  ;;  %vm269_vm5 = vcmask 23552   ;;  %v1144_v45 = vld [vmem:[%s1573_s1 + $0x58] sm:$0xff]  ;;  %s1206_s5 = sshll.u32 %s1578_s16, 6 }
  0x11   : > { %v569_v16 = vmul.f32 %v567_v15, %v1287_v0  ;;  %vm386_vm6 = vcmask 121856   ;;  %vm479_vm7 = vcmask 7168   ;;  %vm650_vm8 = vcmask 1039360   ;;  %s1549_s8 = scalar_lea.vmem %s1576_s4, %s1206_s5 }
  0x12   : > { %vm743_vm9 = vcmask 924672   ;;  %vm836_vm10 = vcmask 916480   ;;  %vm929_vm11 = vcmask 908288  }
  0x16   : > { %v202_v1 = vld.sshfl [vmem:[#allocation1 + $0x8] sm:$0xff pattern:$0x75316420] }
  0x17   : > { %206 = vst [vmem:[#allocation1] ss:$2 sm:$0xff] %v1287_v0 }
  0x1e   : > { %v207_v2 = vld.sshfl [vmem:[#allocation1] sm:$0xff pattern:$0x75316420]  ;;  %v208_v3 = vld.sshfl [vmem:[#allocation1 + $0x8] sm:$0xff pattern:$0x75316420] }
  0x1f   : > { %234 = vst [vmem:[#allocation1] ss:$2 sm:$0xff] %v1287_v0  ;;  %209 = vrot.lane.b32.xlu2 %v207_v2, %s1238_s21 }
  0x26   : > { %v235_v4 = vld.sshfl [vmem:[#allocation1 + $0x8] sm:$0xff pattern:$0x75316420] }
  0x27   : > { %236 = vrot.lane.b32.xlu0 %v235_v4, %s1239_s22  ;;  %239 = vst [vmem:[#allocation1] ss:$2 sm:$0xff] %v1287_v0  ;;  %211 = vrot.lane.b32.xlu2 %v208_v3, %s1238_s21  ;;  %v1140_v4 = vld [vmem:[%s1574_s2 + $0x4] sm:$0x3] }
  0x2e   : > { %v241_v5 = vld.sshfl [vmem:[#allocation1 + $0x8] sm:$0xff pattern:$0x75316420]  ;;  %v240_v6 = vld.sshfl [vmem:[#allocation1] sm:$0xff pattern:$0x75316420] }
  0x2f   : > { %244 = vrot.lane.b32.xlu1 %v241_v5, %s1239_s22  ;;  %242 = vrot.lane.b32.xlu0 %v240_v6, %s1239_s22  ;;  %374 = vst [vmem:[#allocation1] ss:$2 sm:$0xff] %v1287_v0 }
  0x36   : > { %v375_v7 = vld.sshfl [vmem:[#allocation1 + $0x8] sm:$0xff pattern:$0x75316420] }
  0x37   : > { %203 = vrot.lane.b32.xlu1 %v202_v1, %s1238_s21  ;;  %376 = vrot.lane.b32.xlu0 %v375_v7, %s1240_s23  ;;  %379 = vst [vmem:[#allocation1] ss:$2 sm:$0xff] %v1287_v0  ;;  %v265_v1 = vpack.c.bf16 %v1129_v58, %v1128_v57 }
  0x3e   : > { %v380_v9 = vld.sshfl [vmem:[#allocation1] sm:$0xff pattern:$0x75316420]  ;;  %v381_v10 = vld.sshfl [vmem:[#allocation1 + $0x8] sm:$0xff pattern:$0x75316420] }
  0x3f   : > { %382 = vrot.lane.b32.xlu1 %v380_v9, %s1240_s23  ;;  %467 = vst [vmem:[#allocation1] ss:$2 sm:$0xff] %v1287_v0  ;;  %384 = vrot.lane.b32.xlu2 %v381_v10, %s1240_s23  ;;  %v394_v9 = vperm.slane %v1140_v4, 0  ;;  %v395_v10 = vperm.slane %v1140_v4, 1 }
  0x46   : > { %v468_v14 = vld.sshfl [vmem:[#allocation1 + $0x8] sm:$0xff pattern:$0x75316420] }
  0x47   : > { %469 = vrot.lane.b32.xlu0 %v468_v14, %s1241_s26  ;;  %472 = vst [vmem:[#allocation1] ss:$2 sm:$0xff] %v1287_v0 }
  0x4e   : > { %v473_v17 = vld.sshfl [vmem:[#allocation1] sm:$0xff pattern:$0x75316420]  ;;  %v474_v18 = vld.sshfl [vmem:[#allocation1 + $0x8] sm:$0xff pattern:$0x75316420] }
  0x4f   : > { %475 = vrot.lane.b32.xlu1 %v473_v17, %s1241_s26  ;;  %477 = vrot.lane.b32.xlu2 %v474_v18, %s1241_s26  ;;  %578 = vst [vmem:[#allocation1] ss:$2 sm:$0xff] %v569_v16 }
  0x56   : > { %v1301_v19 = vld.sshfl [vmem:[#allocation1] sm:$0xff pattern:$0x75316420]  ;;  %v1303_v20 = vld.sshfl [vmem:[#allocation1 + $0x8] sm:$0xff pattern:$0x75316420] }
  0x57   : > { %643 = vst [vmem:[#allocation1] ss:$2 sm:$0xff] %v1287_v0  ;;  %v583_v14 = vpack.c.bf16 %v1301_v19, %v1301_v19  ;;  %v584_v15 = vpack.c.bf16 %v1303_v20, %v1303_v20  ;;  %v1142_v19 = vld [vmem:[%s1573_s1 + $0x48] sm:$0xff] }
  0x59   : > { %v592_v20 = vand.u32 %v583_v14, %v1320_v52 }
  0x5e   : > { %v645_v21 = vld.sshfl [vmem:[#allocation1 + $0x8] sm:$0xff pattern:$0x75316420]  ;;  %v644_v22 = vld.sshfl [vmem:[#allocation1] sm:$0xff pattern:$0x75316420] }
  0x5f   : > { %648 = vrot.lane.b32.xlu1 %v645_v21, %s1242_s27  ;;  %646 = vrot.lane.b32.xlu0 %v644_v22, %s1242_s27  ;;  %654 = vst [vmem:[#allocation1] ss:$2 sm:$0xff] %v1287_v0  ;;  %v226_v22 = vld [vmem:[%s1573_s1] sm:$0xff] }
  0x66   : > { %v655_v23 = vld.sshfl [vmem:[#allocation1] sm:$0xff pattern:$0x75316420] }
  0x67   : > { %736 = vst [vmem:[#allocation1] ss:$2 sm:$0xff] %v1287_v0  ;;  %656 = vrot.lane.b32.xlu2 %v655_v23, %s1242_s27  ;;  %v227_v23 = vld [vmem:[%s1573_s1 + $0x8] sm:$0xff] }
  0x6e   : > { %v738_v24 = vld.sshfl [vmem:[#allocation1 + $0x8] sm:$0xff pattern:$0x75316420]  ;;  %v737_v25 = vld.sshfl [vmem:[#allocation1] sm:$0xff pattern:$0x75316420] }
  0x6f   : > { %741 = vrot.lane.b32.xlu1 %v738_v24, %s1243_s28  ;;  %739 = vrot.lane.b32.xlu0 %v737_v25, %s1243_s28  ;;  %747 = vst [vmem:[#allocation1] ss:$2 sm:$0xff] %v1287_v0  ;;  %v1141_v24 = vld [vmem:[%s1573_s1 + $0x40] sm:$0xff]  ;;  %v595_v25 = vand.u32 %v584_v15, %v1320_v52 }
  0x76   : > { %v748_v26 = vld.sshfl [vmem:[#allocation1] sm:$0xff pattern:$0x75316420] }
  0x77   : > { %749 = vrot.lane.b32.xlu2 %v748_v26, %s1243_s28  ;;  %829 = vst [vmem:[#allocation1] ss:$2 sm:$0xff] %v1287_v0 }
  0x79   : > { %v210_v32 = vpop.permute.xlu2 %209 }
  0x7e   : > { %v831_v27 = vld.sshfl [vmem:[#allocation1 + $0x8] sm:$0xff pattern:$0x75316420]  ;;  %v830_v28 = vld.sshfl [vmem:[#allocation1] sm:$0xff pattern:$0x75316420] }
  0x7f   : > { %834 = vrot.lane.b32.xlu1 %v831_v27, %s1244_s29  ;;  %832 = vrot.lane.b32.xlu0 %v830_v28, %s1244_s29  ;;  %840 = vst [vmem:[#allocation1] ss:$2 sm:$0xff] %v1287_v0  ;;  %v230_v28 = vpack.c.bf16 %v227_v23, %v226_v22  ;;  %v1153_v22 = vld [vmem:[%s1573_s1 + $0x78] sm:$0xff]  ;;  %v1161_v23 = vld [vmem:[%s1573_s1 + $0x90] sm:$0xff] }
  0x81   : > { %v212_v36 = vpop.permute.xlu2 %211 }
  0x82   : > { %v214_v39 = vsel %vm213_vm1, %v210_v32, %v212_v36 }
  0x83   : > { %v225_v42 = vmul.f32 %v221_v37, %v214_v39 }
  0x85   : > { %v233_v51 = vpack.c.bf16 %v225_v42, %v225_v42  ;;  %v228_v42 = vld [vmem:[%s1573_s1 + $0x10] sm:$0xff] }
  0x86   : > { %v841_v29 = vld.sshfl [vmem:[#allocation1] sm:$0xff pattern:$0x75316420] }
  0x87   : > { %922 = vst [vmem:[#allocation1] ss:$2 sm:$0xff] %v1287_v0  ;;  %842 = vrot.lane.b32.xlu2 %v841_v29, %s1244_s29  ;;  %v334_v62 = vand.u32 %v1320_v52, %v233_v51  ;;  %v405_v29 = vpack.c.bf16 %v1142_v19, %v1141_v24  ;;  %v1162_v24 = vld [vmem:[%s1573_s1 + $0x98] sm:$0xff] }
  0x8e   : > { %v924_v30 = vld.sshfl [vmem:[#allocation1 + $0x8] sm:$0xff pattern:$0x75316420]  ;;  %v923_v31 = vld.sshfl [vmem:[#allocation1] sm:$0xff pattern:$0x75316420] }
  0x8f   : > { %927 = vrot.lane.b32.xlu1 %v924_v30, %s1245_s30  ;;  %925 = vrot.lane.b32.xlu0 %v923_v31, %s1245_s30  ;;  %933 = vst [vmem:[#allocation1] ss:$2 sm:$0xff] %v1287_v0  ;;  %v1149_v30 = vld [vmem:[%s1574_s2 + $0x6] sm:$0x3] }
  0x90   : > { %v488_v34 = vperm.slane %v1149_v30, 1 }
  0x96   : > { %v934_v33 = vld.sshfl [vmem:[#allocation1] sm:$0xff pattern:$0x75316420] }
  0x97   : > { %935 = vrot.lane.b32.xlu2 %v934_v33, %s1245_s30  ;;  %v487_v33 = vperm.slane %v1149_v30, 0 }
  0x99   : > { %v237_v35 = vpop.permute.xlu0 %236  ;;  %v385_v8 = vpop.permute.xlu2 %384 }
  0xa1   : > { %v245_v43 = vpop.permute.xlu1 %244  ;;  %v243_v44 = vpop.permute.xlu0 %242 }
  0xa2   : > { %v247_v47 = vsel %vm246_vm3, %v243_v44, %v245_v43  ;;  %v250_v48 = vsel %vm246_vm3, %v237_v35, %v243_v44  ;;  %v229_v43 = vld [vmem:[%s1573_s1 + $0x18] sm:$0xff]  ;;  %v1143_v44 = vld [vmem:[%s1573_s1 + $0x50] sm:$0xff] }
  0xa3   : > { %v258_v49 = vmul.f32 %v254_v40, %v250_v48  ;;  %v259_v50 = vmul.f32 %v255_v41, %v247_v47  ;;  %v231_v48 = vpack.c.bf16 %v229_v43, %v228_v42  ;;  %v1178_v42 = vld [vmem:[%s1573_s1 + $0xc8] sm:$0xff] }
  0xa5   : > { %v267_v53 = vpack.c.bf16 %v258_v49, %v258_v49  ;;  %v268_v54 = vpack.c.bf16 %v259_v50, %v259_v50  ;;  %v406_v49 = vpack.c.bf16 %v1144_v45, %v1143_v44  ;;  %v1167_v50 = vld [vmem:[%s1574_s2 + $0xa] sm:$0x3] }
  0xa6   : > { %v663_v51 = vperm.slane %v1167_v50, 0 }
  0xa7   : > { %v281_v60 = vand.u32 %v1320_v52, %v267_v53  ;;  %v284_v61 = vand.u32 %v1320_v52, %v268_v54  ;;  %v664_v53 = vperm.slane %v1167_v50, 1 }
  0xa9   : > { %v204_v0 = vpop.permute.xlu1 %203  ;;  %1207 = vmatpush.bf16.msra.mxu2 %v281_v60  ;;  %1208 = vmatpush.bf16.msra.mxu3 %v284_v61  ;;  %v377_v7 = vpop.permute.xlu0 %376 }
  0xaa   : > { %v217_v2 = vsel %vm213_vm1, %v204_v0, %v210_v32  ;;  %293 = vmatpush.bf16.msra.mxu0 %v281_v60  ;;  %312 = vmatpush.bf16.msra.mxu1 %v284_v61  ;;  %v478_v32 = vpop.permute.xlu2 %477  ;;  %v1150_v61 = vld [vmem:[%s1573_s1 + $0x60] sm:$0xff] }
  0xab   : > { %v224_v3 = vmul.f32 %v220_v59, %v217_v2  ;;  %v1160_v2 = vld [vmem:[%s1573_s1 + $0x88] sm:$0xff] }
  0xac   : > { %1133 = vmatmul.msk.bf16.vlgmr.msra.gmra.mxu2 %vm269_vm5, %v266_v63  ;;  %1135 = vmatmul.msk.bf16.vlgmr.msra.gmra.mxu3 %vm269_vm5, %v266_v63 }
  0xad   : > { %362 = vmatpush.bf16.msrb.mxu3 %v334_v62  ;;  %v232_v5 = vpack.c.bf16 %v224_v3, %v224_v3  ;;  %1132 = vmatmul.msk.bf16.vlgmr.msra.gmra.mxu0 %vm269_vm5, %v265_v1  ;;  %v1151_v62 = vld [vmem:[%s1573_s1 + $0x68] sm:$0xff] }
  0xae   : > { %1134 = vmatmul.msk.bf16.vlgmr.msra.gmra.mxu1 %vm269_vm5, %v265_v1  ;;  %v1159_v1 = vld [vmem:[%s1573_s1 + $0x80] sm:$0xff] }
  0xaf   : > { %v331_v6 = vand.u32 %v1320_v52, %v232_v5  ;;  %v498_v5 = vpack.c.bf16 %v1151_v62, %v1150_v61  ;;  %v1171_v61 = vld [vmem:[%s1573_s1 + $0xb8] sm:$0xff]  ;;  %v1179_v62 = vld [vmem:[%s1573_s1 + $0xd0] sm:$0xff] }
  0xb1   : > { %343 = vmatpush.bf16.msrb.mxu2 %v331_v6  ;;  %v383_v11 = vpop.permute.xlu1 %382  ;;  %v575_v6 = vpack.c.bf16 %v1160_v2, %v1159_v1 }
  0xb2   : > { %v387_v12 = vsel %vm386_vm6, %v383_v11, %v385_v8  ;;  %v390_v13 = vsel %vm386_vm6, %v377_v7, %v383_v11  ;;  %v1176_v7 = vld [vmem:[%s1574_s2 + $0xc] sm:$0x3] }
  0xb3   : > { %v398_v16 = vmul.f32 %v394_v9, %v390_v13  ;;  %v399_v17 = vmul.f32 %v395_v10, %v387_v12  ;;  %v756_v8 = vperm.slane %v1176_v7, 0  ;;  %v757_v9 = vperm.slane %v1176_v7, 1  ;;  %v1195_v7 = vld [vmem:[%s1573_s1 + $0x100] sm:$0xff] }
  0xb5   : > { %v407_v18 = vpack.c.bf16 %v398_v16, %v398_v16  ;;  %v408_v21 = vpack.c.bf16 %v399_v17, %v399_v17 }
  0xb7   : > { %v416_v26 = vand.u32 %v407_v18, %v1320_v52  ;;  %v419_v27 = vand.u32 %v408_v21, %v1320_v52  ;;  %v1152_v21 = vld [vmem:[%s1573_s1 + $0x70] sm:$0xff] }
  0xb9   : > { %428 = vmatpush.bf16.msrb.mxu0 %v416_v26  ;;  %447 = vmatpush.bf16.msrb.mxu1 %v419_v27  ;;  %v470_v31 = vpop.permute.xlu0 %469  ;;  %v576_v26 = vpack.c.bf16 %v1162_v24, %v1161_v23  ;;  %v1185_v27 = vld [vmem:[%s1574_s2 + $0xe] sm:$0x3] }
  0xbc   : > { %1136 = vmatmul.msk.bf16.vlgmr.msrb.gmra.mxu2 %vm269_vm5, %v230_v28  ;;  %1138 = vmatmul.msk.bf16.vlgmr.msrb.gmra.mxu3 %vm269_vm5, %v230_v28  ;;  %v849_v28 = vperm.slane %v1185_v27, 0 }
  0xbd   : > { %604 = vmatpush.bf16.msra.mxu0 %v592_v20  ;;  %623 = vmatpush.bf16.msra.mxu1 %v595_v25  ;;  %v499_v25 = vpack.c.bf16 %v1153_v22, %v1152_v21 }
  0xbe   : > { %1145 = vmatmul.msk.bf16.vlgmr.msrb.gmra.mxu0 %vm269_vm5, %v405_v29  ;;  %1147 = vmatmul.msk.bf16.vlgmr.msrb.gmra.mxu1 %vm269_vm5, %v405_v29  ;;  %v850_v29 = vperm.slane %v1185_v27, 1  ;;  %v1017_v27 = vld [vmem:[%s1575_s3 + $0x10] sm:$0xff] }
  0xc1   : > { %v476_v35 = vpop.permute.xlu1 %475  ;;  %v657_v54 = vpop.permute.xlu2 %656 }
  0xc2   : > { %v480_v36 = vsel %vm479_vm7, %v476_v35, %v478_v32  ;;  %v483_v37 = vsel %vm479_vm7, %v470_v31, %v476_v35 }
  0xc3   : > { %v491_v38 = vmul.f32 %v487_v33, %v483_v37  ;;  %v492_v39 = vmul.f32 %v488_v34, %v480_v36  ;;  %v1168_v37 = vld [vmem:[%s1573_s1 + $0xa0] sm:$0xff] }
  0xc5   : > { %v500_v40 = vpack.c.bf16 %v491_v38, %v491_v38  ;;  %v501_v41 = vpack.c.bf16 %v492_v39, %v492_v39  ;;  %v1169_v38 = vld [vmem:[%s1573_s1 + $0xa8] sm:$0xff] }
  0xc6   : > { %v674_v45 = vpack.c.bf16 %v1169_v38, %v1168_v37 }
  0xc7   : > { %v509_v46 = vand.u32 %v500_v40, %v1320_v52  ;;  %v512_v47 = vand.u32 %v501_v41, %v1320_v52  ;;  %v1177_v41 = vld [vmem:[%s1573_s1 + $0xc0] sm:$0xff] }
  0xc9   : > { %521 = vmatpush.bf16.msra.mxu2 %v509_v46  ;;  %540 = vmatpush.bf16.msra.mxu3 %v512_v47  ;;  %v767_v46 = vpack.c.bf16 %v1178_v42, %v1177_v41  ;;  %v1194_v47 = vld [vmem:[%s1574_s2 + $0x10] sm:$0x3] }
  0xcc   : > { %1137 = vmatmul.msk.bf16.gmra.mxu2 %vm269_vm5, %v231_v48  ;;  %1139 = vmatmul.msk.bf16.gmra.mxu3 %vm269_vm5, %v231_v48  ;;  %v942_v48 = vperm.slane %v1194_v47, 0 }
  0xce   : > { %1146 = vmatmul.msk.bf16.gmra.mxu0 %vm269_vm5, %v406_v49  ;;  %1148 = vmatmul.msk.bf16.gmra.mxu1 %vm269_vm5, %v406_v49  ;;  %v943_v49 = vperm.slane %v1194_v47, 1 }
  0xd1   : > { %v649_v55 = vpop.permute.xlu1 %648  ;;  %v647_v56 = vpop.permute.xlu0 %646 }
  0xd2   : > { %v651_v57 = vsel %vm650_vm8, %v647_v56, %v649_v55  ;;  %v659_v58 = vsel %vm650_vm8, %v649_v55, %v657_v54  ;;  %v750_v10 = vpop.permute.xlu2 %749 }
  0xd3   : > { %v667_v59 = vmul.f32 %v663_v51, %v651_v57  ;;  %v668_v60 = vmul.f32 %v664_v53, %v659_v58 }
  0xd5   : > { %v676_v63 = vpack.c.bf16 %v667_v59, %v667_v59  ;;  %v677_v0 = vpack.c.bf16 %v668_v60, %v668_v60  ;;  %v1170_v60 = vld [vmem:[%s1573_s1 + $0xb0] sm:$0xff] }
  0xd6   : > { %v675_v2 = vpack.c.bf16 %v1171_v61, %v1170_v60 }
  0xd7   : > { %v685_v3 = vand.u32 %v676_v63, %v1320_v52  ;;  %v688_v4 = vand.u32 %v677_v0, %v1320_v52  ;;  %v1180_v63 = vld [vmem:[%s1573_s1 + $0xd8] sm:$0xff] }
  0xd9   : > { %697 = vmatpush.bf16.msrb.mxu2 %v685_v3  ;;  %716 = vmatpush.bf16.msrb.mxu3 %v688_v4  ;;  %v768_v3 = vpack.c.bf16 %v1180_v63, %v1179_v62  ;;  %v1015_v4 = vld [vmem:[%s1575_s3] sm:$0xff] }
  0xdc   : > { %1154 = vmatmul.msk.bf16.vlgmr.msra.gmra.mxu2 %vm269_vm5, %v498_v5  ;;  %1156 = vmatmul.msk.bf16.vlgmr.msra.gmra.mxu3 %vm269_vm5, %v498_v5  ;;  %v1247_v5 = vmov 0  }
  0xdd   : > { %1227 = vset.pattern.permute.xlu0 %v1247_v5  ;;  %1228 = vset.pattern.permute.xlu1 %v1247_v5 }
  0xde   : > { %1163 = vmatmul.msk.bf16.vlgmr.msra.gmra.mxu0 %vm269_vm5, %v575_v6  ;;  %1165 = vmatmul.msk.bf16.vlgmr.msra.gmra.mxu1 %vm269_vm5, %v575_v6  ;;  %v1187_v6 = vld [vmem:[%s1573_s1 + $0xe8] sm:$0xff] }
  0xdf   : > { %1021 = vperm.xlu0 %1227, %v1015_v4   ;;  %1229 = vset.pattern.permute.xlu2 %v1247_v5 }
  0xe0   : > { %1031 = vperm.xlu2 %1229, %v1017_v27  }
  0xe1   : > { %v742_v11 = vpop.permute.xlu1 %741  ;;  %v740_v12 = vpop.permute.xlu0 %739 }
  0xe2   : > { %v744_v13 = vsel %vm743_vm9, %v740_v12, %v742_v11  ;;  %v752_v14 = vsel %vm743_vm9, %v742_v11, %v750_v10  ;;  %v843_v30 = vpop.permute.xlu2 %842  ;;  %v1018_v12 = vld [vmem:[%s1575_s3 + $0x18] sm:$0xff] }
  0xe3   : > { %v760_v15 = vmul.f32 %v756_v8, %v744_v13  ;;  %v761_v16 = vmul.f32 %v757_v9, %v752_v14  ;;  %v1196_v8 = vld [vmem:[%s1573_s1 + $0x108] sm:$0xff]  ;;  %v1188_v13 = vld [vmem:[%s1573_s1 + $0xf0] sm:$0xff]  ;;  %v1189_v14 = vld [vmem:[%s1573_s1 + $0xf8] sm:$0xff] }
  0xe4   : > { %v1016_v9 = vld [vmem:[%s1575_s3 + $0x8] sm:$0xff]  ;;  %v953_v11 = vpack.c.bf16 %v1196_v8, %v1195_v7 }
  0xe5   : > { %v769_v17 = vpack.c.bf16 %v760_v15, %v760_v15  ;;  %v770_v18 = vpack.c.bf16 %v761_v16, %v761_v16  ;;  %1026 = vperm.xlu1 %1228, %v1016_v9   ;;  %v1197_v15 = vld [vmem:[%s1573_s1 + $0x110] sm:$0xff]  ;;  %v1198_v16 = vld [vmem:[%s1573_s1 + $0x118] sm:$0xff] }
  0xe7   : > { %v778_v19 = vand.u32 %v769_v17, %v1320_v52  ;;  %v781_v20 = vand.u32 %v770_v18, %v1320_v52  ;;  %v861_v17 = vpack.c.bf16 %v1189_v14, %v1188_v13  ;;  %v954_v18 = vpack.c.bf16 %v1198_v16, %v1197_v15 }
  0xe9   : > { %790 = vmatpush.bf16.msrb.mxu0 %v778_v19  ;;  %809 = vmatpush.bf16.msrb.mxu1 %v781_v20 }
  0xec   : > { %1155 = vmatmul.msk.bf16.gmra.mxu2 %vm269_vm5, %v499_v25  ;;  %1157 = vmatmul.msk.bf16.gmra.mxu3 %vm269_vm5, %v499_v25 }
  0xed   : > { %1036 = vperm.xlu1 %1228, %v1018_v12  }
  0xee   : > { %1164 = vmatmul.msk.bf16.gmra.mxu0 %vm269_vm5, %v576_v26  ;;  %1166 = vmatmul.msk.bf16.gmra.mxu1 %vm269_vm5, %v576_v26 }
  0xf1   : > { %v835_v31 = vpop.permute.xlu1 %834  ;;  %v833_v32 = vpop.permute.xlu0 %832 }
  0xf2   : > { %v837_v33 = vsel %vm836_vm10, %v833_v32, %v835_v31  ;;  %v845_v34 = vsel %vm836_vm10, %v835_v31, %v843_v30  ;;  %v936_v50 = vpop.permute.xlu2 %935 }
  0xf3   : > { %v853_v35 = vmul.f32 %v849_v28, %v837_v33  ;;  %v854_v36 = vmul.f32 %v850_v29, %v845_v34 }
  0xf5   : > { %v862_v39 = vpack.c.bf16 %v853_v35, %v853_v35  ;;  %v863_v40 = vpack.c.bf16 %v854_v36, %v854_v36 }
  0xf7   : > { %v871_v43 = vand.u32 %v862_v39, %v1320_v52  ;;  %v874_v44 = vand.u32 %v863_v40, %v1320_v52 }
  0xf9   : > { %883 = vmatpush.bf16.msra.mxu2 %v871_v43  ;;  %902 = vmatpush.bf16.msra.mxu3 %v874_v44 }
  0xfc   : > { %1172 = vmatmul.msk.bf16.vlgmr.msrb.gmra.mxu2 %vm269_vm5, %v674_v45  ;;  %1174 = vmatmul.msk.bf16.vlgmr.msrb.gmra.mxu3 %vm269_vm5, %v674_v45 }
  0xfe   : > { %1181 = vmatmul.msk.bf16.vlgmr.msrb.gmra.mxu0 %vm269_vm5, %v767_v46  ;;  %1183 = vmatmul.msk.bf16.vlgmr.msrb.gmra.mxu1 %vm269_vm5, %v767_v46 }
 0x101   : > { %v928_v51 = vpop.permute.xlu1 %927  ;;  %v926_v53 = vpop.permute.xlu0 %925 }
 0x102   : > { %v930_v54 = vsel %vm929_vm11, %v926_v53, %v928_v51  ;;  %v938_v55 = vsel %vm929_vm11, %v928_v51, %v936_v50 }
 0x103   : > { %v946_v56 = vmul.f32 %v942_v48, %v930_v54  ;;  %v947_v57 = vmul.f32 %v943_v49, %v938_v55 }
 0x105   : > { %v955_v58 = vpack.c.bf16 %v946_v56, %v946_v56  ;;  %v956_v59 = vpack.c.bf16 %v947_v57, %v947_v57 }
 0x107   : > { %v964_v0 = vand.u32 %v955_v58, %v1320_v52  ;;  %v967_v1 = vand.u32 %v956_v59, %v1320_v52  ;;  %v1186_v52 = vld [vmem:[%s1573_s1 + $0xe0] sm:$0xff] }
 0x108   : > { %v860_v10 = vpack.c.bf16 %v1187_v6, %v1186_v52 }
 0x109   : > { %976 = vmatpush.bf16.msra.mxu0 %v964_v0  ;;  %995 = vmatpush.bf16.msra.mxu1 %v967_v1 }
 0x10c   : > { %1173 = vmatmul.msk.bf16.gmra.mxu2 %vm269_vm5, %v675_v2  ;;  %1175 = vmatmul.msk.bf16.gmra.mxu3 %vm269_vm5, %v675_v2 }
 0x10e   : > { %1182 = vmatmul.msk.bf16.gmra.mxu0 %vm269_vm5, %v768_v3  ;;  %1184 = vmatmul.msk.bf16.gmra.mxu1 %vm269_vm5, %v768_v3 }
 0x11c   : > { %1190 = vmatmul.msk.bf16.vlgmr.msra.gmra.mxu2 %vm269_vm5, %v860_v10  ;;  %1192 = vmatmul.msk.bf16.vlgmr.msra.gmra.mxu3 %vm269_vm5, %v860_v10 }
 0x11e   : > { %1199 = vmatmul.msk.bf16.vlgmr.msra.gmra.mxu0 %vm269_vm5, %v953_v11  ;;  %1201 = vmatmul.msk.bf16.vlgmr.msra.gmra.mxu1 %vm269_vm5, %v953_v11 }
 0x12a   : > { %v295_v21 = vpop.f32.mrf.mxu0 }
 0x12b   : > { %v314_v22 = vpop.f32.mrf.mxu1 }
 0x12c   : > { %1191 = vmatmul.msk.bf16.gmra.mxu2 %vm269_vm5, %v861_v17  ;;  %1193 = vmatmul.msk.bf16.gmra.mxu3 %vm269_vm5, %v861_v17 }
 0x12e   : > { %1200 = vmatmul.msk.bf16.gmra.mxu0 %vm269_vm5, %v954_v18  ;;  %1202 = vmatmul.msk.bf16.gmra.mxu1 %vm269_vm5, %v954_v18 }
 0x12f   : > { %v300_v23 = vpop.f32.mrf.mxu2  ;;  %v319_v24 = vpop.f32.mrf.mxu3 }
 0x132   : > { %v297_v19 = vpop.f32.mrf.mxu0 }
 0x133   : > { %v316_v20 = vpop.f32.mrf.mxu1 }
 0x137   : > { %v302_v25 = vpop.f32.mrf.mxu2  ;;  %v321_v26 = vpop.f32.mrf.mxu3 }
 0x13b   : > { %v430_v28 = vpop.f32.mrf.mxu0  ;;  %v449_v29 = vpop.f32.mrf.mxu1 }
 0x13f   : > { %v345_v30 = vpop.f32.mrf.mxu2  ;;  %v364_v31 = vpop.f32.mrf.mxu3 }
 0x140   : > { %v346_v32 = vadd.f32 %v345_v30, %v295_v21  ;;  %v365_v33 = vadd.f32 %v364_v31, %v314_v22 }
 0x142   : > { %v459_v34 = vadd.f32 %v430_v28, %v346_v32  ;;  %v460_v35 = vadd.f32 %v449_v29, %v365_v33 }
 0x143   : > { %v432_v36 = vpop.f32.mrf.mxu0  ;;  %v451_v37 = vpop.f32.mrf.mxu1 }
 0x147   : > { %v347_v38 = vpop.f32.mrf.mxu2  ;;  %v366_v39 = vpop.f32.mrf.mxu3 }
 0x148   : > { %v348_v40 = vadd.f32 %v347_v38, %v297_v19  ;;  %v367_v41 = vadd.f32 %v366_v39, %v316_v20 }
 0x14a   : > { %v461_v42 = vadd.f32 %v432_v36, %v348_v40  ;;  %v462_v43 = vadd.f32 %v451_v37, %v367_v41 }
 0x14b   : > { %v435_v44 = vpop.f32.mrf.mxu0  ;;  %v454_v45 = vpop.f32.mrf.mxu1 }
 0x14f   : > { %v350_v46 = vpop.f32.mrf.mxu2  ;;  %v369_v47 = vpop.f32.mrf.mxu3 }
 0x150   : > { %v351_v48 = vadd.f32 %v350_v46, %v300_v23  ;;  %v370_v49 = vadd.f32 %v369_v47, %v319_v24 }
 0x152   : > { %v1519_v50 = vadd.f32 %v435_v44, %v351_v48  ;;  %v1521_v51 = vadd.f32 %v454_v45, %v370_v49  ;;  %v1022_v48 = vpop.permute.xlu0 %1021 }
 0x153   : > { %v437_v53 = vpop.f32.mrf.mxu0  ;;  %v456_v54 = vpop.f32.mrf.mxu1 }
 0x157   : > { %v352_v55 = vpop.f32.mrf.mxu2  ;;  %v371_v56 = vpop.f32.mrf.mxu3 }
 0x158   : > { %v353_v57 = vadd.f32 %v352_v55, %v302_v25  ;;  %v372_v58 = vadd.f32 %v371_v56, %v321_v26 }
 0x15a   : > { %v1523_v59 = vadd.f32 %v437_v53, %v353_v57  ;;  %v1525_v60 = vadd.f32 %v456_v54, %v372_v58 }
 0x15b   : > { %v606_v61 = vpop.f32.mrf.mxu0  ;;  %v625_v62 = vpop.f32.mrf.mxu1 }
 0x15f   : > { %v523_v63 = vpop.f32.mrf.mxu2  ;;  %v542_v0 = vpop.f32.mrf.mxu3 }
 0x160   : > { %v552_v26 = vadd.f32 %v523_v63, %v459_v34  ;;  %v553_v27 = vadd.f32 %v542_v0, %v460_v35 }
 0x162   : > { %v635_v30 = vadd.f32 %v606_v61, %v552_v26  ;;  %v636_v31 = vadd.f32 %v625_v62, %v553_v27 }
 0x163   : > { %v608_v1 = vpop.f32.mrf.mxu0  ;;  %v627_v2 = vpop.f32.mrf.mxu1 }
 0x167   : > { %v525_v3 = vpop.f32.mrf.mxu2  ;;  %v544_v4 = vpop.f32.mrf.mxu3 }
 0x168   : > { %v554_v38 = vadd.f32 %v525_v3, %v461_v42  ;;  %v555_v39 = vadd.f32 %v544_v4, %v462_v43 }
 0x16a   : > { %v637_v46 = vadd.f32 %v608_v1, %v554_v38  ;;  %v638_v34 = vadd.f32 %v627_v2, %v555_v39 }
 0x16b   : > { %v611_v5 = vpop.f32.mrf.mxu0  ;;  %v630_v52 = vpop.f32.mrf.mxu1 }
 0x16f   : > { %v528_v6 = vpop.f32.mrf.mxu2  ;;  %v547_v7 = vpop.f32.mrf.mxu3 }
 0x170   : > { %v556_v56 = vadd.f32 %v528_v6, %v1519_v50  ;;  %v557_v57 = vadd.f32 %v547_v7, %v1521_v51  ;;  %v1027_v7 = vpop.permute.xlu1 %1026 }
 0x172   : > { %v639_v50 = vadd.f32 %v611_v5, %v556_v56  ;;  %v640_v4 = vadd.f32 %v630_v52, %v557_v57 }
 0x173   : > { %v1527_v8 = vpop.f32.mrf.mxu0  ;;  %v1529_v9 = vpop.f32.mrf.mxu1 }
 0x177   : > { %v1531_v10 = vpop.f32.mrf.mxu2  ;;  %v1533_v11 = vpop.f32.mrf.mxu3 }
 0x17b   : > { %v792_v12 = vpop.f32.mrf.mxu0  ;;  %v811_v13 = vpop.f32.mrf.mxu1 }
 0x17f   : > { %v699_v14 = vpop.f32.mrf.mxu2  ;;  %v718_v15 = vpop.f32.mrf.mxu3 }
 0x180   : > { %v728_v32 = vadd.f32 %v699_v14, %v635_v30  ;;  %v729_v33 = vadd.f32 %v718_v15, %v636_v31 }
 0x182   : > { %v821_v40 = vadd.f32 %v792_v12, %v728_v32  ;;  %v822_v41 = vadd.f32 %v811_v13, %v729_v33 }
 0x183   : > { %v794_v16 = vpop.f32.mrf.mxu0  ;;  %v813_v17 = vpop.f32.mrf.mxu1 }
 0x187   : > { %v701_v18 = vpop.f32.mrf.mxu2  ;;  %v720_v21 = vpop.f32.mrf.mxu3 }
 0x188   : > { %v730_v49 = vadd.f32 %v701_v18, %v637_v46  ;;  %v731_v53 = vadd.f32 %v720_v21, %v638_v34 }
 0x18a   : > { %v823_v62 = vadd.f32 %v794_v16, %v730_v49  ;;  %v824_v63 = vadd.f32 %v813_v17, %v731_v53  ;;  %v558_v16 = vadd.f32 %v1531_v10, %v1523_v59  ;;  %v559_v17 = vadd.f32 %v1533_v11, %v1525_v60  ;;  %v1032_v60 = vpop.permute.xlu2 %1031 }
 0x18b   : > { %v797_v22 = vpop.f32.mrf.mxu0  ;;  %v816_v23 = vpop.f32.mrf.mxu1 }
 0x18c   : > { %v641_v32 = vadd.f32 %v1527_v8, %v558_v16  ;;  %v642_v33 = vadd.f32 %v1529_v9, %v559_v17 }
 0x18f   : > { %v704_v24 = vpop.f32.mrf.mxu2  ;;  %v723_v19 = vpop.f32.mrf.mxu3 }
 0x190   : > { %v732_v12 = vadd.f32 %v704_v24, %v639_v50  ;;  %v733_v13 = vadd.f32 %v723_v19, %v640_v4 }
 0x192   : > { %v825_v52 = vadd.f32 %v797_v22, %v732_v12  ;;  %v826_v21 = vadd.f32 %v816_v23, %v733_v13 }
 0x193   : > { %v1535_v20 = vpop.f32.mrf.mxu0  ;;  %v1537_v25 = vpop.f32.mrf.mxu1 }
 0x197   : > { %v1539_v28 = vpop.f32.mrf.mxu2  ;;  %v1541_v29 = vpop.f32.mrf.mxu3 }
 0x198   : > { %v734_v11 = vadd.f32 %v1539_v28, %v641_v32  ;;  %v735_v22 = vadd.f32 %v1541_v29, %v642_v33 }
 0x19a   : > { %v827_v39 = vadd.f32 %v1535_v20, %v734_v11  ;;  %v828_v8 = vadd.f32 %v1537_v25, %v735_v22 }
 0x19b   : > { %v978_v36 = vpop.f32.mrf.mxu0  ;;  %v997_v37 = vpop.f32.mrf.mxu1 }
 0x19f   : > { %v885_v44 = vpop.f32.mrf.mxu2  ;;  %v904_v45 = vpop.f32.mrf.mxu3 }
 0x1a0   : > { %v914_v35 = vadd.f32 %v885_v44, %v821_v40  ;;  %v915_v47 = vadd.f32 %v904_v45, %v822_v41 }
 0x1a2   : > { %v1007_v54 = vadd.f32 %v978_v36, %v914_v35  ;;  %v1008_v55 = vadd.f32 %v997_v37, %v915_v47  ;;  %v1037_v47 = vpop.permute.xlu1 %1036 }
 0x1a3   : > { %v980_v58 = vpop.f32.mrf.mxu0  ;;  %v999_v61 = vpop.f32.mrf.mxu1 }
 0x1a4   : > { %v1039_v42 = vadd.f32 %v1022_v48, %v1007_v54  ;;  %v1040_v43 = vadd.f32 %v1022_v48, %v1008_v55 }
 0x1a6   : > { %v1047_v0 = vmax.f32 %v1039_v42, 0.0  ;;  %v1048_v1 = vmax.f32 %v1040_v43, 0.0 }
 0x1a7   : > { %v887_v2 = vpop.f32.mrf.mxu2  ;;  %v906_v3 = vpop.f32.mrf.mxu3 }
 0x1a8   : > { %1055 = vst [vmem:[%s1549_s8] sm:$0xff] %v1047_v0  ;;  %v916_v51 = vadd.f32 %v887_v2, %v823_v62  ;;  %v917_v6 = vadd.f32 %v906_v3, %v824_v63 }
 0x1a9   : > { %1056 = vst [vmem:[%s1549_s8 + $0x8] sm:$0xff] %v1048_v1 }
 0x1aa   : > { %v1009_v14 = vadd.f32 %v980_v58, %v916_v51  ;;  %v1010_v15 = vadd.f32 %v999_v61, %v917_v6 }
 0x1ab   : > { %v983_v30 = vpop.f32.mrf.mxu0  ;;  %v1002_v31 = vpop.f32.mrf.mxu1 }
 0x1ac   : > { %v1041_v18 = vadd.f32 %v1027_v7, %v1009_v14  ;;  %v1042_v5 = vadd.f32 %v1027_v7, %v1010_v15 }
 0x1ae   : > { %v1049_v26 = vmax.f32 %v1041_v18, 0.0  ;;  %v1050_v27 = vmax.f32 %v1042_v5, 0.0 }
 0x1af   : > { %v890_v24 = vpop.f32.mrf.mxu2  ;;  %v909_v19 = vpop.f32.mrf.mxu3 }
 0x1b0   : > { %1057 = vst [vmem:[%s1549_s8 + $0x10] sm:$0xff] %v1049_v26  ;;  %v918_v59 = vadd.f32 %v890_v24, %v825_v52  ;;  %v919_v10 = vadd.f32 %v909_v19, %v826_v21 }
 0x1b1   : > { %1058 = vst [vmem:[%s1549_s8 + $0x18] sm:$0xff] %v1050_v27 }
 0x1b2   : > { %v1011_v23 = vadd.f32 %v983_v30, %v918_v59  ;;  %v1012_v36 = vadd.f32 %v1002_v31, %v919_v10 }
 0x1b3   : > { %v985_v28 = vpop.f32.mrf.mxu0  ;;  %v1004_v29 = vpop.f32.mrf.mxu1 }
 0x1b4   : > { %v1043_v37 = vadd.f32 %v1032_v60, %v1011_v23  ;;  %v1044_v38 = vadd.f32 %v1032_v60, %v1012_v36 }
 0x1b6   : > { %v1051_v9 = vmax.f32 %v1043_v37, 0.0  ;;  %v1052_v40 = vmax.f32 %v1044_v38, 0.0 }
 0x1b7   : > { %v892_v41 = vpop.f32.mrf.mxu2  ;;  %v911_v44 = vpop.f32.mrf.mxu3 }
 0x1b8   : > { %1059 = vst [vmem:[%s1549_s8 + $0x20] sm:$0xff] %v1051_v9  ;;  %v920_v45 = vadd.f32 %v892_v41, %v827_v39  ;;  %v921_v46 = vadd.f32 %v911_v44, %v828_v8 }
 0x1b9   : > { %1060 = vst [vmem:[%s1549_s8 + $0x28] sm:$0xff] %v1052_v40 }
 0x1ba   : > { %v1013_v34 = vadd.f32 %v985_v28, %v920_v45  ;;  %v1014_v35 = vadd.f32 %v1004_v29, %v921_v46 }
 0x1bc   : > { %v1045_v48 = vadd.f32 %v1037_v47, %v1013_v34  ;;  %v1046_v49 = vadd.f32 %v1037_v47, %v1014_v35 }
 0x1be   : > { %v1053_v20 = vmax.f32 %v1045_v48, 0.0  ;;  %v1054_v53 = vmax.f32 %v1046_v49, 0.0 }
 0x1c0   : > { %1061 = vst [vmem:[%s1549_s8 + $0x30] sm:$0xff] %v1053_v20 }
 0x1c1   : > { %1062 = vst [vmem:[%s1549_s8 + $0x38] sm:$0xff] %v1054_v53 }
 0x1c2 PF: > { %s14_s15 = sadd.s32 1, %s1236_s15  }
 0x1c3   : > { %p11_p4 = scmp.ge.s32.totalorder %s14_s15, 4  }
 0x1c5   :  { %13 = sbr.rel (!%p11_p4) target bundleno = 1 (0x1), region = 82 }

// kernel: _forward_core.6
= control target key start
LH: loop header
LB: loop body
LE: loop exit
PB: predicated region body
PF: predicated region fallthrough
CT: control target
= control target key end

     0   :  { %s2565_s21 = smov 0   ;;  %s3856_s0 = inlined_call_operand.vmem [shape: f32[2,32,256], index: 0, kind: input, shape index: {}]   ;;  %s3857_s1 = inlined_call_operand.vmem [shape: f32[2,32,256], index: 1, kind: input, shape index: {}]   ;;  %s3858_s2 = inlined_call_operand.vmem [shape: f32[9,32,32], index: 2, kind: input, shape index: {}]   ;;  %s3859_s3 = inlined_call_operand.vmem [shape: f32[9,32,32], index: 3, kind: input, shape index: {}]   ;;  %s3860_s4 = inlined_call_operand.vmem [shape: f32[9,1,256], index: 4, kind: input, shape index: {}]   ;;  %s3861_s5 = inlined_call_operand.vmem [shape: f32[32,1], index: 5, kind: input, shape index: {}]   ;;  %s3862_s6 = inlined_call_operand.vmem [shape: f32[2,32,256], index: 6, kind: output, shape index: {}]  }
   0x1 LB: > { %s2327_s22 = sadd.s32 4294967295, %s2519_s21   ;;  %p2331_p0 = scmp.ge.s32.totalorder %s2519_s21, 1  ;;  %s2519_s21 = sphi %s2565_s21, %s16_s21  }
   0x2   : > { %p222_p1 = scmp.lt.s32.totalorder %s2519_s21, 3 }
   0x4   : > { %p223_p2 = pnand %p2331_p0, %p222_p1 }
   0x5   : > { %p257_p3 = scmp.lt.s32.totalorder (!%p223_p2), %s2327_s22, 1  ;;  %s2521_s27 = smov (!%p223_p2), 17  }
   0x6   : > { %226 = sbr.rel (%p223_p2) target bundleno = 636 (0x27c), region = 44  ;;  %s2522_s28 = smov (!%p223_p2), 16  }
   0x7   : > { %s2523_s29 = smov (!%p223_p2), 1   ;;  %s2524_s30 = smov (!%p223_p2), 15  }
   0x8   : > { %s2525_s7 = smov (!%p223_p2), 127   ;;  %s2526_s8 = smov (!%p223_p2), 112  }
   0x9   : > { %s2527_s9 = smov (!%p223_p2), 113   ;;  %s2528_s16 = smov (!%p223_p2), 111  }
   0xb   : > { %s3864_s22 = smov (!%p257_p3, %s2327_s22), 1  ;;  %v326_v14 = vld [vmem:[%s3860_s4] sm:$0x3]  ;;  %vm309_vm0 = vcmask 138240   ;;  %v341_v42 = vld [vmem:[%s3858_s2 + $0x8] sm:$0xff]  ;;  %vm370_vm1 = vcmask 130048  }
   0xc   : > { %s2573_s23 = sshll.u32 %s3864_s22, 6  ;;  %v2694_v15 = vperm.slane %v326_v14, 0  ;;  %v2696_v16 = vperm.slane %v326_v14, 1  ;;  %v340_v41 = vld [vmem:[%s3858_s2] sm:$0xff]  ;;  %vm413_vm2 = vcmask 261120   ;;  %vm637_vm3 = vcmask 7168  }
   0xd   : > { %s261_s26 = scalar_lea.vmem %s3856_s0, %s2573_s23  ;;  %v2338_v43 = vld [vmem:[%s3860_s4 + $0x2] sm:$0x3]  ;;  %v344_v46 = vpack.c.bf16 %v341_v42, %v340_v41  ;;  %s2763_s20 = scalar_lea.vmem %s3857_s1, %s2573_s23  ;;  %vm522_vm4 = vcmask 121856   ;;  %vm826_vm5 = vcmask 1039360   ;;  %vm1056_vm6 = vcmask 916480  }
   0xe   : > { %v2579_v0 = vld [vmem:[%s261_s26 + $0x28] sm:$0xff]  ;;  %v2581_v1 = vld [vmem:[%s261_s26 + $0x20] sm:$0xff]  ;;  %v2591_v3 = vld [vmem:[%s261_s26 + $0x38] sm:$0xff]  ;;  %v2735_v47 = vperm.slane %v2338_v43, 0  ;;  %v2737_v48 = vperm.slane %v2338_v43, 1  ;;  %vm941_vm7 = vcmask 924672  }
   0xf   : > { %289 = vrot.lane.b32.xlu0 %v2579_v0, %s2521_s27  ;;  %305 = vrot.lane.b32.xlu1 %v2581_v1, %s2521_s27  ;;  %v2587_v2 = vld [vmem:[%s261_s26 + $0x8] sm:$0xff]  ;;  %v2593_v4 = vld [vmem:[%s261_s26 + $0x30] sm:$0xff]  ;;  %vm1171_vm8 = vcmask 908288  }
  0x10   : > { %285 = vrot.lane.b32.xlu2 %v2587_v2, %s2521_s27  ;;  %v2595_v5 = vld [vmem:[%s261_s26 + $0x18] sm:$0xff]  ;;  %v2603_v6 = vld [vmem:[%s261_s26 + $0x10] sm:$0xff]  ;;  %v2605_v7 = vld [vmem:[%s261_s26] sm:$0xff] }
  0x11   : > { %v2766_v62 = vld [vmem:[%s2763_s20 + $0x28] sm:$0xff]  ;;  %v2789_v14 = vld [vmem:[%s2763_s20 + $0x30] sm:$0xff] }
  0x17   : > { %291 = vrot.lane.b32.xlu0 %v2591_v3, %s2521_s27  ;;  %307 = vrot.lane.b32.xlu1 %v2593_v4, %s2521_s27 }
  0x18   : > { %287 = vrot.lane.b32.xlu2 %v2595_v5, %s2521_s27 }
  0x1f   : > { %303 = vrot.lane.b32.xlu1 %v2603_v6, %s2521_s27  ;;  %301 = vrot.lane.b32.xlu0 %v2605_v7, %s2521_s27 }
  0x20   : > { %354 = vrot.lane.b32.xlu2 %v2579_v0, %s2522_s28 }
  0x27   : > { %366 = vrot.lane.b32.xlu1 %v2581_v1, %s2522_s28  ;;  %356 = vrot.lane.b32.xlu0 %v2591_v3, %s2522_s28 }
  0x28   : > { %368 = vrot.lane.b32.xlu2 %v2593_v4, %s2522_s28 }
  0x2f   : > { %352 = vrot.lane.b32.xlu1 %v2595_v5, %s2522_s28  ;;  %350 = vrot.lane.b32.xlu0 %v2587_v2, %s2522_s28 }
  0x30   : > { %362 = vrot.lane.b32.xlu2 %v2605_v7, %s2522_s28 }
  0x37   : > { %621 = vrot.lane.b32.xlu1 %v2579_v0, %s2523_s29  ;;  %364 = vrot.lane.b32.xlu0 %v2603_v6, %s2522_s28 }
  0x38   : > { %623 = vrot.lane.b32.xlu2 %v2591_v3, %s2523_s29 }
  0x3f   : > { %635 = vrot.lane.b32.xlu1 %v2593_v4, %s2523_s29  ;;  %633 = vrot.lane.b32.xlu0 %v2581_v1, %s2523_s29 }
  0x40   : > { %506 = vrot.lane.b32.xlu2 %v2579_v0, %s2524_s30 }
  0x47   : > { %518 = vrot.lane.b32.xlu1 %v2581_v1, %s2524_s30  ;;  %508 = vrot.lane.b32.xlu0 %v2591_v3, %s2524_s30 }
  0x48   : > { %520 = vrot.lane.b32.xlu2 %v2593_v4, %s2524_s30 }
  0x4f   : > { %619 = vrot.lane.b32.xlu1 %v2595_v5, %s2523_s29  ;;  %617 = vrot.lane.b32.xlu0 %v2587_v2, %s2523_s29 }
  0x50   : > { %629 = vrot.lane.b32.xlu2 %v2605_v7, %s2523_s29 }
  0x57   : > { %502 = vrot.lane.b32.xlu1 %v2587_v2, %s2524_s30  ;;  %631 = vrot.lane.b32.xlu0 %v2603_v6, %s2523_s29 }
  0x58   : > { %504 = vrot.lane.b32.xlu2 %v2595_v5, %s2524_s30 }
  0x5f   : > { %516 = vrot.lane.b32.xlu1 %v2603_v6, %s2524_s30  ;;  %514 = vrot.lane.b32.xlu0 %v2605_v7, %s2524_s30 }
  0x60   : > { %818 = vrot.lane.b32.xlu2 %v2581_v1, %s2525_s7 }
  0x67   : > { %822 = vrot.lane.b32.xlu1 %v2593_v4, %s2525_s7  ;;  %820 = vrot.lane.b32.xlu0 %v2579_v0, %s2525_s7 }
  0x68   : > { %824 = vrot.lane.b32.xlu2 %v2591_v3, %s2525_s7 }
  0x6a   : > { %v286_v8 = vpop.permute.xlu2 %285 }
  0x6f   : > { %812 = vrot.lane.b32.xlu1 %v2587_v2, %s2525_s7  ;;  %810 = vrot.lane.b32.xlu0 %v2605_v7, %s2525_s7 }
  0x70   : > { %814 = vrot.lane.b32.xlu2 %v2603_v6, %s2525_s7 }
  0x72   : > { %v288_v9 = vpop.permute.xlu2 %287 }
  0x77   : > { %1048 = vrot.lane.b32.xlu1 %v2581_v1, %s2526_s8  ;;  %816 = vrot.lane.b32.xlu0 %v2595_v5, %s2525_s7 }
  0x78   : > { %1050 = vrot.lane.b32.xlu2 %v2579_v0, %s2526_s8 }
  0x7a   : > { %v2679_v10 = vpop.permute.xlu2 %354 }
  0x7f   : > { %1054 = vrot.lane.b32.xlu1 %v2591_v3, %s2526_s8  ;;  %1052 = vrot.lane.b32.xlu0 %v2593_v4, %s2526_s8 }
  0x80   : > { %933 = vrot.lane.b32.xlu2 %v2581_v1, %s2527_s9 }
  0x81   : > { %v290_v11 = vpop.permute.xlu0 %289  ;;  %v306_v12 = vpop.permute.xlu1 %305 }
  0x82   : > { %v369_v13 = vpop.permute.xlu2 %368  ;;  %v312_v17 = vsel %vm309_vm0, %v306_v12, %v290_v11  ;;  %v324_v18 = vsel %vm309_vm0, %v290_v11, %v306_v12  ;;  %v343_v11 = vld [vmem:[%s3858_s2 + $0x18] sm:$0xff]  ;;  %v2783_v12 = vld [vmem:[%s2763_s20 + $0x20] sm:$0xff] }
  0x83   : > { %v336_v23 = vmul.f32 %v2694_v15, %v324_v18  ;;  %v337_v25 = vmul.f32 %v2696_v16, %v312_v17 }
  0x87   : > { %937 = vrot.lane.b32.xlu1 %v2593_v4, %s2527_s9  ;;  %935 = vrot.lane.b32.xlu0 %v2579_v0, %s2527_s9 }
  0x88   : > { %939 = vrot.lane.b32.xlu2 %v2591_v3, %s2527_s9 }
  0x89   : > { %v292_v19 = vpop.permute.xlu0 %291  ;;  %v308_v20 = vpop.permute.xlu1 %307 }
  0x8a   : > { %v313_v21 = vsel %vm309_vm0, %v308_v20, %v292_v19  ;;  %v325_v22 = vsel %vm309_vm0, %v292_v19, %v308_v20  ;;  %v2708_v27 = vpop.permute.xlu2 %362 }
  0x8b   : > { %v338_v24 = vmul.f32 %v2694_v15, %v325_v22  ;;  %v339_v26 = vmul.f32 %v2696_v16, %v313_v21 }
  0x8d   : > { %v348_v28 = vpack.c.bf16 %v338_v24, %v336_v23  ;;  %v349_v29 = vpack.c.bf16 %v339_v26, %v337_v25 }
  0x8f   : > { %470 = vmatpush.bf16.msra.mxu2 %v348_v28  ;;  %489 = vmatpush.bf16.msra.mxu3 %v349_v29  ;;  %v2339_v28 = vld [vmem:[%s3858_s2 + $0x20] sm:$0xff]  ;;  %v2340_v29 = vld [vmem:[%s3858_s2 + $0x28] sm:$0xff] }
  0x90   : > { %1042 = vrot.lane.b32.xlu1 %v2587_v2, %s2526_s8  ;;  %1040 = vrot.lane.b32.xlu0 %v2605_v7, %s2526_s8 }
  0x91   : > { %v304_v30 = vpop.permute.xlu1 %303  ;;  %v302_v31 = vpop.permute.xlu0 %301  ;;  %1044 = vrot.lane.b32.xlu2 %v2603_v6, %s2526_s8 }
  0x92   : > { %v311_v32 = vsel %vm309_vm0, %v304_v30, %v288_v9  ;;  %v323_v33 = vsel %vm309_vm0, %v288_v9, %v304_v30  ;;  %v310_v34 = vsel %vm309_vm0, %v302_v31, %v286_v8  ;;  %v322_v35 = vsel %vm309_vm0, %v286_v8, %v302_v31  ;;  %v2724_v40 = vpop.permute.xlu2 %623  ;;  %v2360_v31 = vld [vmem:[%s3860_s4 + $0x6] sm:$0x3] }
  0x93   : > { %v334_v36 = vmul.f32 %v2694_v15, %v323_v33  ;;  %v335_v37 = vmul.f32 %v2696_v16, %v311_v32  ;;  %v332_v38 = vmul.f32 %v2694_v15, %v322_v35  ;;  %v333_v39 = vmul.f32 %v2696_v16, %v310_v34 }
  0x94   : > { %v407_v34 = vpack.c.bf16 %v2340_v29, %v2339_v28  ;;  %v2820_v35 = vperm.slane %v2360_v31, 0 }
  0x95   : > { %v346_v44 = vpack.c.bf16 %v334_v36, %v332_v38  ;;  %v347_v45 = vpack.c.bf16 %v335_v37, %v333_v39  ;;  %v2822_v36 = vperm.slane %v2360_v31, 1 }
  0x97   : > { %471 = vmatpush.bf16.msra.mxu2 %v346_v44  ;;  %490 = vmatpush.bf16.msra.mxu3 %v347_v45 }
  0x98   : > { %925 = vrot.lane.b32.xlu1 %v2605_v7, %s2527_s9  ;;  %1046 = vrot.lane.b32.xlu0 %v2595_v5, %s2526_s8 }
  0x99   : > { %v367_v49 = vpop.permute.xlu1 %366  ;;  %v357_v50 = vpop.permute.xlu0 %356  ;;  %927 = vrot.lane.b32.xlu2 %v2587_v2, %s2527_s9 }
  0x9a   : > { %v373_v51 = vsel %vm370_vm1, %v367_v49, %v2679_v10  ;;  %v385_v52 = vsel %vm370_vm1, %v2679_v10, %v367_v49  ;;  %v374_v53 = vsel %vm370_vm1, %v369_v13, %v357_v50  ;;  %v386_v54 = vsel %vm370_vm1, %v357_v50, %v369_v13  ;;  %2347 = vmatmul.msk.bf16.vlgmr.msra.gmra.mxu2 %vm413_vm2, %v344_v46  ;;  %v2756_v59 = vpop.permute.xlu2 %506  ;;  %v342_v10 = vld [vmem:[%s3858_s2 + $0x10] sm:$0xff]  ;;  %v2786_v13 = vld [vmem:[%s2763_s20 + $0x38] sm:$0xff] }
  0x9b   : > { %v398_v55 = vmul.f32 %v2735_v47, %v385_v52  ;;  %v400_v56 = vmul.f32 %v2735_v47, %v386_v54  ;;  %v399_v57 = vmul.f32 %v2737_v48, %v373_v51  ;;  %v401_v58 = vmul.f32 %v2737_v48, %v374_v53  ;;  %2349 = vmatmul.msk.bf16.vlgmr.msra.gmra.mxu3 %vm413_vm2, %v344_v46  ;;  %v2848_v51 = vld [vmem:[%s2763_s20 + $0x8] sm:$0xff]  ;;  %v2851_v54 = vld [vmem:[%s2763_s20 + $0x18] sm:$0xff] }
  0x9c   : > { %v345_v17 = vpack.c.bf16 %v343_v11, %v342_v10 }
  0x9d   : > { %v411_v60 = vpack.c.bf16 %v400_v56, %v398_v55  ;;  %v412_v61 = vpack.c.bf16 %v401_v58, %v399_v57 }
  0x9f   : > { %426 = vmatpush.bf16.msra.mxu0 %v411_v60  ;;  %445 = vmatpush.bf16.msra.mxu1 %v412_v61 }
  0xa0   : > { %931 = vrot.lane.b32.xlu1 %v2595_v5, %s2527_s9  ;;  %929 = vrot.lane.b32.xlu0 %v2603_v6, %s2527_s9 }
  0xa1   : > { %v353_v63 = vpop.permute.xlu1 %352  ;;  %v351_v8 = vpop.permute.xlu0 %350  ;;  %1286 = vrot.lane.b32.xlu2 %v2766_v62, %s2521_s27 }
  0xa2   : > { %v2774_v9 = vpop.permute.xlu2 %520  ;;  %v371_v18 = vsel %vm370_vm1, %v2708_v27, %v351_v8  ;;  %v383_v19 = vsel %vm370_vm1, %v351_v8, %v2708_v27 }
  0xa3   : > { %v394_v24 = vmul.f32 %v2735_v47, %v383_v19  ;;  %v395_v25 = vmul.f32 %v2737_v48, %v371_v18  ;;  %v2341_v19 = vld [vmem:[%s3858_s2 + $0x30] sm:$0xff] }
  0xa8   : > { %1302 = vrot.lane.b32.xlu1 %v2783_v12, %s2521_s27  ;;  %1288 = vrot.lane.b32.xlu0 %v2786_v13, %s2521_s27 }
  0xa9   : > { %v622_v20 = vpop.permute.xlu1 %621  ;;  %v365_v21 = vpop.permute.xlu0 %364  ;;  %1304 = vrot.lane.b32.xlu2 %v2789_v14, %s2521_s27 }
  0xaa   : > { %v372_v22 = vsel %vm370_vm1, %v365_v21, %v353_v63  ;;  %v384_v23 = vsel %vm370_vm1, %v353_v63, %v365_v21  ;;  %2348 = vmatmul.msk.bf16.gmra.mxu2 %vm413_vm2, %v345_v17  ;;  %v2814_v30 = vpop.permute.xlu2 %629  ;;  %v2884_v21 = vld [vmem:[%s2763_s20 + $0x10] sm:$0xff] }
  0xab   : > { %v396_v26 = vmul.f32 %v2735_v47, %v384_v23  ;;  %v397_v27 = vmul.f32 %v2737_v48, %v372_v22  ;;  %2350 = vmatmul.msk.bf16.gmra.mxu3 %vm413_vm2, %v345_v17 }
  0xad   : > { %v409_v32 = vpack.c.bf16 %v396_v26, %v394_v24  ;;  %v410_v33 = vpack.c.bf16 %v397_v27, %v395_v25 }
  0xaf   : > { %427 = vmatpush.bf16.msra.mxu0 %v409_v32  ;;  %446 = vmatpush.bf16.msra.mxu1 %v410_v33 }
  0xb0   : > { %1165 = vrot.lane.b32.xlu1 %v2579_v0, %s2528_s16  ;;  %1163 = vrot.lane.b32.xlu0 %v2581_v1, %s2528_s16 }
  0xb1   : > { %v636_v37 = vpop.permute.xlu1 %635  ;;  %v634_v38 = vpop.permute.xlu0 %633  ;;  %1167 = vrot.lane.b32.xlu2 %v2593_v4, %s2528_s16 }
  0xb2   : > { %v641_v39 = vsel %vm637_vm3, %v636_v37, %v2724_v40  ;;  %v653_v41 = vsel %vm637_vm3, %v2724_v40, %v636_v37  ;;  %v640_v42 = vsel %vm637_vm3, %v634_v38, %v622_v20  ;;  %v652_v43 = vsel %vm637_vm3, %v622_v20, %v634_v38  ;;  %2343 = vmatmul.msk.bf16.vlgmr.msra.gmra.mxu0 %vm413_vm2, %v407_v34  ;;  %v2842_v50 = vpop.permute.xlu2 %504  ;;  %v2351_v40 = vld [vmem:[%s3860_s4 + $0x4] sm:$0x3] }
  0xb3   : > { %v667_v44 = vmul.f32 %v2820_v35, %v653_v41  ;;  %v668_v45 = vmul.f32 %v2822_v36, %v641_v39  ;;  %v665_v46 = vmul.f32 %v2820_v35, %v652_v43  ;;  %v666_v49 = vmul.f32 %v2822_v36, %v640_v42  ;;  %2345 = vmatmul.msk.bf16.vlgmr.msra.gmra.mxu1 %vm413_vm2, %v407_v34  ;;  %v2361_v41 = vld [vmem:[%s3858_s2 + $0x60] sm:$0xff]  ;;  %v2362_v42 = vld [vmem:[%s3858_s2 + $0x68] sm:$0xff] }
  0xb4   : > { %v2853_v55 = vperm.slane %v2351_v40, 0  ;;  %v2855_v56 = vperm.slane %v2351_v40, 1 }
  0xb5   : > { %v678_v52 = vpack.c.bf16 %v667_v44, %v665_v46  ;;  %v679_v53 = vpack.c.bf16 %v668_v45, %v666_v49  ;;  %v2369_v46 = vld [vmem:[%s3860_s4 + $0x8] sm:$0x3]  ;;  %v674_v49 = vpack.c.bf16 %v2362_v42, %v2361_v41 }
  0xb6   : > { %v2926_v40 = vperm.slane %v2369_v46, 0 }
  0xb7   : > { %692 = vmatpush.bf16.msrb.mxu2 %v678_v52  ;;  %711 = vmatpush.bf16.msrb.mxu3 %v679_v53 }
  0xb8   : > { %1282 = vrot.lane.b32.xlu1 %v2848_v51, %s2521_s27  ;;  %1169 = vrot.lane.b32.xlu0 %v2591_v3, %s2528_s16  ;;  %v743_v52 = vmul.f32 %v2926_v40, %v2581_v1  ;;  %v745_v53 = vmul.f32 %v2926_v40, %v2593_v4 }
  0xb9   : > { %v519_v57 = vpop.permute.xlu1 %518  ;;  %v509_v58 = vpop.permute.xlu0 %508  ;;  %1284 = vrot.lane.b32.xlu2 %v2851_v54, %s2521_s27 }
  0xba   : > { %v525_v60 = vsel %vm522_vm4, %v519_v57, %v2756_v59  ;;  %v537_v61 = vsel %vm522_vm4, %v2756_v59, %v519_v57  ;;  %v526_v63 = vsel %vm522_vm4, %v2774_v9, %v509_v58  ;;  %v538_v8 = vsel %vm522_vm4, %v509_v58, %v2774_v9  ;;  %v2342_v59 = vld [vmem:[%s3858_s2 + $0x38] sm:$0xff]  ;;  %v2881_v20 = vpop.permute.xlu2 %818  ;;  %v2887_v9 = vld [vmem:[%s2763_s20] sm:$0xff] }
  0xbb   : > { %v550_v10 = vmul.f32 %v2853_v55, %v537_v61  ;;  %v551_v11 = vmul.f32 %v2855_v56, %v525_v60  ;;  %v552_v17 = vmul.f32 %v2853_v55, %v538_v8  ;;  %v553_v18 = vmul.f32 %v2855_v56, %v526_v63 }
  0xbc   : > { %v408_v24 = vpack.c.bf16 %v2342_v59, %v2341_v19  ;;  %v2936_v57 = vperm.slane %v2369_v46, 1  ;;  %v2378_v59 = vld [vmem:[%s3860_s4 + $0xa] sm:$0x3] }
  0xbd   : > { %v563_v22 = vpack.c.bf16 %v552_v17, %v550_v10  ;;  %v564_v23 = vpack.c.bf16 %v553_v18, %v551_v11  ;;  %v2353_v18 = vld [vmem:[%s3858_s2 + $0x48] sm:$0xff] }
  0xbf   : > { %577 = vmatpush.bf16.msrb.mxu0 %v563_v22  ;;  %596 = vmatpush.bf16.msrb.mxu1 %v564_v23  ;;  %v756_v22 = vpack.c.bf16 %v745_v53, %v743_v52  ;;  %v744_v23 = vmul.f32 %v2936_v57, %v2579_v0 }
  0xc0   : > { %1300 = vrot.lane.b32.xlu1 %v2884_v21, %s2521_s27  ;;  %1298 = vrot.lane.b32.xlu0 %v2887_v9, %s2521_s27 }
  0xc1   : > { %v620_v25 = vpop.permute.xlu1 %619  ;;  %v618_v26 = vpop.permute.xlu0 %617  ;;  %1155 = vrot.lane.b32.xlu2 %v2605_v7, %s2528_s16 }
  0xc2   : > { %2344 = vmatmul.msk.bf16.gmra.mxu0 %vm413_vm2, %v408_v24  ;;  %v2897_v27 = vpop.permute.xlu2 %824  ;;  %v638_v28 = vsel %vm637_vm3, %v2814_v30, %v618_v26  ;;  %v650_v29 = vsel %vm637_vm3, %v618_v26, %v2814_v30 }
  0xc3   : > { %2346 = vmatmul.msk.bf16.gmra.mxu1 %vm413_vm2, %v408_v24  ;;  %v661_v37 = vmul.f32 %v2820_v35, %v650_v29  ;;  %v662_v38 = vmul.f32 %v2822_v36, %v638_v28  ;;  %v746_v24 = vmul.f32 %v2936_v57, %v2591_v3  ;;  %v739_v28 = vmul.f32 %v2926_v40, %v2605_v7 }
  0xc4   : > { %v741_v29 = vmul.f32 %v2926_v40, %v2603_v6 }
  0xc5   : > { %v757_v0 = vpack.c.bf16 %v746_v24, %v744_v23 }
  0xc8   : > { %1159 = vrot.lane.b32.xlu1 %v2603_v6, %s2528_s16  ;;  %1157 = vrot.lane.b32.xlu0 %v2587_v2, %s2528_s16  ;;  %v754_v6 = vpack.c.bf16 %v741_v29, %v739_v28  ;;  %v2396_v28 = vld [vmem:[%s3860_s4 + $0xe] sm:$0x3] }
  0xc9   : > { %v503_v31 = vpop.permute.xlu1 %502  ;;  %v632_v32 = vpop.permute.xlu0 %631  ;;  %1161 = vrot.lane.b32.xlu2 %v2595_v5, %s2528_s16 }
  0xca   : > { %v639_v33 = vsel %vm637_vm3, %v632_v32, %v620_v25  ;;  %v651_v34 = vsel %vm637_vm3, %v620_v25, %v632_v32  ;;  %v2921_v43 = vpop.permute.xlu2 %814  ;;  %v2971_v32 = vperm.slane %v2378_v59, 0 }
  0xcb   : > { %v663_v30 = vmul.f32 %v2820_v35, %v651_v34  ;;  %v664_v39 = vmul.f32 %v2822_v36, %v639_v33  ;;  %v2973_v33 = vperm.slane %v2378_v59, 1  ;;  %v740_v34 = vmul.f32 %v2936_v57, %v2587_v2 }
  0xcd   : > { %v676_v44 = vpack.c.bf16 %v663_v30, %v661_v37  ;;  %v677_v45 = vpack.c.bf16 %v664_v39, %v662_v38  ;;  %v742_v37 = vmul.f32 %v2936_v57, %v2595_v5 }
  0xcf   : > { %693 = vmatpush.bf16.msrb.mxu2 %v676_v44  ;;  %712 = vmatpush.bf16.msrb.mxu3 %v677_v45  ;;  %v755_v52 = vpack.c.bf16 %v742_v37, %v740_v34 }
  0xd0   : > { %1505 = vrot.lane.b32.xlu1 %v2786_v13, %s2524_s30  ;;  %1503 = vrot.lane.b32.xlu0 %v2766_v62, %s2524_s30 }
  0xd1   : > { %v517_v58 = vpop.permute.xlu1 %516  ;;  %v515_v60 = vpop.permute.xlu0 %514  ;;  %1515 = vrot.lane.b32.xlu2 %v2783_v12, %s2524_s30 }
  0xd2   : > { %v524_v61 = vsel %vm522_vm4, %v517_v58, %v2842_v50  ;;  %v536_v63 = vsel %vm522_vm4, %v2842_v50, %v517_v58  ;;  %v523_v8 = vsel %vm522_vm4, %v515_v60, %v503_v31  ;;  %v535_v1 = vsel %vm522_vm4, %v503_v31, %v515_v60  ;;  %2365 = vmatmul.msk.bf16.vlgmr.msrb.gmra.mxu2 %vm413_vm2, %v674_v49  ;;  %v2352_v50 = vld [vmem:[%s3858_s2 + $0x40] sm:$0xff]  ;;  %v2958_v19 = vpop.permute.xlu2 %1050 }
  0xd3   : > { %v548_v4 = vmul.f32 %v2853_v55, %v536_v63  ;;  %v549_v10 = vmul.f32 %v2855_v56, %v524_v61  ;;  %v546_v11 = vmul.f32 %v2853_v55, %v535_v1  ;;  %v547_v17 = vmul.f32 %v2855_v56, %v523_v8  ;;  %2367 = vmatmul.msk.bf16.vlgmr.msrb.gmra.mxu3 %vm413_vm2, %v674_v49  ;;  %v2354_v61 = vld [vmem:[%s3858_s2 + $0x50] sm:$0xff]  ;;  %v2355_v63 = vld [vmem:[%s3858_s2 + $0x58] sm:$0xff] }
  0xd4   : > { %v559_v31 = vpack.c.bf16 %v2353_v18, %v2352_v50  ;;  %v560_v1 = vpack.c.bf16 %v2355_v63, %v2354_v61 }
  0xd5   : > { %v561_v25 = vpack.c.bf16 %v548_v4, %v546_v11  ;;  %v562_v26 = vpack.c.bf16 %v549_v10, %v547_v17 }
  0xd7   : > { %578 = vmatpush.bf16.msrb.mxu0 %v561_v25  ;;  %597 = vmatpush.bf16.msrb.mxu1 %v562_v26  ;;  %v2379_v25 = vld [vmem:[%s3858_s2 + $0xa0] sm:$0xff] }
  0xd8   : > { %1396 = vrot.lane.b32.xlu1 %v2766_v62, %s2522_s28  ;;  %1517 = vrot.lane.b32.xlu0 %v2789_v14, %s2524_s30 }
  0xd9   : > { %v823_v3 = vpop.permute.xlu1 %822  ;;  %v821_v7 = vpop.permute.xlu0 %820  ;;  %1398 = vrot.lane.b32.xlu2 %v2786_v13, %s2522_s28 }
  0xda   : > { %v830_v38 = vsel %vm826_vm5, %v823_v3, %v2897_v27  ;;  %v846_v30 = vsel %vm826_vm5, %v2897_v27, %v823_v3  ;;  %v829_v39 = vsel %vm826_vm5, %v2881_v20, %v821_v7  ;;  %v845_v41 = vsel %vm826_vm5, %v821_v7, %v2881_v20  ;;  %2356 = vmatmul.msk.bf16.vlgmr.msrb.gmra.mxu0 %vm413_vm2, %v559_v31  ;;  %v2363_v27 = vld [vmem:[%s3858_s2 + $0x70] sm:$0xff]  ;;  %v2364_v20 = vld [vmem:[%s3858_s2 + $0x78] sm:$0xff]  ;;  %v3005_v45 = vpop.permute.xlu2 %933 }
  0xdb   : > { %770 = vmatpush.bf16.msra.mxu0 %v756_v22  ;;  %v860_v42 = vmul.f32 %v2971_v32, %v830_v38  ;;  %v861_v2 = vmul.f32 %v2973_v33, %v846_v30  ;;  %v858_v5 = vmul.f32 %v2971_v32, %v829_v39  ;;  %v859_v44 = vmul.f32 %v2973_v33, %v845_v41 }
  0xdc   : > { %2358 = vmatmul.msk.bf16.vlgmr.msrb.gmra.mxu1 %vm413_vm2, %v559_v31  ;;  %v675_v53 = vpack.c.bf16 %v2364_v20, %v2363_v27  ;;  %v3052_v3 = vperm.slane %v2396_v28, 0  ;;  %v3054_v7 = vperm.slane %v2396_v28, 1  ;;  %v2387_v20 = vld [vmem:[%s3860_s4 + $0xc] sm:$0x3]  ;;  %v2372_v28 = vld [vmem:[%s3858_s2 + $0x90] sm:$0xff] }
  0xdd   : > { %789 = vmatpush.bf16.msra.mxu1 %v757_v0  ;;  %v871_v46 = vpack.c.bf16 %v860_v42, %v858_v5  ;;  %v872_v49 = vpack.c.bf16 %v861_v2, %v859_v44  ;;  %v2370_v5 = vld [vmem:[%s3858_s2 + $0x80] sm:$0xff]  ;;  %v2371_v44 = vld [vmem:[%s3858_s2 + $0x88] sm:$0xff] }
  0xdf   : > { %771 = vmatpush.bf16.msra.mxu0 %v754_v6  ;;  %885 = vmatpush.bf16.msra.mxu2 %v871_v46 }
  0xe0   : > { %904 = vmatpush.bf16.msra.mxu3 %v872_v49  ;;  %1410 = vrot.lane.b32.xlu1 %v2789_v14, %s2522_s28 }
  0xe1   : > { %1408 = vrot.lane.b32.xlu0 %v2783_v12, %s2522_s28  ;;  %v813_v58 = vpop.permute.xlu1 %812  ;;  %v811_v60 = vpop.permute.xlu0 %810  ;;  %1499 = vrot.lane.b32.xlu2 %v2848_v51, %s2524_s30 }
  0xe2   : > { %790 = vmatpush.bf16.msra.mxu1 %v755_v52  ;;  %2366 = vmatmul.msk.bf16.gmra.mxu2 %vm413_vm2, %v675_v53  ;;  %v3021_v8 = vpop.permute.xlu2 %939  ;;  %v827_v4 = vsel %vm826_vm5, %v811_v60, %v813_v58  ;;  %v843_v10 = vsel %vm826_vm5, %v813_v58, %v811_v60  ;;  %v752_v52 = vpack.c.bf16 %v2371_v44, %v2370_v5  ;;  %v3087_v58 = vperm.slane %v2387_v20, 1  ;;  %v2397_v44 = vld [vmem:[%s3858_s2 + $0xe0] sm:$0xff] }
  0xe3   : > { %2368 = vmatmul.msk.bf16.gmra.mxu3 %vm413_vm2, %v675_v53  ;;  %v854_v59 = vmul.f32 %v2971_v32, %v827_v4  ;;  %v855_v22 = vmul.f32 %v2973_v33, %v843_v10  ;;  %v3085_v53 = vperm.slane %v2387_v20, 0 }
  0xe8   : > { %1511 = vrot.lane.b32.xlu1 %v2887_v9, %s2524_s30 }
  0xe9   : > { %1501 = vrot.lane.b32.xlu0 %v2851_v54, %s2524_s30  ;;  %v1049_v11 = vpop.permute.xlu1 %1048  ;;  %v817_v17 = vpop.permute.xlu0 %816  ;;  %1513 = vrot.lane.b32.xlu2 %v2884_v21, %s2524_s30 }
  0xea   : > { %v828_v50 = vsel %vm826_vm5, %v2921_v43, %v817_v17  ;;  %v844_v18 = vsel %vm826_vm5, %v817_v17, %v2921_v43  ;;  %2357 = vmatmul.msk.bf16.gmra.mxu0 %vm413_vm2, %v560_v1  ;;  %v2380_v43 = vld [vmem:[%s3858_s2 + $0xa8] sm:$0xff]  ;;  %v1059_v6 = vsel %vm1056_vm6, %v1049_v11, %v2958_v19  ;;  %v1075_v34 = vsel %vm1056_vm6, %v2958_v19, %v1049_v11 }
  0xeb   : > { %v856_v23 = vmul.f32 %v2971_v32, %v828_v50  ;;  %v857_v24 = vmul.f32 %v2973_v33, %v844_v18  ;;  %v3047_v26 = vpop.permute.xlu2 %1044  ;;  %v867_v0 = vpack.c.bf16 %v2380_v43, %v2379_v25  ;;  %v1088_v41 = vmul.f32 %v3052_v3, %v1059_v6 }
  0xec   : > { %2359 = vmatmul.msk.bf16.gmra.mxu1 %vm413_vm2, %v560_v1  ;;  %v1089_v19 = vmul.f32 %v3054_v7, %v1075_v34 }
  0xed   : > { %v869_v29 = vpack.c.bf16 %v856_v23, %v854_v59  ;;  %v870_v31 = vpack.c.bf16 %v857_v24, %v855_v22 }
  0xef   : > { %886 = vmatpush.bf16.msra.mxu2 %v869_v29  ;;  %905 = vmatpush.bf16.msra.mxu3 %v870_v31  ;;  %v2373_v29 = vld [vmem:[%s3858_s2 + $0x98] sm:$0xff] }
  0xf0   : > { %1394 = vrot.lane.b32.xlu1 %v2851_v54, %s2522_s28 }
  0xf1   : > { %1392 = vrot.lane.b32.xlu0 %v2848_v51, %s2522_s28  ;;  %v1055_v37 = vpop.permute.xlu1 %1054  ;;  %v1053_v38 = vpop.permute.xlu0 %1052  ;;  %1404 = vrot.lane.b32.xlu2 %v2887_v9, %s2522_s28 }
  0xf2   : > { %v1060_v30 = vsel %vm1056_vm6, %v1053_v38, %v1055_v37  ;;  %v1076_v39 = vsel %vm1056_vm6, %v1055_v37, %v1053_v38  ;;  %2383 = vmatmul.msk.bf16.vlgmr.msra.gmra.mxu2 %vm413_vm2, %v867_v0 }
  0xf3   : > { %v1090_v42 = vmul.f32 %v3052_v3, %v1060_v30  ;;  %v1091_v2 = vmul.f32 %v3054_v7, %v1076_v39  ;;  %2385 = vmatmul.msk.bf16.vlgmr.msra.gmra.mxu3 %vm413_vm2, %v867_v0  ;;  %v3080_v27 = vpop.permute.xlu2 %927  ;;  %v753_v0 = vpack.c.bf16 %v2373_v29, %v2372_v28 }
  0xf5   : > { %v1101_v46 = vpack.c.bf16 %v1090_v42, %v1088_v41  ;;  %v1102_v49 = vpack.c.bf16 %v1091_v2, %v1089_v19 }
  0xf7   : > { %1115 = vmatpush.bf16.msrb.mxu2 %v1101_v46  ;;  %1134 = vmatpush.bf16.msrb.mxu3 %v1102_v49 }
  0xf8   : > { %1610 = vrot.lane.b32.xlu1 %v2766_v62, %s2523_s29 }
  0xf9   : > { %1406 = vrot.lane.b32.xlu0 %v2884_v21, %s2522_s28  ;;  %v938_v60 = vpop.permute.xlu1 %937  ;;  %v936_v61 = vpop.permute.xlu0 %935  ;;  %1612 = vrot.lane.b32.xlu2 %v2786_v13, %s2523_s29 }
  0xfa   : > { %v945_v63 = vsel %vm941_vm7, %v938_v60, %v3021_v8  ;;  %v961_v1 = vsel %vm941_vm7, %v3021_v8, %v938_v60  ;;  %v944_v4 = vsel %vm941_vm7, %v3005_v45, %v936_v61  ;;  %v960_v10 = vsel %vm941_vm7, %v936_v61, %v3005_v45  ;;  %2374 = vmatmul.msk.bf16.vlgmr.msra.gmra.mxu0 %vm413_vm2, %v752_v52  ;;  %v2381_v8 = vld [vmem:[%s3858_s2 + $0xb0] sm:$0xff]  ;;  %v2382_v45 = vld [vmem:[%s3858_s2 + $0xb8] sm:$0xff] }
  0xfb   : > { %v975_v11 = vmul.f32 %v3085_v53, %v945_v63  ;;  %v976_v17 = vmul.f32 %v3087_v58, %v961_v1  ;;  %v973_v50 = vmul.f32 %v3085_v53, %v944_v4  ;;  %v974_v18 = vmul.f32 %v3087_v58, %v960_v10  ;;  %v3115_v59 = vpop.permute.xlu2 %1286 }
  0xfc   : > { %2376 = vmatmul.msk.bf16.vlgmr.msra.gmra.mxu1 %vm413_vm2, %v752_v52  ;;  %v868_v24 = vpack.c.bf16 %v2382_v45, %v2381_v8  ;;  %v2389_v8 = vld [vmem:[%s3858_s2 + $0xc8] sm:$0xff] }
  0xfd   : > { %v986_v22 = vpack.c.bf16 %v975_v11, %v973_v50  ;;  %v987_v23 = vpack.c.bf16 %v976_v17, %v974_v18  ;;  %v2388_v18 = vld [vmem:[%s3858_s2 + $0xc0] sm:$0xff] }
  0xff   : > { %1000 = vmatpush.bf16.msrb.mxu0 %v986_v22  ;;  %1019 = vmatpush.bf16.msrb.mxu1 %v987_v23  ;;  %v982_v23 = vpack.c.bf16 %v2389_v8, %v2388_v18 }
 0x100   : > { %1624 = vrot.lane.b32.xlu1 %v2789_v14, %s2523_s29 }
 0x101   : > { %1622 = vrot.lane.b32.xlu0 %v2783_v12, %s2523_s29  ;;  %1606 = vrot.lane.b32.xlu2 %v2848_v51, %s2523_s29 }
 0x102   : > { %v1043_v25 = vpop.permute.xlu1 %1042  ;;  %v1041_v43 = vpop.permute.xlu0 %1040  ;;  %2384 = vmatmul.msk.bf16.gmra.mxu2 %vm413_vm2, %v868_v24 }
 0x103   : > { %2386 = vmatmul.msk.bf16.gmra.mxu3 %vm413_vm2, %v868_v24  ;;  %v1305_v31 = vpop.permute.xlu2 %1304  ;;  %v1057_v6 = vsel %vm1056_vm6, %v1041_v43, %v1043_v25  ;;  %v1073_v34 = vsel %vm1056_vm6, %v1043_v25, %v1041_v43 }
 0x104   : > { %v1084_v19 = vmul.f32 %v3052_v3, %v1057_v6  ;;  %v1085_v42 = vmul.f32 %v3054_v7, %v1073_v34 }
 0x108   : > { %1618 = vrot.lane.b32.xlu1 %v2887_v9, %s2523_s29 }
 0x109   : > { %1608 = vrot.lane.b32.xlu0 %v2851_v54, %s2523_s29  ;;  %1620 = vrot.lane.b32.xlu2 %v2884_v21, %s2523_s29 }
 0x10a   : > { %v926_v37 = vpop.permute.xlu1 %925  ;;  %v1047_v38 = vpop.permute.xlu0 %1046  ;;  %2375 = vmatmul.msk.bf16.gmra.mxu0 %vm413_vm2, %v753_v0 }
 0x10b   : > { %v1058_v30 = vsel %vm1056_vm6, %v3047_v26, %v1047_v38  ;;  %v1074_v39 = vsel %vm1056_vm6, %v1047_v38, %v3047_v26  ;;  %v3145_v41 = vpop.permute.xlu2 %1167  ;;  %v2398_v26 = vld [vmem:[%s3858_s2 + $0xe8] sm:$0xff]  ;;  %v942_v49 = vsel %vm941_vm7, %v926_v37, %v3080_v27  ;;  %v958_v60 = vsel %vm941_vm7, %v3080_v27, %v926_v37 }
 0x10c   : > { %2377 = vmatmul.msk.bf16.gmra.mxu1 %vm413_vm2, %v753_v0  ;;  %v1086_v2 = vmul.f32 %v3052_v3, %v1058_v30  ;;  %v1087_v5 = vmul.f32 %v3054_v7, %v1074_v39  ;;  %v1097_v52 = vpack.c.bf16 %v2398_v26, %v2397_v44  ;;  %v969_v1 = vmul.f32 %v3085_v53, %v942_v49  ;;  %v2405_v26 = vld [vmem:[%s3860_s4 + $0x10] sm:$0x3] }
 0x10d   : > { %v970_v17 = vmul.f32 %v3087_v58, %v958_v60  ;;  %v3228_v49 = vperm.slane %v2405_v26, 0 }
 0x10e   : > { %v1099_v20 = vpack.c.bf16 %v1086_v2, %v1084_v19  ;;  %v1100_v46 = vpack.c.bf16 %v1087_v5, %v1085_v42 }
 0x110   : > { %1901 = vrot.lane.b32.xlu1 %v2766_v62, %s2527_s9  ;;  %1116 = vmatpush.bf16.msrb.mxu2 %v1099_v20  ;;  %v2390_v20 = vld [vmem:[%s3858_s2 + $0xd0] sm:$0xff] }
 0x111   : > { %1899 = vrot.lane.b32.xlu0 %v2783_v12, %s2527_s9  ;;  %1135 = vmatpush.bf16.msrb.mxu3 %v1100_v46  ;;  %v2391_v46 = vld [vmem:[%s3858_s2 + $0xd8] sm:$0xff] }
 0x112   : > { %v932_v61 = vpop.permute.xlu1 %931  ;;  %v930_v63 = vpop.permute.xlu0 %929  ;;  %1903 = vrot.lane.b32.xlu2 %v2789_v14, %s2527_s9  ;;  %v983_v60 = vpack.c.bf16 %v2391_v46, %v2390_v20 }
 0x113   : > { %v943_v4 = vsel %vm941_vm7, %v930_v63, %v932_v61  ;;  %v959_v10 = vsel %vm941_vm7, %v932_v61, %v930_v63  ;;  %v3170_v11 = vpop.permute.xlu2 %1284  ;;  %2401 = vmatmul.msk.bf16.vlgmr.msrb.gmra.mxu2 %vm413_vm2, %v1097_v52 }
 0x114   : > { %v971_v50 = vmul.f32 %v3085_v53, %v943_v4  ;;  %v972_v27 = vmul.f32 %v3087_v58, %v959_v10  ;;  %2403 = vmatmul.msk.bf16.vlgmr.msrb.gmra.mxu3 %vm413_vm2, %v1097_v52  ;;  %v3230_v52 = vperm.slane %v2405_v26, 1 }
 0x116   : > { %v984_v45 = vpack.c.bf16 %v971_v50, %v969_v1  ;;  %v985_v22 = vpack.c.bf16 %v972_v27, %v970_v17 }
 0x118   : > { %1792 = vrot.lane.b32.xlu1 %v2783_v12, %s2525_s7  ;;  %1001 = vmatpush.bf16.msrb.mxu0 %v984_v45 }
 0x119   : > { %1905 = vrot.lane.b32.xlu0 %v2786_v13, %s2527_s9  ;;  %1020 = vmatpush.bf16.msrb.mxu1 %v985_v22 }
 0x11a   : > { %v1303_v24 = vpop.permute.xlu1 %1302  ;;  %v1289_v25 = vpop.permute.xlu0 %1288  ;;  %1794 = vrot.lane.b32.xlu2 %v2766_v62, %s2525_s7 }
 0x11b   : > { %v1308_v43 = vsel %vm309_vm0, %v1303_v24, %v3115_v59  ;;  %v1320_v28 = vsel %vm309_vm0, %v3115_v59, %v1303_v24  ;;  %v1309_v29 = vsel %vm309_vm0, %v1305_v31, %v1289_v25  ;;  %v1321_v0 = vsel %vm309_vm0, %v1289_v25, %v1305_v31  ;;  %v3195_v6 = vpop.permute.xlu2 %1155  ;;  %2392 = vmatmul.msk.bf16.vlgmr.msrb.gmra.mxu0 %vm413_vm2, %v982_v23  ;;  %v2399_v59 = vld [vmem:[%s3858_s2 + $0xf0] sm:$0xff]  ;;  %v2400_v31 = vld [vmem:[%s3858_s2 + $0xf8] sm:$0xff] }
 0x11c   : > { %v1326_v34 = vmul.f32 %v1320_v28, %v2694_v15  ;;  %v1327_v37 = vmul.f32 %v1308_v43, %v2696_v16  ;;  %v1328_v38 = vmul.f32 %v1321_v0, %v2694_v15  ;;  %v1329_v30 = vmul.f32 %v1309_v29, %v2696_v16  ;;  %2394 = vmatmul.msk.bf16.vlgmr.msrb.gmra.mxu1 %vm413_vm2, %v982_v23 }
 0x11d   : > { %v1098_v42 = vpack.c.bf16 %v2400_v31, %v2399_v59  ;;  %v473_v50 = vpop.f32.mrf.mxu2 }
 0x11e   : > { %v1338_v39 = vpack.c.bf16 %v1328_v38, %v1326_v34  ;;  %v1339_v19 = vpack.c.bf16 %v1329_v30, %v1327_v37  ;;  %v492_v23 = vpop.f32.mrf.mxu3 }
 0x120   : > { %1798 = vrot.lane.b32.xlu1 %v2786_v13, %s2525_s7  ;;  %1352 = vmatpush.bf16.msra.mxu2 %v1338_v39 }
 0x121   : > { %1796 = vrot.lane.b32.xlu0 %v2789_v14, %s2525_s7  ;;  %1371 = vmatpush.bf16.msra.mxu3 %v1339_v19 }
 0x122   : > { %v1166_v2 = vpop.permute.xlu1 %1165  ;;  %v1164_v5 = vpop.permute.xlu0 %1163  ;;  %1891 = vrot.lane.b32.xlu2 %v2887_v9, %s2527_s9 }
 0x123   : > { %v3215_v44 = vpop.permute.xlu2 %1161  ;;  %2402 = vmatmul.msk.bf16.gmra.mxu2 %vm413_vm2, %v1098_v42  ;;  %v1174_v61 = vsel %vm1171_vm8, %v1164_v5, %v1166_v2  ;;  %v1190_v63 = vsel %vm1171_vm8, %v1166_v2, %v1164_v5  ;;  %v1330_v5 = vld [vmem:[%s3859_s3] sm:$0xff] }
 0x124   : > { %2404 = vmatmul.msk.bf16.gmra.mxu3 %vm413_vm2, %v1098_v42  ;;  %v1203_v18 = vmul.f32 %v3228_v49, %v1174_v61  ;;  %v1204_v8 = vmul.f32 %v3230_v52, %v1190_v63 }
 0x125   : > { %v3280_v26 = vpop.f32.mrf.mxu2 }
 0x128   : > { %1895 = vrot.lane.b32.xlu1 %v2884_v21, %s2527_s9 }
 0x129   : > { %1893 = vrot.lane.b32.xlu0 %v2848_v51, %s2527_s9 }
 0x12a   : > { %v1283_v1 = vpop.permute.xlu1 %1282  ;;  %v1170_v4 = vpop.permute.xlu0 %1169  ;;  %1897 = vrot.lane.b32.xlu2 %v2851_v54, %s2527_s9 }
 0x12b   : > { %v1175_v10 = vsel %vm1171_vm8, %v3145_v41, %v1170_v4  ;;  %v1191_v17 = vsel %vm1171_vm8, %v1170_v4, %v3145_v41  ;;  %v3244_v27 = vpop.permute.xlu2 %1515  ;;  %2393 = vmatmul.msk.bf16.gmra.mxu0 %vm413_vm2, %v983_v60 }
 0x12c   : > { %v1205_v45 = vmul.f32 %v3228_v49, %v1175_v10  ;;  %v1206_v22 = vmul.f32 %v3230_v52, %v1191_v17  ;;  %2395 = vmatmul.msk.bf16.gmra.mxu1 %vm413_vm2, %v983_v60  ;;  %v3282_v60 = vpop.f32.mrf.mxu3 }
 0x12e   : > { %v1216_v24 = vpack.c.bf16 %v1205_v45, %v1203_v18  ;;  %v1217_v25 = vpack.c.bf16 %v1206_v22, %v1204_v8 }
 0x12f   : > { %v429_v43 = vpop.f32.mrf.mxu0 }
 0x130   : > { %1786 = vrot.lane.b32.xlu1 %v2848_v51, %s2525_s7  ;;  %v448_v41 = vpop.f32.mrf.mxu1  ;;  %v3256_v28 = vadd.f32 %v473_v50, %v429_v43  ;;  %1230 = vmatpush.bf16.msra.mxu0 %v1216_v24 }
 0x131   : > { %1784 = vrot.lane.b32.xlu0 %v2887_v9, %s2525_s7  ;;  %1249 = vmatpush.bf16.msra.mxu1 %v1217_v25  ;;  %v3258_v29 = vadd.f32 %v492_v23, %v448_v41  ;;  %v478_v41 = vpop.f32.mrf.mxu2 }
 0x132   : > { %v1301_v0 = vpop.permute.xlu1 %1300  ;;  %v1299_v34 = vpop.permute.xlu0 %1298  ;;  %1788 = vrot.lane.b32.xlu2 %v2884_v21, %s2525_s7 }
 0x133   : > { %v1307_v37 = vsel %vm309_vm0, %v1301_v0, %v3170_v11  ;;  %v1319_v38 = vsel %vm309_vm0, %v3170_v11, %v1301_v0  ;;  %v1306_v30 = vsel %vm309_vm0, %v1299_v34, %v1283_v1  ;;  %v1318_v59 = vsel %vm309_vm0, %v1283_v1, %v1299_v34  ;;  %v3268_v31 = vpop.permute.xlu2 %1398  ;;  %v1331_v11 = vld [vmem:[%s3859_s3 + $0x8] sm:$0xff] }
 0x134   : > { %v1324_v39 = vmul.f32 %v1319_v38, %v2694_v15  ;;  %v1325_v19 = vmul.f32 %v1307_v37, %v2696_v16  ;;  %v1322_v42 = vmul.f32 %v1318_v59, %v2694_v15  ;;  %v1323_v2 = vmul.f32 %v1306_v30, %v2696_v16  ;;  %v497_v38 = vpop.f32.mrf.mxu3 }
 0x135   : > { %v1334_v15 = vpack.c.bf16 %v1331_v11, %v1330_v5 }
 0x136   : > { %v1336_v20 = vpack.c.bf16 %v1324_v39, %v1322_v42  ;;  %v1337_v46 = vpack.c.bf16 %v1325_v19, %v1323_v2  ;;  %v1332_v42 = vld [vmem:[%s3859_s3 + $0x10] sm:$0xff]  ;;  %v1333_v2 = vld [vmem:[%s3859_s3 + $0x18] sm:$0xff] }
 0x137   : > { %v3284_v61 = vpop.f32.mrf.mxu0 }
 0x138   : > { %2113 = vrot.lane.b32.xlu1 %v2783_v12, %s2528_s16  ;;  %v3290_v16 = vpop.f32.mrf.mxu1  ;;  %1353 = vmatpush.bf16.msra.mxu2 %v1336_v20 }
 0x139   : > { %1790 = vrot.lane.b32.xlu0 %v2851_v54, %s2525_s7  ;;  %1372 = vmatpush.bf16.msra.mxu3 %v1337_v46 }
 0x13a   : > { %v1160_v63 = vpop.permute.xlu1 %1159  ;;  %v1158_v1 = vpop.permute.xlu0 %1157  ;;  %2115 = vrot.lane.b32.xlu2 %v2766_v62, %s2528_s16 }
 0x13b   : > { %v1173_v4 = vsel %vm1171_vm8, %v1160_v63, %v3215_v44  ;;  %v1189_v10 = vsel %vm1171_vm8, %v3215_v44, %v1160_v63  ;;  %v1172_v17 = vsel %vm1171_vm8, %v3195_v6, %v1158_v1  ;;  %v1188_v50 = vsel %vm1171_vm8, %v1158_v1, %v3195_v6  ;;  %v3302_v18 = vpop.permute.xlu2 %1499  ;;  %2414 = vmatmul.msk.bf16.vlgmr.msra.gmra.mxu2 %vm413_vm2, %v1334_v15  ;;  %v2406_v44 = vld [vmem:[%s3858_s2 + $0x100] sm:$0xff]  ;;  %v2407_v6 = vld [vmem:[%s3858_s2 + $0x108] sm:$0xff] }
 0x13c   : > { %v1201_v8 = vmul.f32 %v3228_v49, %v1173_v4  ;;  %v1202_v45 = vmul.f32 %v3230_v52, %v1189_v10  ;;  %v1199_v22 = vmul.f32 %v3228_v49, %v1172_v17  ;;  %v1200_v23 = vmul.f32 %v3230_v52, %v1188_v50  ;;  %2416 = vmatmul.msk.bf16.vlgmr.msra.gmra.mxu3 %vm413_vm2, %v1334_v15  ;;  %v3357_v17 = vpop.f32.mrf.mxu3  ;;  %v2408_v50 = vld [vmem:[%s3858_s2 + $0x110] sm:$0xff] }
 0x13d   : > { %v1212_v0 = vpack.c.bf16 %v2407_v6, %v2406_v44 }
 0x13e   : > { %v1214_v24 = vpack.c.bf16 %v1201_v8, %v1199_v22  ;;  %v1215_v25 = vpack.c.bf16 %v1202_v45, %v1200_v23  ;;  %v2409_v8 = vld [vmem:[%s3858_s2 + $0x118] sm:$0xff] }
 0x13f   : > { %v434_v43 = vpop.f32.mrf.mxu0  ;;  %v1213_v44 = vpack.c.bf16 %v2409_v8, %v2408_v50 }
 0x140   : > { %2119 = vrot.lane.b32.xlu1 %v2786_v13, %s2528_s16  ;;  %v453_v34 = vpop.f32.mrf.mxu1  ;;  %v3320_v37 = vadd.f32 %v478_v41, %v434_v43  ;;  %1231 = vmatpush.bf16.msra.mxu0 %v1214_v24 }
 0x141   : > { %2117 = vrot.lane.b32.xlu0 %v2789_v14, %s2528_s16  ;;  %1250 = vmatpush.bf16.msra.mxu1 %v1215_v25  ;;  %v3322_v30 = vadd.f32 %v497_v38, %v453_v34 }
 0x142   : > { %v1506_v59 = vpop.permute.xlu1 %1505  ;;  %v1504_v39 = vpop.permute.xlu0 %1503  ;;  %2006 = vrot.lane.b32.xlu2 %v2783_v12, %s2526_s8  ;;  %v1335_v12 = vpack.c.bf16 %v1333_v2, %v1332_v42 }
 0x143   : > { %v3326_v19 = vpop.permute.xlu2 %1513  ;;  %2410 = vmatmul.msk.bf16.vlgmr.msra.gmra.mxu0 %vm413_vm2, %v1212_v0  ;;  %v1521_v5 = vsel %vm522_vm4, %v3244_v27, %v1504_v39  ;;  %v1533_v11 = vsel %vm522_vm4, %v1504_v39, %v3244_v27 }
 0x144   : > { %2412 = vmatmul.msk.bf16.vlgmr.msra.gmra.mxu1 %vm413_vm2, %v1212_v0  ;;  %v1540_v4 = vmul.f32 %v1521_v5, %v2855_v56 }
 0x148   : > { %2010 = vrot.lane.b32.xlu1 %v2789_v14, %s2526_s8  ;;  %v3348_v14 = vpop.f32.mrf.mxu2  ;;  %v3368_v23 = vpop.f32.mrf.mxu1 }
 0x149   : > { %2008 = vrot.lane.b32.xlu0 %v2766_v62, %s2526_s8  ;;  %v1539_v62 = vmul.f32 %v1533_v11, %v2853_v55 }
 0x14a   : > { %v1397_v20 = vpop.permute.xlu1 %1396  ;;  %v1518_v46 = vpop.permute.xlu0 %1517  ;;  %2012 = vrot.lane.b32.xlu2 %v2786_v13, %s2526_s8 }
 0x14b   : > { %v1522_v15 = vsel %vm522_vm4, %v1518_v46, %v1506_v59  ;;  %v1534_v63 = vsel %vm522_vm4, %v1506_v59, %v1518_v46  ;;  %v3350_v1 = vpop.permute.xlu2 %1404  ;;  %2415 = vmatmul.msk.bf16.gmra.mxu2 %vm413_vm2, %v1335_v12  ;;  %v3360_v13 = vpop.f32.mrf.mxu0 }
 0x14c   : > { %v1541_v10 = vmul.f32 %v1534_v63, %v2853_v55  ;;  %v1542_v27 = vmul.f32 %v1522_v15, %v2855_v56  ;;  %2417 = vmatmul.msk.bf16.gmra.mxu3 %vm413_vm2, %v1335_v12 }
 0x14e   : > { %v1552_v45 = vpack.c.bf16 %v1541_v10, %v1539_v62  ;;  %v1553_v22 = vpack.c.bf16 %v1542_v27, %v1540_v4 }
 0x150   : > { %2107 = vrot.lane.b32.xlu1 %v2848_v51, %s2528_s16  ;;  %1566 = vmatpush.bf16.msrb.mxu2 %v1552_v45 }
 0x151   : > { %2105 = vrot.lane.b32.xlu0 %v2887_v9, %s2528_s16  ;;  %1585 = vmatpush.bf16.msrb.mxu3 %v1553_v22 }
 0x152   : > { %v1411_v6 = vpop.permute.xlu1 %1410  ;;  %2109 = vrot.lane.b32.xlu2 %v2884_v21, %s2528_s16 }
 0x153   : > { %v1409_v24 = vpop.permute.xlu0 %1408  ;;  %v1415_v25 = vsel %vm370_vm1, %v1411_v6, %v3268_v31  ;;  %v1427_v43 = vsel %vm370_vm1, %v3268_v31, %v1411_v6  ;;  %v3382_v34 = vpop.permute.xlu2 %1612  ;;  %2411 = vmatmul.msk.bf16.gmra.mxu0 %vm413_vm2, %v1213_v44  ;;  %v2427_v6 = vld [vmem:[%s3859_s3 + $0x48] sm:$0xff] }
 0x154   : > { %v1414_v41 = vsel %vm370_vm1, %v1409_v24, %v1397_v20  ;;  %v1426_v0 = vsel %vm370_vm1, %v1397_v20, %v1409_v24  ;;  %v1434_v38 = vmul.f32 %v1427_v43, %v2735_v47  ;;  %v1435_v59 = vmul.f32 %v1415_v25, %v2737_v48  ;;  %2413 = vmatmul.msk.bf16.gmra.mxu1 %vm413_vm2, %v1213_v44 }
 0x155   : > { %v1432_v39 = vmul.f32 %v1426_v0, %v2735_v47  ;;  %v1433_v42 = vmul.f32 %v1414_v41, %v2737_v48  ;;  %v695_v2 = vpop.f32.mrf.mxu2 }
 0x156   : > { %v714_v5 = vpop.f32.mrf.mxu3 }
 0x157   : > { %v1445_v31 = vpack.c.bf16 %v1434_v38, %v1432_v39  ;;  %v1446_v12 = vpack.c.bf16 %v1435_v59, %v1433_v42  ;;  %v580_v11 = vpop.f32.mrf.mxu0  ;;  %v2507_v59 = vld [vmem:[%s2763_s20 + $0x20] sm:$0xff] }
 0x158   : > { %1998 = vrot.lane.b32.xlu1 %v2887_v9, %s2526_s8  ;;  %v609_v20 = vadd.f32 %v580_v11, %v3256_v28  ;;  %v1717_v39 = vmul.f32 %v2507_v59, %v2926_v40 }
 0x159   : > { %2111 = vrot.lane.b32.xlu0 %v2851_v54, %s2528_s16  ;;  %v599_v46 = vpop.f32.mrf.mxu1  ;;  %1459 = vmatpush.bf16.msrb.mxu0 %v1445_v31  ;;  %v2509_v31 = vld [vmem:[%s2763_s20 + $0x28] sm:$0xff] }
 0x15a   : > { %v610_v15 = vadd.f32 %v599_v46, %v3258_v29  ;;  %1478 = vmatpush.bf16.msrb.mxu1 %v1446_v12  ;;  %v1512_v63 = vpop.permute.xlu1 %1511  ;;  %v3396_v62 = vadd.f32 %v695_v2, %v609_v20  ;;  %2000 = vrot.lane.b32.xlu2 %v2848_v51, %s2526_s8  ;;  %v1718_v12 = vmul.f32 %v2509_v31, %v2936_v57 }
 0x15b   : > { %v1502_v4 = vpop.permute.xlu0 %1501  ;;  %v1519_v10 = vsel %vm522_vm4, %v1512_v63, %v3302_v18  ;;  %v1531_v27 = vsel %vm522_vm4, %v3302_v18, %v1512_v63  ;;  %v2426_v18 = vld [vmem:[%s3859_s3 + $0x40] sm:$0xff]  ;;  %v3422_v24 = vpop.permute.xlu2 %1606 }
 0x15c   : > { %v3404_v50 = vadd.f32 %v714_v5, %v610_v15  ;;  %v1520_v28 = vsel %vm522_vm4, %v3326_v19, %v1502_v4  ;;  %v1535_v29 = vmul.f32 %v1531_v27, %v2853_v55  ;;  %v1536_v8 = vmul.f32 %v1519_v10, %v2855_v56  ;;  %v2510_v5 = vld [vmem:[%s2763_s20 + $0x38] sm:$0xff] }
 0x15d   : > { %v1532_v45 = vsel %vm522_vm4, %v1502_v4, %v3326_v19  ;;  %v1538_v51 = vmul.f32 %v1520_v28, %v2855_v56  ;;  %v3414_v44 = vpop.f32.mrf.mxu2  ;;  %v1548_v41 = vpack.c.bf16 %v2427_v6, %v2426_v18  ;;  %v1720_v11 = vmul.f32 %v2510_v5, %v2936_v57 }
 0x15e   : > { %v1537_v22 = vmul.f32 %v1532_v45, %v2853_v55  ;;  %v3424_v43 = vpop.f32.mrf.mxu3  ;;  %v1713_v6 = vmul.f32 %v2887_v9, %v2926_v40 }
 0x15f   : > { %v1551_v25 = vpack.c.bf16 %v1538_v51, %v1536_v8  ;;  %v3426_v56 = vpop.f32.mrf.mxu0  ;;  %v1731_v10 = vpack.c.bf16 %v1720_v11, %v1718_v12 }
 0x160   : > { %v1550_v55 = vpack.c.bf16 %v1537_v22, %v1535_v29  ;;  %2004 = vrot.lane.b32.xlu1 %v2851_v54, %s2526_s8  ;;  %v2508_v54 = vld [vmem:[%s2763_s20 + $0x30] sm:$0xff] }
 0x161   : > { %2002 = vrot.lane.b32.xlu0 %v2884_v21, %s2526_s8  ;;  %v3432_v19 = vpop.f32.mrf.mxu1  ;;  %1586 = vmatpush.bf16.msrb.mxu3 %v1551_v25  ;;  %v1719_v2 = vmul.f32 %v2508_v54, %v2926_v40  ;;  %v2511_v25 = vld [vmem:[%s2763_s20 + $0x8] sm:$0xff] }
 0x162   : > { %1567 = vmatpush.bf16.msrb.mxu2 %v1550_v55  ;;  %v1395_v0 = vpop.permute.xlu1 %1394  ;;  %v1714_v55 = vmul.f32 %v2511_v25, %v2936_v57 }
 0x163   : > { %v1393_v38 = vpop.permute.xlu0 %1392  ;;  %v3446_v63 = vpop.permute.xlu2 %1620  ;;  %v1730_v4 = vpack.c.bf16 %v1719_v2, %v1717_v39 }
 0x164   : > { %2432 = vmatmul.msk.bf16.vlgmr.msrb.gmra.mxu3 %vm413_vm2, %v1548_v41  ;;  %v1424_v20 = vsel %vm370_vm1, %v1393_v38, %v3350_v1  ;;  %v1412_v29 = vsel %vm370_vm1, %v3350_v1, %v1393_v38  ;;  %v2512_v38 = vld [vmem:[%s2763_s20 + $0x18] sm:$0xff]  ;;  %s3833_s20 = scalar_lea.vmem %s3862_s6, %s2573_s23 }
 0x165   : > { %2430 = vmatmul.msk.bf16.vlgmr.msrb.gmra.mxu2 %vm413_vm2, %v1548_v41  ;;  %v700_v42 = vpop.f32.mrf.mxu2  ;;  %v1428_v8 = vmul.f32 %v1424_v20, %v2735_v47  ;;  %1763 = vmatpush.bf16.msra.mxu3 %v1731_v10  ;;  %v1716_v59 = vmul.f32 %v2512_v38, %v2936_v57  ;;  %v1429_v39 = vmul.f32 %v1412_v29, %v2737_v48 }
 0x166   : > { %v719_v46 = vpop.f32.mrf.mxu3  ;;  %1744 = vmatpush.bf16.msra.mxu2 %v1730_v4 }
 0x167   : > { %v585_v15 = vpop.f32.mrf.mxu0 }
 0x168   : > { %v613_v27 = vadd.f32 %v585_v15, %v3320_v37  ;;  %v1715_v37 = vmul.f32 %v2884_v21, %v2926_v40  ;;  %v2418_v21 = vld [vmem:[%s3859_s3 + $0x20] sm:$0xff]  ;;  %v2419_v40 = vld [vmem:[%s3859_s3 + $0x28] sm:$0xff] }
 0x169   : > { %v604_v28 = vpop.f32.mrf.mxu1  ;;  %v1441_v11 = vpack.c.bf16 %v2419_v40, %v2418_v21 }
 0x16a   : > { %v614_v45 = vadd.f32 %v604_v28, %v3322_v30  ;;  %v1611_v51 = vpop.permute.xlu1 %1610  ;;  %v3453_v22 = vadd.f32 %v700_v42, %v613_v27  ;;  %v1728_v54 = vpack.c.bf16 %v1715_v37, %v1713_v6 }
 0x16b   : > { %v1407_v18 = vpop.permute.xlu0 %1406 }
 0x16c   : > { %v3461_v1 = vadd.f32 %v719_v46, %v614_v45  ;;  %v1413_v41 = vsel %vm370_vm1, %v1407_v18, %v1395_v0  ;;  %v1425_v30 = vsel %vm370_vm1, %v1395_v0, %v1407_v18  ;;  %v1729_v0 = vpack.c.bf16 %v1716_v59, %v1714_v55  ;;  %1745 = vmatpush.bf16.msra.mxu2 %v1728_v54  ;;  %v3490_v15 = vpop.permute.xlu2 %1903 }
 0x16d   : > { %v1430_v42 = vmul.f32 %v1425_v30, %v2735_v47  ;;  %v1431_v9 = vmul.f32 %v1413_v41, %v2737_v48  ;;  %v3476_v2 = vpop.f32.mrf.mxu2  ;;  %v2428_v47 = vld [vmem:[%s3859_s3 + $0x50] sm:$0xff]  ;;  %v2429_v48 = vld [vmem:[%s3859_s3 + $0x58] sm:$0xff] }
 0x16e   : > { %v3478_v12 = vpop.f32.mrf.mxu3  ;;  %1764 = vmatpush.bf16.msra.mxu3 %v1729_v0  ;;  %v1549_v46 = vpack.c.bf16 %v2429_v48, %v2428_v47  ;;  %v2420_v48 = vld [vmem:[%s3859_s3 + $0x30] sm:$0xff] }
 0x16f   : > { %v1443_v31 = vpack.c.bf16 %v1430_v42, %v1428_v8  ;;  %v1444_v57 = vpack.c.bf16 %v1431_v9, %v1429_v39  ;;  %v3486_v5 = vpop.f32.mrf.mxu0 }
 0x171   : > { %v3488_v20 = vpop.f32.mrf.mxu1  ;;  %1460 = vmatpush.bf16.msrb.mxu0 %v1443_v31  ;;  %1479 = vmatpush.bf16.msrb.mxu1 %v1444_v57 }
 0x172   : > { %v1625_v4 = vpop.permute.xlu1 %1624 }
 0x173   : > { %v1623_v10 = vpop.permute.xlu0 %1622  ;;  %v1629_v27 = vsel %vm637_vm3, %v1625_v4, %v3382_v34  ;;  %v1641_v28 = vsel %vm637_vm3, %v3382_v34, %v1625_v4 }
 0x174   : > { %v1628_v29 = vsel %vm637_vm3, %v1623_v10, %v1611_v51  ;;  %2422 = vmatmul.msk.bf16.vlgmr.msrb.gmra.mxu0 %vm413_vm2, %v1441_v11  ;;  %v1648_v8 = vmul.f32 %v1641_v28, %v2820_v35  ;;  %v1649_v45 = vmul.f32 %v1629_v27, %v2822_v36  ;;  %v1640_v18 = vsel %vm637_vm3, %v1611_v51, %v1623_v10  ;;  %v1795_v0 = vpop.permute.xlu2 %1794 }
 0x175   : > { %v1647_v6 = vmul.f32 %v1628_v29, %v2822_v36  ;;  %2424 = vmatmul.msk.bf16.vlgmr.msrb.gmra.mxu1 %vm413_vm2, %v1441_v11  ;;  %v1646_v37 = vmul.f32 %v1640_v18, %v2820_v35  ;;  %v888_v25 = vpop.f32.mrf.mxu2  ;;  %2431 = vmatmul.msk.bf16.gmra.mxu2 %vm413_vm2, %v1549_v46 }
 0x176   : > { %2433 = vmatmul.msk.bf16.gmra.mxu3 %vm413_vm2, %v1549_v46  ;;  %v907_v55 = vpop.f32.mrf.mxu3 }
 0x177   : > { %v1660_v34 = vpack.c.bf16 %v1649_v45, %v1647_v6  ;;  %v1659_v41 = vpack.c.bf16 %v1648_v8, %v1646_v37  ;;  %v773_v30 = vpop.f32.mrf.mxu0 }
 0x178   : > { %v802_v38 = vadd.f32 %v773_v30, %v3396_v62 }
 0x179   : > { %v792_v59 = vpop.f32.mrf.mxu1  ;;  %1692 = vmatpush.bf16.msra.mxu1 %v1660_v34  ;;  %1673 = vmatpush.bf16.msra.mxu0 %v1659_v41 }
 0x17a   : > { %v803_v51 = vadd.f32 %v792_v59, %v3404_v50  ;;  %v1619_v39 = vpop.permute.xlu1 %1618  ;;  %v3508_v42 = vadd.f32 %v888_v25, %v802_v38 }
 0x17b   : > { %v1609_v9 = vpop.permute.xlu0 %1608  ;;  %v1626_v21 = vsel %vm637_vm3, %v1619_v39, %v3422_v24  ;;  %v1638_v40 = vsel %vm637_vm3, %v3422_v24, %v1619_v39  ;;  %v2421_v24 = vld [vmem:[%s3859_s3 + $0x38] sm:$0xff] }
 0x17c   : > { %v3514_v54 = vadd.f32 %v907_v55, %v803_v51  ;;  %v1627_v62 = vsel %vm637_vm3, %v3446_v63, %v1609_v9  ;;  %v1642_v31 = vmul.f32 %v1638_v40, %v2820_v35  ;;  %v1643_v50 = vmul.f32 %v1626_v21, %v2822_v36  ;;  %v3548_v37 = vpop.permute.xlu2 %1891 }
 0x17d   : > { %v1639_v57 = vsel %vm637_vm3, %v1609_v9, %v3446_v63  ;;  %v1645_v47 = vmul.f32 %v1627_v62, %v2822_v36  ;;  %v3530_v46 = vpop.f32.mrf.mxu2  ;;  %v2442_v63 = vld [vmem:[%s3859_s3 + $0x80] sm:$0xff]  ;;  %v2443_v36 = vld [vmem:[%s3859_s3 + $0x88] sm:$0xff]  ;;  %v1442_v29 = vpack.c.bf16 %v2421_v24, %v2420_v48 }
 0x17e   : > { %v1644_v11 = vmul.f32 %v1639_v57, %v2820_v35  ;;  %v3532_v10 = vpop.f32.mrf.mxu3  ;;  %v1726_v35 = vpack.c.bf16 %v2443_v36, %v2442_v63 }
 0x17f   : > { %v1658_v4 = vpack.c.bf16 %v1645_v47, %v1643_v50  ;;  %v3540_v27 = vpop.f32.mrf.mxu0  ;;  %v2435_v50 = vld [vmem:[%s3859_s3 + $0x68] sm:$0xff] }
 0x180   : > { %v1657_v28 = vpack.c.bf16 %v1644_v11, %v1642_v31 }
 0x181   : > { %v3542_v8 = vpop.f32.mrf.mxu1  ;;  %1693 = vmatpush.bf16.msra.mxu1 %v1658_v4  ;;  %v2445_v4 = vld [vmem:[%s3859_s3 + $0x98] sm:$0xff] }
 0x182   : > { %1674 = vmatpush.bf16.msra.mxu0 %v1657_v28  ;;  %v1902_v45 = vpop.permute.xlu1 %1901 }
 0x183   : > { %v1900_v18 = vpop.permute.xlu0 %1899 }
 0x184   : > { %2423 = vmatmul.msk.bf16.gmra.mxu0 %vm413_vm2, %v1442_v29  ;;  %v1909_v30 = vsel %vm941_vm7, %v1900_v18, %v1902_v45  ;;  %v1925_v59 = vsel %vm941_vm7, %v1902_v45, %v1900_v18 }
 0x185   : > { %2425 = vmatmul.msk.bf16.gmra.mxu1 %vm413_vm2, %v1442_v29  ;;  %v893_v6 = vpop.f32.mrf.mxu2  ;;  %2446 = vmatmul.msk.bf16.vlgmr.msra.gmra.mxu2 %vm413_vm2, %v1726_v35  ;;  %v1931_v62 = vmul.f32 %v1909_v30, %v3085_v53  ;;  %v1932_v57 = vmul.f32 %v1925_v59, %v3087_v58  ;;  %v1898_v29 = vpop.permute.xlu2 %1897 }
 0x186   : > { %2448 = vmatmul.msk.bf16.vlgmr.msra.gmra.mxu3 %vm413_vm2, %v1726_v35  ;;  %v912_v25 = vpop.f32.mrf.mxu3 }
 0x187   : > { %v778_v34 = vpop.f32.mrf.mxu0 }
 0x188   : > { %v806_v55 = vadd.f32 %v778_v34, %v3453_v22 }
 0x189   : > { %v797_v41 = vpop.f32.mrf.mxu1 }
 0x18a   : > { %v807_v38 = vadd.f32 %v797_v41, %v3461_v1  ;;  %v1793_v51 = vpop.permute.xlu1 %1792  ;;  %v3554_v39 = vadd.f32 %v893_v6, %v806_v55  ;;  %v2434_v1 = vld [vmem:[%s3859_s3 + $0x60] sm:$0xff]  ;;  %v476_v55 = vadd.f32 %v3280_v26, %v3284_v61  ;;  %v495_v41 = vadd.f32 %v3282_v60, %v3290_v16 }
 0x18b   : > { %v1906_v9 = vpop.permute.xlu0 %1905  ;;  %v1655_v28 = vpack.c.bf16 %v2435_v50, %v2434_v1  ;;  %v1802_v45 = vsel %vm826_vm5, %v1793_v51, %v1795_v0  ;;  %v1818_v18 = vsel %vm826_vm5, %v1795_v0, %v1793_v51 }
 0x18c   : > { %v3556_v21 = vadd.f32 %v912_v25, %v807_v38  ;;  %v1910_v40 = vsel %vm941_vm7, %v3490_v15, %v1906_v9  ;;  %v1926_v22 = vsel %vm941_vm7, %v1906_v9, %v3490_v15  ;;  %v2444_v15 = vld [vmem:[%s3859_s3 + $0x90] sm:$0xff]  ;;  %v1824_v59 = vmul.f32 %v1802_v45, %v2971_v32 }
 0x18d   : > { %v1933_v31 = vmul.f32 %v1910_v40, %v3085_v53  ;;  %v1934_v47 = vmul.f32 %v1926_v22, %v3087_v58  ;;  %v3572_v48 = vpop.f32.mrf.mxu2  ;;  %v1727_v6 = vpack.c.bf16 %v2445_v4, %v2444_v15  ;;  %v1825_v0 = vmul.f32 %v1818_v18, %v2973_v33  ;;  %v3605_v1 = vpop.permute.xlu2 %1788 }
 0x18e   : > { %v3574_v11 = vpop.f32.mrf.mxu3  ;;  %v611_v26 = vadd.f32 %v3426_v56, %v476_v55  ;;  %v612_v60 = vadd.f32 %v3432_v19, %v495_v41  ;;  %v2459_v55 = vld [vmem:[%s3859_s3 + $0xc8] sm:$0xff] }
 0x18f   : > { %v1944_v24 = vpack.c.bf16 %v1933_v31, %v1931_v62  ;;  %v1945_v63 = vpack.c.bf16 %v1934_v47, %v1932_v57  ;;  %v3582_v36 = vpop.f32.mrf.mxu0 }
 0x190   : > { %v726_v22 = vadd.f32 %v3414_v44, %v611_v26  ;;  %v727_v50 = vadd.f32 %v3424_v43, %v612_v60 }
 0x191   : > { %v3584_v35 = vpop.f32.mrf.mxu1  ;;  %1958 = vmatpush.bf16.msrb.mxu2 %v1944_v24  ;;  %1977 = vmatpush.bf16.msrb.mxu3 %v1945_v63 }
 0x192   : > { %v1799_v25 = vpop.permute.xlu1 %1798  ;;  %v804_v24 = vadd.f32 %v3540_v27, %v726_v22  ;;  %v805_v27 = vadd.f32 %v3542_v8, %v727_v50 }
 0x193   : > { %v1797_v34 = vpop.permute.xlu0 %1796 }
 0x194   : > { %v1803_v30 = vsel %vm826_vm5, %v1797_v34, %v1799_v25  ;;  %v1819_v38 = vsel %vm826_vm5, %v1799_v25, %v1797_v34  ;;  %2438 = vmatmul.msk.bf16.vlgmr.msra.gmra.mxu0 %vm413_vm2, %v1655_v28  ;;  %v2458_v34 = vld [vmem:[%s3859_s3 + $0xc0] sm:$0xff] }
 0x195   : > { %v1826_v51 = vmul.f32 %v1803_v30, %v2971_v32  ;;  %v1827_v9 = vmul.f32 %v1819_v38, %v2973_v33  ;;  %2440 = vmatmul.msk.bf16.vlgmr.msra.gmra.mxu1 %vm413_vm2, %v1655_v28  ;;  %2447 = vmatmul.msk.bf16.gmra.mxu2 %vm413_vm2, %v1727_v6 }
 0x196   : > { %2449 = vmatmul.msk.bf16.gmra.mxu3 %vm413_vm2, %v1727_v6  ;;  %v1118_v40 = vpop.f32.mrf.mxu2 }
 0x197   : > { %v1837_v61 = vpack.c.bf16 %v1826_v51, %v1824_v59  ;;  %v1838_v16 = vpack.c.bf16 %v1827_v9, %v1825_v0  ;;  %v1137_v62 = vpop.f32.mrf.mxu3  ;;  %v919_v59 = vadd.f32 %v3530_v46, %v804_v24  ;;  %v500_v46 = vadd.f32 %v3357_v17, %v3368_v23 }
 0x198   : > { %v1003_v31 = vpop.f32.mrf.mxu0 }
 0x199   : > { %1851 = vmatpush.bf16.msrb.mxu0 %v1837_v61  ;;  %1870 = vmatpush.bf16.msrb.mxu1 %v1838_v16  ;;  %v1032_v56 = vadd.f32 %v1003_v31, %v3508_v42  ;;  %v1022_v57 = vpop.f32.mrf.mxu1  ;;  %v2436_v42 = vld [vmem:[%s3859_s3 + $0x70] sm:$0xff]  ;;  %v481_v16 = vadd.f32 %v3348_v14, %v3360_v13  ;;  %v616_v31 = vadd.f32 %v3488_v20, %v500_v46 }
 0x19a   : > { %v1896_v47 = vpop.permute.xlu1 %1895  ;;  %v1033_v19 = vadd.f32 %v1022_v57, %v3514_v54  ;;  %v2437_v54 = vld [vmem:[%s3859_s3 + $0x78] sm:$0xff] }
 0x19b   : > { %v1908_v15 = vsel %vm941_vm7, %v1896_v47, %v1898_v29  ;;  %v1924_v4 = vsel %vm941_vm7, %v1898_v29, %v1896_v47  ;;  %v1894_v63 = vpop.permute.xlu0 %1893  ;;  %v3615_v45 = vadd.f32 %v1118_v40, %v1032_v56  ;;  %v1656_v38 = vpack.c.bf16 %v2437_v54, %v2436_v42  ;;  %v2460_v54 = vld [vmem:[%s3859_s3 + $0xd0] sm:$0xff] }
 0x19c   : > { %v1929_v44 = vmul.f32 %v1908_v15, %v3085_v53  ;;  %v1930_v28 = vmul.f32 %v1924_v4, %v3087_v58  ;;  %v1907_v43 = vsel %vm941_vm7, %v3548_v37, %v1894_v63  ;;  %v3626_v29 = vadd.f32 %v1137_v62, %v1033_v19 }
 0x19d   : > { %v1923_v18 = vsel %vm941_vm7, %v1894_v63, %v3548_v37  ;;  %v1927_v6 = vmul.f32 %v1907_v43, %v3085_v53  ;;  %v920_v37 = vadd.f32 %v3532_v10, %v805_v27  ;;  %v2116_v10 = vpop.permute.xlu2 %2115  ;;  %v615_v22 = vadd.f32 %v3486_v5, %v481_v16 }
 0x19e   : > { %v1928_v25 = vmul.f32 %v1923_v18, %v3087_v58  ;;  %v1120_v30 = vpop.f32.mrf.mxu2  ;;  %v1940_v58 = vpack.c.bf16 %v2459_v55, %v2458_v34  ;;  %v731_v23 = vadd.f32 %v3478_v12, %v616_v31 }
 0x19f   : > { %v1942_v41 = vpack.c.bf16 %v1929_v44, %v1927_v6  ;;  %v1139_v8 = vpop.f32.mrf.mxu3  ;;  %v730_v17 = vadd.f32 %v3476_v2, %v615_v22 }
 0x1a0   : > { %v1943_v0 = vpack.c.bf16 %v1930_v28, %v1928_v25  ;;  %v1005_v53 = vpop.f32.mrf.mxu0  ;;  %v809_v4 = vadd.f32 %v3584_v35, %v731_v23 }
 0x1a1   : > { %1959 = vmatpush.bf16.msrb.mxu2 %v1942_v41  ;;  %v1034_v51 = vadd.f32 %v1005_v53, %v919_v59  ;;  %v1024_v9 = vpop.f32.mrf.mxu1  ;;  %v808_v20 = vadd.f32 %v3582_v36, %v730_v17  ;;  %v2451_v36 = vld [vmem:[%s3859_s3 + $0xa8] sm:$0xff] }
 0x1a2   : > { %1978 = vmatpush.bf16.msrb.mxu3 %v1943_v0  ;;  %v1787_v26 = vpop.permute.xlu1 %1786  ;;  %v1035_v60 = vadd.f32 %v1024_v9, %v920_v37  ;;  %v924_v55 = vadd.f32 %v3574_v11, %v809_v4 }
 0x1a3   : > { %v1785_v61 = vpop.permute.xlu0 %1784  ;;  %v3645_v40 = vadd.f32 %v1120_v30, %v1034_v51  ;;  %v923_v27 = vadd.f32 %v3572_v48, %v808_v20 }
 0x1a4   : > { %2439 = vmatmul.msk.bf16.gmra.mxu0 %vm413_vm2, %v1656_v38  ;;  %v3648_v62 = vadd.f32 %v1139_v8, %v1035_v60  ;;  %v1800_v56 = vsel %vm826_vm5, %v1785_v61, %v1787_v26  ;;  %v1816_v19 = vsel %vm826_vm5, %v1787_v26, %v1785_v61 }
 0x1a5   : > { %2441 = vmatmul.msk.bf16.gmra.mxu1 %vm413_vm2, %v1656_v38  ;;  %2462 = vmatmul.msk.bf16.vlgmr.msrb.gmra.mxu2 %vm413_vm2, %v1940_v58  ;;  %v1820_v12 = vmul.f32 %v1800_v56, %v2971_v32  ;;  %v1821_v35 = vmul.f32 %v1816_v19, %v2973_v33  ;;  %v2007_v42 = vpop.permute.xlu2 %2006  ;;  %v2453_v19 = vld [vmem:[%s3859_s3 + $0xb8] sm:$0xff] }
 0x1a6   : > { %2464 = vmatmul.msk.bf16.vlgmr.msrb.gmra.mxu3 %vm413_vm2, %v1940_v58  ;;  %v1123_v50 = vpop.f32.mrf.mxu2 }
 0x1a7   : > { %v1142_v14 = vpop.f32.mrf.mxu3 }
 0x1a8   : > { %v1008_v13 = vpop.f32.mrf.mxu0 }
 0x1a9   : > { %v1036_v57 = vadd.f32 %v1008_v13, %v3554_v39  ;;  %v1027_v47 = vpop.f32.mrf.mxu1 }
 0x1aa   : > { %v2114_v24 = vpop.permute.xlu1 %2113  ;;  %v1037_v15 = vadd.f32 %v1027_v47, %v3556_v21  ;;  %v2450_v21 = vld [vmem:[%s3859_s3 + $0xa0] sm:$0xff] }
 0x1ab   : > { %v1791_v5 = vpop.permute.xlu0 %1790  ;;  %v3662_v63 = vadd.f32 %v1123_v50, %v1036_v57  ;;  %v2123_v18 = vsel %vm1171_vm8, %v2114_v24, %v2116_v10  ;;  %v1833_v34 = vpack.c.bf16 %v2451_v36, %v2450_v21 }
 0x1ac   : > { %v1801_v2 = vsel %vm826_vm5, %v3605_v1, %v1791_v5  ;;  %v3667_v44 = vadd.f32 %v1142_v14, %v1037_v15  ;;  %v1817_v39 = vsel %vm826_vm5, %v1791_v5, %v3605_v1  ;;  %v2145_v37 = vmul.f32 %v2123_v18, %v3228_v49 }
 0x1ad   : > { %v1822_v28 = vmul.f32 %v1801_v2, %v2971_v32  ;;  %v1823_v43 = vmul.f32 %v1817_v39, %v2973_v33  ;;  %v2461_v32 = vld [vmem:[%s3859_s3 + $0xd8] sm:$0xff]  ;;  %v2139_v33 = vsel %vm1171_vm8, %v2116_v10, %v2114_v24  ;;  %v2013_v10 = vpop.permute.xlu2 %2012  ;;  %v2452_v24 = vld [vmem:[%s3859_s3 + $0xb0] sm:$0xff] }
 0x1ae   : > { %v1125_v25 = vpop.f32.mrf.mxu2  ;;  %v1941_v8 = vpack.c.bf16 %v2461_v32, %v2460_v54  ;;  %v2146_v58 = vmul.f32 %v2139_v33, %v3230_v52  ;;  %v1834_v2 = vpack.c.bf16 %v2453_v19, %v2452_v24  ;;  %v2467_v19 = vld [vmem:[%s3859_s3 + $0xe8] sm:$0xff] }
 0x1af   : > { %v1835_v1 = vpack.c.bf16 %v1822_v28, %v1820_v12  ;;  %v1836_v6 = vpack.c.bf16 %v1823_v43, %v1821_v35  ;;  %v1144_v30 = vpop.f32.mrf.mxu3 }
 0x1b0   : > { %v1010_v41 = vpop.f32.mrf.mxu0 }
 0x1b1   : > { %1852 = vmatpush.bf16.msrb.mxu0 %v1835_v1  ;;  %v1038_v38 = vadd.f32 %v1010_v41, %v923_v27  ;;  %v1029_v59 = vpop.f32.mrf.mxu1  ;;  %1871 = vmatpush.bf16.msrb.mxu1 %v1836_v6 }
 0x1b2   : > { %v2120_v0 = vpop.permute.xlu1 %2119  ;;  %v1039_v48 = vadd.f32 %v1029_v59, %v924_v55 }
 0x1b3   : > { %v2118_v53 = vpop.permute.xlu0 %2117  ;;  %v3692_v51 = vadd.f32 %v1125_v25, %v1038_v38 }
 0x1b4   : > { %v2124_v11 = vsel %vm1171_vm8, %v2118_v53, %v2120_v0  ;;  %v2140_v9 = vsel %vm1171_vm8, %v2120_v0, %v2118_v53  ;;  %2454 = vmatmul.msk.bf16.vlgmr.msrb.gmra.mxu0 %vm413_vm2, %v1833_v34  ;;  %v3697_v26 = vadd.f32 %v1144_v30, %v1039_v48  ;;  %v2475_v48 = vld [vmem:[%s3859_s3 + $0x108] sm:$0xff] }
 0x1b5   : > { %v2147_v60 = vmul.f32 %v2124_v11, %v3228_v49  ;;  %v2148_v61 = vmul.f32 %v2140_v9, %v3230_v52  ;;  %2456 = vmatmul.msk.bf16.vlgmr.msrb.gmra.mxu1 %vm413_vm2, %v1833_v34  ;;  %2463 = vmatmul.msk.bf16.gmra.mxu2 %vm413_vm2, %v1941_v8  ;;  %v2110_v35 = vpop.permute.xlu2 %2109 }
 0x1b6   : > { %2465 = vmatmul.msk.bf16.gmra.mxu3 %vm413_vm2, %v1941_v8 }
 0x1b7   : > { %v2158_v16 = vpack.c.bf16 %v2147_v60, %v2145_v37  ;;  %v2159_v46 = vpack.c.bf16 %v2148_v61, %v2146_v58  ;;  %v2474_v37 = vld [vmem:[%s3859_s3 + $0x100] sm:$0xff] }
 0x1b9   : > { %2172 = vmatpush.bf16.msra.mxu2 %v2158_v16  ;;  %2191 = vmatpush.bf16.msra.mxu3 %v2159_v46 }
 0x1ba   : > { %v2011_v22 = vpop.permute.xlu1 %2010 }
 0x1bb   : > { %v2017_v31 = vsel %vm1056_vm6, %v2011_v22, %v2013_v10  ;;  %v2033_v50 = vsel %vm1056_vm6, %v2013_v10, %v2011_v22  ;;  %v2009_v14 = vpop.permute.xlu0 %2008  ;;  %v2213_v22 = vld [vmem:[%s3861_s5 + $0x8] sm:$0xff] }
 0x1bc   : > { %v2040_v13 = vmul.f32 %v2017_v31, %v3052_v3  ;;  %v2041_v17 = vmul.f32 %v2033_v50, %v3054_v7  ;;  %v2016_v23 = vsel %vm1056_vm6, %v2007_v42, %v2009_v14  ;;  %v2032_v56 = vsel %vm1056_vm6, %v2009_v14, %v2007_v42 }
 0x1bd   : > { %v2038_v57 = vmul.f32 %v2016_v23, %v3052_v3  ;;  %v2039_v47 = vmul.f32 %v2032_v56, %v3054_v7  ;;  %v2001_v30 = vpop.permute.xlu2 %2000 }
 0x1be   : > { %v1355_v20 = vpop.f32.mrf.mxu2 }
 0x1bf   : > { %v2051_v15 = vpack.c.bf16 %v2040_v13, %v2038_v57  ;;  %v2052_v5 = vpack.c.bf16 %v2041_v17, %v2039_v47  ;;  %v1374_v4 = vpop.f32.mrf.mxu3  ;;  %v2529_v17 = vmov 0  }
 0x1c0   : > { %v1233_v12 = vpop.f32.mrf.mxu0  ;;  %2505 = vset.pattern.permute.xlu0 %v2529_v17  ;;  %2506 = vset.pattern.permute.xlu1 %v2529_v17 }
 0x1c1   : > { %v1252_v39 = vpop.f32.mrf.mxu1  ;;  %2065 = vmatpush.bf16.msra.mxu0 %v2051_v15  ;;  %2084 = vmatpush.bf16.msra.mxu1 %v2052_v5  ;;  %v1262_v28 = vadd.f32 %v1233_v12, %v3615_v45 }
 0x1c2   : > { %v1263_v21 = vadd.f32 %v1252_v39, %v3626_v29  ;;  %v2108_v36 = vpop.permute.xlu1 %2107  ;;  %2223 = vperm.xlu0 %2505, %v2213_v22   ;;  %2504 = vset.pattern.permute.xlu2 %v2529_v17  ;;  %v2214_v39 = vld [vmem:[%s3861_s5 + $0x10] sm:$0xff] }
 0x1c3   : > { %v2106_v43 = vpop.permute.xlu0 %2105  ;;  %v3720_v42 = vadd.f32 %v1355_v20, %v1262_v28  ;;  %2228 = vperm.xlu1 %2506, %v2214_v39  }
 0x1c4   : > { %v3722_v54 = vadd.f32 %v1374_v4, %v1263_v21  ;;  %2455 = vmatmul.msk.bf16.gmra.mxu0 %vm413_vm2, %v1834_v2  ;;  %v2121_v25 = vsel %vm1171_vm8, %v2106_v43, %v2108_v36  ;;  %v2137_v34 = vsel %vm1171_vm8, %v2108_v36, %v2106_v43 }
 0x1c5   : > { %2457 = vmatmul.msk.bf16.gmra.mxu1 %vm413_vm2, %v1834_v2  ;;  %v2141_v59 = vmul.f32 %v2121_v25, %v3228_v49 }
 0x1c6   : > { %v1357_v32 = vpop.f32.mrf.mxu2 }
 0x1c7   : > { %v1376_v1 = vpop.f32.mrf.mxu3 }
 0x1c8   : > { %v1235_v27 = vpop.f32.mrf.mxu0 }
 0x1c9   : > { %v1254_v18 = vpop.f32.mrf.mxu1  ;;  %v1264_v6 = vadd.f32 %v1235_v27, %v3645_v40  ;;  %v2142_v40 = vmul.f32 %v2137_v34, %v3230_v52 }
 0x1ca   : > { %v1265_v45 = vadd.f32 %v1254_v18, %v3648_v62  ;;  %v1999_v29 = vpop.permute.xlu1 %1998 }
 0x1cb   : > { %v2112_v55 = vpop.permute.xlu0 %2111  ;;  %v3730_v33 = vadd.f32 %v1357_v32, %v1264_v6  ;;  %v2014_v58 = vsel %vm1056_vm6, %v1999_v29, %v2001_v30  ;;  %v2030_v11 = vsel %vm1056_vm6, %v2001_v30, %v1999_v29  ;;  %v2468_v32 = vld [vmem:[%s3859_s3 + $0xf0] sm:$0xff] }
 0x1cc   : > { %v3732_v41 = vadd.f32 %v1376_v1, %v1265_v45  ;;  %v2122_v8 = vsel %vm1171_vm8, %v2110_v35, %v2112_v55  ;;  %v2138_v38 = vsel %vm1171_vm8, %v2112_v55, %v2110_v35  ;;  %v2034_v31 = vmul.f32 %v2014_v58, %v3052_v3  ;;  %v2476_v35 = vld [vmem:[%s3859_s3 + $0x110] sm:$0xff]  ;;  %v2469_v1 = vld [vmem:[%s3859_s3 + $0xf8] sm:$0xff] }
 0x1cd   : > { %v2143_v62 = vmul.f32 %v2122_v8, %v3228_v49  ;;  %v2144_v0 = vmul.f32 %v2138_v38, %v3230_v52  ;;  %v2154_v49 = vpack.c.bf16 %v2475_v48, %v2474_v37  ;;  %v2035_v50 = vmul.f32 %v2030_v11, %v3054_v7  ;;  %v2215_v38 = vld [vmem:[%s3861_s5 + $0x18] sm:$0xff] }
 0x1ce   : > { %v1360_v53 = vpop.f32.mrf.mxu2  ;;  %v2048_v6 = vpack.c.bf16 %v2469_v1, %v2468_v32 }
 0x1cf   : > { %v2156_v9 = vpack.c.bf16 %v2143_v62, %v2141_v59  ;;  %v2157_v60 = vpack.c.bf16 %v2144_v0, %v2142_v40  ;;  %v1379_v61 = vpop.f32.mrf.mxu3 }
 0x1d0   : > { %v1238_v16 = vpop.f32.mrf.mxu0 }
 0x1d1   : > { %v1266_v52 = vadd.f32 %v1238_v16, %v3662_v63  ;;  %v1257_v46 = vpop.f32.mrf.mxu1  ;;  %2173 = vmatpush.bf16.msra.mxu2 %v2156_v9  ;;  %2192 = vmatpush.bf16.msra.mxu3 %v2157_v60 }
 0x1d2   : > { %v2005_v10 = vpop.permute.xlu1 %2004  ;;  %v1267_v14 = vadd.f32 %v1257_v46, %v3667_v44  ;;  %v2466_v44 = vld [vmem:[%s3859_s3 + $0xe0] sm:$0xff] }
 0x1d3   : > { %v2003_v13 = vpop.permute.xlu0 %2002  ;;  %v3755_v23 = vadd.f32 %v1360_v53, %v1266_v52  ;;  %v2047_v20 = vpack.c.bf16 %v2467_v19, %v2466_v44 }
 0x1d4   : > { %v2015_v63 = vsel %vm1056_vm6, %v2003_v13, %v2005_v10  ;;  %v2031_v56 = vsel %vm1056_vm6, %v2005_v10, %v2003_v13  ;;  %v1389_v57 = vadd.f32 %v1379_v61, %v1267_v14  ;;  %2478 = vmatmul.msk.bf16.vlgmr.msra.gmra.mxu2 %vm413_vm2, %v2154_v49  ;;  %2480 = vmatmul.msk.bf16.vlgmr.msra.gmra.mxu3 %vm413_vm2, %v2154_v49 }
 0x1d5   : > { %v2036_v47 = vmul.f32 %v2015_v63, %v3052_v3  ;;  %v2037_v24 = vmul.f32 %v2031_v56, %v3054_v7 }
 0x1d6   : > { %v1362_v3 = vpop.f32.mrf.mxu2 }
 0x1d7   : > { %v2049_v15 = vpack.c.bf16 %v2036_v47, %v2034_v31  ;;  %v2050_v5 = vpack.c.bf16 %v2037_v24, %v2035_v50  ;;  %v1381_v12 = vpop.f32.mrf.mxu3 }
 0x1d8   : > { %v1240_v4 = vpop.f32.mrf.mxu0 }
 0x1d9   : > { %2066 = vmatpush.bf16.msra.mxu0 %v2049_v15  ;;  %2085 = vmatpush.bf16.msra.mxu1 %v2050_v5  ;;  %v1268_v7 = vadd.f32 %v1240_v4, %v3692_v51  ;;  %v1259_v2 = vpop.f32.mrf.mxu1  ;;  %v2477_v51 = vld [vmem:[%s3859_s3 + $0x118] sm:$0xff] }
 0x1da   : > { %v1269_v28 = vadd.f32 %v1259_v2, %v3697_v26  ;;  %v2155_v43 = vpack.c.bf16 %v2477_v51, %v2476_v35  ;;  %v2212_v26 = vld [vmem:[%s3861_s5] sm:$0xff] }
 0x1db   : > { %v1390_v21 = vadd.f32 %v1362_v3, %v1268_v7  ;;  %2218 = vperm.xlu2 %2504, %v2212_v26  }
 0x1dc   : > { %2470 = vmatmul.msk.bf16.vlgmr.msra.gmra.mxu0 %vm413_vm2, %v2047_v20  ;;  %2472 = vmatmul.msk.bf16.vlgmr.msra.gmra.mxu1 %vm413_vm2, %v2047_v20  ;;  %v1391_v36 = vadd.f32 %v1381_v12, %v1269_v28 }
 0x1e3   : > { %2233 = vperm.xlu2 %2504, %v2215_v38  }
 0x1e4   : > { %2479 = vmatmul.msk.bf16.gmra.mxu2 %vm413_vm2, %v2155_v43  ;;  %2481 = vmatmul.msk.bf16.gmra.mxu3 %vm413_vm2, %v2155_v43 }
 0x1e7   : > { %v1588_v18 = vpop.f32.mrf.mxu3 }
 0x1e8   : > { %v1569_v27 = vpop.f32.mrf.mxu2 }
 0x1ec   : > { %2471 = vmatmul.msk.bf16.gmra.mxu0 %vm413_vm2, %v2048_v6  ;;  %2473 = vmatmul.msk.bf16.gmra.mxu1 %vm413_vm2, %v2048_v6 }
 0x1ef   : > { %v1590_v29 = vpop.f32.mrf.mxu3 }
 0x1f0   : > { %v1571_v45 = vpop.f32.mrf.mxu2 }
 0x1f1   : > { %v1462_v25 = vpop.f32.mrf.mxu0 }
 0x1f2   : > { %v1491_v34 = vadd.f32 %v1462_v25, %v3720_v42  ;;  %v1481_v55 = vpop.f32.mrf.mxu1 }
 0x1f3   : > { %v1492_v30 = vadd.f32 %v1481_v55, %v3722_v54 }
 0x1f4   : > { %v1598_v8 = vadd.f32 %v1569_v27, %v1491_v34 }
 0x1f5   : > { %v1599_v59 = vadd.f32 %v1588_v18, %v1492_v30 }
 0x1f8   : > { %v1574_v62 = vpop.f32.mrf.mxu2 }
 0x1f9   : > { %v1464_v40 = vpop.f32.mrf.mxu0  ;;  %v1593_v48 = vpop.f32.mrf.mxu3 }
 0x1fa   : > { %v1493_v0 = vadd.f32 %v1464_v40, %v3730_v33  ;;  %v1483_v37 = vpop.f32.mrf.mxu1 }
 0x1fb   : > { %v1494_v53 = vadd.f32 %v1483_v37, %v3732_v41 }
 0x1fc   : > { %v1600_v58 = vadd.f32 %v1571_v45, %v1493_v0 }
 0x1fd   : > { %v1601_v42 = vadd.f32 %v1590_v29, %v1494_v53 }
 0x200   : > { %v1576_v9 = vpop.f32.mrf.mxu2 }
 0x201   : > { %v1467_v11 = vpop.f32.mrf.mxu0  ;;  %v1595_v61 = vpop.f32.mrf.mxu3 }
 0x202   : > { %v1495_v54 = vadd.f32 %v1467_v11, %v3755_v23  ;;  %v1486_v60 = vpop.f32.mrf.mxu1 }
 0x203   : > { %v1496_v16 = vadd.f32 %v1486_v60, %v1389_v57 }
 0x204   : > { %v3803_v49 = vadd.f32 %v1574_v62, %v1495_v54 }
 0x205   : > { %v3805_v52 = vadd.f32 %v1593_v48, %v1496_v16 }
 0x208   : > { %v1747_v31 = vpop.f32.mrf.mxu2 }
 0x209   : > { %v1469_v46 = vpop.f32.mrf.mxu0  ;;  %v1766_v50 = vpop.f32.mrf.mxu3 }
 0x20a   : > { %v1497_v10 = vadd.f32 %v1469_v46, %v1390_v21  ;;  %v1488_v33 = vpop.f32.mrf.mxu1 }
 0x20b   : > { %v1498_v22 = vadd.f32 %v1488_v33, %v1391_v36 }
 0x20c   : > { %v3807_v41 = vadd.f32 %v1576_v9, %v1497_v10 }
 0x20d   : > { %v3809_v14 = vadd.f32 %v1595_v61, %v1498_v22 }
 0x210   : > { %v1749_v23 = vpop.f32.mrf.mxu2 }
 0x211   : > { %v1676_v13 = vpop.f32.mrf.mxu0  ;;  %v1768_v63 = vpop.f32.mrf.mxu3 }
 0x212   : > { %v1695_v17 = vpop.f32.mrf.mxu1  ;;  %v1705_v32 = vadd.f32 %v1676_v13, %v1598_v8 }
 0x213   : > { %v1706_v1 = vadd.f32 %v1695_v17, %v1599_v59 }
 0x214   : > { %v1776_v29 = vadd.f32 %v1747_v31, %v1705_v32 }
 0x215   : > { %v1777_v25 = vadd.f32 %v1766_v50, %v1706_v1 }
 0x218   : > { %v1752_v47 = vpop.f32.mrf.mxu2 }
 0x219   : > { %v1678_v56 = vpop.f32.mrf.mxu0  ;;  %v1771_v24 = vpop.f32.mrf.mxu3 }
 0x21a   : > { %v1697_v57 = vpop.f32.mrf.mxu1  ;;  %v1707_v30 = vadd.f32 %v1678_v56, %v1600_v58 }
 0x21b   : > { %v1708_v38 = vadd.f32 %v1697_v57, %v1601_v42 }
 0x21c   : > { %v1778_v48 = vadd.f32 %v1749_v23, %v1707_v30 }
 0x21d   : > { %v1779_v53 = vadd.f32 %v1768_v63, %v1708_v38 }
 0x220   : > { %v3811_v15 = vpop.f32.mrf.mxu2 }
 0x221   : > { %v1681_v44 = vpop.f32.mrf.mxu0  ;;  %v3813_v5 = vpop.f32.mrf.mxu3 }
 0x222   : > { %v1700_v19 = vpop.f32.mrf.mxu1  ;;  %v1709_v10 = vadd.f32 %v1681_v44, %v3803_v49 }
 0x223   : > { %v1710_v58 = vadd.f32 %v1700_v19, %v3805_v52 }
 0x224   : > { %v1780_v49 = vadd.f32 %v1752_v47, %v1709_v10 }
 0x225   : > { %v1781_v57 = vadd.f32 %v1771_v24, %v1710_v58 }
 0x228   : > { %v1961_v3 = vpop.f32.mrf.mxu2 }
 0x229   : > { %v3815_v20 = vpop.f32.mrf.mxu0  ;;  %v1980_v7 = vpop.f32.mrf.mxu3 }
 0x22a   : > { %v3817_v4 = vpop.f32.mrf.mxu1 }
 0x230   : > { %v1963_v39 = vpop.f32.mrf.mxu2 }
 0x231   : > { %v1854_v2 = vpop.f32.mrf.mxu0  ;;  %v1982_v28 = vpop.f32.mrf.mxu3 }
 0x232   : > { %v1873_v12 = vpop.f32.mrf.mxu1  ;;  %v1883_v34 = vadd.f32 %v1854_v2, %v1776_v29 }
 0x233   : > { %v1884_v55 = vadd.f32 %v1873_v12, %v1777_v25 }
 0x234   : > { %v1990_v40 = vadd.f32 %v1961_v3, %v1883_v34  ;;  %v2224_v19 = vpop.permute.xlu0 %2223 }
 0x235   : > { %v1991_v62 = vadd.f32 %v1980_v7, %v1884_v55  ;;  %v2219_v54 = vpop.permute.xlu2 %2218 }
 0x238   : > { %v1966_v35 = vpop.f32.mrf.mxu2 }
 0x239   : > { %v1856_v21 = vpop.f32.mrf.mxu0  ;;  %v1985_v51 = vpop.f32.mrf.mxu3 }
 0x23a   : > { %v1875_v36 = vpop.f32.mrf.mxu1  ;;  %v1885_v60 = vadd.f32 %v1856_v21, %v1778_v48 }
 0x23b   : > { %v1886_v61 = vadd.f32 %v1875_v36, %v1779_v53 }
 0x23c   : > { %v1992_v22 = vadd.f32 %v1963_v39, %v1885_v60  ;;  %v1711_v39 = vadd.f32 %v3815_v20, %v3807_v41 }
 0x23d   : > { %v1993_v31 = vadd.f32 %v1982_v28, %v1886_v61  ;;  %v1712_v28 = vadd.f32 %v3817_v4, %v3809_v14  ;;  %v2229_v14 = vpop.permute.xlu1 %2228 }
 0x23e   : > { %v1782_v34 = vadd.f32 %v3811_v15, %v1711_v39 }
 0x23f   : > { %v1783_v55 = vadd.f32 %v3813_v5, %v1712_v28 }
 0x240   : > { %v3819_v27 = vpop.f32.mrf.mxu2 }
 0x241   : > { %v1859_v43 = vpop.f32.mrf.mxu0  ;;  %v3821_v18 = vpop.f32.mrf.mxu3 }
 0x242   : > { %v1878_v26 = vpop.f32.mrf.mxu1  ;;  %v1887_v3 = vadd.f32 %v1859_v43, %v1780_v49 }
 0x243   : > { %v1888_v7 = vadd.f32 %v1878_v26, %v1781_v57 }
 0x244   : > { %v1994_v24 = vadd.f32 %v1966_v35, %v1887_v3 }
 0x245   : > { %v1995_v36 = vadd.f32 %v1985_v51, %v1888_v7 }
 0x249   : > { %v3823_v6 = vpop.f32.mrf.mxu0 }
 0x24a   : > { %v3825_v45 = vpop.f32.mrf.mxu1  ;;  %v1889_v4 = vadd.f32 %v3823_v6, %v1782_v34 }
 0x24b   : > { %v1890_v35 = vadd.f32 %v3825_v45, %v1783_v55 }
 0x24d   : > { %v1997_v15 = vadd.f32 %v3821_v18, %v1890_v35 }
 0x257   : > { %v2175_v0 = vpop.f32.mrf.mxu2  ;;  %v2194_v37 = vpop.f32.mrf.mxu3 }
 0x259   : > { %v2068_v8 = vpop.f32.mrf.mxu0  ;;  %v2087_v59 = vpop.f32.mrf.mxu1 }
 0x25a   : > { %v2097_v11 = vadd.f32 %v2068_v8, %v1990_v40  ;;  %v2098_v9 = vadd.f32 %v2087_v59, %v1991_v62  ;;  %v1996_v62 = vadd.f32 %v3819_v27, %v1889_v4 }
 0x25c   : > { %v2204_v16 = vadd.f32 %v2175_v0, %v2097_v11  ;;  %v2205_v46 = vadd.f32 %v2194_v37, %v2098_v9  ;;  %v2234_v9 = vpop.permute.xlu2 %2233 }
 0x25e   : > { %v2236_v42 = vadd.f32 %v2219_v54, %v2204_v16  ;;  %v2237_v33 = vadd.f32 %v2219_v54, %v2205_v46 }
 0x25f   : > { %v2177_v17 = vpop.f32.mrf.mxu2  ;;  %v2196_v23 = vpop.f32.mrf.mxu3 }
 0x260   : > { %v2244_v50 = vmax.f32 %v2236_v42, 0.0  ;;  %v2245_v13 = vmax.f32 %v2237_v33, 0.0 }
 0x261   : > { %v2070_v63 = vpop.f32.mrf.mxu0  ;;  %v2089_v56 = vpop.f32.mrf.mxu1 }
 0x262   : > { %2252 = vst [vmem:[%s3833_s20] sm:$0xff] %v2244_v50  ;;  %v2099_v52 = vadd.f32 %v2070_v63, %v1992_v22  ;;  %v2100_v44 = vadd.f32 %v2089_v56, %v1993_v31 }
 0x263   : > { %2253 = vst [vmem:[%s3833_s20 + $0x8] sm:$0xff] %v2245_v13 }
 0x264   : > { %v2206_v2 = vadd.f32 %v2177_v17, %v2099_v52  ;;  %v2207_v12 = vadd.f32 %v2196_v23, %v2100_v44 }
 0x266   : > { %v2238_v21 = vadd.f32 %v2224_v19, %v2206_v2  ;;  %v2239_v47 = vadd.f32 %v2224_v19, %v2207_v12 }
 0x267   : > { %v2180_v29 = vpop.f32.mrf.mxu2  ;;  %v2199_v25 = vpop.f32.mrf.mxu3 }
 0x268   : > { %v2246_v32 = vmax.f32 %v2238_v21, 0.0  ;;  %v2247_v1 = vmax.f32 %v2239_v47, 0.0 }
 0x269   : > { %v2073_v43 = vpop.f32.mrf.mxu0  ;;  %v2092_v26 = vpop.f32.mrf.mxu1 }
 0x26a   : > { %2254 = vst [vmem:[%s3833_s20 + $0x10] sm:$0xff] %v2246_v32  ;;  %v2101_v41 = vadd.f32 %v2073_v43, %v1994_v24  ;;  %v2102_v20 = vadd.f32 %v2092_v26, %v1995_v36 }
 0x26b   : > { %2255 = vst [vmem:[%s3833_s20 + $0x18] sm:$0xff] %v2247_v1 }
 0x26c   : > { %v2208_v51 = vadd.f32 %v2180_v29, %v2101_v41  ;;  %v2209_v30 = vadd.f32 %v2199_v25, %v2102_v20 }
 0x26e   : > { %v2240_v38 = vadd.f32 %v2229_v14, %v2208_v51  ;;  %v2241_v40 = vadd.f32 %v2229_v14, %v2209_v30 }
 0x26f   : > { %v2182_v6 = vpop.f32.mrf.mxu2  ;;  %v2201_v45 = vpop.f32.mrf.mxu3 }
 0x270   : > { %v2248_v5 = vmax.f32 %v2240_v38, 0.0  ;;  %v2249_v0 = vmax.f32 %v2241_v40, 0.0 }
 0x271   : > { %v2075_v37 = vpop.f32.mrf.mxu0  ;;  %v2094_v8 = vpop.f32.mrf.mxu1 }
 0x272   : > { %2256 = vst [vmem:[%s3833_s20 + $0x20] sm:$0xff] %v2248_v5  ;;  %v2103_v59 = vadd.f32 %v2075_v37, %v1996_v62  ;;  %v2104_v48 = vadd.f32 %v2094_v8, %v1997_v15 }
 0x273   : > { %2257 = vst [vmem:[%s3833_s20 + $0x28] sm:$0xff] %v2249_v0 }
 0x274   : > { %v2210_v53 = vadd.f32 %v2182_v6, %v2103_v59  ;;  %v2211_v11 = vadd.f32 %v2201_v45, %v2104_v48 }
 0x276   : > { %v2242_v54 = vadd.f32 %v2234_v9, %v2210_v53  ;;  %v2243_v60 = vadd.f32 %v2234_v9, %v2211_v11 }
 0x278   : > { %v2250_v27 = vmax.f32 %v2242_v54, 0.0  ;;  %v2251_v61 = vmax.f32 %v2243_v60, 0.0 }
 0x27a   : > { %2258 = vst [vmem:[%s3833_s20 + $0x30] sm:$0xff] %v2250_v27 }
 0x27b   : > { %2259 = vst [vmem:[%s3833_s20 + $0x38] sm:$0xff] %v2251_v61 }
 0x27c PF: > { %s16_s21 = sadd.s32 1, %s2519_s21  }
 0x27d   : > { %p13_p4 = scmp.ge.s32.totalorder %s16_s21, 4  }
 0x27f   :  { %15 = sbr.rel (!%p13_p4) target bundleno = 1 (0x1), region = 101 }

// kernel: _forward_core.7
= control target key start
LH: loop header
LB: loop body
LE: loop exit
PB: predicated region body
PF: predicated region fallthrough
CT: control target
= control target key end

     0   :  { %vm75_vm0 = vcmask 1041408   ;;  %vm71_vm1 = vcmask 15360   ;;  %vm99_vm2 = vcmask 392192   ;;  %s2824_s21 = smov 32   ;;  %vm240_vm6 = vcmask 261120   ;;  %s2827_s13 = smov 112   ;;  %s3989_s2 = inlined_call_operand.vmem [shape: f32[2,48], index: 2, kind: input, shape index: {}]   ;;  %s3990_s0 = inlined_call_operand.vmem [shape: f32[8,2], index: 0, kind: input, shape index: {}]   ;;  %s3991_s5 = inlined_call_operand.vmem [shape: f32[48,192], index: 5, kind: input, shape index: {}]   ;;  %s3992_s4 = inlined_call_operand.vmem [shape: f32[48,192], index: 4, kind: input, shape index: {}]   ;;  %s3993_s3 = inlined_call_operand.vmem [shape: f32[1,48], index: 3, kind: input, shape index: {}]   ;;  %s3994_s1 = inlined_call_operand.vmem [shape: f32[8,48], index: 1, kind: input, shape index: {}]   ;;  %s3995_s6 = inlined_call_operand.vmem [shape: f32[1,192], index: 6, kind: input, shape index: {}]   ;;  %s3996_s8 = inlined_call_operand.vmem [shape: f32[1,2], index: 8, kind: input, shape index: {}]   ;;  %s3997_s7 = inlined_call_operand.vmem [shape: f32[48,2], index: 7, kind: input, shape index: {}]   ;;  %s3998_s9 = inlined_call_operand.vmem [shape: f32[8,24], index: 9, kind: output, shape index: {}]  }
   0x1   :  { %v2892_v0 = vld [vmem:[%s3989_s2] sm:$0x3]  ;;  %v2900_v2 = vld [vmem:[%s3991_s5 + $0x58] sm:$0xff]  ;;  %v2908_v3 = vld [vmem:[%s3991_s5 + $0x48] sm:$0xff]  ;;  %s2830_s16 = smov 14   ;;  %s2831_s17 = smov 20  }
   0x2   :  { %v67_v1 = vld [vmem:[%s3990_s0] sm:$0xff]  ;;  %2478 = vmatpush.msk.msra.mxu0 %vm75_vm0, %v2892_v0  ;;  %133 = vmatpush.msra.mxu2 %v2900_v2  ;;  %v2914_v4 = vld [vmem:[%s3991_s5 + $0x38] sm:$0xff]  ;;  %v2919_v5 = vld [vmem:[%s3992_s4 + $0x50] sm:$0xff]  ;;  %s2832_s0 = smov 4   ;;  %s2833_s19 = smov 10  }
   0x3   :  { %2479 = vmatmul.msk.f32.vlgmr.msra.gmra.mxu0 %vm71_vm1, %v67_v1  ;;  %v2924_v6 = vld [vmem:[%s3992_s4 + $0x58] sm:$0xff]  ;;  %156 = vmatpush.msra.mxu3 %v2919_v5  ;;  %v2931_v7 = vld [vmem:[%s3992_s4 + $0x40] sm:$0xff]  ;;  %v2936_v8 = vld [vmem:[%s3992_s4 + $0x48] sm:$0xff]  ;;  %s2834_s20 = smov 16   ;;  %s2836_s22 = smov 12  }
   0x4   :  { %134 = vmatpush.msra.mxu2 %v2908_v3  ;;  %v2941_v9 = vld [vmem:[%s3991_s5 + $0x28] sm:$0xff]  ;;  %176 = vmatpush.msrb.mxu0 %v2924_v6  ;;  %v2947_v10 = vld [vmem:[%s3992_s4 + $0x30] sm:$0xff]  ;;  %v2954_v11 = vld [vmem:[%s3992_s4 + $0x38] sm:$0xff]  ;;  %s2837_s23 = smov 18  }
   0x5   :  { %157 = vmatpush.msra.mxu3 %v2931_v7  ;;  %v2959_v12 = vld [vmem:[%s3991_s5 + $0x50] sm:$0xff]  ;;  %v2964_v13 = vld [vmem:[%s3991_s5 + $0x18] sm:$0xff]  ;;  %v2971_v14 = vld [vmem:[%s3992_s4 + $0x20] sm:$0xff] }
   0x6   :  { %135 = vmatpush.msra.mxu2 %v2914_v4  ;;  %177 = vmatpush.msrb.mxu0 %v2936_v8  ;;  %v2978_v15 = vld [vmem:[%s3992_s4 + $0x28] sm:$0xff]  ;;  %v66_v17 = vld [vmem:[%s3994_s1] sm:$0xff]  ;;  %v3008_v19 = vld [vmem:[%s3992_s4 + $0x10] sm:$0xff]  ;;  %s2826_s1 = smov 96  }
   0x7   :  { %113 = vmatpush.msra.mxu1 %v2959_v12  ;;  %158 = vmatpush.msra.mxu3 %v2947_v10  ;;  %v2983_v16 = vld [vmem:[%s3991_s5 + $0x8] sm:$0xff]  ;;  %v3003_v18 = vld [vmem:[%s3991_s5 + $0x40] sm:$0xff]  ;;  %v3013_v20 = vld [vmem:[%s3992_s4 + $0x18] sm:$0xff] }
   0x8   :  { %136 = vmatpush.msra.mxu2 %v2941_v9  ;;  %178 = vmatpush.msrb.mxu0 %v2954_v11  ;;  %v3021_v21 = vld [vmem:[%s3991_s5 + $0x30] sm:$0xff]  ;;  %v3026_v22 = vld [vmem:[%s3992_s4] sm:$0xff]  ;;  %v3031_v23 = vld [vmem:[%s3992_s4 + $0x8] sm:$0xff] }
   0x9   :  { %159 = vmatpush.msra.mxu3 %v2971_v14  ;;  %114 = vmatpush.msra.mxu1 %v3003_v18  ;;  %v3040_v24 = vld [vmem:[%s3991_s5 + $0x20] sm:$0xff]  ;;  %v3045_v25 = vld [vmem:[%s3991_s5 + $0x10] sm:$0xff] }
   0xa   :  { %137 = vmatpush.msra.mxu2 %v2964_v13  ;;  %179 = vmatpush.msrb.mxu0 %v2978_v15  ;;  %v3053_v26 = vld [vmem:[%s3991_s5] sm:$0xff] }
   0xb   :  { %160 = vmatpush.msra.mxu3 %v3008_v19  ;;  %115 = vmatpush.msra.mxu1 %v3021_v21  ;;  %v3072_v27 = vld [vmem:[%s3993_s3] ss:$0 sm:$0xff] }
   0xc   :  { %138 = vmatpush.msra.mxu2 %v2983_v16  ;;  %180 = vmatpush.msrb.mxu0 %v3013_v20  ;;  %v58_v30 = vld [vmem:[%s3995_s6] sm:$0x3]  ;;  %s2825_s6 = smov 48  }
   0xd   :  { %2481 = vmatmul.msk.f32.vlgmr.msra.gmra.mxu2 %vm99_vm2, %v66_v17  ;;  %161 = vmatpush.msra.mxu3 %v3026_v22  ;;  %v3082_v32 = vperm.slane %v58_v30, 0  ;;  %v3085_v39 = vperm.slane %v58_v30, 1  ;;  %v3104_v30 = vld [vmem:[%s3997_s7 + $0x20] sm:$0xff] }
   0xe   :  { %2487 = vmatpush.msk.msrb.mxu2 %vm75_vm0, %v2892_v0  ;;  %181 = vmatpush.msrb.mxu0 %v3031_v23 }
   0xf   :  { %317 = vmatpush.msrb.mxu3 %v2959_v12  ;;  %116 = vmatpush.msra.mxu1 %v3040_v24 }
  0x10   :  { %360 = vmatpush.msra.mxu2 %v2919_v5  ;;  %337 = vmatpush.msra.mxu0 %v2900_v2 }
  0x11   :  { %318 = vmatpush.msrb.mxu3 %v3003_v18  ;;  %117 = vmatpush.msra.mxu1 %v3045_v25 }
  0x12   :  { %361 = vmatpush.msra.mxu2 %v2931_v7  ;;  %338 = vmatpush.msra.mxu0 %v2908_v3 }
  0x13   :  { %319 = vmatpush.msrb.mxu3 %v3021_v21  ;;  %118 = vmatpush.msra.mxu1 %v3053_v26 }
  0x14   :  { %362 = vmatpush.msra.mxu2 %v2947_v10  ;;  %339 = vmatpush.msra.mxu0 %v2914_v4 }
  0x15   :  { %2480 = vmatmul.msk.f32.vlgmr.msra.gmra.mxu1 %vm99_vm2, %v66_v17  ;;  %320 = vmatpush.msrb.mxu3 %v3040_v24 }
  0x16   :  { %363 = vmatpush.msra.mxu2 %v2971_v14  ;;  %340 = vmatpush.msra.mxu0 %v2941_v9 }
  0x17   :  { %321 = vmatpush.msrb.mxu3 %v3045_v25 }
  0x18   :  { %364 = vmatpush.msra.mxu2 %v3008_v19  ;;  %341 = vmatpush.msra.mxu0 %v2964_v13 }
  0x19   :  { %322 = vmatpush.msrb.mxu3 %v3053_v26 }
  0x1a   :  { %365 = vmatpush.msra.mxu2 %v3026_v22  ;;  %342 = vmatpush.msra.mxu0 %v2983_v16 }
  0x80   :  { %v96_v28 = vpop.f32.mrf.mxu0 }
  0x81   :  { %v97_v29 = vadd.f32 %v3072_v27, %v96_v28 }
  0x83   :  { %2482 = vmatmul.msk.f32.vlgmr.msra.gmra.mxu3 %vm99_vm2, %v97_v29  ;;  %2483 = vmatmul.msk.f32.vlgmr.msrb.gmra.mxu0 %vm99_vm2, %v97_v29  ;;  %v3099_v29 = vld [vmem:[%s3997_s7 + $0x28] sm:$0xff] }
  0x84   :  { %2496 = vmatpush.msk.msrb.mxu0 %vm75_vm0, %v2892_v0  ;;  %273 = vmatpush.msrb.mxu1 %v3099_v29 }
  0x85   :  { %468 = vmatpush.msra.mxu3 %v3099_v29 }
  0x86   :  { %274 = vmatpush.msrb.mxu1 %v3104_v30 }
  0x87   :  { %469 = vmatpush.msra.mxu3 %v3104_v30 }
  0x90   :  { %v140_v35 = vpop.f32.mrf.mxu2 }
  0x92   :  { %v120_v31 = vpop.f32.mrf.mxu1 }
 0x100   :  { %v183_v36 = vpop.f32.mrf.mxu0 }
 0x101   :  { %v184_v38 = vadd.f32 %v183_v36, %v140_v35  ;;  %v3132_v36 = vld [vmem:[%s3997_s7] sm:$0xff] }
 0x103   :  { %v192_v40 = vadd.f32 %v3085_v39, %v184_v38 }
 0x105   :  { %v2485_v1 = vmul.f32 -1.442695, %v192_v40 }
 0x106   :  { %v163_v33 = vpop.f32.mrf.mxu3 }
 0x107   :  { %v164_v34 = vadd.f32 %v163_v33, %v120_v31  ;;  %v3111_v31 = vld [vmem:[%s3997_s7 + $0x18] sm:$0xff]  ;;  %v3118_v33 = vld [vmem:[%s3997_s7 + $0x10] sm:$0xff] }
 0x108   :  { %275 = vmatpush.msrb.mxu1 %v3111_v31  ;;  %470 = vmatpush.msra.mxu3 %v3111_v31 }
 0x109   :  { %v191_v37 = vadd.f32 %v3082_v32, %v164_v34  ;;  %v3125_v34 = vld [vmem:[%s3997_s7 + $0x8] sm:$0xff] }
 0x10a   :  { %276 = vmatpush.msrb.mxu1 %v3118_v33  ;;  %471 = vmatpush.msra.mxu3 %v3118_v33 }
 0x10b   :  { %2603 = vtanh.f32 %v191_v37  ;;  %v2484_v43 = vmul.f32 -1.442695, %v191_v37 }
 0x10c   :  { %2605 = vtanh.f32 %v192_v40  ;;  %277 = vmatpush.msrb.mxu1 %v3125_v34  ;;  %472 = vmatpush.msra.mxu3 %v3125_v34 }
 0x10d   :  { %2607 = vpow2.f32 %v2484_v43 }
 0x10e   :  { %278 = vmatpush.msrb.mxu1 %v3132_v36  ;;  %473 = vmatpush.msra.mxu3 %v3132_v36 }
 0x110   :  { %380 = vmatpush.msra.mxu1 %v2924_v6 }
 0x111   :  { %v2604_v41 = vpop.eup %2603 }
 0x112   :  { %236 = vrot.lane.b32.xlu0 %v2604_v41, %s2824_s21  ;;  %v2606_v42 = vpop.eup %2605  ;;  %381 = vmatpush.msra.mxu1 %v2936_v8 }
 0x113   :  { %v2608_v44 = vpop.eup %2607 }
 0x114   :  { %v196_v45 = vadd.f32 1.0, %v2608_v44  ;;  %382 = vmatpush.msra.mxu1 %v2954_v11 }
 0x116   :  { %2609 = vrcp.f32 %v196_v45  ;;  %v208_v52 = vand.u32 2147483648, %v196_v45  ;;  %vm202_vm4 = vweird.f32 %v196_v45  ;;  %v206_v53 = vand.u32 2147483647, %v196_v45  ;;  %383 = vmatpush.msra.mxu1 %v2978_v15 }
 0x118   :  { %v209_v55 = vor.u32 1.1754944e-38, %v208_v52  ;;  %vm207_vm7 = vcmp.eq.f32.partialorder %v206_v53, 8.507059e+37  ;;  %384 = vmatpush.msra.mxu1 %v3013_v20 }
 0x11a   :  { %238 = vrot.lane.b32.xlu0 %v2606_v42, %s2824_s21  ;;  %385 = vmatpush.msra.mxu1 %v3031_v23 }
 0x11c   :  { %v2610_v46 = vpop.eup %2609 }
 0x11d   :  { %v198_v47 = vmul.f32 %v2610_v46, %v196_v45  ;;  %vm203_vm3 = vweird.f32 %v2610_v46 }
 0x11e   :  { %vm204_vm5 = vmor %vm202_vm4, %vm203_vm3 }
 0x11f   :  { %v199_v48 = vsub.f32 1.0, %v198_v47 }
 0x121   :  { %v200_v49 = vmul.f32 %v2610_v46, %v199_v48 }
 0x123   :  { %v201_v51 = vadd.f32 %v2610_v46, %v200_v49 }
 0x125   :  { %v205_v54 = vsel %vm204_vm5, %v2610_v46, %v201_v51 }
 0x126   :  { %v210_v58 = vsel %vm207_vm7, %v209_v55, %v205_v54 }
 0x127   :  { %v233_v60 = vmul.f32 0.0, %v210_v58 }
 0x184   :  { %v237_v50 = vpop.permute.xlu0 %236 }
 0x18c   :  { %v239_v56 = vpop.permute.xlu0 %238 }
 0x18d   :  { %v241_v57 = vsel %vm240_vm6, %v237_v50, %v239_v56  ;;  %v3169_v50 = vld [vmem:[%s3996_s8] ss:$0 sm:$0xff] }
 0x18e   :  { %v243_v59 = vmul.f32 %v241_v57, %v210_v58 }
 0x190   :  { %245 = vrot.lane.b32.xlu1 %v243_v59, %s2825_s6 }
 0x202   :  { %v246_v61 = vpop.permute.xlu1 %245 }
 0x203   :  { %v3092_v62 = vadd.f32 %v246_v61, %v233_v60 }
 0x205   :  { %2611 = vtanh.f32 %v3092_v62 }
 0x206   :  { %2613 = vpow2.f32 %v2485_v1 }
 0x20b   :  { %v2612_v63 = vpop.eup %2611 }
 0x20c   :  { %251 = vrot.lane.b32.xlu1 %v2612_v63, %s2826_s1  ;;  %v2614_v17 = vpop.eup %2613 }
 0x20d   :  { %v217_v28 = vadd.f32 1.0, %v2614_v17 }
 0x20f   :  { %2615 = vrcp.f32 %v217_v28  ;;  %v229_v42 = vand.u32 2147483648, %v217_v28  ;;  %vm223_vm9 = vweird.f32 %v217_v28  ;;  %v227_v43 = vand.u32 2147483647, %v217_v28 }
 0x211   :  { %v230_v45 = vor.u32 1.1754944e-38, %v229_v42  ;;  %vm228_vm11 = vcmp.eq.f32.partialorder %v227_v43, 8.507059e+37 }
 0x215   :  { %v2616_v35 = vpop.eup %2615 }
 0x216   :  { %v219_v37 = vmul.f32 %v2616_v35, %v217_v28  ;;  %vm224_vm8 = vweird.f32 %v2616_v35 }
 0x217   :  { %vm225_vm10 = vmor %vm223_vm9, %vm224_vm8 }
 0x218   :  { %v220_v38 = vsub.f32 1.0, %v219_v37 }
 0x21a   :  { %v221_v40 = vmul.f32 %v2616_v35, %v220_v38 }
 0x21c   :  { %v222_v41 = vadd.f32 %v2616_v35, %v221_v40 }
 0x21e   :  { %v226_v44 = vsel %vm225_vm10, %v2616_v35, %v222_v41 }
 0x21f   :  { %v231_v46 = vsel %vm228_vm11, %v230_v45, %v226_v44 }
 0x27e   :  { %v252_v47 = vpop.permute.xlu1 %251 }
 0x27f   :  { %v254_v48 = vmul.f32 %v252_v47, %v231_v46 }
 0x281   :  { %259 = vrot.lane.b32.xlu2 %v254_v48, %s2827_s13 }
 0x2db   :  { %v260_v49 = vpop.permute.xlu2 %259 }
 0x2dc   :  { %2486 = vmatmul.msk.f32.vlgmr.msrb.gmra.mxu1 %vm99_vm2, %v260_v49  ;;  %2489 = vmatmul.msk.f32.vlgmr.msrb.gmra.mxu3 %vm99_vm2, %v260_v49 }
 0x2dd   :  { %2490 = vmatmul.msk.f32.vlgmr.msra.gmra.mxu0 %vm99_vm2, %v260_v49  ;;  %559 = vmatpush.msrb.mxu1 %v2919_v5 }
 0x2de   :  { %536 = vmatpush.msra.mxu0 %v2900_v2  ;;  %579 = vmatpush.msrb.mxu3 %v2924_v6 }
 0x2df   :  { %560 = vmatpush.msrb.mxu1 %v2931_v7 }
 0x2e0   :  { %537 = vmatpush.msra.mxu0 %v2908_v3  ;;  %580 = vmatpush.msrb.mxu3 %v2936_v8 }
 0x2e1   :  { %561 = vmatpush.msrb.mxu1 %v2947_v10 }
 0x2e2   :  { %538 = vmatpush.msra.mxu0 %v2914_v4  ;;  %581 = vmatpush.msrb.mxu3 %v2954_v11 }
 0x2e3   :  { %562 = vmatpush.msrb.mxu1 %v2971_v14 }
 0x2e4   :  { %539 = vmatpush.msra.mxu0 %v2941_v9  ;;  %582 = vmatpush.msrb.mxu3 %v2978_v15 }
 0x2e5   :  { %563 = vmatpush.msrb.mxu1 %v3008_v19 }
 0x2e6   :  { %540 = vmatpush.msra.mxu0 %v2964_v13  ;;  %583 = vmatpush.msrb.mxu3 %v3013_v20 }
 0x2e7   :  { %564 = vmatpush.msrb.mxu1 %v3026_v22 }
 0x2e8   :  { %541 = vmatpush.msra.mxu0 %v2983_v16  ;;  %584 = vmatpush.msrb.mxu3 %v3031_v23 }
 0x359   :  { %v280_v51 = vpop.f32.mrf.mxu1 }
 0x35a   :  { %v281_v52 = vadd.f32 %v3169_v50, %v280_v51  ;;  %v344_v55 = vpop.f32.mrf.mxu0 }
 0x35c   :  { %283 = vst.msk [vmem:[%s3998_s9] sm:$0xff] %vm71_vm1, %v281_v52  ;;  %2488 = vmatmul.msk.f32.vlgmr.msrb.gmra.mxu2 %vm71_vm1, %v281_v52 }
 0x35d   :  { %516 = vmatpush.msrb.mxu2 %v2959_v12 }
 0x35f   :  { %517 = vmatpush.msrb.mxu2 %v3003_v18  ;;  %v324_v59 = vpop.f32.mrf.mxu3 }
 0x361   :  { %518 = vmatpush.msrb.mxu2 %v3021_v21 }
 0x363   :  { %519 = vmatpush.msrb.mxu2 %v3040_v24 }
 0x365   :  { %520 = vmatpush.msrb.mxu2 %v3045_v25 }
 0x367   :  { %521 = vmatpush.msrb.mxu2 %v3053_v26 }
 0x3df   :  { %v304_v53 = vpop.f32.mrf.mxu2 }
 0x3e0   :  { %v305_v54 = vadd.f32 %v3072_v27, %v304_v53 }
 0x3e2   :  { %2491 = vmatmul.msk.f32.vlgmr.msra.gmra.mxu2 %vm99_vm2, %v305_v54  ;;  %2492 = vmatmul.msk.f32.vlgmr.msra.gmra.mxu1 %vm99_vm2, %v305_v54 }
 0x3e3   :  { %667 = vmatpush.msra.mxu2 %v3099_v29  ;;  %715 = vmatpush.msra.mxu1 %v2959_v12 }
 0x3e5   :  { %668 = vmatpush.msra.mxu2 %v3104_v30  ;;  %716 = vmatpush.msra.mxu1 %v3003_v18 }
 0x3e7   :  { %669 = vmatpush.msra.mxu2 %v3111_v31  ;;  %717 = vmatpush.msra.mxu1 %v3021_v21 }
 0x3e9   :  { %670 = vmatpush.msra.mxu2 %v3118_v33  ;;  %718 = vmatpush.msra.mxu1 %v3040_v24 }
 0x3eb   :  { %671 = vmatpush.msra.mxu2 %v3125_v34  ;;  %719 = vmatpush.msra.mxu1 %v3045_v25 }
 0x3ed   :  { %672 = vmatpush.msra.mxu2 %v3132_v36  ;;  %720 = vmatpush.msra.mxu1 %v3053_v26 }
 0x45f   :  { %v387_v56 = vpop.f32.mrf.mxu1 }
 0x460   :  { %v388_v57 = vadd.f32 %v387_v56, %v344_v55 }
 0x462   :  { %v391_v58 = vadd.f32 %v388_v57, %v3085_v39 }
 0x464   :  { %2617 = vtanh.f32 %v391_v58 }
 0x465   :  { %v367_v60 = vpop.f32.mrf.mxu2 }
 0x466   :  { %v368_v61 = vadd.f32 %v367_v60, %v324_v59  ;;  %v2494_v59 = vmul.f32 -1.442695, %v391_v58 }
 0x468   :  { %v390_v63 = vadd.f32 %v368_v61, %v3082_v32 }
 0x46a   :  { %v2618_v1 = vpop.eup %2617  ;;  %2619 = vtanh.f32 %v390_v63  ;;  %v2493_v28 = vmul.f32 -1.442695, %v390_v63 }
 0x46b   :  { %437 = vrot.lane.b32.xlu0 %v2618_v1, %s2824_s21 }
 0x46c   :  { %2621 = vpow2.f32 %v2493_v28 }
 0x470   :  { %v2620_v17 = vpop.eup %2619 }
 0x471   :  { %435 = vrot.lane.b32.xlu2 %v2620_v17, %s2824_s21 }
 0x472   :  { %v2622_v35 = vpop.eup %2621 }
 0x473   :  { %v395_v37 = vadd.f32 1.0, %v2622_v35 }
 0x475   :  { %2623 = vrcp.f32 %v395_v37  ;;  %v407_v44 = vand.u32 2147483648, %v395_v37  ;;  %vm401_vm13 = vweird.f32 %v395_v37  ;;  %v405_v45 = vand.u32 2147483647, %v395_v37 }
 0x477   :  { %v408_v47 = vor.u32 1.1754944e-38, %v407_v44  ;;  %vm406_vm15 = vcmp.eq.f32.partialorder %v405_v45, 8.507059e+37 }
 0x47b   :  { %v2624_v38 = vpop.eup %2623 }
 0x47c   :  { %v397_v40 = vmul.f32 %v2624_v38, %v395_v37  ;;  %vm402_vm12 = vweird.f32 %v2624_v38 }
 0x47d   :  { %vm403_vm14 = vmor %vm401_vm13, %vm402_vm12 }
 0x47e   :  { %v398_v41 = vsub.f32 1.0, %v397_v40 }
 0x480   :  { %v399_v42 = vmul.f32 %v2624_v38, %v398_v41 }
 0x482   :  { %v400_v43 = vadd.f32 %v2624_v38, %v399_v42 }
 0x484   :  { %v404_v46 = vsel %vm403_vm14, %v2624_v38, %v400_v43 }
 0x485   :  { %v409_v51 = vsel %vm406_vm15, %v408_v47, %v404_v46 }
 0x486   :  { %v432_v54 = vmul.f32 %v409_v51, %v3092_v62 }
 0x4cb   :  { %v436_v48 = vpop.permute.xlu2 %435 }
 0x4dd   :  { %v438_v49 = vpop.permute.xlu0 %437 }
 0x4de   :  { %v439_v52 = vsel %vm240_vm6, %v436_v48, %v438_v49 }
 0x4df   :  { %v441_v53 = vmul.f32 %v439_v52, %v409_v51 }
 0x4e1   :  { %443 = vrot.lane.b32.xlu1 %v441_v53, %s2825_s6 }
 0x553   :  { %v444_v55 = vpop.permute.xlu1 %443 }
 0x554   :  { %v3205_v56 = vadd.f32 %v444_v55, %v432_v54 }
 0x556   :  { %2625 = vtanh.f32 %v3205_v56 }
 0x557   :  { %2627 = vpow2.f32 %v2494_v59 }
 0x55c   :  { %v2626_v57 = vpop.eup %2625 }
 0x55d   :  { %449 = vrot.lane.b32.xlu2 %v2626_v57, %s2826_s1  ;;  %v2628_v60 = vpop.eup %2627 }
 0x55e   :  { %v416_v61 = vadd.f32 1.0, %v2628_v60 }
 0x560   :  { %2629 = vrcp.f32 %v416_v61  ;;  %v428_v62 = vand.u32 2147483648, %v416_v61  ;;  %vm422_vm4 = vweird.f32 %v416_v61  ;;  %v426_v37 = vand.u32 2147483647, %v416_v61 }
 0x562   :  { %v429_v40 = vor.u32 1.1754944e-38, %v428_v62  ;;  %vm427_vm7 = vcmp.eq.f32.partialorder %v426_v37, 8.507059e+37 }
 0x566   :  { %v2630_v63 = vpop.eup %2629 }
 0x567   :  { %v418_v1 = vmul.f32 %v2630_v63, %v416_v61  ;;  %vm423_vm3 = vweird.f32 %v2630_v63 }
 0x568   :  { %vm424_vm5 = vmor %vm422_vm4, %vm423_vm3 }
 0x569   :  { %v419_v17 = vsub.f32 1.0, %v418_v1 }
 0x56b   :  { %v420_v28 = vmul.f32 %v2630_v63, %v419_v17 }
 0x56d   :  { %v421_v35 = vadd.f32 %v2630_v63, %v420_v28 }
 0x56f   :  { %v425_v38 = vsel %vm424_vm5, %v2630_v63, %v421_v35 }
 0x570   :  { %v430_v41 = vsel %vm427_vm7, %v429_v40, %v425_v38 }
 0x5b7   :  { %v450_v42 = vpop.permute.xlu2 %449 }
 0x5b8   :  { %v452_v58 = vmul.f32 %v450_v42, %v430_v41 }
 0x5ba   :  { %454 = vrot.lane.b32.xlu0 %v452_v58, %s2827_s13 }
 0x62c   :  { %v455_v43 = vpop.permute.xlu0 %454 }
 0x62d   :  { %2495 = vmatmul.msk.f32.vlgmr.msra.gmra.mxu3 %vm99_vm2, %v455_v43  ;;  %2498 = vmatmul.msk.f32.vlgmr.msrb.gmra.mxu2 %vm99_vm2, %v455_v43 }
 0x62e   :  { %735 = vmatpush.msra.mxu3 %v2900_v2  ;;  %778 = vmatpush.msrb.mxu2 %v2924_v6 }
 0x630   :  { %736 = vmatpush.msra.mxu3 %v2908_v3  ;;  %779 = vmatpush.msrb.mxu2 %v2936_v8 }
 0x632   :  { %737 = vmatpush.msra.mxu3 %v2914_v4  ;;  %780 = vmatpush.msrb.mxu2 %v2954_v11 }
 0x634   :  { %738 = vmatpush.msra.mxu3 %v2941_v9  ;;  %781 = vmatpush.msrb.mxu2 %v2978_v15 }
 0x636   :  { %739 = vmatpush.msra.mxu3 %v2964_v13  ;;  %782 = vmatpush.msrb.mxu2 %v3013_v20 }
 0x638   :  { %740 = vmatpush.msra.mxu3 %v2983_v16  ;;  %783 = vmatpush.msrb.mxu2 %v3031_v23 }
 0x6b0   :  { %v475_v44 = vpop.f32.mrf.mxu3  ;;  %v523_v48 = vpop.f32.mrf.mxu2 }
 0x6b1   :  { %v3225_v45 = vadd.f32 %v3169_v50, %v475_v44 }
 0x6b3   :  { %2497 = vmatmul.msk.f32.vlgmr.msrb.gmra.mxu0 %vm71_vm1, %v3225_v45 }
 0x6b4   :  { %2505 = vmatpush.msk.msrb.mxu0 %vm75_vm0, %v2892_v0 }
 0x6bb   :  { %2499 = vmatmul.msk.f32.vlgmr.msra.gmra.mxu0 %vm99_vm2, %v455_v43 }
 0x6bc   :  { %758 = vmatpush.msra.mxu0 %v2919_v5 }
 0x6be   :  { %759 = vmatpush.msra.mxu0 %v2931_v7 }
 0x6c0   :  { %760 = vmatpush.msra.mxu0 %v2947_v10 }
 0x6c2   :  { %761 = vmatpush.msra.mxu0 %v2971_v14 }
 0x6c4   :  { %762 = vmatpush.msra.mxu0 %v3008_v19 }
 0x6c6   :  { %763 = vmatpush.msra.mxu0 %v3026_v22 }
 0x730   :  { %v503_v46 = vpop.f32.mrf.mxu0 }
 0x731   :  { %v504_v47 = vadd.f32 %v3072_v27, %v503_v46 }
 0x733   :  { %2500 = vmatmul.msk.f32.vlgmr.msrb.gmra.mxu1 %vm99_vm2, %v504_v47  ;;  %2501 = vmatmul.msk.f32.vlgmr.msrb.gmra.mxu3 %vm99_vm2, %v504_v47 }
 0x734   :  { %866 = vmatpush.msrb.mxu1 %v3099_v29  ;;  %2514 = vmatpush.msk.msrb.mxu3 %vm75_vm0, %v2892_v0 }
 0x736   :  { %867 = vmatpush.msrb.mxu1 %v3104_v30 }
 0x738   :  { %868 = vmatpush.msrb.mxu1 %v3111_v31  ;;  %v543_v53 = vpop.f32.mrf.mxu0 }
 0x73a   :  { %869 = vmatpush.msrb.mxu1 %v3118_v33 }
 0x73c   :  { %870 = vmatpush.msrb.mxu1 %v3125_v34 }
 0x73e   :  { %871 = vmatpush.msrb.mxu1 %v3132_v36 }
 0x7b0   :  { %v566_v49 = vpop.f32.mrf.mxu1 }
 0x7b1   :  { %v567_v51 = vadd.f32 %v566_v49, %v523_v48 }
 0x7b3   :  { %v589_v52 = vadd.f32 %v567_v51, %v3082_v32 }
 0x7b5   :  { %2631 = vtanh.f32 %v589_v52  ;;  %v2502_v61 = vmul.f32 -1.442695, %v589_v52 }
 0x7b6   :  { %v586_v54 = vpop.f32.mrf.mxu3 }
 0x7b7   :  { %v587_v55 = vadd.f32 %v586_v54, %v543_v53 }
 0x7b9   :  { %v590_v57 = vadd.f32 %v587_v55, %v3085_v39 }
 0x7bb   :  { %v2632_v59 = vpop.eup %2631  ;;  %2633 = vtanh.f32 %v590_v57  ;;  %v2503_v53 = vmul.f32 -1.442695, %v590_v57 }
 0x7bc   :  { %634 = vrot.lane.b32.xlu1 %v2632_v59, %s2824_s21  ;;  %2635 = vpow2.f32 %v2502_v61 }
 0x7c1   :  { %v2634_v60 = vpop.eup %2633 }
 0x7c2   :  { %636 = vrot.lane.b32.xlu2 %v2634_v60, %s2824_s21  ;;  %v2636_v63 = vpop.eup %2635 }
 0x7c3   :  { %v594_v1 = vadd.f32 1.0, %v2636_v63 }
 0x7c5   :  { %2637 = vrcp.f32 %v594_v1  ;;  %v606_v38 = vand.u32 2147483648, %v594_v1  ;;  %vm600_vm9 = vweird.f32 %v594_v1  ;;  %v604_v40 = vand.u32 2147483647, %v594_v1 }
 0x7c7   :  { %v607_v42 = vor.u32 1.1754944e-38, %v606_v38  ;;  %vm605_vm11 = vcmp.eq.f32.partialorder %v604_v40, 8.507059e+37 }
 0x7cb   :  { %v2638_v17 = vpop.eup %2637 }
 0x7cc   :  { %v596_v28 = vmul.f32 %v2638_v17, %v594_v1  ;;  %vm601_vm8 = vweird.f32 %v2638_v17 }
 0x7cd   :  { %vm602_vm10 = vmor %vm600_vm9, %vm601_vm8 }
 0x7ce   :  { %v597_v35 = vsub.f32 1.0, %v596_v28 }
 0x7d0   :  { %v598_v62 = vmul.f32 %v2638_v17, %v597_v35 }
 0x7d2   :  { %v599_v37 = vadd.f32 %v2638_v17, %v598_v62 }
 0x7d4   :  { %v603_v41 = vsel %vm602_vm10, %v2638_v17, %v599_v37 }
 0x7d5   :  { %v608_v44 = vsel %vm605_vm11, %v607_v42, %v603_v41 }
 0x7d6   :  { %v631_v48 = vmul.f32 %v608_v44, %v3205_v56 }
 0x81c   :  { %v637_v58 = vpop.permute.xlu2 %636 }
 0x82e   :  { %v635_v43 = vpop.permute.xlu1 %634 }
 0x82f   :  { %v638_v46 = vsel %vm240_vm6, %v635_v43, %v637_v58 }
 0x830   :  { %v640_v47 = vmul.f32 %v638_v46, %v608_v44 }
 0x832   :  { %642 = vrot.lane.b32.xlu0 %v640_v47, %s2825_s6 }
 0x8a4   :  { %v643_v49 = vpop.permute.xlu0 %642 }
 0x8a5   :  { %v3256_v51 = vadd.f32 %v643_v49, %v631_v48 }
 0x8a7   :  { %2639 = vtanh.f32 %v3256_v51 }
 0x8a8   :  { %2641 = vpow2.f32 %v2503_v53 }
 0x8ad   :  { %v2640_v52 = vpop.eup %2639 }
 0x8ae   :  { %648 = vrot.lane.b32.xlu1 %v2640_v52, %s2826_s1  ;;  %v2642_v54 = vpop.eup %2641 }
 0x8af   :  { %v615_v55 = vadd.f32 1.0, %v2642_v54 }
 0x8b1   :  { %2643 = vrcp.f32 %v615_v55  ;;  %v627_v56 = vand.u32 2147483648, %v615_v55  ;;  %vm621_vm13 = vweird.f32 %v615_v55  ;;  %v625_v17 = vand.u32 2147483647, %v615_v55 }
 0x8b3   :  { %v628_v35 = vor.u32 1.1754944e-38, %v627_v56  ;;  %vm626_vm15 = vcmp.eq.f32.partialorder %v625_v17, 8.507059e+37 }
 0x8b7   :  { %v2644_v59 = vpop.eup %2643 }
 0x8b8   :  { %v617_v60 = vmul.f32 %v2644_v59, %v615_v55  ;;  %vm622_vm12 = vweird.f32 %v2644_v59 }
 0x8b9   :  { %vm623_vm14 = vmor %vm621_vm13, %vm622_vm12 }
 0x8ba   :  { %v618_v61 = vsub.f32 1.0, %v617_v60 }
 0x8bc   :  { %v619_v63 = vmul.f32 %v2644_v59, %v618_v61 }
 0x8be   :  { %v620_v1 = vadd.f32 %v2644_v59, %v619_v63 }
 0x8c0   :  { %v624_v28 = vsel %vm623_vm14, %v2644_v59, %v620_v1 }
 0x8c1   :  { %v629_v62 = vsel %vm626_vm15, %v628_v35, %v624_v28 }
 0x920   :  { %v649_v37 = vpop.permute.xlu1 %648 }
 0x921   :  { %v651_v57 = vmul.f32 %v649_v37, %v629_v62 }
 0x923   :  { %653 = vrot.lane.b32.xlu2 %v651_v57, %s2827_s13 }
 0x97d   :  { %v654_v38 = vpop.permute.xlu2 %653 }
 0x97e   :  { %2504 = vmatmul.msk.f32.vlgmr.msra.gmra.mxu2 %vm99_vm2, %v654_v38  ;;  %2507 = vmatmul.msk.f32.vlgmr.msra.gmra.mxu1 %vm99_vm2, %v654_v38 }
 0x97f   :  { %2508 = vmatmul.msk.f32.vlgmr.msra.gmra.mxu3 %vm99_vm2, %v654_v38  ;;  %934 = vmatpush.msra.mxu2 %v2900_v2 }
 0x980   :  { %957 = vmatpush.msra.mxu3 %v2919_v5  ;;  %977 = vmatpush.msra.mxu1 %v2924_v6 }
 0x981   :  { %935 = vmatpush.msra.mxu2 %v2908_v3 }
 0x982   :  { %958 = vmatpush.msra.mxu3 %v2931_v7  ;;  %978 = vmatpush.msra.mxu1 %v2936_v8 }
 0x983   :  { %936 = vmatpush.msra.mxu2 %v2914_v4 }
 0x984   :  { %959 = vmatpush.msra.mxu3 %v2947_v10  ;;  %979 = vmatpush.msra.mxu1 %v2954_v11 }
 0x985   :  { %937 = vmatpush.msra.mxu2 %v2941_v9 }
 0x986   :  { %960 = vmatpush.msra.mxu3 %v2971_v14  ;;  %980 = vmatpush.msra.mxu1 %v2978_v15 }
 0x987   :  { %938 = vmatpush.msra.mxu2 %v2964_v13 }
 0x988   :  { %961 = vmatpush.msra.mxu3 %v3008_v19  ;;  %981 = vmatpush.msra.mxu1 %v3013_v20 }
 0x989   :  { %939 = vmatpush.msra.mxu2 %v2983_v16 }
 0x98a   :  { %962 = vmatpush.msra.mxu3 %v3026_v22  ;;  %982 = vmatpush.msra.mxu1 %v3031_v23 }
 0xa01   :  { %v674_v2 = vpop.f32.mrf.mxu2 }
 0xa02   :  { %v3283_v3 = vadd.f32 %v3169_v50, %v674_v2  ;;  %v742_v58 = vpop.f32.mrf.mxu3 }
 0xa04   :  { %2506 = vmatmul.msk.f32.vlgmr.msrb.gmra.mxu0 %vm71_vm1, %v3283_v3 }
 0xa05   :  { %914 = vmatpush.msrb.mxu0 %v2959_v12  ;;  %v722_v12 = vpop.f32.mrf.mxu1 }
 0xa07   :  { %915 = vmatpush.msrb.mxu0 %v3003_v18 }
 0xa09   :  { %916 = vmatpush.msrb.mxu0 %v3021_v21 }
 0xa0b   :  { %917 = vmatpush.msrb.mxu0 %v3040_v24 }
 0xa0d   :  { %918 = vmatpush.msrb.mxu0 %v3045_v25 }
 0xa0f   :  { %919 = vmatpush.msrb.mxu0 %v3053_v26 }
 0xa81   :  { %v702_v4 = vpop.f32.mrf.mxu0 }
 0xa82   :  { %v703_v9 = vadd.f32 %v3072_v27, %v702_v4 }
 0xa84   :  { %2509 = vmatmul.msk.f32.vlgmr.msra.gmra.mxu0 %vm99_vm2, %v703_v9  ;;  %2510 = vmatmul.msk.f32.vlgmr.msrb.gmra.mxu2 %vm99_vm2, %v703_v9 }
 0xa85   :  { %1065 = vmatpush.msra.mxu0 %v3099_v29  ;;  %2523 = vmatpush.msk.msrb.mxu2 %vm75_vm0, %v2892_v0 }
 0xa87   :  { %1066 = vmatpush.msra.mxu0 %v3104_v30 }
 0xa89   :  { %1067 = vmatpush.msra.mxu0 %v3111_v31 }
 0xa8b   :  { %1068 = vmatpush.msra.mxu0 %v3118_v33 }
 0xa8d   :  { %1069 = vmatpush.msra.mxu0 %v3125_v34 }
 0xa8f   :  { %1070 = vmatpush.msra.mxu0 %v3132_v36 }
 0xb01   :  { %v765_v40 = vpop.f32.mrf.mxu0 }
 0xb02   :  { %v766_v41 = vadd.f32 %v765_v40, %v722_v12 }
 0xb04   :  { %v788_v42 = vadd.f32 %v766_v41, %v3082_v32 }
 0xb06   :  { %2645 = vtanh.f32 %v788_v42  ;;  %v2511_v48 = vmul.f32 -1.442695, %v788_v42 }
 0xb07   :  { %v785_v43 = vpop.f32.mrf.mxu2 }
 0xb08   :  { %v786_v44 = vadd.f32 %v785_v43, %v742_v58 }
 0xb0a   :  { %v789_v0 = vadd.f32 %v786_v44, %v3085_v39 }
 0xb0c   :  { %v2646_v46 = vpop.eup %2645  ;;  %2647 = vtanh.f32 %v789_v0  ;;  %v2512_v9 = vmul.f32 -1.442695, %v789_v0 }
 0xb0d   :  { %833 = vrot.lane.b32.xlu0 %v2646_v46, %s2824_s21  ;;  %2649 = vpow2.f32 %v2511_v48 }
 0xb12   :  { %v2648_v47 = vpop.eup %2647 }
 0xb13   :  { %835 = vrot.lane.b32.xlu1 %v2648_v47, %s2824_s21  ;;  %v2650_v49 = vpop.eup %2649 }
 0xb14   :  { %v793_v52 = vadd.f32 1.0, %v2650_v49 }
 0xb16   :  { %2651 = vrcp.f32 %v793_v52  ;;  %v805_v61 = vand.u32 2147483648, %v793_v52  ;;  %vm799_vm4 = vweird.f32 %v793_v52  ;;  %v803_v63 = vand.u32 2147483647, %v793_v52 }
 0xb18   :  { %v806_v56 = vor.u32 1.1754944e-38, %v805_v61  ;;  %vm804_vm7 = vcmp.eq.f32.partialorder %v803_v63, 8.507059e+37 }
 0xb1c   :  { %v2652_v53 = vpop.eup %2651 }
 0xb1d   :  { %v795_v54 = vmul.f32 %v2652_v53, %v793_v52  ;;  %vm800_vm3 = vweird.f32 %v2652_v53 }
 0xb1e   :  { %vm801_vm5 = vmor %vm799_vm4, %vm800_vm3 }
 0xb1f   :  { %v796_v55 = vsub.f32 1.0, %v795_v54  ;;  %v3322_v54 = vld [vmem:[%s3991_s5 + $0x58] sm:$0xff] }
 0xb21   :  { %v797_v59 = vmul.f32 %v2652_v53, %v796_v55  ;;  %v3330_v55 = vld [vmem:[%s3991_s5 + $0x48] sm:$0xff] }
 0xb23   :  { %v798_v60 = vadd.f32 %v2652_v53, %v797_v59  ;;  %v3338_v59 = vld [vmem:[%s3991_s5 + $0x38] sm:$0xff] }
 0xb25   :  { %v802_v1 = vsel %vm801_vm5, %v2652_v53, %v798_v60 }
 0xb26   :  { %v807_v35 = vsel %vm804_vm7, %v806_v56, %v802_v1 }
 0xb27   :  { %v830_v57 = vmul.f32 %v807_v35, %v3256_v51 }
 0xb7f   :  { %v834_v17 = vpop.permute.xlu0 %833 }
 0xb85   :  { %v836_v28 = vpop.permute.xlu1 %835 }
 0xb86   :  { %v837_v62 = vsel %vm240_vm6, %v834_v17, %v836_v28 }
 0xb87   :  { %v839_v37 = vmul.f32 %v837_v62, %v807_v35 }
 0xb89   :  { %841 = vrot.lane.b32.xlu2 %v839_v37, %s2825_s6 }
 0xbe3   :  { %v842_v38 = vpop.permute.xlu2 %841 }
 0xbe4   :  { %v3311_v2 = vadd.f32 %v842_v38, %v830_v57 }
 0xbe6   :  { %2653 = vtanh.f32 %v3311_v2 }
 0xbe7   :  { %2655 = vpow2.f32 %v2512_v9 }
 0xbec   :  { %v2654_v4 = vpop.eup %2653 }
 0xbed   :  { %847 = vrot.lane.b32.xlu0 %v2654_v4, %s2826_s1  ;;  %v2656_v12 = vpop.eup %2655 }
 0xbee   :  { %v814_v40 = vadd.f32 1.0, %v2656_v12 }
 0xbf0   :  { %2657 = vrcp.f32 %v814_v40  ;;  %v826_v51 = vand.u32 2147483648, %v814_v40  ;;  %vm820_vm9 = vweird.f32 %v814_v40  ;;  %v824_v46 = vand.u32 2147483647, %v814_v40 }
 0xbf2   :  { %v827_v48 = vor.u32 1.1754944e-38, %v826_v51  ;;  %vm825_vm11 = vcmp.eq.f32.partialorder %v824_v46, 8.507059e+37 }
 0xbf6   :  { %v2658_v41 = vpop.eup %2657 }
 0xbf7   :  { %v816_v42 = vmul.f32 %v2658_v41, %v814_v40  ;;  %vm821_vm8 = vweird.f32 %v2658_v41 }
 0xbf8   :  { %vm822_vm10 = vmor %vm820_vm9, %vm821_vm8 }
 0xbf9   :  { %v817_v58 = vsub.f32 1.0, %v816_v42 }
 0xbfb   :  { %v818_v43 = vmul.f32 %v2658_v41, %v817_v58 }
 0xbfd   :  { %v819_v44 = vadd.f32 %v2658_v41, %v818_v43 }
 0xbff   :  { %v823_v47 = vsel %vm822_vm10, %v2658_v41, %v819_v44 }
 0xc00   :  { %v828_v49 = vsel %vm825_vm11, %v827_v48, %v823_v47 }
 0xc5f   :  { %v848_v52 = vpop.permute.xlu0 %847 }
 0xc60   :  { %v850_v0 = vmul.f32 %v848_v52, %v828_v49 }
 0xc62   :  { %852 = vrot.lane.b32.xlu1 %v850_v0, %s2827_s13 }
 0xcd4   :  { %v853_v53 = vpop.permute.xlu1 %852 }
 0xcd5   :  { %2513 = vmatmul.msk.f32.vlgmr.msrb.gmra.mxu1 %vm99_vm2, %v853_v53  ;;  %2516 = vmatmul.msk.f32.vlgmr.msrb.gmra.mxu0 %vm99_vm2, %v853_v53 }
 0xcd6   :  { %2517 = vmatmul.msk.f32.vlgmr.msra.gmra.mxu2 %vm99_vm2, %v853_v53  ;;  %1133 = vmatpush.msrb.mxu1 %v3322_v54 }
 0xcd7   :  { %1156 = vmatpush.msra.mxu2 %v2919_v5  ;;  %1176 = vmatpush.msrb.mxu0 %v2924_v6  ;;  %v3346_v5 = vld [vmem:[%s3991_s5 + $0x28] sm:$0xff] }
 0xcd8   :  { %1134 = vmatpush.msrb.mxu1 %v3330_v55 }
 0xcd9   :  { %1157 = vmatpush.msra.mxu2 %v2931_v7  ;;  %1177 = vmatpush.msrb.mxu0 %v2936_v8  ;;  %v3365_v8 = vld [vmem:[%s3991_s5 + $0x50] sm:$0xff] }
 0xcda   :  { %1135 = vmatpush.msrb.mxu1 %v3338_v59 }
 0xcdb   :  { %1158 = vmatpush.msra.mxu2 %v2947_v10  ;;  %1178 = vmatpush.msrb.mxu0 %v2954_v11 }
 0xcdc   :  { %1136 = vmatpush.msrb.mxu1 %v3346_v5 }
 0xcdd   :  { %1159 = vmatpush.msra.mxu2 %v2971_v14  ;;  %1179 = vmatpush.msrb.mxu0 %v2978_v15  ;;  %v3387_v14 = vld [vmem:[%s3992_s4 + $0x40] sm:$0xff]  ;;  %v3394_v15 = vld [vmem:[%s3992_s4 + $0x30] sm:$0xff] }
 0xcde   :  { %1137 = vmatpush.msrb.mxu1 %v2964_v13  ;;  %v3380_v13 = vld [vmem:[%s3992_s4 + $0x50] sm:$0xff] }
 0xcdf   :  { %1160 = vmatpush.msra.mxu2 %v3008_v19  ;;  %1180 = vmatpush.msrb.mxu0 %v3013_v20 }
 0xce0   :  { %1138 = vmatpush.msrb.mxu1 %v2983_v16  ;;  %v3401_v16 = vld [vmem:[%s3992_s4 + $0x20] sm:$0xff] }
 0xce1   :  { %1161 = vmatpush.msra.mxu2 %v3026_v22  ;;  %1181 = vmatpush.msrb.mxu0 %v3031_v23 }
 0xd52   :  { %v873_v6 = vpop.f32.mrf.mxu1 }
 0xd53   :  { %v3358_v7 = vadd.f32 %v3169_v50, %v873_v6 }
 0xd55   :  { %2515 = vmatmul.msk.f32.vlgmr.msrb.gmra.mxu3 %vm71_vm1, %v3358_v7 }
 0xd56   :  { %1113 = vmatpush.msrb.mxu3 %v3365_v8 }
 0xd58   :  { %1114 = vmatpush.msrb.mxu3 %v3003_v18 }
 0xd59   :  { %v941_v18 = vpop.f32.mrf.mxu2 }
 0xd5a   :  { %1115 = vmatpush.msrb.mxu3 %v3021_v21 }
 0xd5c   :  { %1116 = vmatpush.msrb.mxu3 %v3040_v24  ;;  %v921_v24 = vpop.f32.mrf.mxu0 }
 0xd5e   :  { %1117 = vmatpush.msrb.mxu3 %v3045_v25 }
 0xd60   :  { %1118 = vmatpush.msrb.mxu3 %v3053_v26 }
 0xdd8   :  { %v901_v10 = vpop.f32.mrf.mxu3 }
 0xdd9   :  { %v902_v11 = vadd.f32 %v3072_v27, %v901_v10 }
 0xddb   :  { %2518 = vmatmul.msk.f32.vlgmr.msra.gmra.mxu3 %vm99_vm2, %v902_v11  ;;  %2519 = vmatmul.msk.f32.vlgmr.msra.gmra.mxu1 %vm99_vm2, %v902_v11 }
 0xddc   :  { %1264 = vmatpush.msra.mxu3 %v3099_v29  ;;  %1355 = vmatpush.msra.mxu1 %v3380_v13 }
 0xdde   :  { %1265 = vmatpush.msra.mxu3 %v3104_v30  ;;  %1356 = vmatpush.msra.mxu1 %v3387_v14 }
 0xde0   :  { %1266 = vmatpush.msra.mxu3 %v3111_v31  ;;  %1357 = vmatpush.msra.mxu1 %v3394_v15 }
 0xde2   :  { %1267 = vmatpush.msra.mxu3 %v3118_v33  ;;  %1358 = vmatpush.msra.mxu1 %v3401_v16 }
 0xde4   :  { %1268 = vmatpush.msra.mxu3 %v3125_v34  ;;  %1359 = vmatpush.msra.mxu1 %v3008_v19 }
 0xde6   :  { %1269 = vmatpush.msra.mxu3 %v3132_v36  ;;  %1360 = vmatpush.msra.mxu1 %v3026_v22 }
 0xe58   :  { %v984_v20 = vpop.f32.mrf.mxu1 }
 0xe59   :  { %v985_v21 = vadd.f32 %v984_v20, %v941_v18 }
 0xe5b   :  { %v988_v23 = vadd.f32 %v985_v21, %v3085_v39  ;;  %v3427_v21 = vld [vmem:[%s3989_s2] sm:$0x3]  ;;  %s2835_s2 = smov 6  }
 0xe5d   :  { %2659 = vtanh.f32 %v988_v23  ;;  %v2521_v43 = vmul.f32 -1.442695, %v988_v23  ;;  %v3436_v23 = vld [vmem:[%s3991_s5 + $0x40] sm:$0xff] }
 0xe5e   :  { %v964_v25 = vpop.f32.mrf.mxu3 }
 0xe5f   :  { %v965_v26 = vadd.f32 %v964_v25, %v921_v24  ;;  %v3443_v24 = vld [vmem:[%s3991_s5 + $0x30] sm:$0xff]  ;;  %v3450_v25 = vld [vmem:[%s3991_s5 + $0x20] sm:$0xff] }
 0xe61   :  { %v987_v27 = vadd.f32 %v965_v26, %v3082_v32  ;;  %v3456_v26 = vld [vmem:[%s3991_s5 + $0x18] sm:$0xff] }
 0xe63   :  { %v2660_v29 = vpop.eup %2659  ;;  %2661 = vtanh.f32 %v987_v27  ;;  %v2520_v30 = vmul.f32 -1.442695, %v987_v27  ;;  %v3462_v27 = vld [vmem:[%s3991_s5 + $0x10] sm:$0xff] }
 0xe64   :  { %1034 = vrot.lane.b32.xlu0 %v2660_v29, %s2824_s21  ;;  %v3468_v29 = vld [vmem:[%s3991_s5 + $0x8] sm:$0xff] }
 0xe65   :  { %2663 = vpow2.f32 %v2520_v30 }
 0xe69   :  { %v2662_v19 = vpop.eup %2661 }
 0xe6a   :  { %1032 = vrot.lane.b32.xlu2 %v2662_v19, %s2824_s21  ;;  %v3474_v19 = vld [vmem:[%s3991_s5] sm:$0xff] }
 0xe6b   :  { %v2664_v22 = vpop.eup %2663 }
 0xe6c   :  { %v992_v60 = vadd.f32 1.0, %v2664_v22 }
 0xe6e   :  { %2665 = vrcp.f32 %v992_v60  ;;  %v1004_v28 = vand.u32 2147483648, %v992_v60  ;;  %vm998_vm13 = vweird.f32 %v992_v60  ;;  %v1002_v35 = vand.u32 2147483647, %v992_v60 }
 0xe70   :  { %v1005_v37 = vor.u32 1.1754944e-38, %v1004_v28  ;;  %vm1003_vm15 = vcmp.eq.f32.partialorder %v1002_v35, 8.507059e+37 }
 0xe74   :  { %v2666_v61 = vpop.eup %2665 }
 0xe75   :  { %v994_v63 = vmul.f32 %v2666_v61, %v992_v60  ;;  %vm999_vm12 = vweird.f32 %v2666_v61 }
 0xe76   :  { %vm1000_vm14 = vmor %vm998_vm13, %vm999_vm12 }
 0xe77   :  { %v995_v1 = vsub.f32 1.0, %v994_v63  ;;  %v3499_v63 = vld [vmem:[%s3997_s7 + $0x28] sm:$0xff] }
 0xe79   :  { %v996_v56 = vmul.f32 %v2666_v61, %v995_v1  ;;  %v3507_v1 = vld [vmem:[%s3997_s7 + $0x20] sm:$0xff] }
 0xe7b   :  { %v997_v17 = vadd.f32 %v2666_v61, %v996_v56 }
 0xe7d   :  { %v1001_v62 = vsel %vm1000_vm14, %v2666_v61, %v997_v17 }
 0xe7e   :  { %v1006_v4 = vsel %vm1003_vm15, %v1005_v37, %v1001_v62 }
 0xe7f   :  { %v1029_v40 = vmul.f32 %v1006_v4, %v3311_v2 }
 0xec4   :  { %v1033_v57 = vpop.permute.xlu2 %1032 }
 0xed6   :  { %v1035_v38 = vpop.permute.xlu0 %1034 }
 0xed7   :  { %v1036_v9 = vsel %vm240_vm6, %v1033_v57, %v1035_v38 }
 0xed8   :  { %v1038_v12 = vmul.f32 %v1036_v9, %v1006_v4 }
 0xeda   :  { %1040 = vrot.lane.b32.xlu1 %v1038_v12, %s2825_s6 }
 0xf4c   :  { %v1041_v41 = vpop.permute.xlu1 %1040 }
 0xf4d   :  { %v3415_v42 = vadd.f32 %v1041_v41, %v1029_v40 }
 0xf4f   :  { %2667 = vtanh.f32 %v3415_v42 }
 0xf50   :  { %2669 = vpow2.f32 %v2521_v43 }
 0xf55   :  { %v2668_v58 = vpop.eup %2667 }
 0xf56   :  { %1046 = vrot.lane.b32.xlu2 %v2668_v58, %s2826_s1  ;;  %v2670_v44 = vpop.eup %2669 }
 0xf57   :  { %v1013_v51 = vadd.f32 1.0, %v2670_v44 }
 0xf59   :  { %2671 = vrcp.f32 %v1013_v51  ;;  %v1025_v2 = vand.u32 2147483648, %v1013_v51  ;;  %vm1019_vm4 = vweird.f32 %v1013_v51  ;;  %v1023_v0 = vand.u32 2147483647, %v1013_v51 }
 0xf5b   :  { %v1026_v6 = vor.u32 1.1754944e-38, %v1025_v2  ;;  %vm1024_vm7 = vcmp.eq.f32.partialorder %v1023_v0, 8.507059e+37 }
 0xf5f   :  { %v2672_v46 = vpop.eup %2671 }
 0xf60   :  { %v1015_v47 = vmul.f32 %v2672_v46, %v1013_v51  ;;  %vm1020_vm3 = vweird.f32 %v2672_v46 }
 0xf61   :  { %vm1021_vm5 = vmor %vm1019_vm4, %vm1020_vm3 }
 0xf62   :  { %v1016_v48 = vsub.f32 1.0, %v1015_v47 }
 0xf64   :  { %v1017_v49 = vmul.f32 %v2672_v46, %v1016_v48 }
 0xf66   :  { %v1018_v52 = vadd.f32 %v2672_v46, %v1017_v49 }
 0xf68   :  { %v1022_v53 = vsel %vm1021_vm5, %v2672_v46, %v1018_v52 }
 0xf69   :  { %v1027_v10 = vsel %vm1024_vm7, %v1026_v6, %v1022_v53 }
 0xfb0   :  { %v1047_v11 = vpop.permute.xlu2 %1046 }
 0xfb1   :  { %v1049_v18 = vmul.f32 %v1047_v11, %v1027_v10 }
 0xfb3   :  { %1051 = vrot.lane.b32.xlu0 %v1049_v18, %s2827_s13 }
0x1025   :  { %v1052_v20 = vpop.permute.xlu0 %1051 }
0x1026   :  { %2522 = vmatmul.msk.f32.vlgmr.msra.gmra.mxu0 %vm99_vm2, %v1052_v20  ;;  %2525 = vmatmul.msk.f32.vlgmr.msrb.gmra.mxu3 %vm99_vm2, %v1052_v20 }
0x1027   :  { %2526 = vmatmul.msk.f32.vlgmr.msrb.gmra.mxu1 %vm99_vm2, %v1052_v20  ;;  %1332 = vmatpush.msra.mxu0 %v3322_v54 }
0x1028   :  { %2532 = vmatpush.msk.msrb.mxu3 %vm75_vm0, %v3427_v21  ;;  %1511 = vmatpush.msrb.mxu1 %v3365_v8 }
0x1029   :  { %1333 = vmatpush.msra.mxu0 %v3330_v55 }
0x102a   :  { %1512 = vmatpush.msrb.mxu1 %v3436_v23 }
0x102b   :  { %1334 = vmatpush.msra.mxu0 %v3338_v59 }
0x102c   :  { %1513 = vmatpush.msrb.mxu1 %v3443_v24 }
0x102d   :  { %1335 = vmatpush.msra.mxu0 %v3346_v5 }
0x102e   :  { %1514 = vmatpush.msrb.mxu1 %v3450_v25 }
0x102f   :  { %1336 = vmatpush.msra.mxu0 %v3456_v26 }
0x1030   :  { %1515 = vmatpush.msrb.mxu1 %v3462_v27 }
0x1031   :  { %1337 = vmatpush.msra.mxu0 %v3468_v29 }
0x1032   :  { %1516 = vmatpush.msrb.mxu1 %v3474_v19 }
0x10a3   :  { %v1072_v30 = vpop.f32.mrf.mxu0 }
0x10a4   :  { %v3478_v22 = vadd.f32 %v3169_v50, %v1072_v30  ;;  %v3491_v50 = vld [vmem:[%s3993_s3] ss:$0 sm:$0xff]  ;;  %v1140_v56 = vpop.f32.mrf.mxu1 }
0x10a6   :  { %2524 = vmatmul.msk.f32.vlgmr.msrb.gmra.mxu2 %vm71_vm1, %v3478_v22 }
0x10a7   :  { %1312 = vmatpush.msrb.mxu2 %v3365_v8 }
0x10a9   :  { %1313 = vmatpush.msrb.mxu2 %v3436_v23  ;;  %v1120_v62 = vpop.f32.mrf.mxu3 }
0x10ab   :  { %1314 = vmatpush.msrb.mxu2 %v3443_v24 }
0x10ad   :  { %1315 = vmatpush.msrb.mxu2 %v3450_v25 }
0x10af   :  { %1316 = vmatpush.msrb.mxu2 %v3462_v27 }
0x10b1   :  { %1317 = vmatpush.msrb.mxu2 %v3474_v19 }
0x1129   :  { %v1100_v60 = vpop.f32.mrf.mxu2 }
0x112a   :  { %v1101_v61 = vadd.f32 %v3491_v50, %v1100_v60 }
0x112c   :  { %2527 = vmatmul.msk.f32.vlgmr.msra.gmra.mxu2 %vm99_vm2, %v1101_v61  ;;  %2528 = vmatmul.msk.f32.vlgmr.msrb.gmra.mxu0 %vm99_vm2, %v1101_v61 }
0x112d   :  { %1463 = vmatpush.msra.mxu2 %v3499_v63  ;;  %2541 = vmatpush.msk.msrb.mxu0 %vm75_vm0, %v3427_v21 }
0x112f   :  { %1464 = vmatpush.msra.mxu2 %v3507_v1 }
0x1131   :  { %1465 = vmatpush.msra.mxu2 %v3111_v31 }
0x1133   :  { %1466 = vmatpush.msra.mxu2 %v3118_v33 }
0x1135   :  { %1467 = vmatpush.msra.mxu2 %v3125_v34 }
0x1137   :  { %1468 = vmatpush.msra.mxu2 %v3132_v36 }
0x11a9   :  { %v1183_v17 = vpop.f32.mrf.mxu0 }
0x11aa   :  { %v1184_v28 = vadd.f32 %v1183_v17, %v1140_v56 }
0x11ac   :  { %v1187_v35 = vadd.f32 %v1184_v28, %v3085_v39 }
0x11ae   :  { %2673 = vtanh.f32 %v1187_v35  ;;  %v2530_v11 = vmul.f32 -1.442695, %v1187_v35 }
0x11af   :  { %v1163_v37 = vpop.f32.mrf.mxu2 }
0x11b0   :  { %v1164_v57 = vadd.f32 %v1163_v37, %v1120_v62 }
0x11b2   :  { %v1186_v38 = vadd.f32 %v1164_v57, %v3082_v32 }
0x11b4   :  { %v2674_v4 = vpop.eup %2673  ;;  %2675 = vtanh.f32 %v1186_v38  ;;  %v2529_v33 = vmul.f32 -1.442695, %v1186_v38 }
0x11b5   :  { %1233 = vrot.lane.b32.xlu2 %v2674_v4, %s2824_s21 }
0x11b6   :  { %2677 = vpow2.f32 %v2529_v33  ;;  %v3540_v33 = vld [vmem:[%s3992_s4 + $0x48] sm:$0xff] }
0x11ba   :  { %v2676_v31 = vpop.eup %2675 }
0x11bb   :  { %1231 = vrot.lane.b32.xlu1 %v2676_v31, %s2824_s21  ;;  %v3532_v31 = vld [vmem:[%s3992_s4 + $0x58] sm:$0xff] }
0x11bc   :  { %v2678_v34 = vpop.eup %2677 }
0x11bd   :  { %v1191_v36 = vadd.f32 1.0, %v2678_v34  ;;  %v3548_v34 = vld [vmem:[%s3992_s4 + $0x38] sm:$0xff] }
0x11bf   :  { %2679 = vrcp.f32 %v1191_v36  ;;  %v1203_v43 = vand.u32 2147483648, %v1191_v36  ;;  %vm1197_vm9 = vweird.f32 %v1191_v36  ;;  %v1201_v44 = vand.u32 2147483647, %v1191_v36 }
0x11c1   :  { %v1204_v46 = vor.u32 1.1754944e-38, %v1203_v43  ;;  %vm1202_vm11 = vcmp.eq.f32.partialorder %v1201_v44, 8.507059e+37  ;;  %v3590_v43 = vld [vmem:[%s3996_s8] ss:$0 sm:$0xff] }
0x11c5   :  { %v2680_v9 = vpop.eup %2679 }
0x11c6   :  { %v1193_v12 = vmul.f32 %v2680_v9, %v1191_v36  ;;  %vm1198_vm8 = vweird.f32 %v2680_v9  ;;  %v3556_v36 = vld [vmem:[%s3992_s4 + $0x28] sm:$0xff] }
0x11c7   :  { %vm1199_vm10 = vmor %vm1197_vm9, %vm1198_vm8 }
0x11c8   :  { %v1194_v40 = vsub.f32 1.0, %v1193_v12  ;;  %v3570_v12 = vld [vmem:[%s3992_s4 + $0x10] sm:$0xff] }
0x11ca   :  { %v1195_v41 = vmul.f32 %v2680_v9, %v1194_v40  ;;  %v3577_v40 = vld [vmem:[%s3992_s4 + $0x8] sm:$0xff] }
0x11cc   :  { %v1196_v58 = vadd.f32 %v2680_v9, %v1195_v41  ;;  %v3583_v41 = vld [vmem:[%s3992_s4] sm:$0xff] }
0x11ce   :  { %v1200_v51 = vsel %vm1199_vm10, %v2680_v9, %v1196_v58  ;;  %v3564_v9 = vld [vmem:[%s3992_s4 + $0x18] sm:$0xff] }
0x11cf   :  { %v1205_v49 = vsel %vm1202_vm11, %v1204_v46, %v1200_v51 }
0x11d0   :  { %v1228_v0 = vmul.f32 %v1205_v49, %v3415_v42 }
0x120f   :  { %v1234_v47 = vpop.permute.xlu2 %1233 }
0x122d   :  { %v1232_v48 = vpop.permute.xlu1 %1231 }
0x122e   :  { %v1235_v52 = vsel %vm240_vm6, %v1232_v48, %v1234_v47  ;;  %v3613_v47 = vld [vmem:[%s3997_s7 + $0x18] sm:$0xff]  ;;  %v3619_v48 = vld [vmem:[%s3997_s7 + $0x10] sm:$0xff] }
0x122f   :  { %v1237_v2 = vmul.f32 %v1235_v52, %v1205_v49  ;;  %v3625_v49 = vld [vmem:[%s3997_s7 + $0x8] sm:$0xff]  ;;  %v3631_v52 = vld [vmem:[%s3997_s7] sm:$0xff] }
0x1231   :  { %1239 = vrot.lane.b32.xlu0 %v1237_v2, %s2825_s6 }
0x12a3   :  { %v1240_v53 = vpop.permute.xlu0 %1239 }
0x12a4   :  { %v3521_v6 = vadd.f32 %v1240_v53, %v1228_v0 }
0x12a6   :  { %2681 = vtanh.f32 %v3521_v6 }
0x12a7   :  { %2683 = vpow2.f32 %v2530_v11 }
0x12ac   :  { %v2682_v10 = vpop.eup %2681 }
0x12ad   :  { %1245 = vrot.lane.b32.xlu1 %v2682_v10, %s2826_s1  ;;  %v2684_v18 = vpop.eup %2683 }
0x12ae   :  { %v1212_v20 = vadd.f32 1.0, %v2684_v18 }
0x12b0   :  { %2685 = vrcp.f32 %v1212_v20  ;;  %v1224_v42 = vand.u32 2147483648, %v1212_v20  ;;  %vm1218_vm13 = vweird.f32 %v1212_v20  ;;  %v1222_v28 = vand.u32 2147483647, %v1212_v20 }
0x12b2   :  { %v1225_v37 = vor.u32 1.1754944e-38, %v1224_v42  ;;  %vm1223_vm15 = vcmp.eq.f32.partialorder %v1222_v28, 8.507059e+37 }
0x12b6   :  { %v2686_v30 = vpop.eup %2685 }
0x12b7   :  { %v1214_v60 = vmul.f32 %v2686_v30, %v1212_v20  ;;  %vm1219_vm12 = vweird.f32 %v2686_v30 }
0x12b8   :  { %vm1220_vm14 = vmor %vm1218_vm13, %vm1219_vm12 }
0x12b9   :  { %v1215_v61 = vsub.f32 1.0, %v1214_v60 }
0x12bb   :  { %v1216_v56 = vmul.f32 %v2686_v30, %v1215_v61 }
0x12bd   :  { %v1217_v17 = vadd.f32 %v2686_v30, %v1216_v56 }
0x12bf   :  { %v1221_v62 = vsel %vm1220_vm14, %v2686_v30, %v1217_v17 }
0x12c0   :  { %v1226_v57 = vsel %vm1223_vm15, %v1225_v37, %v1221_v62 }
0x131f   :  { %v1246_v38 = vpop.permute.xlu1 %1245 }
0x1320   :  { %v1248_v35 = vmul.f32 %v1246_v38, %v1226_v57 }
0x1322   :  { %1250 = vrot.lane.b32.xlu2 %v1248_v35, %s2827_s13 }
0x137c   :  { %v1251_v4 = vpop.permute.xlu2 %1250 }
0x137d   :  { %2531 = vmatmul.msk.f32.vlgmr.msra.gmra.mxu3 %vm99_vm2, %v1251_v4  ;;  %2534 = vmatmul.msk.f32.vlgmr.msrb.gmra.mxu2 %vm99_vm2, %v1251_v4 }
0x137e   :  { %2535 = vmatmul.msk.f32.vlgmr.msra.gmra.mxu0 %vm99_vm2, %v1251_v4  ;;  %1375 = vmatpush.msra.mxu3 %v3532_v31 }
0x137f   :  { %1554 = vmatpush.msra.mxu0 %v3380_v13  ;;  %1574 = vmatpush.msrb.mxu2 %v3532_v31 }
0x1380   :  { %1376 = vmatpush.msra.mxu3 %v3540_v33 }
0x1381   :  { %1555 = vmatpush.msra.mxu0 %v3387_v14  ;;  %1575 = vmatpush.msrb.mxu2 %v3540_v33 }
0x1382   :  { %1377 = vmatpush.msra.mxu3 %v3548_v34 }
0x1383   :  { %1556 = vmatpush.msra.mxu0 %v3394_v15  ;;  %1576 = vmatpush.msrb.mxu2 %v3548_v34 }
0x1384   :  { %1378 = vmatpush.msra.mxu3 %v3556_v36 }
0x1385   :  { %1557 = vmatpush.msra.mxu0 %v3401_v16  ;;  %1577 = vmatpush.msrb.mxu2 %v3556_v36 }
0x1386   :  { %1379 = vmatpush.msra.mxu3 %v3564_v9 }
0x1387   :  { %1558 = vmatpush.msra.mxu0 %v3570_v12  ;;  %1578 = vmatpush.msrb.mxu2 %v3564_v9 }
0x1388   :  { %1380 = vmatpush.msra.mxu3 %v3577_v40 }
0x1389   :  { %1559 = vmatpush.msra.mxu0 %v3583_v41  ;;  %1579 = vmatpush.msrb.mxu2 %v3577_v40 }
0x13fb   :  { %v1339_v11 = vpop.f32.mrf.mxu0 }
0x1400   :  { %v1271_v58 = vpop.f32.mrf.mxu3  ;;  %v1319_v2 = vpop.f32.mrf.mxu2 }
0x1401   :  { %v3593_v44 = vadd.f32 %v3590_v43, %v1271_v58 }
0x1403   :  { %2533 = vmatmul.msk.f32.vlgmr.msrb.gmra.mxu3 %vm71_vm1, %v3593_v44 }
0x1404   :  { %1531 = vmatpush.msrb.mxu3 %v3322_v54 }
0x1406   :  { %1532 = vmatpush.msrb.mxu3 %v3330_v55 }
0x1408   :  { %1533 = vmatpush.msrb.mxu3 %v3338_v59 }
0x140a   :  { %1534 = vmatpush.msrb.mxu3 %v3346_v5 }
0x140c   :  { %1535 = vmatpush.msrb.mxu3 %v3456_v26 }
0x140e   :  { %1536 = vmatpush.msrb.mxu3 %v3468_v29 }
0x1486   :  { %v1299_v51 = vpop.f32.mrf.mxu3 }
0x1487   :  { %v1300_v46 = vadd.f32 %v3491_v50, %v1299_v51 }
0x1489   :  { %2536 = vmatmul.msk.f32.vlgmr.msra.gmra.mxu1 %vm99_vm2, %v1300_v46  ;;  %2537 = vmatmul.msk.f32.vlgmr.msra.gmra.mxu3 %vm99_vm2, %v1300_v46 }
0x148a   :  { %1662 = vmatpush.msra.mxu1 %v3499_v63  ;;  %2550 = vmatpush.msk.msra.mxu3 %vm75_vm0, %v3427_v21 }
0x148c   :  { %1663 = vmatpush.msra.mxu1 %v3507_v1 }
0x148e   :  { %1664 = vmatpush.msra.mxu1 %v3613_v47 }
0x1490   :  { %1665 = vmatpush.msra.mxu1 %v3619_v48 }
0x1492   :  { %1666 = vmatpush.msra.mxu1 %v3625_v49 }
0x1494   :  { %1667 = vmatpush.msra.mxu1 %v3631_v52 }
0x1506   :  { %v1362_v0 = vpop.f32.mrf.mxu1 }
0x1507   :  { %v1363_v53 = vadd.f32 %v1362_v0, %v1319_v2 }
0x1509   :  { %v1385_v10 = vadd.f32 %v1363_v53, %v3082_v32 }
0x150b   :  { %2687 = vtanh.f32 %v1385_v10  ;;  %v2538_v56 = vmul.f32 -1.442695, %v1385_v10 }
0x150c   :  { %v1382_v18 = vpop.f32.mrf.mxu3 }
0x150d   :  { %v1383_v20 = vadd.f32 %v1382_v18, %v1339_v11 }
0x150f   :  { %v1386_v30 = vadd.f32 %v1383_v20, %v3085_v39 }
0x1511   :  { %v2688_v60 = vpop.eup %2687  ;;  %2689 = vtanh.f32 %v1386_v30 }
0x1512   :  { %1430 = vrot.lane.b32.xlu0 %v2688_v60, %s2824_s21  ;;  %2691 = vpow2.f32 %v2538_v56 }
0x1517   :  { %v2690_v61 = vpop.eup %2689 }
0x1518   :  { %1432 = vrot.lane.b32.xlu1 %v2690_v61, %s2824_s21  ;;  %v2692_v17 = vpop.eup %2691  ;;  %v2539_v61 = vmul.f32 -1.442695, %v1386_v30 }
0x1519   :  { %v1390_v42 = vadd.f32 1.0, %v2692_v17 }
0x151b   :  { %2693 = vrcp.f32 %v1390_v42  ;;  %v1402_v35 = vand.u32 2147483648, %v1390_v42  ;;  %vm1396_vm4 = vweird.f32 %v1390_v42  ;;  %v1400_v4 = vand.u32 2147483647, %v1390_v42 }
0x151d   :  { %v1403_v51 = vor.u32 1.1754944e-38, %v1402_v35  ;;  %vm1401_vm7 = vcmp.eq.f32.partialorder %v1400_v4, 8.507059e+37 }
0x1521   :  { %v2694_v28 = vpop.eup %2693 }
0x1522   :  { %v1392_v62 = vmul.f32 %v2694_v28, %v1390_v42  ;;  %vm1397_vm3 = vweird.f32 %v2694_v28 }
0x1523   :  { %vm1398_vm5 = vmor %vm1396_vm4, %vm1397_vm3 }
0x1524   :  { %v1393_v37 = vsub.f32 1.0, %v1392_v62 }
0x1526   :  { %v1394_v57 = vmul.f32 %v2694_v28, %v1393_v37 }
0x1528   :  { %v1395_v38 = vadd.f32 %v2694_v28, %v1394_v57 }
0x152a   :  { %v1399_v58 = vsel %vm1398_vm5, %v2694_v28, %v1395_v38 }
0x152b   :  { %v1404_v0 = vsel %vm1401_vm7, %v1403_v51, %v1399_v58 }
0x152c   :  { %v1427_v11 = vmul.f32 %v1404_v0, %v3521_v6 }
0x1584   :  { %v1431_v46 = vpop.permute.xlu0 %1430 }
0x158a   :  { %v1433_v2 = vpop.permute.xlu1 %1432 }
0x158b   :  { %v1434_v53 = vsel %vm240_vm6, %v1431_v46, %v1433_v2 }
0x158c   :  { %v1436_v10 = vmul.f32 %v1434_v53, %v1404_v0 }
0x158e   :  { %1438 = vrot.lane.b32.xlu2 %v1436_v10, %s2825_s6 }
0x15e8   :  { %v1439_v18 = vpop.permute.xlu2 %1438 }
0x15e9   :  { %v3641_v20 = vadd.f32 %v1439_v18, %v1427_v11 }
0x15eb   :  { %2695 = vtanh.f32 %v3641_v20 }
0x15ec   :  { %2697 = vpow2.f32 %v2539_v61 }
0x15f1   :  { %v2696_v60 = vpop.eup %2695 }
0x15f2   :  { %1444 = vrot.lane.b32.xlu0 %v2696_v60, %s2826_s1  ;;  %v2698_v56 = vpop.eup %2697 }
0x15f3   :  { %v1411_v17 = vadd.f32 1.0, %v2698_v56 }
0x15f5   :  { %2699 = vrcp.f32 %v1411_v17  ;;  %v1423_v6 = vand.u32 2147483648, %v1411_v17  ;;  %vm1417_vm9 = vweird.f32 %v1411_v17  ;;  %v1421_v38 = vand.u32 2147483647, %v1411_v17 }
0x15f7   :  { %v1424_v4 = vor.u32 1.1754944e-38, %v1423_v6  ;;  %vm1422_vm11 = vcmp.eq.f32.partialorder %v1421_v38, 8.507059e+37 }
0x15fb   :  { %v2700_v42 = vpop.eup %2699 }
0x15fc   :  { %v1413_v28 = vmul.f32 %v2700_v42, %v1411_v17  ;;  %vm1418_vm8 = vweird.f32 %v2700_v42 }
0x15fd   :  { %vm1419_vm10 = vmor %vm1417_vm9, %vm1418_vm8 }
0x15fe   :  { %v1414_v62 = vsub.f32 1.0, %v1413_v28 }
0x1600   :  { %v1415_v37 = vmul.f32 %v2700_v42, %v1414_v62 }
0x1602   :  { %v1416_v57 = vadd.f32 %v2700_v42, %v1415_v37 }
0x1604   :  { %v1420_v35 = vsel %vm1419_vm10, %v2700_v42, %v1416_v57 }
0x1605   :  { %v1425_v58 = vsel %vm1422_vm11, %v1424_v4, %v1420_v35 }
0x1664   :  { %v1445_v51 = vpop.permute.xlu0 %1444 }
0x1665   :  { %v1447_v30 = vmul.f32 %v1445_v51, %v1425_v58 }
0x1667   :  { %1449 = vrot.lane.b32.xlu1 %v1447_v30, %s2827_s13 }
0x16d9   :  { %v1450_v46 = vpop.permute.xlu1 %1449 }
0x16da   :  { %2540 = vmatmul.msk.f32.vlgmr.msra.gmra.mxu2 %vm99_vm2, %v1450_v46  ;;  %2543 = vmatmul.msk.f32.vlgmr.msrb.gmra.mxu1 %vm99_vm2, %v1450_v46 }
0x16db   :  { %2544 = vmatmul.msk.f32.vlgmr.msrb.gmra.mxu3 %vm99_vm2, %v1450_v46  ;;  %1730 = vmatpush.msra.mxu2 %v3322_v54 }
0x16dc   :  { %1753 = vmatpush.msrb.mxu3 %v3380_v13  ;;  %1773 = vmatpush.msrb.mxu1 %v3532_v31 }
0x16dd   :  { %1731 = vmatpush.msra.mxu2 %v3330_v55 }
0x16de   :  { %1754 = vmatpush.msrb.mxu3 %v3387_v14  ;;  %1774 = vmatpush.msrb.mxu1 %v3540_v33 }
0x16df   :  { %1732 = vmatpush.msra.mxu2 %v3338_v59 }
0x16e0   :  { %1755 = vmatpush.msrb.mxu3 %v3394_v15  ;;  %1775 = vmatpush.msrb.mxu1 %v3548_v34 }
0x16e1   :  { %1733 = vmatpush.msra.mxu2 %v3346_v5 }
0x16e2   :  { %1756 = vmatpush.msrb.mxu3 %v3401_v16  ;;  %1776 = vmatpush.msrb.mxu1 %v3556_v36 }
0x16e3   :  { %1734 = vmatpush.msra.mxu2 %v3456_v26 }
0x16e4   :  { %1757 = vmatpush.msrb.mxu3 %v3570_v12  ;;  %1777 = vmatpush.msrb.mxu1 %v3564_v9 }
0x16e5   :  { %1735 = vmatpush.msra.mxu2 %v3468_v29 }
0x16e6   :  { %1758 = vmatpush.msrb.mxu3 %v3583_v41  ;;  %1778 = vmatpush.msrb.mxu1 %v3577_v40 }
0x1757   :  { %v1518_v11 = vpop.f32.mrf.mxu1 }
0x175d   :  { %v1470_v2 = vpop.f32.mrf.mxu2 }
0x175e   :  { %v3668_v0 = vadd.f32 %v3590_v43, %v1470_v2  ;;  %v1538_v56 = vpop.f32.mrf.mxu3 }
0x1760   :  { %2542 = vmatmul.msk.f32.vlgmr.msrb.gmra.mxu0 %vm71_vm1, %v3668_v0 }
0x1761   :  { %1710 = vmatpush.msrb.mxu0 %v3365_v8 }
0x1763   :  { %1711 = vmatpush.msrb.mxu0 %v3436_v23 }
0x1765   :  { %1712 = vmatpush.msrb.mxu0 %v3443_v24 }
0x1767   :  { %1713 = vmatpush.msrb.mxu0 %v3450_v25 }
0x1769   :  { %1714 = vmatpush.msrb.mxu0 %v3462_v27 }
0x176b   :  { %1715 = vmatpush.msrb.mxu0 %v3474_v19 }
0x17dd   :  { %v1498_v53 = vpop.f32.mrf.mxu0 }
0x17de   :  { %v1499_v10 = vadd.f32 %v3491_v50, %v1498_v53 }
0x17e0   :  { %2545 = vmatmul.msk.f32.vlgmr.msra.gmra.mxu0 %vm99_vm2, %v1499_v10  ;;  %2546 = vmatmul.msk.f32.vlgmr.msrb.gmra.mxu2 %vm99_vm2, %v1499_v10 }
0x17e1   :  { %1861 = vmatpush.msra.mxu0 %v3499_v63  ;;  %2559 = vmatpush.msk.msrb.mxu2 %vm75_vm0, %v3427_v21 }
0x17e3   :  { %1862 = vmatpush.msra.mxu0 %v3507_v1 }
0x17e5   :  { %1863 = vmatpush.msra.mxu0 %v3613_v47 }
0x17e7   :  { %1864 = vmatpush.msra.mxu0 %v3619_v48 }
0x17e9   :  { %1865 = vmatpush.msra.mxu0 %v3625_v49 }
0x17eb   :  { %1866 = vmatpush.msra.mxu0 %v3631_v52 }
0x185d   :  { %v1561_v18 = vpop.f32.mrf.mxu0 }
0x185e   :  { %v1562_v60 = vadd.f32 %v1561_v18, %v1518_v11 }
0x1860   :  { %v1584_v61 = vadd.f32 %v1562_v60, %v3082_v32 }
0x1862   :  { %2701 = vtanh.f32 %v1584_v61  ;;  %v2547_v57 = vmul.f32 -1.442695, %v1584_v61 }
0x1863   :  { %v1581_v17 = vpop.f32.mrf.mxu2 }
0x1864   :  { %v1582_v42 = vadd.f32 %v1581_v17, %v1538_v56 }
0x1866   :  { %v1585_v28 = vadd.f32 %v1582_v42, %v3085_v39 }
0x1868   :  { %v2702_v62 = vpop.eup %2701  ;;  %2703 = vtanh.f32 %v1585_v28 }
0x1869   :  { %1629 = vrot.lane.b32.xlu2 %v2702_v62, %s2824_s21  ;;  %2705 = vpow2.f32 %v2547_v57  ;;  %v2548_v57 = vmul.f32 -1.442695, %v1585_v28 }
0x186e   :  { %v2704_v37 = vpop.eup %2703 }
0x186f   :  { %1631 = vrot.lane.b32.xlu0 %v2704_v37, %s2824_s21  ;;  %v2706_v6 = vpop.eup %2705 }
0x1870   :  { %v1589_v38 = vadd.f32 1.0, %v2706_v6 }
0x1872   :  { %2707 = vrcp.f32 %v1589_v38  ;;  %v1601_v46 = vand.u32 2147483648, %v1589_v38  ;;  %vm1595_vm13 = vweird.f32 %v1589_v38  ;;  %v1599_v2 = vand.u32 2147483647, %v1589_v38 }
0x1874   :  { %v1602_v10 = vor.u32 1.1754944e-38, %v1601_v46  ;;  %vm1600_vm15 = vcmp.eq.f32.partialorder %v1599_v2, 8.507059e+37 }
0x1878   :  { %v2708_v35 = vpop.eup %2707 }
0x1879   :  { %v1591_v4 = vmul.f32 %v2708_v35, %v1589_v38  ;;  %vm1596_vm12 = vweird.f32 %v2708_v35 }
0x187a   :  { %vm1597_vm14 = vmor %vm1595_vm13, %vm1596_vm12 }
0x187b   :  { %v1592_v58 = vsub.f32 1.0, %v1591_v4 }
0x187d   :  { %v1593_v51 = vmul.f32 %v2708_v35, %v1592_v58 }
0x187f   :  { %v1594_v30 = vadd.f32 %v2708_v35, %v1593_v51 }
0x1881   :  { %v1598_v53 = vsel %vm1597_vm14, %v2708_v35, %v1594_v30 }
0x1882   :  { %v1603_v60 = vsel %vm1600_vm15, %v1602_v10, %v1598_v53 }
0x1883   :  { %v1626_v17 = vmul.f32 %v1603_v60, %v3641_v20 }
0x18c3   :  { %v1630_v11 = vpop.permute.xlu2 %1629 }
0x18e1   :  { %v1632_v18 = vpop.permute.xlu0 %1631 }
0x18e2   :  { %v1633_v61 = vsel %vm240_vm6, %v1630_v11, %v1632_v18 }
0x18e3   :  { %v1635_v56 = vmul.f32 %v1633_v61, %v1603_v60 }
0x18e5   :  { %1637 = vrot.lane.b32.xlu1 %v1635_v56, %s2825_s6 }
0x1957   :  { %v1638_v42 = vpop.permute.xlu1 %1637 }
0x1958   :  { %v3696_v62 = vadd.f32 %v1638_v42, %v1626_v17 }
0x195a   :  { %2709 = vtanh.f32 %v3696_v62 }
0x195b   :  { %2711 = vpow2.f32 %v2548_v57 }
0x1960   :  { %v2710_v37 = vpop.eup %2709 }
0x1961   :  { %1643 = vrot.lane.b32.xlu2 %v2710_v37, %s2826_s1  ;;  %v2712_v6 = vpop.eup %2711 }
0x1962   :  { %v1610_v38 = vadd.f32 1.0, %v2712_v6 }
0x1964   :  { %2713 = vrcp.f32 %v1610_v38  ;;  %v1622_v20 = vand.u32 2147483648, %v1610_v38  ;;  %vm1616_vm4 = vweird.f32 %v1610_v38  ;;  %v1620_v46 = vand.u32 2147483647, %v1610_v38 }
0x1966   :  { %v1623_v53 = vor.u32 1.1754944e-38, %v1622_v20  ;;  %vm1621_vm7 = vcmp.eq.f32.partialorder %v1620_v46, 8.507059e+37 }
0x196a   :  { %v2714_v35 = vpop.eup %2713 }
0x196b   :  { %v1612_v4 = vmul.f32 %v2714_v35, %v1610_v38  ;;  %vm1617_vm3 = vweird.f32 %v2714_v35 }
0x196c   :  { %vm1618_vm5 = vmor %vm1616_vm4, %vm1617_vm3 }
0x196d   :  { %v1613_v58 = vsub.f32 1.0, %v1612_v4 }
0x196f   :  { %v1614_v51 = vmul.f32 %v2714_v35, %v1613_v58 }
0x1971   :  { %v1615_v30 = vadd.f32 %v2714_v35, %v1614_v51 }
0x1973   :  { %v1619_v2 = vsel %vm1618_vm5, %v2714_v35, %v1615_v30 }
0x1974   :  { %v1624_v10 = vsel %vm1621_vm7, %v1623_v53, %v1619_v2 }
0x19bb   :  { %v1644_v11 = vpop.permute.xlu2 %1643 }
0x19bc   :  { %v1646_v28 = vmul.f32 %v1644_v11, %v1624_v10 }
0x19be   :  { %1648 = vrot.lane.b32.xlu0 %v1646_v28, %s2827_s13 }
0x1a30   :  { %v1649_v18 = vpop.permute.xlu0 %1648 }
0x1a31   :  { %2549 = vmatmul.msk.f32.vlgmr.msra.gmra.mxu1 %vm99_vm2, %v1649_v18  ;;  %2552 = vmatmul.msk.f32.vlgmr.msrb.gmra.mxu0 %vm99_vm2, %v1649_v18 }
0x1a32   :  { %2553 = vmatmul.msk.f32.vlgmr.msra.gmra.mxu2 %vm99_vm2, %v1649_v18  ;;  %1929 = vmatpush.msra.mxu1 %v3322_v54 }
0x1a33   :  { %1952 = vmatpush.msra.mxu2 %v3380_v13  ;;  %1972 = vmatpush.msrb.mxu0 %v3532_v31 }
0x1a34   :  { %1930 = vmatpush.msra.mxu1 %v3330_v55 }
0x1a35   :  { %1953 = vmatpush.msra.mxu2 %v3387_v14  ;;  %1973 = vmatpush.msrb.mxu0 %v3540_v33 }
0x1a36   :  { %1931 = vmatpush.msra.mxu1 %v3338_v59 }
0x1a37   :  { %1954 = vmatpush.msra.mxu2 %v3394_v15  ;;  %1974 = vmatpush.msrb.mxu0 %v3548_v34 }
0x1a38   :  { %1932 = vmatpush.msra.mxu1 %v3346_v5 }
0x1a39   :  { %1955 = vmatpush.msra.mxu2 %v3401_v16  ;;  %1975 = vmatpush.msrb.mxu0 %v3556_v36 }
0x1a3a   :  { %1933 = vmatpush.msra.mxu1 %v3456_v26 }
0x1a3b   :  { %1956 = vmatpush.msra.mxu2 %v3570_v12  ;;  %1976 = vmatpush.msrb.mxu0 %v3564_v9 }
0x1a3c   :  { %1934 = vmatpush.msra.mxu1 %v3468_v29 }
0x1a3d   :  { %1957 = vmatpush.msra.mxu2 %v3583_v41  ;;  %1977 = vmatpush.msrb.mxu0 %v3577_v40 }
0x1aae   :  { %v1669_v54 = vpop.f32.mrf.mxu1  ;;  %v1717_v56 = vpop.f32.mrf.mxu0 }
0x1aaf   :  { %v3723_v55 = vadd.f32 %v3590_v43, %v1669_v54 }
0x1ab1   :  { %2551 = vmatmul.msk.f32.vlgmr.msra.gmra.mxu3 %vm71_vm1, %v3723_v55 }
0x1ab2   :  { %1909 = vmatpush.msra.mxu3 %v3365_v8 }
0x1ab4   :  { %1910 = vmatpush.msra.mxu3 %v3436_v23 }
0x1ab5   :  { %v1737_v8 = vpop.f32.mrf.mxu2 }
0x1ab6   :  { %1911 = vmatpush.msra.mxu3 %v3443_v24 }
0x1ab8   :  { %1912 = vmatpush.msra.mxu3 %v3450_v25 }
0x1aba   :  { %1913 = vmatpush.msra.mxu3 %v3462_v27 }
0x1abc   :  { %1914 = vmatpush.msra.mxu3 %v3474_v19 }
0x1b34   :  { %v1697_v59 = vpop.f32.mrf.mxu3 }
0x1b35   :  { %v1698_v5 = vadd.f32 %v3491_v50, %v1697_v59 }
0x1b37   :  { %2554 = vmatmul.msk.f32.vlgmr.msrb.gmra.mxu3 %vm99_vm2, %v1698_v5  ;;  %2555 = vmatmul.msk.f32.vlgmr.msrb.gmra.mxu1 %vm99_vm2, %v1698_v5 }
0x1b38   :  { %2060 = vmatpush.msrb.mxu3 %v3499_v63  ;;  %2568 = vmatpush.msk.msrb.mxu1 %vm75_vm0, %v3427_v21 }
0x1b3a   :  { %2061 = vmatpush.msrb.mxu3 %v3507_v1 }
0x1b3c   :  { %2062 = vmatpush.msrb.mxu3 %v3613_v47 }
0x1b3e   :  { %2063 = vmatpush.msrb.mxu3 %v3619_v48 }
0x1b40   :  { %2064 = vmatpush.msrb.mxu3 %v3625_v49 }
0x1b42   :  { %2065 = vmatpush.msrb.mxu3 %v3631_v52 }
0x1bb4   :  { %v1780_v16 = vpop.f32.mrf.mxu1 }
0x1bb5   :  { %v1781_v60 = vadd.f32 %v1780_v16, %v1737_v8 }
0x1bb7   :  { %v1784_v61 = vadd.f32 %v1781_v60, %v3085_v39 }
0x1bb9   :  { %2715 = vtanh.f32 %v1784_v61 }
0x1bba   :  { %v1760_v17 = vpop.f32.mrf.mxu3 }
0x1bbb   :  { %v1761_v42 = vadd.f32 %v1760_v17, %v1717_v56  ;;  %v2557_v17 = vmul.f32 -1.442695, %v1784_v61 }
0x1bbd   :  { %v1783_v37 = vadd.f32 %v1761_v42, %v3082_v32 }
0x1bbf   :  { %v2716_v57 = vpop.eup %2715  ;;  %2717 = vtanh.f32 %v1783_v37  ;;  %v2556_v38 = vmul.f32 -1.442695, %v1783_v37 }
0x1bc0   :  { %1830 = vrot.lane.b32.xlu2 %v2716_v57, %s2824_s21 }
0x1bc1   :  { %2719 = vpow2.f32 %v2556_v38 }
0x1bc5   :  { %v2718_v6 = vpop.eup %2717 }
0x1bc6   :  { %1828 = vrot.lane.b32.xlu1 %v2718_v6, %s2824_s21 }
0x1bc7   :  { %v2720_v35 = vpop.eup %2719 }
0x1bc8   :  { %v1788_v4 = vadd.f32 1.0, %v2720_v35 }
0x1bca   :  { %2721 = vrcp.f32 %v1788_v4  ;;  %v1800_v2 = vand.u32 2147483648, %v1788_v4  ;;  %vm1794_vm9 = vweird.f32 %v1788_v4  ;;  %v1798_v53 = vand.u32 2147483647, %v1788_v4 }
0x1bcc   :  { %v1801_v11 = vor.u32 1.1754944e-38, %v1800_v2  ;;  %vm1799_vm11 = vcmp.eq.f32.partialorder %v1798_v53, 8.507059e+37  ;;  %v3762_v53 = vld [vmem:[%s3991_s5 + $0x58] sm:$0xff] }
0x1bd0   :  { %v2722_v58 = vpop.eup %2721 }
0x1bd1   :  { %v1790_v51 = vmul.f32 %v2722_v58, %v1788_v4  ;;  %vm1795_vm8 = vweird.f32 %v2722_v58 }
0x1bd2   :  { %vm1796_vm10 = vmor %vm1794_vm9, %vm1795_vm8 }
0x1bd3   :  { %v1791_v30 = vsub.f32 1.0, %v1790_v51 }
0x1bd5   :  { %v1792_v20 = vmul.f32 %v2722_v58, %v1791_v30 }
0x1bd7   :  { %v1793_v46 = vadd.f32 %v2722_v58, %v1792_v20 }
0x1bd9   :  { %v1797_v10 = vsel %vm1796_vm10, %v2722_v58, %v1793_v46 }
0x1bda   :  { %v1802_v54 = vsel %vm1799_vm11, %v1801_v11, %v1797_v10  ;;  %v3770_v10 = vld [vmem:[%s3991_s5 + $0x48] sm:$0xff]  ;;  %v3778_v11 = vld [vmem:[%s3991_s5 + $0x38] sm:$0xff] }
0x1bdb   :  { %v1825_v8 = vmul.f32 %v1802_v54, %v3696_v62 }
0x1c1a   :  { %v1831_v28 = vpop.permute.xlu2 %1830 }
0x1c38   :  { %v1829_v18 = vpop.permute.xlu1 %1828 }
0x1c39   :  { %v1832_v59 = vsel %vm240_vm6, %v1829_v18, %v1831_v28 }
0x1c3a   :  { %v1834_v5 = vmul.f32 %v1832_v59, %v1802_v54 }
0x1c3c   :  { %1836 = vrot.lane.b32.xlu0 %v1834_v5, %s2825_s6 }
0x1cae   :  { %v1837_v16 = vpop.permute.xlu0 %1836 }
0x1caf   :  { %v3751_v60 = vadd.f32 %v1837_v16, %v1825_v8 }
0x1cb1   :  { %2723 = vtanh.f32 %v3751_v60 }
0x1cb2   :  { %2725 = vpow2.f32 %v2557_v17 }
0x1cb7   :  { %v2724_v56 = vpop.eup %2723 }
0x1cb8   :  { %1842 = vrot.lane.b32.xlu1 %v2724_v56, %s2826_s1  ;;  %v2726_v42 = vpop.eup %2725 }
0x1cb9   :  { %v1809_v37 = vadd.f32 1.0, %v2726_v42 }
0x1cbb   :  { %2727 = vrcp.f32 %v1809_v37  ;;  %v1821_v62 = vand.u32 2147483648, %v1809_v37  ;;  %vm1815_vm13 = vweird.f32 %v1809_v37  ;;  %v1819_v58 = vand.u32 2147483647, %v1809_v37 }
0x1cbd   :  { %v1822_v30 = vor.u32 1.1754944e-38, %v1821_v62  ;;  %vm1820_vm15 = vcmp.eq.f32.partialorder %v1819_v58, 8.507059e+37 }
0x1cc1   :  { %v2728_v57 = vpop.eup %2727 }
0x1cc2   :  { %v1811_v6 = vmul.f32 %v2728_v57, %v1809_v37  ;;  %vm1816_vm12 = vweird.f32 %v2728_v57 }
0x1cc3   :  { %vm1817_vm14 = vmor %vm1815_vm13, %vm1816_vm12 }
0x1cc4   :  { %v1812_v38 = vsub.f32 1.0, %v1811_v6 }
0x1cc6   :  { %v1813_v35 = vmul.f32 %v2728_v57, %v1812_v38 }
0x1cc8   :  { %v1814_v4 = vadd.f32 %v2728_v57, %v1813_v35 }
0x1cca   :  { %v1818_v51 = vsel %vm1817_vm14, %v2728_v57, %v1814_v4 }
0x1ccb   :  { %v1823_v20 = vsel %vm1820_vm15, %v1822_v30, %v1818_v51 }
0x1d2a   :  { %v1843_v46 = vpop.permute.xlu1 %1842 }
0x1d2b   :  { %v1845_v61 = vmul.f32 %v1843_v46, %v1823_v20 }
0x1d2d   :  { %1847 = vrot.lane.b32.xlu2 %v1845_v61, %s2827_s13 }
0x1d87   :  { %v1848_v2 = vpop.permute.xlu2 %1847 }
0x1d88   :  { %2558 = vmatmul.msk.f32.vlgmr.msra.gmra.mxu0 %vm99_vm2, %v1848_v2  ;;  %2561 = vmatmul.msk.f32.vlgmr.msra.gmra.mxu3 %vm99_vm2, %v1848_v2 }
0x1d89   :  { %2562 = vmatmul.msk.f32.vlgmr.msra.gmra.mxu1 %vm99_vm2, %v1848_v2  ;;  %2128 = vmatpush.msra.mxu0 %v3762_v53 }
0x1d8a   :  { %2151 = vmatpush.msra.mxu1 %v3380_v13  ;;  %2171 = vmatpush.msra.mxu3 %v3532_v31  ;;  %v3786_v13 = vld [vmem:[%s3991_s5 + $0x28] sm:$0xff] }
0x1d8b   :  { %2129 = vmatpush.msra.mxu0 %v3770_v10 }
0x1d8c   :  { %2152 = vmatpush.msra.mxu1 %v3387_v14  ;;  %2172 = vmatpush.msra.mxu3 %v3540_v33  ;;  %v3792_v14 = vld [vmem:[%s3992_s4 + $0x20] sm:$0xff] }
0x1d8d   :  { %2130 = vmatpush.msra.mxu0 %v3778_v11 }
0x1d8e   :  { %2153 = vmatpush.msra.mxu1 %v3394_v15  ;;  %2173 = vmatpush.msra.mxu3 %v3548_v34 }
0x1d8f   :  { %2131 = vmatpush.msra.mxu0 %v3786_v13 }
0x1d90   :  { %2154 = vmatpush.msra.mxu1 %v3792_v14  ;;  %2174 = vmatpush.msra.mxu3 %v3556_v36 }
0x1d91   :  { %2132 = vmatpush.msra.mxu0 %v3456_v26  ;;  %v3810_v26 = vld [vmem:[%s3991_s5 + $0x50] sm:$0xff] }
0x1d92   :  { %2155 = vmatpush.msra.mxu1 %v3570_v12  ;;  %2175 = vmatpush.msra.mxu3 %v3564_v9 }
0x1d93   :  { %2133 = vmatpush.msra.mxu0 %v3468_v29 }
0x1d94   :  { %2156 = vmatpush.msra.mxu1 %v3583_v41  ;;  %2176 = vmatpush.msra.mxu3 %v3577_v40 }
0x1e05   :  { %v1868_v15 = vpop.f32.mrf.mxu0 }
0x1e06   :  { %v3803_v28 = vadd.f32 %v3590_v43, %v1868_v15 }
0x1e08   :  { %2560 = vmatmul.msk.f32.vlgmr.msrb.gmra.mxu2 %vm71_vm1, %v3803_v28 }
0x1e09   :  { %2108 = vmatpush.msrb.mxu2 %v3810_v26 }
0x1e0b   :  { %2109 = vmatpush.msrb.mxu2 %v3436_v23  ;;  %v1936_v23 = vpop.f32.mrf.mxu1 }
0x1e0d   :  { %2110 = vmatpush.msrb.mxu2 %v3443_v24 }
0x1e0f   :  { %2111 = vmatpush.msrb.mxu2 %v3450_v25 }
0x1e11   :  { %2112 = vmatpush.msrb.mxu2 %v3462_v27 }
0x1e13   :  { %2113 = vmatpush.msrb.mxu2 %v3474_v19  ;;  %v1916_v19 = vpop.f32.mrf.mxu3 }
0x1e8b   :  { %v1896_v29 = vpop.f32.mrf.mxu2 }
0x1e8c   :  { %v1897_v18 = vadd.f32 %v3491_v50, %v1896_v29 }
0x1e8e   :  { %2563 = vmatmul.msk.f32.vlgmr.msra.gmra.mxu2 %vm99_vm2, %v1897_v18  ;;  %2564 = vmatmul.msk.f32.vlgmr.msrb.gmra.mxu0 %vm99_vm2, %v1897_v18 }
0x1e8f   :  { %2259 = vmatpush.msra.mxu2 %v3499_v63  ;;  %2577 = vmatpush.msk.msrb.mxu0 %vm75_vm0, %v3427_v21 }
0x1e91   :  { %2260 = vmatpush.msra.mxu2 %v3507_v1 }
0x1e93   :  { %2261 = vmatpush.msra.mxu2 %v3613_v47 }
0x1e95   :  { %2262 = vmatpush.msra.mxu2 %v3619_v48 }
0x1e97   :  { %2263 = vmatpush.msra.mxu2 %v3625_v49 }
0x1e99   :  { %2264 = vmatpush.msra.mxu2 %v3631_v52 }
0x1f0b   :  { %v1979_v24 = vpop.f32.mrf.mxu0 }
0x1f0c   :  { %v1980_v25 = vadd.f32 %v1979_v24, %v1936_v23 }
0x1f0e   :  { %v1983_v27 = vadd.f32 %v1980_v25, %v3085_v39 }
0x1f10   :  { %2729 = vtanh.f32 %v1983_v27  ;;  %v2566_v15 = vmul.f32 -1.442695, %v1983_v27 }
0x1f11   :  { %v1959_v50 = vpop.f32.mrf.mxu2 }
0x1f12   :  { %v1960_v63 = vadd.f32 %v1959_v50, %v1916_v19 }
0x1f14   :  { %v1982_v21 = vadd.f32 %v1960_v63, %v3082_v32 }
0x1f16   :  { %v2730_v1 = vpop.eup %2729  ;;  %2731 = vtanh.f32 %v1982_v21  ;;  %v2565_v59 = vmul.f32 -1.442695, %v1982_v21 }
0x1f17   :  { %2029 = vrot.lane.b32.xlu1 %v2730_v1, %s2824_s21 }
0x1f18   :  { %2733 = vpow2.f32 %v2565_v59 }
0x1f1c   :  { %v2732_v54 = vpop.eup %2731 }
0x1f1d   :  { %2027 = vrot.lane.b32.xlu0 %v2732_v54, %s2824_s21 }
0x1f1e   :  { %v2734_v5 = vpop.eup %2733 }
0x1f1f   :  { %v1987_v8 = vadd.f32 1.0, %v2734_v5 }
0x1f21   :  { %2735 = vrcp.f32 %v1987_v8  ;;  %v1999_v57 = vand.u32 2147483648, %v1987_v8  ;;  %vm1993_vm3 = vweird.f32 %v1987_v8  ;;  %v1997_v6 = vand.u32 2147483647, %v1987_v8 }
0x1f23   :  { %v2000_v35 = vor.u32 1.1754944e-38, %v1999_v57  ;;  %vm1998_vm5 = vcmp.eq.f32.partialorder %v1997_v6, 8.507059e+37 }
0x1f27   :  { %v2736_v16 = vpop.eup %2735 }
0x1f28   :  { %v1989_v56 = vmul.f32 %v2736_v16, %v1987_v8  ;;  %vm1994_vm0 = vweird.f32 %v2736_v16  ;;  %v2810_v8 = vld [vmem:[%s3992_s4 + $0x50] sm:$0xff] }
0x1f29   :  { %vm1995_vm4 = vmor %vm1993_vm3, %vm1994_vm0 }
0x1f2a   :  { %v1990_v17 = vsub.f32 1.0, %v1989_v56 }
0x1f2c   :  { %v1991_v42 = vmul.f32 %v2736_v16, %v1990_v17 }
0x1f2e   :  { %v1992_v37 = vadd.f32 %v2736_v16, %v1991_v42 }
0x1f30   :  { %v1996_v38 = vsel %vm1995_vm4, %v2736_v16, %v1992_v37  ;;  %v2811_v16 = vld [vmem:[%s3992_s4 + $0x40] sm:$0xff] }
0x1f31   :  { %v2001_v58 = vsel %vm1998_vm5, %v2000_v35, %v1996_v38 }
0x1f32   :  { %v2024_v20 = vmul.f32 %v2001_v58, %v3751_v60 }
0x1f89   :  { %v2030_v4 = vpop.permute.xlu1 %2029 }
0x1f8f   :  { %v2028_v62 = vpop.permute.xlu0 %2027 }
0x1f90   :  { %v2031_v51 = vsel %vm240_vm6, %v2028_v62, %v2030_v4 }
0x1f91   :  { %v2033_v30 = vmul.f32 %v2031_v51, %v2001_v58 }
0x1f93   :  { %2035 = vrot.lane.b32.xlu2 %v2033_v30, %s2825_s6 }
0x1fed   :  { %v2036_v46 = vpop.permute.xlu2 %2035 }
0x1fee   :  { %v3836_v61 = vadd.f32 %v2036_v46, %v2024_v20 }
0x1ff0   :  { %2737 = vtanh.f32 %v3836_v61 }
0x1ff1   :  { %2739 = vpow2.f32 %v2566_v15 }
0x1ff6   :  { %v2738_v2 = vpop.eup %2737 }
0x1ff7   :  { %2041 = vrot.lane.b32.xlu0 %v2738_v2, %s2826_s1  ;;  %v2740_v29 = vpop.eup %2739 }
0x1ff8   :  { %v2008_v18 = vadd.f32 1.0, %v2740_v29 }
0x1ffa   :  { %2741 = vrcp.f32 %v2008_v18  ;;  %v2020_v60 = vand.u32 2147483648, %v2008_v18  ;;  %vm2014_vm8 = vweird.f32 %v2008_v18  ;;  %v2018_v63 = vand.u32 2147483647, %v2008_v18 }
0x1ffc   :  { %v2021_v1 = vor.u32 1.1754944e-38, %v2020_v60  ;;  %vm2019_vm10 = vcmp.eq.f32.partialorder %v2018_v63, 8.507059e+37 }
0x2000   :  { %v2742_v23 = vpop.eup %2741 }
0x2001   :  { %v2010_v24 = vmul.f32 %v2742_v23, %v2008_v18  ;;  %vm2015_vm7 = vweird.f32 %v2742_v23 }
0x2002   :  { %vm2016_vm9 = vmor %vm2014_vm8, %vm2015_vm7 }
0x2003   :  { %v2011_v25 = vsub.f32 1.0, %v2010_v24 }
0x2005   :  { %v2012_v19 = vmul.f32 %v2742_v23, %v2011_v25 }
0x2007   :  { %v2013_v50 = vadd.f32 %v2742_v23, %v2012_v19 }
0x2009   :  { %v2017_v21 = vsel %vm2016_vm9, %v2742_v23, %v2013_v50 }
0x200a   :  { %v2022_v54 = vsel %vm2019_vm10, %v2021_v1, %v2017_v21 }
0x2069   :  { %v2042_v59 = vpop.permute.xlu0 %2041 }
0x206a   :  { %v2044_v27 = vmul.f32 %v2042_v59, %v2022_v54 }
0x206c   :  { %2046 = vrot.lane.b32.xlu1 %v2044_v27, %s2827_s13 }
0x20de   :  { %v2047_v5 = vpop.permute.xlu1 %2046 }
0x20df   :  { %2567 = vmatmul.msk.f32.vlgmr.msrb.gmra.mxu3 %vm99_vm2, %v2047_v5  ;;  %2570 = vmatmul.msk.f32.vlgmr.msrb.gmra.mxu2 %vm99_vm2, %v2047_v5 }
0x20e0   :  { %2571 = vmatmul.msk.f32.vlgmr.msra.gmra.mxu0 %vm99_vm2, %v2047_v5  ;;  %2327 = vmatpush.msrb.mxu3 %v3762_v53  ;;  %v2812_v53 = vld [vmem:[%s3992_s4 + $0x30] sm:$0xff] }
0x20e1   :  { %2350 = vmatpush.msra.mxu0 %v2810_v8  ;;  %2370 = vmatpush.msrb.mxu2 %v3532_v31  ;;  %v2813_v31 = vld [vmem:[%s3991_s5 + $0x18] sm:$0xff] }
0x20e2   :  { %2328 = vmatpush.msrb.mxu3 %v3770_v10 }
0x20e3   :  { %2351 = vmatpush.msra.mxu0 %v2811_v16  ;;  %2371 = vmatpush.msrb.mxu2 %v3540_v33  ;;  %v2814_v33 = vld [vmem:[%s3991_s5 + $0x8] sm:$0xff] }
0x20e4   :  { %2329 = vmatpush.msrb.mxu3 %v3778_v11  ;;  %v3896_v11 = vld [vmem:[%s3993_s3] ss:$0 sm:$0xff] }
0x20e5   :  { %2352 = vmatpush.msra.mxu0 %v2812_v53  ;;  %2372 = vmatpush.msrb.mxu2 %v3548_v34 }
0x20e6   :  { %2330 = vmatpush.msrb.mxu3 %v3786_v13 }
0x20e7   :  { %2353 = vmatpush.msra.mxu0 %v3792_v14  ;;  %2373 = vmatpush.msrb.mxu2 %v3556_v36  ;;  %v2821_v14 = vld [vmem:[%s3997_s7 + $0x28] sm:$0xff] }
0x20e8   :  { %2331 = vmatpush.msrb.mxu3 %v2813_v31 }
0x20e9   :  { %2354 = vmatpush.msra.mxu0 %v3570_v12  ;;  %2374 = vmatpush.msrb.mxu2 %v3564_v9  ;;  %v2815_v9 = vld [vmem:[%s3991_s5 + $0x40] sm:$0xff]  ;;  %v2816_v12 = vld [vmem:[%s3991_s5 + $0x30] sm:$0xff] }
0x20ea   :  { %2332 = vmatpush.msrb.mxu3 %v2814_v33 }
0x20eb   :  { %2355 = vmatpush.msra.mxu0 %v3583_v41  ;;  %2375 = vmatpush.msrb.mxu2 %v3577_v40  ;;  %v2817_v40 = vld [vmem:[%s3991_s5 + $0x20] sm:$0xff]  ;;  %v2818_v41 = vld [vmem:[%s3991_s5 + $0x10] sm:$0xff] }
0x215d   :  { %v2135_v57 = vpop.f32.mrf.mxu0 }
0x2162   :  { %v2067_v34 = vpop.f32.mrf.mxu3  ;;  %v2115_v56 = vpop.f32.mrf.mxu2 }
0x2163   :  { %v3873_v36 = vadd.f32 %v3590_v43, %v2067_v34  ;;  %v2819_v43 = vld [vmem:[%s3991_s5] sm:$0xff] }
0x2165   :  { %2569 = vmatmul.msk.f32.vlgmr.msrb.gmra.mxu1 %vm71_vm1, %v3873_v36 }
0x2166   :  { %2307 = vmatpush.msrb.mxu1 %v3810_v26  ;;  %v2822_v26 = vld [vmem:[%s3997_s7 + $0x20] sm:$0xff] }
0x2168   :  { %2308 = vmatpush.msrb.mxu1 %v2815_v9 }
0x216a   :  { %2309 = vmatpush.msrb.mxu1 %v2816_v12 }
0x216c   :  { %2310 = vmatpush.msrb.mxu1 %v2817_v40 }
0x216e   :  { %2311 = vmatpush.msrb.mxu1 %v2818_v41 }
0x2170   :  { %2312 = vmatpush.msrb.mxu1 %v2819_v43 }
0x21e2   :  { %v2095_v10 = vpop.f32.mrf.mxu1 }
0x21e3   :  { %v2096_v13 = vadd.f32 %v3896_v11, %v2095_v10  ;;  %v3929_v10 = vld [vmem:[%s3996_s8] ss:$0 sm:$0xff]  ;;  %s2828_s8 = smov 2  }
0x21e5   :  { %2572 = vmatmul.msk.f32.vlgmr.msra.gmra.mxu1 %vm99_vm2, %v2096_v13  ;;  %2573 = vmatmul.msk.f32.vlgmr.msra.gmra.mxu3 %vm99_vm2, %v2096_v13 }
0x21e6   :  { %2458 = vmatpush.msra.mxu1 %v2821_v14 }
0x21e8   :  { %2459 = vmatpush.msra.mxu1 %v2822_v26 }
0x21ea   :  { %2460 = vmatpush.msra.mxu1 %v3613_v47 }
0x21ec   :  { %2461 = vmatpush.msra.mxu1 %v3619_v48 }
0x21ee   :  { %2462 = vmatpush.msra.mxu1 %v3625_v49 }
0x21f0   :  { %2463 = vmatpush.msra.mxu1 %v3631_v52 }
0x2262   :  { %v2158_v17 = vpop.f32.mrf.mxu1 }
0x2263   :  { %v2159_v42 = vadd.f32 %v2158_v17, %v2115_v56 }
0x2265   :  { %v2181_v37 = vadd.f32 %v2159_v42, %v3082_v32 }
0x2267   :  { %2743 = vtanh.f32 %v2181_v37  ;;  %v2574_v48 = vmul.f32 -1.442695, %v2181_v37 }
0x2268   :  { %v2178_v6 = vpop.f32.mrf.mxu3 }
0x2269   :  { %v2179_v38 = vadd.f32 %v2178_v6, %v2135_v57 }
0x226b   :  { %v2182_v35 = vadd.f32 %v2179_v38, %v3085_v39 }
0x226d   :  { %v2744_v4 = vpop.eup %2743  ;;  %2745 = vtanh.f32 %v2182_v35  ;;  %v2575_v1 = vmul.f32 -1.442695, %v2182_v35 }
0x226e   :  { %2226 = vrot.lane.b32.xlu2 %v2744_v4, %s2824_s21  ;;  %2747 = vpow2.f32 %v2574_v48 }
0x2273   :  { %v2746_v47 = vpop.eup %2745 }
0x2274   :  { %2228 = vrot.lane.b32.xlu0 %v2746_v47, %s2824_s21  ;;  %v2748_v49 = vpop.eup %2747 }
0x2275   :  { %v2186_v52 = vadd.f32 1.0, %v2748_v49 }
0x2277   :  { %2749 = vrcp.f32 %v2186_v52  ;;  %v2198_v46 = vand.u32 2147483648, %v2186_v52  ;;  %vm2192_vm12 = vweird.f32 %v2186_v52  ;;  %v2196_v2 = vand.u32 2147483647, %v2186_v52 }
0x2279   :  { %v2199_v29 = vor.u32 1.1754944e-38, %v2198_v46  ;;  %vm2197_vm14 = vcmp.eq.f32.partialorder %v2196_v2, 8.507059e+37 }
0x227d   :  { %v2750_v62 = vpop.eup %2749 }
0x227e   :  { %v2188_v58 = vmul.f32 %v2750_v62, %v2186_v52  ;;  %vm2193_vm11 = vweird.f32 %v2750_v62 }
0x227f   :  { %vm2194_vm13 = vmor %vm2192_vm12, %vm2193_vm11 }
0x2280   :  { %v2189_v51 = vsub.f32 1.0, %v2188_v58 }
0x2282   :  { %v2190_v30 = vmul.f32 %v2750_v62, %v2189_v51 }
0x2284   :  { %v2191_v20 = vadd.f32 %v2750_v62, %v2190_v30 }
0x2286   :  { %v2195_v15 = vsel %vm2194_vm13, %v2750_v62, %v2191_v20  ;;  %vm681_vm13 = vcmask 48160  }
0x2287   :  { %v2200_v24 = vsel %vm2197_vm14, %v2199_v29, %v2195_v15  ;;  %vm880_vm14 = vcmask 64560  }
0x2288   :  { %v2223_v50 = vmul.f32 %v2200_v24, %v3836_v61 }
0x22c8   :  { %v2227_v18 = vpop.permute.xlu2 %2226 }
0x22e6   :  { %v2229_v23 = vpop.permute.xlu0 %2228 }
0x22e7   :  { %v2230_v25 = vsel %vm240_vm6, %v2227_v18, %v2229_v23 }
0x22e8   :  { %v2232_v19 = vmul.f32 %v2230_v25, %v2200_v24 }
0x22ea   :  { %2234 = vrot.lane.b32.xlu1 %v2232_v19, %s2825_s6 }
0x235c   :  { %v2235_v60 = vpop.permute.xlu1 %2234 }
0x235d   :  { %v3918_v63 = vadd.f32 %v2235_v60, %v2223_v50 }
0x235f   :  { %2751 = vtanh.f32 %v3918_v63 }
0x2360   :  { %2753 = vpow2.f32 %v2575_v1 }
0x2365   :  { %v2752_v21 = vpop.eup %2751 }
0x2366   :  { %2240 = vrot.lane.b32.xlu2 %v2752_v21, %s2826_s1  ;;  %v2754_v54 = vpop.eup %2753 }
0x2367   :  { %v2207_v59 = vadd.f32 1.0, %v2754_v54 }
0x2369   :  { %2755 = vrcp.f32 %v2207_v59  ;;  %v2219_v61 = vand.u32 2147483648, %v2207_v59  ;;  %vm2213_vm0 = vweird.f32 %v2207_v59  ;;  %v2217_v31 = vand.u32 2147483647, %v2207_v59 }
0x236b   :  { %v2220_v34 = vor.u32 1.1754944e-38, %v2219_v61  ;;  %vm2218_vm4 = vcmp.eq.f32.partialorder %v2217_v31, 8.507059e+37 }
0x236f   :  { %v2756_v27 = vpop.eup %2755 }
0x2370   :  { %v2209_v5 = vmul.f32 %v2756_v27, %v2207_v59  ;;  %vm2214_vm15 = vweird.f32 %v2756_v27 }
0x2371   :  { %vm2215_vm3 = vmor %vm2213_vm0, %vm2214_vm15  ;;  %vm1079_vm15 = vcmask 80960   ;;  %vm1278_vm0 = vcmask 97360  }
0x2372   :  { %v2210_v8 = vsub.f32 1.0, %v2209_v5 }
0x2374   :  { %v2211_v16 = vmul.f32 %v2756_v27, %v2210_v8 }
0x2376   :  { %v2212_v53 = vadd.f32 %v2756_v27, %v2211_v16 }
0x2378   :  { %v2216_v33 = vsel %vm2215_vm3, %v2756_v27, %v2212_v53  ;;  %vm1477_vm3 = vcmask 113760  }
0x2379   :  { %v2221_v9 = vsel %vm2218_vm4, %v2220_v34, %v2216_v33  ;;  %vm1875_vm4 = vcmask 146560  }
0x23c0   :  { %v2241_v12 = vpop.permute.xlu2 %2240 }
0x23c1   :  { %v2243_v40 = vmul.f32 %v2241_v12, %v2221_v9 }
0x23c3   :  { %2245 = vrot.lane.b32.xlu0 %v2243_v40, %s2827_s13 }
0x2435   :  { %v2246_v41 = vpop.permute.xlu0 %2245 }
0x2436   :  { %2576 = vmatmul.msk.f32.vlgmr.msra.gmra.mxu2 %vm99_vm2, %v2246_v41  ;;  %2579 = vmatmul.msk.f32.vlgmr.msrb.gmra.mxu1 %vm99_vm2, %v2246_v41 }
0x2437   :  { %2580 = vmatmul.msk.f32.vlgmr.msrb.gmra.mxu3 %vm99_vm2, %v2246_v41 }
0x24b3   :  { %v2314_v56 = vpop.f32.mrf.mxu1 }
0x24b9   :  { %v2266_v43 = vpop.f32.mrf.mxu2 }
0x24ba   :  { %v2267_v13 = vadd.f32 %v3929_v10, %v2266_v43  ;;  %v2334_v57 = vpop.f32.mrf.mxu3 }
0x24bc   :  { %2578 = vmatmul.msk.f32.vlgmr.msrb.gmra.mxu0 %vm71_vm1, %v2267_v13 }
0x2539   :  { %v2294_v14 = vpop.f32.mrf.mxu0 }
0x253a   :  { %v2295_v26 = vadd.f32 %v3896_v11, %v2294_v14 }
0x253c   :  { %2581 = vmatmul.msk.f32.vlgmr.msra.gmra.mxu0 %vm99_vm2, %v2295_v26  ;;  %2582 = vmatmul.msk.f32.vlgmr.msrb.gmra.mxu2 %vm99_vm2, %v2295_v26 }
0x25b9   :  { %v2357_v17 = vpop.f32.mrf.mxu0 }
0x25ba   :  { %v2358_v42 = vadd.f32 %v2357_v17, %v2314_v56 }
0x25bc   :  { %v2380_v37 = vadd.f32 %v2358_v42, %v3082_v32 }
0x25be   :  { %2757 = vtanh.f32 %v2380_v37  ;;  %v2583_v47 = vmul.f32 -1.442695, %v2380_v37 }
0x25bf   :  { %v2377_v6 = vpop.f32.mrf.mxu2 }
0x25c0   :  { %v2378_v38 = vadd.f32 %v2377_v6, %v2334_v57 }
0x25c2   :  { %v2381_v35 = vadd.f32 %v2378_v38, %v3085_v39 }
0x25c4   :  { %v2758_v4 = vpop.eup %2757  ;;  %2759 = vtanh.f32 %v2381_v35 }
0x25c5   :  { %2425 = vrot.lane.b32.xlu1 %v2758_v4, %s2824_s21  ;;  %2761 = vpow2.f32 %v2583_v47 }
0x25ca   :  { %v2760_v11 = vpop.eup %2759 }
0x25cb   :  { %2427 = vrot.lane.b32.xlu2 %v2760_v11, %s2824_s21  ;;  %v2762_v48 = vpop.eup %2761  ;;  %s2829_s21 = smov 8  }
0x25cc   :  { %v2385_v49 = vadd.f32 1.0, %v2762_v48 }
0x25ce   :  { %2763 = vrcp.f32 %v2385_v49  ;;  %v2397_v30 = vand.u32 2147483648, %v2385_v49  ;;  %vm2391_vm5 = vweird.f32 %v2385_v49  ;;  %v2395_v39 = vand.u32 2147483647, %v2385_v49 }
0x25d0   :  { %v2398_v46 = vor.u32 1.1754944e-38, %v2397_v30  ;;  %vm2396_vm8 = vcmp.eq.f32.partialorder %v2395_v39, 8.507059e+37 }
0x25d4   :  { %v2764_v52 = vpop.eup %2763 }
0x25d5   :  { %v2387_v32 = vmul.f32 %v2764_v52, %v2385_v49  ;;  %vm2392_vm1 = vweird.f32 %v2764_v52 }
0x25d6   :  { %vm2393_vm7 = vmor %vm2391_vm5, %vm2392_vm1  ;;  %vm2074_vm1 = vcmask 162960   ;;  %vm2273_vm5 = vcmask 179360  }
0x25d7   :  { %v2388_v62 = vsub.f32 1.0, %v2387_v32 }
0x25d9   :  { %v2389_v58 = vmul.f32 %v2764_v52, %v2388_v62 }
0x25db   :  { %v2390_v51 = vadd.f32 %v2764_v52, %v2389_v58 }
0x25dd   :  { %v2394_v20 = vsel %vm2393_vm7, %v2764_v52, %v2390_v51  ;;  %vm2472_vm7 = vcmask 195760  }
0x25de   :  { %v2399_v29 = vsel %vm2396_vm8, %v2398_v46, %v2394_v20 }
0x25df   :  { %v2422_v24 = vmul.f32 %v2399_v29, %v3918_v63 }
0x2625   :  { %v2428_v2 = vpop.permute.xlu2 %2427 }
0x2637   :  { %v2426_v15 = vpop.permute.xlu1 %2425 }
0x2638   :  { %v2429_v18 = vsel %vm240_vm6, %v2426_v15, %v2428_v2  ;;  %vm482_vm6 = vcmask 31760  }
0x2639   :  { %v2431_v23 = vmul.f32 %v2429_v18, %v2399_v29 }
0x263b   :  { %2433 = vrot.lane.b32.xlu0 %v2431_v23, %s2825_s6 }
0x2643   :  { %479 = vrot.lane.b32.xlu0 %v3225_v45, %s2828_s8  ;;  %v2584_v45 = vmul.f32 -1.442695, %v2381_v35  ;;  %s2838_s8 = smov 22  }
0x264b   :  { %1076 = vrot.lane.b32.xlu0 %v3478_v22, %s2829_s21 }
0x2653   :  { %1673 = vrot.lane.b32.xlu0 %v3723_v55, %s2830_s16 }
0x265b   :  { %2270 = vrot.lane.b32.xlu0 %v2267_v13, %s2831_s17 }
0x26ad   :  { %v2434_v25 = vpop.permute.xlu0 %2433 }
0x26ae   :  { %v2436_v19 = vadd.f32 %v2434_v25, %v2422_v24 }
0x26b0   :  { %2765 = vtanh.f32 %v2436_v19 }
0x26b1   :  { %2767 = vpow2.f32 %v2584_v45 }
0x26b5   :  { %v480_v50 = vpop.permute.xlu0 %479 }
0x26b6   :  { %v2766_v60 = vpop.eup %2765  ;;  %483 = vst.msk [vmem:[%s3998_s9] sm:$0xff] %vm482_vm6, %v480_v50 }
0x26b7   :  { %2439 = vrot.lane.b32.xlu1 %v2766_v60, %s2826_s1  ;;  %v2768_v22 = vpop.eup %2767 }
0x26b8   :  { %v2406_v55 = vadd.f32 1.0, %v2768_v22 }
0x26ba   :  { %2769 = vrcp.f32 %v2406_v55  ;;  %v2418_v27 = vand.u32 2147483648, %v2406_v55  ;;  %vm2412_vm10 = vweird.f32 %v2406_v55 }
0x26bd   :  { %v1077_v31 = vpop.permute.xlu0 %1076 }
0x26bf   :  { %678 = vrot.lane.b32.xlu1 %v3283_v3, %s2832_s0  ;;  %v2416_v3 = vand.u32 2147483647, %v2406_v55 }
0x26c0   :  { %v2770_v63 = vpop.eup %2769 }
0x26c1   :  { %v2408_v21 = vmul.f32 %v2770_v63, %v2406_v55  ;;  %vm2413_vm9 = vweird.f32 %v2770_v63  ;;  %vm2417_vm12 = vcmp.eq.f32.partialorder %v2416_v3, 8.507059e+37 }
0x26c2   :  { %vm2414_vm11 = vmor %vm2412_vm10, %vm2413_vm9 }
0x26c3   :  { %v2409_v1 = vsub.f32 1.0, %v2408_v21 }
0x26c5   :  { %v2410_v54 = vmul.f32 %v2770_v63, %v2409_v1 }
0x26c7   :  { %1275 = vrot.lane.b32.xlu1 %v3593_v44, %s2833_s19  ;;  %v2411_v59 = vadd.f32 %v2770_v63, %v2410_v54  ;;  %v2419_v44 = vor.u32 1.1754944e-38, %v2418_v27 }
0x26c9   :  { %v2415_v5 = vsel %vm2414_vm11, %v2770_v63, %v2411_v59 }
0x26ca   :  { %v2420_v8 = vsel %vm2417_vm12, %v2419_v44, %v2415_v5 }
0x26cf   :  { %1872 = vrot.lane.b32.xlu1 %v3803_v28, %s2834_s20 }
0x2729   :  { %v2440_v28 = vpop.permute.xlu1 %2439 }
0x272a   :  { %v2442_v16 = vmul.f32 %v2440_v28, %v2420_v8 }
0x272c   :  { %2444 = vrot.lane.b32.xlu2 %v2442_v16, %s2827_s13 }
0x2731   :  { %v679_v53 = vpop.permute.xlu1 %678 }
0x2732   :  { %682 = vst.msk [vmem:[%s3998_s9] sm:$0xff] %vm681_vm13, %v679_v53 }
0x2734   :  { %877 = vrot.lane.b32.xlu2 %v3358_v7, %s2835_s2  ;;  %v1674_v7 = vpop.permute.xlu0 %1673 }
0x2739   :  { %v1276_v33 = vpop.permute.xlu1 %1275 }
0x273c   :  { %1474 = vrot.lane.b32.xlu2 %v3668_v0, %s2836_s22  ;;  %v2271_v12 = vpop.permute.xlu0 %2270 }
0x2744   :  { %2071 = vrot.lane.b32.xlu2 %v3873_v36, %s2837_s23  ;;  %v1873_v36 = vpop.permute.xlu1 %1872 }
0x2786   :  { %v2445_v61 = vpop.permute.xlu2 %2444 }
0x2787   :  { %2585 = vmatmul.msk.f32.vlgmr.msra.gmra.mxu1 %vm99_vm2, %v2445_v61  ;;  %vm1676_vm2 = vcmask 130160  }
0x278e   :  { %v878_v34 = vpop.permute.xlu2 %877 }
0x278f   :  { %881 = vst.msk [vmem:[%s3998_s9] sm:$0xff] %vm880_vm14, %v878_v34 }
0x2790   :  { %1080 = vst.msk [vmem:[%s3998_s9] sm:$0xff] %vm1079_vm15, %v1077_v31 }
0x2791   :  { %1279 = vst.msk [vmem:[%s3998_s9] sm:$0xff] %vm1278_vm0, %v1276_v33 }
0x2796   :  { %v1475_v0 = vpop.permute.xlu2 %1474 }
0x2797   :  { %1478 = vst.msk [vmem:[%s3998_s9] sm:$0xff] %vm1477_vm3, %v1475_v0 }
0x2798   :  { %1677 = vst.msk [vmem:[%s3998_s9] sm:$0xff] %vm1676_vm2, %v1674_v7 }
0x2799   :  { %1876 = vst.msk [vmem:[%s3998_s9] sm:$0xff] %vm1875_vm4, %v1873_v36 }
0x279e   :  { %v2072_v9 = vpop.permute.xlu2 %2071 }
0x279f   :  { %2075 = vst.msk [vmem:[%s3998_s9] sm:$0xff] %vm2074_vm1, %v2072_v9 }
0x27a0   :  { %2274 = vst.msk [vmem:[%s3998_s9] sm:$0xff] %vm2273_vm5, %v2271_v12 }
0x2804   :  { %v2465_v40 = vpop.f32.mrf.mxu1 }
0x2805   :  { %v2466_v41 = vadd.f32 %v3929_v10, %v2465_v40 }
0x2807   :  { %2469 = vrot.lane.b32.xlu1 %v2466_v41, %s2838_s8 }
0x2879   :  { %v2470_v43 = vpop.permute.xlu1 %2469 }
0x287a   :  { %2473 = vst.msk [vmem:[%s3998_s9] sm:$0xff] %vm2472_vm7, %v2470_v43 }

</bundles_post_ra>
